<compile_context>
chip_gen: v6e
topology: v6e:2x2x1
jax: 0.10.0
libtpu: 0.0.40
codegen_flags: <defaults>
</compile_context>

<pallas_src>
import functools

import jax
import jax.numpy as jnp
from jax.experimental import pallas as pl
from jax.experimental.pallas import tpu as pltpu


def _round_up(x, m):
    return ((x + m - 1) // m) * m


def _cdiv(a, b):
    return -(-a // b)


# ----------------------------------------------------------------------------
# Pallas kernel: tiled  out = relu?(x @ w + b)
# bf16 operands, f32 VMEM accumulator across the K grid axis.
# ----------------------------------------------------------------------------
def _matmul_bias_kernel(x_ref, w_ref, b_ref, o_ref, acc_ref, *, relu):
    @pl.when(pl.program_id(1) == 0)
    def _():
        acc_ref[...] = jnp.zeros_like(acc_ref)

    acc_ref[...] += jnp.dot(x_ref[...], w_ref[...],
                            preferred_element_type=jnp.float32)

    @pl.when(pl.program_id(1) == pl.num_programs(1) - 1)
    def _():
        acc = acc_ref[...] + b_ref[...]          # (1, Np) broadcasts over rows
        if relu:
            acc = jnp.maximum(acc, 0.0)          # fused ReLU (VPU slack)
        o_ref[...] = acc.astype(o_ref.dtype)


def pallas_matmul_bias(x, w_p, b_p, *, relu, out_dtype, m_steps, k_splits):
    """x: (M, K) bf16 (un-padded), w_p: (k_pad, n_pad) pre-packed, b_p: (1, n_pad) f32.
    Returns the padded (m_pad, n_pad) result; caller slices."""
    M, K = x.shape
    k_pad, n_pad = w_p.shape
    assert k_pad % k_splits == 0
    tk = k_pad // k_splits
    # Small, even step count: amortizes ~0.35us/step overhead and keeps the
    # "parallel" M axis evenly sharded across v7x's two TensorCores.
    tm = _round_up(max(8, _cdiv(M, m_steps)), 8)
    m_pad = _round_up(M, tm)

    x_p = jnp.pad(x, ((0, m_pad - M), (0, k_pad - K)))   # stays bf16

    out = pl.pallas_call(
        functools.partial(_matmul_bias_kernel, relu=relu),
        out_shape=jax.ShapeDtypeStruct((m_pad, n_pad), out_dtype),
        grid_spec=pltpu.PrefetchScalarGridSpec(
            num_scalar_prefetch=0,
            grid=(m_pad // tm, k_splits),
            in_specs=[
                pl.BlockSpec((tm, tk), lambda i, k: (i, k)),
                pl.BlockSpec((tk, n_pad), lambda i, k: (k, 0)),
                pl.BlockSpec((1, n_pad), lambda i, k: (0, 0)),
            ],
            out_specs=pl.BlockSpec((tm, n_pad), lambda i, k: (i, 0)),
            scratch_shapes=[pltpu.VMEM((tm, n_pad), jnp.float32)],
        ),
        compiler_params=pltpu.CompilerParams(
            dimension_semantics=("parallel", "arbitrary"),
            vmem_limit_bytes=32 << 20,
        ),
    )(x_p, w_p, b_p)
    return out


# ----------------------------------------------------------------------------
# Pallas kernel: fused fc_loc  theta = relu(x @ w1 + b1) @ w2 + b2
# x / w1 in bf16 (dominant DMA), biases and w2 in f32; M padded only to 8.
# ----------------------------------------------------------------------------
def _fc_loc_kernel(x_ref, w1_ref, b1_ref, w2_ref, b2_ref, o_ref):
    h = jnp.dot(x_ref[...], w1_ref[...], preferred_element_type=jnp.float32)
    h = jnp.maximum(h + b1_ref[...], 0.0)
    t = jnp.dot(h, w2_ref[...], preferred_element_type=jnp.float32) + b2_ref[...]
    o_ref[...] = t


def pallas_fc_loc(xs, fc_packed, *, n_out=6):
    w1p, b1p, w2p, b2p = fc_packed
    M, K = xs.shape
    k_pad, h_pad = w1p.shape
    n_pad = w2p.shape[1]
    m_pad = _round_up(M, 8)
    x_p = jnp.pad(xs.astype(jnp.bfloat16), ((0, m_pad - M), (0, k_pad - K)))

    out = pl.pallas_call(
        _fc_loc_kernel,
        out_shape=jax.ShapeDtypeStruct((m_pad, n_pad), jnp.float32),
        grid_spec=pltpu.PrefetchScalarGridSpec(
            num_scalar_prefetch=0,
            grid=(1,),
            in_specs=[
                pl.BlockSpec((m_pad, k_pad), lambda i: (0, 0)),
                pl.BlockSpec((k_pad, h_pad), lambda i: (0, 0)),
                pl.BlockSpec((1, h_pad), lambda i: (0, 0)),
                pl.BlockSpec((h_pad, n_pad), lambda i: (0, 0)),
                pl.BlockSpec((1, n_pad), lambda i: (0, 0)),
            ],
            out_specs=pl.BlockSpec((m_pad, n_pad), lambda i: (0, 0)),
        ),
        compiler_params=pltpu.CompilerParams(
            dimension_semantics=("arbitrary",),
            vmem_limit_bytes=32 << 20,
        ),
    )(x_p, w1p, b1p, w2p, b2p)
    return out[:M, :n_out]


# ----------------------------------------------------------------------------
# One-time weight packing (done once at init, outside the jitted forward):
# transpose to (KH*KW*Cin, Cout), pad K/N to lane-friendly sizes, cast to bf16.
# ----------------------------------------------------------------------------
def pack_conv(w_oihw, b, *, k_splits=1, in_dtype=jnp.bfloat16):
    cout, cin, kh, kw = w_oihw.shape
    K = kh * kw * cin
    k_base = _round_up(K, 128)
    tk = _round_up(_cdiv(k_base, k_splits), 128)
    k_pad = tk * k_splits
    n_pad = _round_up(cout, 128)
    w_mat = jnp.transpose(w_oihw, (2, 3, 1, 0)).reshape(K, cout)
    w_p = jnp.pad(w_mat, ((0, k_pad - K), (0, n_pad - cout))).astype(in_dtype)
    b_p = jnp.pad(b, (0, n_pad - cout)).reshape(1, n_pad).astype(jnp.float32)
    return w_p, b_p


def pack_fc(w1, b1, w2, b2):
    h, k = w1.shape
    n = w2.shape[0]
    k_pad = _round_up(k, 128)
    h_pad = _round_up(h, 128)
    n_pad = _round_up(n, 128)
    w1p = jnp.pad(w1.T, ((0, k_pad - k), (0, h_pad - h))).astype(jnp.bfloat16)
    b1p = jnp.pad(b1, (0, h_pad - h)).reshape(1, h_pad).astype(jnp.float32)
    w2p = jnp.pad(w2.T, ((0, h_pad - h), (0, n_pad - n))).astype(jnp.float32)
    b2p = jnp.pad(b2, (0, n_pad - n)).reshape(1, n_pad).astype(jnp.float32)
    return w1p, b1p, w2p, b2p


def pack_params(params):
    return {
        "conv1": pack_conv(params["conv1_w"], params["conv1_b"], k_splits=1),
        "conv2": pack_conv(params["conv2_w"], params["conv2_b"], k_splits=2),
        "model": pack_conv(params["model_w"], params["model_b"], k_splits=1),
        "fc": pack_fc(params["fc1_w"], params["fc1_b"],
                      params["fc2_w"], params["fc2_b"]),
    }


# ----------------------------------------------------------------------------
# Conv2d (valid padding, stride 1) = bf16 im2col (JAX glue) + Pallas matmul
# ----------------------------------------------------------------------------
def conv2d_pallas(x_nhwc, w_p, b_p, *, kh, kw, cout, k_splits=1, relu=False,
                  out_dtype=jnp.float32, m_steps=4):
    # TODO(synk): the (kh,kw) reduction could be streamed through a grid axis
    # (pl.Element row offsets into the NHWC input) to avoid materializing the
    # im2col patches in HBM; kept as JAX glue since the bf16 patch tensors are
    # only a few MB at these shapes.
    x = x_nhwc.astype(jnp.bfloat16)     # cast BEFORE im2col: slices/concat/pad in bf16
    N, H, W, cin = x.shape
    Ho, Wo = H - kh + 1, W - kw + 1
    K = kh * kw * cin
    cols = [x[:, i:i + Ho, j:j + Wo, :] for i in range(kh) for j in range(kw)]
    patches = jnp.concatenate(cols, axis=-1).reshape(N * Ho * Wo, K)
    out = pallas_matmul_bias(patches, w_p, b_p, relu=relu, out_dtype=out_dtype,
                             m_steps=m_steps, k_splits=k_splits)
    return out[:N * Ho * Wo, :cout].reshape(N, Ho, Wo, cout)


def maxpool2d(x_nhwc, k=3, s=2):
    # TODO(synk): strided 3x3 max-pool kept as lax.reduce_window (no clean Pallas strided-slice path).
    init = jnp.array(-jnp.inf, dtype=x_nhwc.dtype)
    return jax.lax.reduce_window(
        x_nhwc, init, jax.lax.max, (1, k, k, 1), (1, s, s, 1), "VALID"
    )


# ----------------------------------------------------------------------------
# affine_grid + grid_sample (align_corners=True, zeros padding) -- JAX glue
# ----------------------------------------------------------------------------
def affine_grid(theta, size):
    N, C, H, W = size
    xs = jnp.linspace(-1.0, 1.0, W)
    ys = jnp.linspace(-1.0, 1.0, H)
    bx, by = jnp.meshgrid(xs, ys)                         # (H, W)
    base = jnp.stack([bx, by, jnp.ones_like(bx)], -1)     # (H, W, 3)
    return jnp.einsum("hwk,nak->nhwa", base, theta)       # (N, H, W, 2)


def grid_sample_bilinear_nhwc(x_nhwc, grid):
    # TODO(synk): data-dependent bilinear gather kept in plain JAX (one fused
    # take_along_axis over all 4 taps) -- no clean Pallas dynamic-gather path.
    # Gather runs along the ROW (sublane) axis with C on lanes (NHWC).
    N, H, W, C = x_nhwc.shape
    gx = (grid[..., 0] + 1.0) * 0.5 * (W - 1)
    gy = (grid[..., 1] + 1.0) * 0.5 * (H - 1)
    x0 = jnp.floor(gx)
    y0 = jnp.floor(gy)
    x1, y1 = x0 + 1.0, y0 + 1.0
    wx1, wy1 = gx - x0, gy - y0
    wx0, wy0 = 1.0 - wx1, 1.0 - wy1

    def tap(xi, yi, wx, wy):
        valid = (xi >= 0) & (xi <= W - 1) & (yi >= 0) & (yi <= H - 1)
        xic = jnp.clip(xi, 0, W - 1).astype(jnp.int32)
        yic = jnp.clip(yi, 0, H - 1).astype(jnp.int32)
        flat = yic * W + xic                              # (N, H, W)
        wgt = jnp.where(valid, wx * wy, 0.0)              # zeros padding
        return flat, wgt

    taps = [tap(x0, y0, wx0, wy0), tap(x1, y0, wx1, wy0),
            tap(x0, y1, wx0, wy1), tap(x1, y1, wx1, wy1)]
    idx_all = jnp.stack([t[0] for t in taps], axis=1).reshape(N, 4 * H * W)
    w_all = jnp.stack([t[1] for t in taps], axis=1).reshape(N, 4 * H * W, 1)

    img_rows = x_nhwc.reshape(N, H * W, C)
    vals = jnp.take_along_axis(img_rows, idx_all[..., None], axis=1)  # row gather
    return (vals * w_all).reshape(N, 4, H, W, C).sum(axis=1)          # (N, H, W, C)


# ----------------------------------------------------------------------------
# Morphics forward
# ----------------------------------------------------------------------------
def localization_pallas(packed, x_nhwc):
    # Conv -> MaxPool -> ReLU (x2). ReLU fused into the conv kernel and hoisted
    # past the maxpool (monotonicity => identical result). Intermediates bf16.
    w1, b1 = packed["conv1"]
    h = conv2d_pallas(x_nhwc, w1, b1, kh=11, kw=11, cout=64, relu=True,
                      out_dtype=jnp.bfloat16, m_steps=4)
    h = maxpool2d(h)
    w2, b2 = packed["conv2"]
    h = conv2d_pallas(h, w2, b2, kh=9, kw=9, cout=96, k_splits=2, relu=True,
                      out_dtype=jnp.bfloat16, m_steps=2)
    h = maxpool2d(h)
    return h


def morphics_forward(packed, x_nchw):
    N, C, H, W = x_nchw.shape
    x_nhwc = jnp.transpose(x_nchw, (0, 2, 3, 1))

    h = localization_pallas(packed, x_nhwc)

    # flatten in NCHW order to match PyTorch .view(-1, fc_in_size)
    xs = jnp.transpose(h, (0, 3, 1, 2)).reshape(N, -1)

    theta = pallas_fc_loc(xs, packed["fc"]).reshape(N, 2, 3)

    grid = affine_grid(theta, (N, C, H, W))
    stn_nhwc = grid_sample_bilinear_nhwc(x_nhwc, grid)   # stays NHWC for the model conv

    wm, bm = packed["model"]
    y = conv2d_pallas(stn_nhwc, wm, bm, kh=3, kw=3, cout=8, relu=True,
                      out_dtype=jnp.float32, m_steps=4)
    y = jnp.transpose(y, (0, 3, 1, 2))
    stn = jnp.transpose(stn_nhwc, (0, 3, 1, 2))
    return y, stn


# ----------------------------------------------------------------------------
# Deterministic parameter construction + f32 reference (for tolerance checks)
# ----------------------------------------------------------------------------
def init_params(key, fc_in):
    def uni(k, shape, fan_in):
        bound = 1.0 / jnp.sqrt(jnp.float32(fan_in))
        return jax.random.uniform(k, shape, jnp.float32, -bound, bound)

    ks = jax.random.split(key, 8)
    return {
        "conv1_w": uni(ks[0], (64, 3, 11, 11), 3 * 11 * 11),
        "conv1_b": uni(ks[1], (64,), 3 * 11 * 11),
        "conv2_w": uni(ks[2], (96, 64, 9, 9), 64 * 9 * 9),
        "conv2_b": uni(ks[3], (96,), 64 * 9 * 9),
        "fc1_w": uni(ks[4], (32, fc_in), fc_in),
        "fc1_b": uni(ks[5], (32,), fc_in),
        "fc2_w": jnp.zeros((6, 32), jnp.float32),                       # zeroed
        "fc2_b": jnp.array([1, 0, 0, 0, 1, 0], jnp.float32),            # identity theta
        "model_w": uni(ks[6], (8, 3, 3, 3), 3 * 3 * 3),
        "model_b": uni(ks[7], (8,), 3 * 3 * 3),
    }


def _ref_conv(x_nchw, w, b):
    y = jax.lax.conv_general_dilated(x_nchw, w, (1, 1), "VALID",
                                     dimension_numbers=("NCHW", "OIHW", "NCHW"))
    return y + b[None, :, None, None]


def _ref_maxpool(x_nchw, k=3, s=2):
    return jax.lax.reduce_window(x_nchw, -jnp.inf, jax.lax.max,
                                 (1, 1, k, k), (1, 1, s, s), "VALID")


def reference_localization(params, x_nchw):
    h = _ref_conv(x_nchw, params["conv1_w"], params["conv1_b"])
    h = jnp.maximum(_ref_maxpool(h), 0.0)
    h = _ref_conv(h, params["conv2_w"], params["conv2_b"])
    h = jnp.maximum(_ref_maxpool(h), 0.0)
    return h


if __name__ == "__main__":
    # Small-but-consistent shapes: batch=2, channels=3, cutout_size=48.
    N, C, S = 2, 3, 48
    # localization output: 48 -conv11-> 38 -pool3/2-> 18 -conv9-> 10 -pool3/2-> 4
    fc_in = 96 * 4 * 4

    key = jax.random.PRNGKey(0)
    kx, kp = jax.random.split(key)
    x = jax.random.normal(kx, (N, C, S, S), jnp.float32)
    params = init_params(kp, fc_in)
    packed = pack_params(params)            # one-time transpose/pad/bf16 packing

    fwd = jax.jit(morphics_forward)
    y, stn = fwd(packed, x)
    jax.block_until_ready((y, stn))

    assert y.shape == (N, 8, S - 2, S - 2), y.shape
    assert stn.shape == (N, C, S, S), stn.shape
    # fc_loc is initialized to the identity transform -> stn should equal x
    assert jnp.allclose(stn, x, atol=1e-3), float(jnp.max(jnp.abs(stn - x)))

    # Tolerance check of the bf16 conv path against an f32 reference
    # (the stn==x assert alone does not exercise it since theta is forced to identity).
    x_nhwc = jnp.transpose(x, (0, 2, 3, 1))
    loc = jax.jit(localization_pallas)(packed, x_nhwc)
    loc = jnp.transpose(loc, (0, 3, 1, 2)).astype(jnp.float32)
    loc_ref = reference_localization(params, x)
    rel_loc = float(jnp.max(jnp.abs(loc - loc_ref)) /
                    (jnp.max(jnp.abs(loc_ref)) + 1e-6))
    assert rel_loc < 0.08, rel_loc

    y_ref = jnp.maximum(_ref_conv(x, params["model_w"], params["model_b"]), 0.0)
    rel_y = float(jnp.max(jnp.abs(y - y_ref)) / (jnp.max(jnp.abs(y_ref)) + 1e-6))
    assert rel_y < 0.05, rel_y

    print("KERNEL_OK")
</pallas_src>

<mosaic_0001>
module attributes {stable_mosaic.version = 11 : i64} {
  func.func @_matmul_bias_kernel(%arg0: i32, %arg1: i32, %arg2: memref<728x384xbf16, #tpu.memory_space<vmem>>, %arg3: memref<384x128xbf16, #tpu.memory_space<vmem>>, %arg4: memref<1x128xf32, #tpu.memory_space<vmem>>, %arg5: memref<728x128xbf16, #tpu.memory_space<vmem>>, %arg6: memref<728x128xf32, #tpu.memory_space<vmem>>) attributes {dimension_semantics = [#tpu.dimension_semantics<parallel>, #tpu.dimension_semantics<arbitrary>], iteration_bounds = array<i64: 4, 1>, scalar_prefetch = 0 : i64, scratch_operands = 1 : i64, tpu.core_type = #tpu.core_type<tc>, window_params = [{transform_indices = @transform_0, window_bounds = array<i64: 728, 384>}, {transform_indices = @transform_1, window_bounds = array<i64: 384, 128>}, {pipeline_mode = #tpu.pipeline_mode<synchronous>, transform_indices = @transform_2, window_bounds = array<i64: 1, 128>}, {transform_indices = @transform_3, window_bounds = array<i64: 728, 128>}]} {
    %c0_i32 = arith.constant 0 : i32
    %0 = arith.cmpi eq, %arg1, %c0_i32 : i32
    %1 = arith.extui %0 : i1 to i32
    %c0_i32_0 = arith.constant 0 : i32
    %2 = arith.cmpi ne, %1, %c0_i32_0 : i32
    scf.if %2 {
      %cst_10 = arith.constant 0.000000e+00 : f32
      %12 = vector.broadcast %cst_10 : f32 to vector<728x128xf32>
      %c0_11 = arith.constant 0 : index
      %c0_12 = arith.constant 0 : index
      %13 = vector.load %arg6[%c0_11, %c0_12] : memref<728x128xf32, #tpu.memory_space<vmem>>, vector<728x128xf32>
      tpu.vector_store %arg6[%c0_11, %c0_12], %12 {strides = array<i32>} : memref<728x128xf32, #tpu.memory_space<vmem>>, vector<728x128xf32>,
    } else {
    }
    %c0 = arith.constant 0 : index
    %c0_1 = arith.constant 0 : index
    %3 = vector.load %arg6[%c0, %c0_1] : memref<728x128xf32, #tpu.memory_space<vmem>>, vector<728x128xf32>
    %c0_2 = arith.constant 0 : index
    %c0_3 = arith.constant 0 : index
    %4 = vector.load %arg2[%c0_2, %c0_3] : memref<728x384xbf16, #tpu.memory_space<vmem>>, vector<728x384xbf16>
    %c0_4 = arith.constant 0 : index
    %c0_5 = arith.constant 0 : index
    %5 = vector.load %arg3[%c0_4, %c0_5] : memref<384x128xbf16, #tpu.memory_space<vmem>>, vector<384x128xbf16>
    %cst = arith.constant dense<0.000000e+00> : vector<728x128xf32>
    %6 = tpu.matmul %4, %5, %cst {dimension_numbers = #tpu.dot_dimension_numbers<[1], [0], [0], [1], [0, 0, 1, 1], [], []>} : vector<728x384xbf16>, vector<384x128xbf16>, vector<728x128xf32> -> vector<728x128xf32>
    %7 = arith.addf %3, %6 : vector<728x128xf32>
    %c0_6 = arith.constant 0 : index
    %c0_7 = arith.constant 0 : index
    %8 = vector.load %arg6[%c0_6, %c0_7] : memref<728x128xf32, #tpu.memory_space<vmem>>, vector<728x128xf32>
    tpu.vector_store %arg6[%c0_6, %c0_7], %7 {strides = array<i32>} : memref<728x128xf32, #tpu.memory_space<vmem>>, vector<728x128xf32>,
    %c0_i32_8 = arith.constant 0 : i32
    %9 = arith.cmpi eq, %arg1, %c0_i32_8 : i32
    %10 = arith.extui %9 : i1 to i32
    %c0_i32_9 = arith.constant 0 : i32
    %11 = arith.cmpi ne, %10, %c0_i32_9 : i32
    scf.if %11 {
      %c0_10 = arith.constant 0 : index
      %c0_11 = arith.constant 0 : index
      %12 = vector.load %arg6[%c0_10, %c0_11] : memref<728x128xf32, #tpu.memory_space<vmem>>, vector<728x128xf32>
      %c0_12 = arith.constant 0 : index
      %c0_13 = arith.constant 0 : index
      %13 = vector.load %arg4[%c0_12, %c0_13] : memref<1x128xf32, #tpu.memory_space<vmem>>, vector<1x128xf32>
      %14 = vector.broadcast %13 : vector<1x128xf32> to vector<728x128xf32>
      %15 = arith.addf %12, %14 : vector<728x128xf32>
      %cst_14 = arith.constant 0.000000e+00 : f32
      %16 = vector.broadcast %cst_14 : f32 to vector<728x128xf32>
      %17 = arith.maximumf %15, %16 : vector<728x128xf32>
      %18 = arith.truncf %17 : vector<728x128xf32> to vector<728x128xbf16>
      %c0_15 = arith.constant 0 : index
      %c0_16 = arith.constant 0 : index
      %19 = vector.load %arg5[%c0_15, %c0_16] : memref<728x128xbf16, #tpu.memory_space<vmem>>, vector<728x128xbf16>
      tpu.vector_store %arg5[%c0_15, %c0_16], %18 {strides = array<i32>} : memref<728x128xbf16, #tpu.memory_space<vmem>>, vector<728x128xbf16>,
    } else {
    }
    return
  }
  func.func @transform_0(%arg0: i32, %arg1: i32) -> (i32, i32) {
    %c0_i32 = arith.constant 0 : i32
    return %arg0, %arg1 : i32, i32
  }
  func.func @transform_1(%arg0: i32, %arg1: i32) -> (i32, i32) {
    %c0_i32 = arith.constant 0 : i32
    %c0_i32_0 = arith.constant 0 : i32
    return %arg1, %c0_i32 : i32, i32
  }
  func.func @transform_2(%arg0: i32, %arg1: i32) -> (i32, i32) {
    %c0_i32 = arith.constant 0 : i32
    %c0_i32_0 = arith.constant 0 : i32
    %c0_i32_1 = arith.constant 0 : i32
    return %c0_i32, %c0_i32_0 : i32, i32
  }
  func.func @transform_3(%arg0: i32, %arg1: i32) -> (i32, i32) {
    %c0_i32 = arith.constant 0 : i32
    %c0_i32_0 = arith.constant 0 : i32
    return %arg0, %c0_i32 : i32, i32
  }
}

module attributes {stable_mosaic.version = 11 : i64} {
  func.func @_matmul_bias_kernel(%arg0: i32, %arg1: i32, %arg2: memref<104x2688xbf16, #tpu.memory_space<vmem>>, %arg3: memref<2688x128xbf16, #tpu.memory_space<vmem>>, %arg4: memref<1x128xf32, #tpu.memory_space<vmem>>, %arg5: memref<104x128xbf16, #tpu.memory_space<vmem>>, %arg6: memref<104x128xf32, #tpu.memory_space<vmem>>) attributes {dimension_semantics = [#tpu.dimension_semantics<parallel>, #tpu.dimension_semantics<arbitrary>], iteration_bounds = array<i64: 2, 2>, scalar_prefetch = 0 : i64, scratch_operands = 1 : i64, tpu.core_type = #tpu.core_type<tc>, window_params = [{transform_indices = @transform_0, window_bounds = array<i64: 104, 2688>}, {transform_indices = @transform_1, window_bounds = array<i64: 2688, 128>}, {pipeline_mode = #tpu.pipeline_mode<synchronous>, transform_indices = @transform_2, window_bounds = array<i64: 1, 128>}, {transform_indices = @transform_3, window_bounds = array<i64: 104, 128>}]} {
    %c0_i32 = arith.constant 0 : i32
    %0 = arith.cmpi eq, %arg1, %c0_i32 : i32
    %1 = arith.extui %0 : i1 to i32
    %c0_i32_0 = arith.constant 0 : i32
    %2 = arith.cmpi ne, %1, %c0_i32_0 : i32
    scf.if %2 {
      %cst_9 = arith.constant 0.000000e+00 : f32
      %12 = vector.broadcast %cst_9 : f32 to vector<104x128xf32>
      %c0_10 = arith.constant 0 : index
      %c0_11 = arith.constant 0 : index
      %13 = vector.load %arg6[%c0_10, %c0_11] : memref<104x128xf32, #tpu.memory_space<vmem>>, vector<104x128xf32>
      tpu.vector_store %arg6[%c0_10, %c0_11], %12 {strides = array<i32>} : memref<104x128xf32, #tpu.memory_space<vmem>>, vector<104x128xf32>,
    } else {
    }
    %c0 = arith.constant 0 : index
    %c0_1 = arith.constant 0 : index
    %3 = vector.load %arg6[%c0, %c0_1] : memref<104x128xf32, #tpu.memory_space<vmem>>, vector<104x128xf32>
    %c0_2 = arith.constant 0 : index
    %c0_3 = arith.constant 0 : index
    %4 = vector.load %arg2[%c0_2, %c0_3] : memref<104x2688xbf16, #tpu.memory_space<vmem>>, vector<104x2688xbf16>
    %c0_4 = arith.constant 0 : index
    %c0_5 = arith.constant 0 : index
    %5 = vector.load %arg3[%c0_4, %c0_5] : memref<2688x128xbf16, #tpu.memory_space<vmem>>, vector<2688x128xbf16>
    %cst = arith.constant dense<0.000000e+00> : vector<104x128xf32>
    %6 = tpu.matmul %4, %5, %cst {dimension_numbers = #tpu.dot_dimension_numbers<[1], [0], [0], [1], [0, 0, 1, 1], [], []>} : vector<104x2688xbf16>, vector<2688x128xbf16>, vector<104x128xf32> -> vector<104x128xf32>
    %7 = arith.addf %3, %6 : vector<104x128xf32>
    %c0_6 = arith.constant 0 : index
    %c0_7 = arith.constant 0 : index
    %8 = vector.load %arg6[%c0_6, %c0_7] : memref<104x128xf32, #tpu.memory_space<vmem>>, vector<104x128xf32>
    tpu.vector_store %arg6[%c0_6, %c0_7], %7 {strides = array<i32>} : memref<104x128xf32, #tpu.memory_space<vmem>>, vector<104x128xf32>,
    %c1_i32 = arith.constant 1 : i32
    %9 = arith.cmpi eq, %arg1, %c1_i32 : i32
    %10 = arith.extui %9 : i1 to i32
    %c0_i32_8 = arith.constant 0 : i32
    %11 = arith.cmpi ne, %10, %c0_i32_8 : i32
    scf.if %11 {
      %c0_9 = arith.constant 0 : index
      %c0_10 = arith.constant 0 : index
      %12 = vector.load %arg6[%c0_9, %c0_10] : memref<104x128xf32, #tpu.memory_space<vmem>>, vector<104x128xf32>
      %c0_11 = arith.constant 0 : index
      %c0_12 = arith.constant 0 : index
      %13 = vector.load %arg4[%c0_11, %c0_12] : memref<1x128xf32, #tpu.memory_space<vmem>>, vector<1x128xf32>
      %14 = vector.broadcast %13 : vector<1x128xf32> to vector<104x128xf32>
      %15 = arith.addf %12, %14 : vector<104x128xf32>
      %cst_13 = arith.constant 0.000000e+00 : f32
      %16 = vector.broadcast %cst_13 : f32 to vector<104x128xf32>
      %17 = arith.maximumf %15, %16 : vector<104x128xf32>
      %18 = arith.truncf %17 : vector<104x128xf32> to vector<104x128xbf16>
      %c0_14 = arith.constant 0 : index
      %c0_15 = arith.constant 0 : index
      %19 = vector.load %arg5[%c0_14, %c0_15] : memref<104x128xbf16, #tpu.memory_space<vmem>>, vector<104x128xbf16>
      tpu.vector_store %arg5[%c0_14, %c0_15], %18 {strides = array<i32>} : memref<104x128xbf16, #tpu.memory_space<vmem>>, vector<104x128xbf16>,
    } else {
    }
    return
  }
  func.func @transform_0(%arg0: i32, %arg1: i32) -> (i32, i32) {
    %c0_i32 = arith.constant 0 : i32
    return %arg0, %arg1 : i32, i32
  }
  func.func @transform_1(%arg0: i32, %arg1: i32) -> (i32, i32) {
    %c0_i32 = arith.constant 0 : i32
    %c0_i32_0 = arith.constant 0 : i32
    return %arg1, %c0_i32 : i32, i32
  }
  func.func @transform_2(%arg0: i32, %arg1: i32) -> (i32, i32) {
    %c0_i32 = arith.constant 0 : i32
    %c0_i32_0 = arith.constant 0 : i32
    %c0_i32_1 = arith.constant 0 : i32
    return %c0_i32, %c0_i32_0 : i32, i32
  }
  func.func @transform_3(%arg0: i32, %arg1: i32) -> (i32, i32) {
    %c0_i32 = arith.constant 0 : i32
    %c0_i32_0 = arith.constant 0 : i32
    return %arg0, %c0_i32 : i32, i32
  }
}

module attributes {stable_mosaic.version = 11 : i64} {
  func.func @_fc_loc_kernel(%arg0: i32, %arg1: memref<8x1536xbf16, #tpu.memory_space<vmem>>, %arg2: memref<1536x128xbf16, #tpu.memory_space<vmem>>, %arg3: memref<1x128xf32, #tpu.memory_space<vmem>>, %arg4: memref<128x128xf32, #tpu.memory_space<vmem>>, %arg5: memref<1x128xf32, #tpu.memory_space<vmem>>, %arg6: memref<8x128xf32, #tpu.memory_space<vmem>>) attributes {dimension_semantics = [#tpu.dimension_semantics<arbitrary>], iteration_bounds = array<i64: 1>, scalar_prefetch = 0 : i64, scratch_operands = 0 : i64, tpu.core_type = #tpu.core_type<tc>, window_params = [{pipeline_mode = #tpu.pipeline_mode<synchronous>, transform_indices = @transform_0, window_bounds = array<i64: 8, 1536>}, {pipeline_mode = #tpu.pipeline_mode<synchronous>, transform_indices = @transform_1, window_bounds = array<i64: 1536, 128>}, {pipeline_mode = #tpu.pipeline_mode<synchronous>, transform_indices = @transform_2, window_bounds = array<i64: 1, 128>}, {pipeline_mode = #tpu.pipeline_mode<synchronous>, transform_indices = @transform_3, window_bounds = array<i64: 128, 128>}, {pipeline_mode = #tpu.pipeline_mode<synchronous>, transform_indices = @transform_4, window_bounds = array<i64: 1, 128>}, {pipeline_mode = #tpu.pipeline_mode<synchronous>, transform_indices = @transform_5, window_bounds = array<i64: 8, 128>}]} {
    %c0 = arith.constant 0 : index
    %c0_0 = arith.constant 0 : index
    %0 = vector.load %arg1[%c0, %c0_0] : memref<8x1536xbf16, #tpu.memory_space<vmem>>, vector<8x1536xbf16>
    %c0_1 = arith.constant 0 : index
    %c0_2 = arith.constant 0 : index
    %1 = vector.load %arg2[%c0_1, %c0_2] : memref<1536x128xbf16, #tpu.memory_space<vmem>>, vector<1536x128xbf16>
    %cst = arith.constant dense<0.000000e+00> : vector<8x128xf32>
    %2 = tpu.matmul %0, %1, %cst {dimension_numbers = #tpu.dot_dimension_numbers<[1], [0], [0], [1], [0, 0, 1, 1], [], []>} : vector<8x1536xbf16>, vector<1536x128xbf16>, vector<8x128xf32> -> vector<8x128xf32>
    %c0_3 = arith.constant 0 : index
    %c0_4 = arith.constant 0 : index
    %3 = vector.load %arg3[%c0_3, %c0_4] : memref<1x128xf32, #tpu.memory_space<vmem>>, vector<1x128xf32>
    %4 = vector.broadcast %3 : vector<1x128xf32> to vector<8x128xf32>
    %5 = arith.addf %2, %4 : vector<8x128xf32>
    %cst_5 = arith.constant 0.000000e+00 : f32
    %6 = vector.broadcast %cst_5 : f32 to vector<8x128xf32>
    %7 = arith.maximumf %5, %6 : vector<8x128xf32>
    %c0_6 = arith.constant 0 : index
    %c0_7 = arith.constant 0 : index
    %8 = vector.load %arg4[%c0_6, %c0_7] : memref<128x128xf32, #tpu.memory_space<vmem>>, vector<128x128xf32>
    %cst_8 = arith.constant dense<0.000000e+00> : vector<8x128xf32>
    %9 = tpu.matmul %7, %8, %cst_8 {dimension_numbers = #tpu.dot_dimension_numbers<[1], [0], [0], [1], [0, 0, 1, 1], [], []>} : vector<8x128xf32>, vector<128x128xf32>, vector<8x128xf32> -> vector<8x128xf32>
    %c0_9 = arith.constant 0 : index
    %c0_10 = arith.constant 0 : index
    %10 = vector.load %arg5[%c0_9, %c0_10] : memref<1x128xf32, #tpu.memory_space<vmem>>, vector<1x128xf32>
    %11 = vector.broadcast %10 : vector<1x128xf32> to vector<8x128xf32>
    %12 = arith.addf %9, %11 : vector<8x128xf32>
    %c0_11 = arith.constant 0 : index
    %c0_12 = arith.constant 0 : index
    %13 = vector.load %arg6[%c0_11, %c0_12] : memref<8x128xf32, #tpu.memory_space<vmem>>, vector<8x128xf32>
    tpu.vector_store %arg6[%c0_11, %c0_12], %12 {strides = array<i32>} : memref<8x128xf32, #tpu.memory_space<vmem>>, vector<8x128xf32>,
    return
  }
  func.func @transform_0(%arg0: i32) -> (i32, i32) {
    %c0_i32 = arith.constant 0 : i32
    %c0_i32_0 = arith.constant 0 : i32
    %c0_i32_1 = arith.constant 0 : i32
    return %c0_i32, %c0_i32_0 : i32, i32
  }
  func.func @transform_1(%arg0: i32) -> (i32, i32) {
    %c0_i32 = arith.constant 0 : i32
    %c0_i32_0 = arith.constant 0 : i32
    %c0_i32_1 = arith.constant 0 : i32
    return %c0_i32, %c0_i32_0 : i32, i32
  }
  func.func @transform_2(%arg0: i32) -> (i32, i32) {
    %c0_i32 = arith.constant 0 : i32
    %c0_i32_0 = arith.constant 0 : i32
    %c0_i32_1 = arith.constant 0 : i32
    return %c0_i32, %c0_i32_0 : i32, i32
  }
  func.func @transform_3(%arg0: i32) -> (i32, i32) {
    %c0_i32 = arith.constant 0 : i32
    %c0_i32_0 = arith.constant 0 : i32
    %c0_i32_1 = arith.constant 0 : i32
    return %c0_i32, %c0_i32_0 : i32, i32
  }
  func.func @transform_4(%arg0: i32) -> (i32, i32) {
    %c0_i32 = arith.constant 0 : i32
    %c0_i32_0 = arith.constant 0 : i32
    %c0_i32_1 = arith.constant 0 : i32
    return %c0_i32, %c0_i32_0 : i32, i32
  }
  func.func @transform_5(%arg0: i32) -> (i32, i32) {
    %c0_i32 = arith.constant 0 : i32
    %c0_i32_0 = arith.constant 0 : i32
    %c0_i32_1 = arith.constant 0 : i32
    return %c0_i32, %c0_i32_0 : i32, i32
  }
}

module attributes {stable_mosaic.version = 11 : i64} {
  func.func @_matmul_bias_kernel(%arg0: i32, %arg1: i32, %arg2: memref<1064x128xbf16, #tpu.memory_space<vmem>>, %arg3: memref<128x128xbf16, #tpu.memory_space<vmem>>, %arg4: memref<1x128xf32, #tpu.memory_space<vmem>>, %arg5: memref<1064x128xf32, #tpu.memory_space<vmem>>, %arg6: memref<1064x128xf32, #tpu.memory_space<vmem>>) attributes {dimension_semantics = [#tpu.dimension_semantics<parallel>, #tpu.dimension_semantics<arbitrary>], iteration_bounds = array<i64: 4, 1>, scalar_prefetch = 0 : i64, scratch_operands = 1 : i64, tpu.core_type = #tpu.core_type<tc>, window_params = [{transform_indices = @transform_0, window_bounds = array<i64: 1064, 128>}, {transform_indices = @transform_1, window_bounds = array<i64: 128, 128>}, {pipeline_mode = #tpu.pipeline_mode<synchronous>, transform_indices = @transform_2, window_bounds = array<i64: 1, 128>}, {transform_indices = @transform_3, window_bounds = array<i64: 1064, 128>}]} {
    %c0_i32 = arith.constant 0 : i32
    %0 = arith.cmpi eq, %arg1, %c0_i32 : i32
    %1 = arith.extui %0 : i1 to i32
    %c0_i32_0 = arith.constant 0 : i32
    %2 = arith.cmpi ne, %1, %c0_i32_0 : i32
    scf.if %2 {
      %cst_10 = arith.constant 0.000000e+00 : f32
      %12 = vector.broadcast %cst_10 : f32 to vector<1064x128xf32>
      %c0_11 = arith.constant 0 : index
      %c0_12 = arith.constant 0 : index
      %13 = vector.load %arg6[%c0_11, %c0_12] : memref<1064x128xf32, #tpu.memory_space<vmem>>, vector<1064x128xf32>
      tpu.vector_store %arg6[%c0_11, %c0_12], %12 {strides = array<i32>} : memref<1064x128xf32, #tpu.memory_space<vmem>>, vector<1064x128xf32>,
    } else {
    }
    %c0 = arith.constant 0 : index
    %c0_1 = arith.constant 0 : index
    %3 = vector.load %arg6[%c0, %c0_1] : memref<1064x128xf32, #tpu.memory_space<vmem>>, vector<1064x128xf32>
    %c0_2 = arith.constant 0 : index
    %c0_3 = arith.constant 0 : index
    %4 = vector.load %arg2[%c0_2, %c0_3] : memref<1064x128xbf16, #tpu.memory_space<vmem>>, vector<1064x128xbf16>
    %c0_4 = arith.constant 0 : index
    %c0_5 = arith.constant 0 : index
    %5 = vector.load %arg3[%c0_4, %c0_5] : memref<128x128xbf16, #tpu.memory_space<vmem>>, vector<128x128xbf16>
    %cst = arith.constant dense<0.000000e+00> : vector<1064x128xf32>
    %6 = tpu.matmul %4, %5, %cst {dimension_numbers = #tpu.dot_dimension_numbers<[1], [0], [0], [1], [0, 0, 1, 1], [], []>} : vector<1064x128xbf16>, vector<128x128xbf16>, vector<1064x128xf32> -> vector<1064x128xf32>
    %7 = arith.addf %3, %6 : vector<1064x128xf32>
    %c0_6 = arith.constant 0 : index
    %c0_7 = arith.constant 0 : index
    %8 = vector.load %arg6[%c0_6, %c0_7] : memref<1064x128xf32, #tpu.memory_space<vmem>>, vector<1064x128xf32>
    tpu.vector_store %arg6[%c0_6, %c0_7], %7 {strides = array<i32>} : memref<1064x128xf32, #tpu.memory_space<vmem>>, vector<1064x128xf32>,
    %c0_i32_8 = arith.constant 0 : i32
    %9 = arith.cmpi eq, %arg1, %c0_i32_8 : i32
    %10 = arith.extui %9 : i1 to i32
    %c0_i32_9 = arith.constant 0 : i32
    %11 = arith.cmpi ne, %10, %c0_i32_9 : i32
    scf.if %11 {
      %c0_10 = arith.constant 0 : index
      %c0_11 = arith.constant 0 : index
      %12 = vector.load %arg6[%c0_10, %c0_11] : memref<1064x128xf32, #tpu.memory_space<vmem>>, vector<1064x128xf32>
      %c0_12 = arith.constant 0 : index
      %c0_13 = arith.constant 0 : index
      %13 = vector.load %arg4[%c0_12, %c0_13] : memref<1x128xf32, #tpu.memory_space<vmem>>, vector<1x128xf32>
      %14 = vector.broadcast %13 : vector<1x128xf32> to vector<1064x128xf32>
      %15 = arith.addf %12, %14 : vector<1064x128xf32>
      %cst_14 = arith.constant 0.000000e+00 : f32
      %16 = vector.broadcast %cst_14 : f32 to vector<1064x128xf32>
      %17 = arith.maximumf %15, %16 : vector<1064x128xf32>
      %c0_15 = arith.constant 0 : index
      %c0_16 = arith.constant 0 : index
      %18 = vector.load %arg5[%c0_15, %c0_16] : memref<1064x128xf32, #tpu.memory_space<vmem>>, vector<1064x128xf32>
      tpu.vector_store %arg5[%c0_15, %c0_16], %17 {strides = array<i32>} : memref<1064x128xf32, #tpu.memory_space<vmem>>, vector<1064x128xf32>,
    } else {
    }
    return
  }
  func.func @transform_0(%arg0: i32, %arg1: i32) -> (i32, i32) {
    %c0_i32 = arith.constant 0 : i32
    return %arg0, %arg1 : i32, i32
  }
  func.func @transform_1(%arg0: i32, %arg1: i32) -> (i32, i32) {
    %c0_i32 = arith.constant 0 : i32
    %c0_i32_0 = arith.constant 0 : i32
    return %arg1, %c0_i32 : i32, i32
  }
  func.func @transform_2(%arg0: i32, %arg1: i32) -> (i32, i32) {
    %c0_i32 = arith.constant 0 : i32
    %c0_i32_0 = arith.constant 0 : i32
    %c0_i32_1 = arith.constant 0 : i32
    return %c0_i32, %c0_i32_0 : i32, i32
  }
  func.func @transform_3(%arg0: i32, %arg1: i32) -> (i32, i32) {
    %c0_i32 = arith.constant 0 : i32
    %c0_i32_0 = arith.constant 0 : i32
    return %arg0, %c0_i32 : i32, i32
  }
}

</mosaic_0001>

<bundles_post_ra>
// kernel: morphics_forward.4
= control target key start
LH: loop header
LB: loop body
LE: loop exit
PB: predicated region body
PF: predicated region fallthrough
CT: control target
= control target key end

     0   :  { %s4423_s12 = smov 0   ;;  %s4425_s13 = smov 0   ;;  %s5044_s0 = inlined_call_operand.vmem [shape: bf16[2912,384], index: 0, kind: input, shape index: {}]   ;;  %s5045_s1 = inlined_call_operand.vmem [shape: bf16[384,128], index: 1, kind: input, shape index: {}]   ;;  %s5046_s2 = inlined_call_operand.vmem [shape: f32[1,128], index: 2, kind: input, shape index: {}]   ;;  %s5047_s3 = inlined_call_operand.vmem [shape: bf16[2912,128], index: 3, kind: output, shape index: {}]  }
   0x1   :  { %s4427_s14 = smov 0  }
   0x2 LB: > { %s25_s15 = sadd.s32 1, %s4396_s13  ;;  %p3331_p0 = scmp.ge.s32.totalorder %s4400_s14, 1  ;;  %s4400_s14 = sphi %s4427_s14, %s13_s14   ;;  %s4396_s13 = sphi %s4425_s13, %s5049_s13   ;;  %s4392_s12 = sphi %s4423_s12, %s5048_s12  }
   0x3   : > { %p27_p1 = scmp.ge.s32.totalorder %s25_s15, 4  ;;  %p169_p2 = scmp.lt.s32.totalorder %s4400_s14, 5 }
   0x5   : > { %s5051_s15 = smov (%p27_p1, %s25_s15), 0  ;;  %p170_p3 = pnand %p3331_p0, %p169_p2 }
   0x6   : > { %s203_s18 = smul.u32 (!%p170_p3), 91, %s4392_s12 }
   0x7   : > { %173 = sbr.rel (%p170_p3) target bundleno = 555 (0x22b), region = 32 }
   0x8   : > { %p205_p4 = scmp.lt.s32.totalorder (!%p170_p3), %s203_s18, 363 }
   0xc   : > { %v4170_v0 = vld [vmem:[%s5045_s1 + $0x38] sm:$0xff]   ;;  %v4402_v1 = vmov 0   ;;  %v4171_v2 = vld [vmem:[%s5045_s1 + $0x30] sm:$0xff]   ;;  %v4172_v3 = vld [vmem:[%s5045_s1 + $0x28] sm:$0xff]   ;;  %s5053_s18 = smov (!%p205_p4, %s203_s18), 363 }
   0xd   : > { %1519 = vmatprep.subr.bf16.mxu0 %v4402_v1  ;;  %4112 = vmatprep.subr.bf16.mxu1 %v4402_v1  ;;  %v4173_v4 = vld [vmem:[%s5045_s1 + $0x20] sm:$0xff]   ;;  %s4144_s25 = smul.u32 12, %s5053_s18  ;;  %v4174_v5 = vld [vmem:[%s5045_s1 + $0x18] sm:$0xff]   ;;  %v4175_v7 = vld [vmem:[%s5045_s1 + $0x10] sm:$0xff]  }
   0xe   : > { %1520 = vmatpush1.bf16.msra.mxu0 %v4170_v0  ;;  %4128 = vmatpush1.bf16.msra.mxu1 %v4170_v0  ;;  %v4176_v9 = vld [vmem:[%s5045_s1 + $0x8] sm:$0xff]   ;;  %v4177_v10 = vld [vmem:[%s5045_s1] sm:$0xff]   ;;  %v4178_v11 = vld [vmem:[%s5045_s1 + $0x78] sm:$0xff]  }
   0xf   : > { %1521 = vmatprep.subr.bf16.mxu0 %v4402_v1  ;;  %4113 = vmatprep.subr.bf16.mxu1 %v4402_v1  ;;  %s4470_s30 = scalar_lea.vmem %s5044_s0, %s4144_s25  ;;  %v4179_v12 = vld [vmem:[%s5045_s1 + $0x70] sm:$0xff]   ;;  %v4180_v13 = vld [vmem:[%s5045_s1 + $0x68] sm:$0xff]   ;;  %v4181_v14 = vld [vmem:[%s5045_s1 + $0x60] sm:$0xff]   ;;  %s3333_s25 = sshll.u32 %s5053_s18, 2 }
  0x10   : > { %v4188_v6 = vld [vmem:[%s4470_s30 + $0x4] ss:$12 sps:$4 sm:$0xff]   ;;  %v4191_v8 = vld [vmem:[%s4470_s30 + $0x34c] ss:$12 sps:$4 sm:$0xff]   ;;  %v4189_v21 = vld [vmem:[%s4470_s30 + $0x348] ss:$12 sps:$4 sm:$0xff]   ;;  %s4800_s28 = scalar_lea.vmem %s5047_s3, %s3333_s25 }
  0x11   : > { %1551 = vmatprep.mubr.bf16.mxu0 %v4188_v6  ;;  %1831 = vmatprep.mubr.bf16.mxu1 %v4191_v8  ;;  %v4182_v15 = vld [vmem:[%s5045_s1 + $0x58] sm:$0xff]   ;;  %v4183_v16 = vld [vmem:[%s5045_s1 + $0x50] sm:$0xff]   ;;  %v4184_v17 = vld [vmem:[%s5045_s1 + $0x48] sm:$0xff]  }
  0x12   : > { %1522 = vmatpush1.bf16.msra.mxu0 %v4171_v2  ;;  %4129 = vmatpush1.bf16.msra.mxu1 %v4171_v2  ;;  %v4185_v18 = vld [vmem:[%s5045_s1 + $0x40] sm:$0xff]   ;;  %v4192_v20 = vld [vmem:[%s5045_s1 + $0xb8] sm:$0xff]   ;;  %v4205_v24 = vld [vmem:[%s5045_s1 + $0xb0] sm:$0xff]  }
  0x13   : > { %1523 = vmatprep.subr.bf16.mxu0 %v4402_v1  ;;  %4114 = vmatprep.subr.bf16.mxu1 %v4402_v1  ;;  %v4186_v19 = vld [vmem:[%s4470_s30] ss:$12 sps:$4 sm:$0xff]   ;;  %v4193_v22 = vld [vmem:[%s4470_s30 + $0x1c] ss:$12 sps:$4 sm:$0xff]   ;;  %v4195_v23 = vld [vmem:[%s4470_s30 + $0x364] ss:$12 sps:$4 sm:$0xff]  }
  0x14   : > { %v4197_v25 = vld [vmem:[%s4470_s30 + $0x18] ss:$12 sps:$4 sm:$0xff]   ;;  %v4212_v26 = vld [vmem:[%s5045_s1 + $0xa8] sm:$0xff]   ;;  %v4199_v28 = vld [vmem:[%s4470_s30 + $0x34] ss:$12 sps:$4 sm:$0xff]  }
  0x15   : > { %v4198_v27 = vld [vmem:[%s4470_s30 + $0x360] ss:$12 sps:$4 sm:$0xff]   ;;  %v4201_v29 = vld [vmem:[%s4470_s30 + $0x37c] ss:$12 sps:$4 sm:$0xff]   ;;  %v4204_v32 = vld [vmem:[%s4470_s30 + $0x378] ss:$12 sps:$4 sm:$0xff]  }
  0x16   : > { %1524 = vmatpush1.bf16.msra.mxu0 %v4172_v3  ;;  %4130 = vmatpush1.bf16.msra.mxu1 %v4172_v3  ;;  %v4219_v30 = vld [vmem:[%s5045_s1 + $0xa0] sm:$0xff]   ;;  %v4203_v31 = vld [vmem:[%s4470_s30 + $0x30] ss:$12 sps:$4 sm:$0xff]   ;;  %v4206_v34 = vld [vmem:[%s4470_s30 + $0x4c] ss:$12 sps:$4 sm:$0xff]  }
  0x17   : > { %1525 = vmatprep.subr.bf16.mxu0 %v4402_v1  ;;  %4115 = vmatprep.subr.bf16.mxu1 %v4402_v1  ;;  %v4232_v33 = vld [vmem:[%s5045_s1 + $0x98] sm:$0xff]   ;;  %v4208_v35 = vld [vmem:[%s4470_s30 + $0x394] ss:$12 sps:$4 sm:$0xff]   ;;  %v4250_v37 = vld [vmem:[%s5045_s1 + $0x88] sm:$0xff]  }
  0x18   : > { %v4239_v36 = vld [vmem:[%s5045_s1 + $0x90] sm:$0xff]   ;;  %v4215_v41 = vld [vmem:[%s4470_s30 + $0x3ac] ss:$12 sps:$4 sm:$0xff]   ;;  %v4258_v42 = vld [vmem:[%s5045_s1 + $0x80] sm:$0xff]  }
  0x19   : > { %v4210_v38 = vld [vmem:[%s4470_s30 + $0x48] ss:$12 sps:$4 sm:$0xff]   ;;  %v4211_v39 = vld [vmem:[%s4470_s30 + $0x390] ss:$12 sps:$4 sm:$0xff]   ;;  %v4217_v43 = vld [vmem:[%s4470_s30 + $0x60] ss:$12 sps:$4 sm:$0xff]  }
  0x1a   : > { %1526 = vmatpush1.bf16.msra.mxu0 %v4173_v4  ;;  %4131 = vmatpush1.bf16.msra.mxu1 %v4173_v4  ;;  %v4213_v40 = vld [vmem:[%s4470_s30 + $0x64] ss:$12 sps:$4 sm:$0xff]   ;;  %v4218_v44 = vld [vmem:[%s4470_s30 + $0x3a8] ss:$12 sps:$4 sm:$0xff]   ;;  %v4225_v48 = vld [vmem:[%s4470_s30 + $0x3c0] ss:$12 sps:$4 sm:$0xff]  }
  0x1b   : > { %1527 = vmatprep.subr.bf16.mxu0 %v4402_v1  ;;  %4116 = vmatprep.subr.bf16.mxu1 %v4402_v1  ;;  %v4220_v45 = vld [vmem:[%s4470_s30 + $0x7c] ss:$12 sps:$4 sm:$0xff]   ;;  %v4222_v46 = vld [vmem:[%s4470_s30 + $0x3c4] ss:$12 sps:$4 sm:$0xff]   ;;  %v4226_v49 = vld [vmem:[%s4470_s30 + $0x94] ss:$12 sps:$4 sm:$0xff]  }
  0x1c   : > { %v4224_v47 = vld [vmem:[%s4470_s30 + $0x78] ss:$12 sps:$4 sm:$0xff]   ;;  %v4228_v50 = vld [vmem:[%s4470_s30 + $0x3dc] ss:$12 sps:$4 sm:$0xff]   ;;  %v4235_v54 = vld [vmem:[%s4470_s30 + $0x3f4] ss:$12 sps:$4 sm:$0xff]  }
  0x1d   : > { %v4230_v51 = vld [vmem:[%s4470_s30 + $0x90] ss:$12 sps:$4 sm:$0xff]   ;;  %v4231_v52 = vld [vmem:[%s4470_s30 + $0x3d8] ss:$12 sps:$4 sm:$0xff]   ;;  %v4237_v55 = vld [vmem:[%s4470_s30 + $0xa8] ss:$12 sps:$4 sm:$0xff]  }
  0x1e   : > { %1528 = vmatpush1.bf16.msra.mxu0 %v4174_v5  ;;  %4132 = vmatpush1.bf16.msra.mxu1 %v4174_v5  ;;  %v4233_v53 = vld [vmem:[%s4470_s30 + $0xac] ss:$12 sps:$4 sm:$0xff]   ;;  %v4238_v56 = vld [vmem:[%s4470_s30 + $0x3f0] ss:$12 sps:$4 sm:$0xff]   ;;  %v4245_v60 = vld [vmem:[%s4470_s30 + $0x408] ss:$12 sps:$4 sm:$0xff]  }
  0x1f   : > { %1529 = vmatprep.subr.bf16.mxu0 %v4402_v1  ;;  %4117 = vmatprep.subr.bf16.mxu1 %v4402_v1  ;;  %v4240_v57 = vld [vmem:[%s4470_s30 + $0xc4] ss:$12 sps:$4 sm:$0xff]   ;;  %v4242_v58 = vld [vmem:[%s4470_s30 + $0x40c] ss:$12 sps:$4 sm:$0xff]   ;;  %v4246_v61 = vld [vmem:[%s4470_s30 + $0xdc] ss:$12 sps:$4 sm:$0xff]  }
  0x20   : > { %v4244_v59 = vld [vmem:[%s4470_s30 + $0xc0] ss:$12 sps:$4 sm:$0xff]   ;;  %v4248_v62 = vld [vmem:[%s4470_s30 + $0x424] ss:$12 sps:$4 sm:$0xff]   ;;  %v594_v63 = vld [vmem:[%s4470_s30 + $0x438] sm:$0xff] }
  0x21   : > { %v4251_v0 = vld [vmem:[%s4470_s30 + $0xd8] ss:$12 sps:$4 sm:$0xff]   ;;  %v4253_v2 = vld [vmem:[%s4470_s30 + $0xf4] ss:$12 sps:$4 sm:$0xff]   ;;  %v3470_v3 = vcombine.high %v594_v63, %v594_v63  ;;  %v4256_v4 = vld [vmem:[%s4470_s30 + $0xf0] ss:$12 sps:$4 sm:$0xff]   ;;  %v3469_v5 = vcombine.low %v594_v63, %v594_v63 }
  0x22   : > { %1530 = vmatpush1.bf16.msra.mxu0 %v4175_v7  ;;  %4133 = vmatpush1.bf16.msra.mxu1 %v4175_v7  ;;  %v4259_v6 = vld [vmem:[%s4470_s30 + $0x10c] ss:$12 sps:$4 sm:$0xff]   ;;  %v4261_v7 = vld [vmem:[%s4470_s30 + $0x8] ss:$12 sps:$4 sm:$0xff]  }
  0x23   : > { %1531 = vmatprep.subr.bf16.mxu0 %v4402_v1  ;;  %4118 = vmatprep.subr.bf16.mxu1 %v4402_v1  ;;  %v4262_v8 = vld [vmem:[%s4470_s30 + $0x108] ss:$12 sps:$4 sm:$0xff]  }
  0x24   : > { %v4331_v63 = vld [vmem:[%s4470_s30 + $0x2a8] ss:$12 sps:$4 sm:$0xff]  }
  0x26   : > { %1532 = vmatpush1.bf16.msra.mxu0 %v4176_v9  ;;  %4134 = vmatpush1.bf16.msra.mxu1 %v4176_v9  ;;  %v4263_v9 = vld [vmem:[%s4470_s30 + $0x20] ss:$12 sps:$4 sm:$0xff]  }
  0x27   : > { %1533 = vmatprep.subr.bf16.mxu0 %v4402_v1  ;;  %4119 = vmatprep.subr.bf16.mxu1 %v4402_v1 }
  0x2a   : > { %1534 = vmatpush1.bf16.msra.mxu0 %v4177_v10  ;;  %4135 = vmatpush1.bf16.msra.mxu1 %v4177_v10  ;;  %v4264_v10 = vld [vmem:[%s4470_s30 + $0x124] ss:$12 sps:$4 sm:$0xff]  }
  0x2b   : > { %1535 = vmatprep.subr.bf16.mxu0 %v4402_v1  ;;  %4120 = vmatprep.subr.bf16.mxu1 %v4402_v1 }
  0x2e   : > { %1536 = vmatpush2.bf16.msra.mxu0 %v4178_v11  ;;  %4136 = vmatpush2.bf16.msra.mxu1 %v4178_v11  ;;  %v4266_v11 = vld [vmem:[%s4470_s30 + $0x38] ss:$12 sps:$4 sm:$0xff]  }
  0x2f   : > { %1537 = vmatprep.subr.bf16.mxu0 %v4402_v1  ;;  %4121 = vmatprep.subr.bf16.mxu1 %v4402_v1 }
  0x32   : > { %1538 = vmatpush2.bf16.msra.mxu0 %v4179_v12  ;;  %4137 = vmatpush2.bf16.msra.mxu1 %v4179_v12  ;;  %v4267_v12 = vld [vmem:[%s4470_s30 + $0x120] ss:$12 sps:$4 sm:$0xff]  }
  0x33   : > { %1539 = vmatprep.subr.bf16.mxu0 %v4402_v1  ;;  %4122 = vmatprep.subr.bf16.mxu1 %v4402_v1 }
  0x36   : > { %1540 = vmatpush2.bf16.msra.mxu0 %v4180_v13  ;;  %4138 = vmatpush2.bf16.msra.mxu1 %v4180_v13  ;;  %v4268_v13 = vld [vmem:[%s4470_s30 + $0x50] ss:$12 sps:$4 sm:$0xff]  }
  0x37   : > { %1541 = vmatprep.subr.bf16.mxu0 %v4402_v1  ;;  %4123 = vmatprep.subr.bf16.mxu1 %v4402_v1 }
  0x3a   : > { %1542 = vmatpush2.bf16.msra.mxu0 %v4181_v14  ;;  %4139 = vmatpush2.bf16.msra.mxu1 %v4181_v14  ;;  %v4269_v14 = vld [vmem:[%s4470_s30 + $0x13c] ss:$12 sps:$4 sm:$0xff]  }
  0x3b   : > { %1543 = vmatprep.subr.bf16.mxu0 %v4402_v1  ;;  %4124 = vmatprep.subr.bf16.mxu1 %v4402_v1 }
  0x3e   : > { %1544 = vmatpush2.bf16.msra.mxu0 %v4182_v15  ;;  %4140 = vmatpush2.bf16.msra.mxu1 %v4182_v15  ;;  %v4271_v15 = vld [vmem:[%s4470_s30 + $0x68] ss:$12 sps:$4 sm:$0xff]  }
  0x3f   : > { %1545 = vmatprep.subr.bf16.mxu0 %v4402_v1  ;;  %4125 = vmatprep.subr.bf16.mxu1 %v4402_v1 }
  0x42   : > { %1546 = vmatpush2.bf16.msra.mxu0 %v4183_v16  ;;  %4141 = vmatpush2.bf16.msra.mxu1 %v4183_v16  ;;  %v4272_v16 = vld [vmem:[%s4470_s30 + $0x138] ss:$12 sps:$4 sm:$0xff]  }
  0x43   : > { %1547 = vmatprep.subr.bf16.mxu0 %v4402_v1  ;;  %4126 = vmatprep.subr.bf16.mxu1 %v4402_v1 }
  0x46   : > { %1548 = vmatpush2.bf16.msra.mxu0 %v4184_v17  ;;  %4142 = vmatpush2.bf16.msra.mxu1 %v4184_v17  ;;  %v4273_v17 = vld [vmem:[%s4470_s30 + $0x80] ss:$12 sps:$4 sm:$0xff]  }
  0x47   : > { %1549 = vmatprep.subr.bf16.mxu0 %v4402_v1  ;;  %4127 = vmatprep.subr.bf16.mxu1 %v4402_v1  ;;  %v4252_v1 = vld [vmem:[%s4470_s30 + $0x420] ss:$12 sps:$4 sm:$0xff]  }
  0x4a   : > { %1550 = vmatpush2.bf16.msra.mxu0 %v4185_v18  ;;  %4143 = vmatpush2.bf16.msra.mxu1 %v4185_v18  ;;  %v4274_v18 = vld [vmem:[%s4470_s30 + $0x154] ss:$12 sps:$4 sm:$0xff]  }
  0x4b   : > { %4004 = vmatprep.subr.bf16.mxu1 %v4192_v20 }
  0x4d   : > { %1552 = vmatmul.mubr.bf16.vlgmr.msra.gmra.mxu0 %v4186_v19  ;;  %1832 = vmatmul.mubr.bf16.vlgmr.msra.gmra.mxu1 %v4189_v21  ;;  %v4276_v19 = vld [vmem:[%s4470_s30 + $0x98] ss:$12 sps:$4 sm:$0xff]   ;;  %v4278_v21 = vld [vmem:[%s4470_s30 + $0xb0] ss:$12 sps:$4 sm:$0xff]  }
  0x4e   : > { %4005 = vmatpush3.bf16.msra.mxu1 %v4192_v20  ;;  %1559 = vmatprep.mubr.bf16.mxu0 %v4193_v22  ;;  %v4277_v20 = vld [vmem:[%s4470_s30 + $0x150] ss:$12 sps:$4 sm:$0xff]   ;;  %v4279_v22 = vld [vmem:[%s4470_s30 + $0x16c] ss:$12 sps:$4 sm:$0xff]  }
  0x4f   : > { %1839 = vmatprep.mubr.bf16.mxu1 %v4195_v23  ;;  %4006 = vmatprep.subr.bf16.mxu1 %v4205_v24  ;;  %v4281_v23 = vld [vmem:[%s4470_s30 + $0xc8] ss:$12 sps:$4 sm:$0xff]  }
  0x52   : > { %4007 = vmatpush3.bf16.msra.mxu1 %v4205_v24  ;;  %v4282_v24 = vld [vmem:[%s4470_s30 + $0x168] ss:$12 sps:$4 sm:$0xff]  }
  0x53   : > { %4008 = vmatprep.subr.bf16.mxu1 %v4212_v26 }
  0x55   : > { %1560 = vmatmul.mubr.bf16.gmra.mxu0 %v4197_v25  ;;  %1840 = vmatmul.mubr.bf16.gmra.mxu1 %v4198_v27  ;;  %v4283_v25 = vld [vmem:[%s4470_s30 + $0xe0] ss:$12 sps:$4 sm:$0xff]   ;;  %v4286_v27 = vld [vmem:[%s4470_s30 + $0xf8] ss:$12 sps:$4 sm:$0xff]  }
  0x56   : > { %1567 = vmatprep.mubr.bf16.mxu0 %v4199_v28  ;;  %1847 = vmatprep.mubr.bf16.mxu1 %v4201_v29  ;;  %v4287_v28 = vld [vmem:[%s4470_s30 + $0x180] ss:$12 sps:$4 sm:$0xff]   ;;  %v4288_v29 = vld [vmem:[%s4470_s30 + $0x110] ss:$12 sps:$4 sm:$0xff]  }
  0x57   : > { %4009 = vmatpush3.bf16.msra.mxu1 %v4212_v26  ;;  %v4284_v26 = vld [vmem:[%s4470_s30 + $0x184] ss:$12 sps:$4 sm:$0xff]  }
  0x58   : > { %4010 = vmatprep.subr.bf16.mxu1 %v4219_v30 }
  0x5b   : > { %4011 = vmatpush3.bf16.msra.mxu1 %v4219_v30  ;;  %v4289_v30 = vld [vmem:[%s4470_s30 + $0x19c] ss:$12 sps:$4 sm:$0xff]  }
  0x5c   : > { %4012 = vmatprep.subr.bf16.mxu1 %v4232_v33 }
  0x5d   : > { %1568 = vmatmul.mubr.bf16.gmra.mxu0 %v4203_v31  ;;  %1848 = vmatmul.mubr.bf16.gmra.mxu1 %v4204_v32  ;;  %v4291_v31 = vld [vmem:[%s4470_s30 + $0x128] ss:$12 sps:$4 sm:$0xff]   ;;  %v4292_v32 = vld [vmem:[%s4470_s30 + $0x198] ss:$12 sps:$4 sm:$0xff]  }
  0x5e   : > { %1575 = vmatprep.mubr.bf16.mxu0 %v4206_v34  ;;  %1855 = vmatprep.mubr.bf16.mxu1 %v4208_v35  ;;  %v4294_v34 = vld [vmem:[%s4470_s30 + $0x1b4] ss:$12 sps:$4 sm:$0xff]   ;;  %v4296_v35 = vld [vmem:[%s4470_s30 + $0x158] ss:$12 sps:$4 sm:$0xff]  }
  0x5f   : > { %4013 = vmatpush3.bf16.msra.mxu1 %v4232_v33  ;;  %v4293_v33 = vld [vmem:[%s4470_s30 + $0x140] ss:$12 sps:$4 sm:$0xff]  }
  0x60   : > { %4014 = vmatprep.subr.bf16.mxu1 %v4239_v36 }
  0x63   : > { %4015 = vmatpush3.bf16.msra.mxu1 %v4239_v36  ;;  %v4297_v36 = vld [vmem:[%s4470_s30 + $0x1b0] ss:$12 sps:$4 sm:$0xff]  }
  0x64   : > { %4016 = vmatprep.subr.bf16.mxu1 %v4250_v37 }
  0x65   : > { %1576 = vmatmul.mubr.bf16.gmra.mxu0 %v4210_v38  ;;  %1856 = vmatmul.mubr.bf16.gmra.mxu1 %v4211_v39  ;;  %v4299_v38 = vld [vmem:[%s4470_s30 + $0x1cc] ss:$12 sps:$4 sm:$0xff]   ;;  %v4301_v39 = vld [vmem:[%s4470_s30 + $0x188] ss:$12 sps:$4 sm:$0xff]  }
  0x66   : > { %1583 = vmatprep.mubr.bf16.mxu0 %v4213_v40  ;;  %1863 = vmatprep.mubr.bf16.mxu1 %v4215_v41  ;;  %v4302_v40 = vld [vmem:[%s4470_s30 + $0x1c8] ss:$12 sps:$4 sm:$0xff]   ;;  %v4303_v41 = vld [vmem:[%s4470_s30 + $0x1a0] ss:$12 sps:$4 sm:$0xff]  }
  0x67   : > { %4017 = vmatpush3.bf16.msra.mxu1 %v4250_v37  ;;  %v4298_v37 = vld [vmem:[%s4470_s30 + $0x170] ss:$12 sps:$4 sm:$0xff]  }
  0x68   : > { %4018 = vmatprep.subr.bf16.mxu1 %v4258_v42 }
  0x6b   : > { %4019 = vmatpush3.bf16.msra.mxu1 %v4258_v42  ;;  %v4304_v42 = vld [vmem:[%s4470_s30 + $0x1e4] ss:$12 sps:$4 sm:$0xff]  }
  0x6d   : > { %1584 = vmatmul.mubr.bf16.gmra.mxu0 %v4217_v43  ;;  %1864 = vmatmul.mubr.bf16.gmra.mxu1 %v4218_v44  ;;  %v4306_v43 = vld [vmem:[%s4470_s30 + $0x1b8] ss:$12 sps:$4 sm:$0xff]   ;;  %v4307_v44 = vld [vmem:[%s4470_s30 + $0x1e0] ss:$12 sps:$4 sm:$0xff]  }
  0x6e   : > { %1591 = vmatprep.mubr.bf16.mxu0 %v4220_v45  ;;  %1871 = vmatprep.mubr.bf16.mxu1 %v4222_v46  ;;  %v4308_v45 = vld [vmem:[%s4470_s30 + $0x1d0] ss:$12 sps:$4 sm:$0xff]  }
  0x6f   : > { %v4309_v46 = vld [vmem:[%s4470_s30 + $0x1fc] ss:$12 sps:$4 sm:$0xff]  }
  0x75   : > { %1592 = vmatmul.mubr.bf16.gmra.mxu0 %v4224_v47  ;;  %1872 = vmatmul.mubr.bf16.gmra.mxu1 %v4225_v48  ;;  %v4311_v47 = vld [vmem:[%s4470_s30 + $0x1e8] ss:$12 sps:$4 sm:$0xff]   ;;  %v4312_v48 = vld [vmem:[%s4470_s30 + $0x1f8] ss:$12 sps:$4 sm:$0xff]  }
  0x76   : > { %1599 = vmatprep.mubr.bf16.mxu0 %v4226_v49  ;;  %1879 = vmatprep.mubr.bf16.mxu1 %v4228_v50  ;;  %v4313_v49 = vld [vmem:[%s4470_s30 + $0x200] ss:$12 sps:$4 sm:$0xff]  }
  0x77   : > { %v4314_v50 = vld [vmem:[%s4470_s30 + $0x214] ss:$12 sps:$4 sm:$0xff]  }
  0x7d   : > { %1600 = vmatmul.mubr.bf16.gmra.mxu0 %v4230_v51  ;;  %1880 = vmatmul.mubr.bf16.gmra.mxu1 %v4231_v52  ;;  %v4316_v51 = vld [vmem:[%s4470_s30 + $0x218] ss:$12 sps:$4 sm:$0xff]   ;;  %v4317_v52 = vld [vmem:[%s4470_s30 + $0x210] ss:$12 sps:$4 sm:$0xff]  }
  0x7e   : > { %1607 = vmatprep.mubr.bf16.mxu0 %v4233_v53  ;;  %1887 = vmatprep.mubr.bf16.mxu1 %v4235_v54  ;;  %v4318_v53 = vld [vmem:[%s4470_s30 + $0x230] ss:$12 sps:$4 sm:$0xff]   ;;  %v4319_v54 = vld [vmem:[%s4470_s30 + $0x22c] ss:$12 sps:$4 sm:$0xff]  }
  0x85   : > { %1608 = vmatmul.mubr.bf16.gmra.mxu0 %v4237_v55  ;;  %1888 = vmatmul.mubr.bf16.gmra.mxu1 %v4238_v56  ;;  %v4321_v55 = vld [vmem:[%s4470_s30 + $0x248] ss:$12 sps:$4 sm:$0xff]  }
  0x86   : > { %1615 = vmatprep.mubr.bf16.mxu0 %v4240_v57  ;;  %1895 = vmatprep.mubr.bf16.mxu1 %v4242_v58  ;;  %v4322_v56 = vld [vmem:[%s4470_s30 + $0x228] ss:$12 sps:$4 sm:$0xff]   ;;  %v4323_v57 = vld [vmem:[%s4470_s30 + $0x260] ss:$12 sps:$4 sm:$0xff]   ;;  %v4324_v58 = vld [vmem:[%s4470_s30 + $0x244] ss:$12 sps:$4 sm:$0xff]  }
  0x8d   : > { %1616 = vmatmul.mubr.bf16.gmra.mxu0 %v4244_v59  ;;  %1896 = vmatmul.mubr.bf16.gmra.mxu1 %v4245_v60  ;;  %v4326_v59 = vld [vmem:[%s4470_s30 + $0x278] ss:$12 sps:$4 sm:$0xff]   ;;  %v4327_v60 = vld [vmem:[%s4470_s30 + $0x240] ss:$12 sps:$4 sm:$0xff]  }
  0x8e   : > { %1623 = vmatprep.mubr.bf16.mxu0 %v4246_v61  ;;  %1903 = vmatprep.mubr.bf16.mxu1 %v4248_v62  ;;  %v4328_v61 = vld [vmem:[%s4470_s30 + $0x290] ss:$12 sps:$4 sm:$0xff]  }
  0x8f   : > { %v4329_v62 = vld [vmem:[%s4470_s30 + $0x25c] ss:$12 sps:$4 sm:$0xff]  }
  0x95   : > { %1624 = vmatmul.mubr.bf16.gmra.mxu0 %v4251_v0  ;;  %1904 = vmatmul.mubr.bf16.gmra.mxu1 %v4252_v1 }
  0x96   : > { %1631 = vmatprep.mubr.bf16.mxu0 %v4253_v2  ;;  %1911 = vmatprep.mubr.bf16.mxu1 %v3470_v3 }
  0x9d   : > { %1632 = vmatmul.mubr.bf16.gmra.mxu0 %v4256_v4  ;;  %1912 = vmatmul.mubr.bf16.gmra.mxu1 %v3469_v5 }
  0x9e   : > { %1639 = vmatprep.mubr.bf16.mxu0 %v4259_v6  ;;  %4020 = vmatprep.mubr.bf16.mxu1 %v4261_v7  ;;  %v4332_v6 = vld [vmem:[%s4470_s30 + $0x258] ss:$12 sps:$4 sm:$0xff]   ;;  %v4333_v7 = vld [vmem:[%s4470_s30 + $0x2c0] ss:$12 sps:$4 sm:$0xff]  }
  0xa5   : > { %1640 = vmatmul.mubr.bf16.gmra.mxu0 %v4262_v8  ;;  %4021 = vmatmul.mubr.bf16.vlgmr.msra.gmra.mxu1 %v4263_v9  ;;  %v4334_v8 = vld [vmem:[%s4470_s30 + $0x274] ss:$12 sps:$4 sm:$0xff]   ;;  %v4336_v9 = vld [vmem:[%s4470_s30 + $0x2d8] ss:$12 sps:$4 sm:$0xff]  }
  0xa6   : > { %1647 = vmatprep.mubr.bf16.mxu0 %v4264_v10  ;;  %4024 = vmatprep.mubr.bf16.mxu1 %v4266_v11 }
  0xad   : > { %1648 = vmatmul.mubr.bf16.gmra.mxu0 %v4267_v12  ;;  %4025 = vmatmul.mubr.bf16.gmra.mxu1 %v4268_v13 }
  0xae   : > { %1655 = vmatprep.mubr.bf16.mxu0 %v4269_v14  ;;  %4028 = vmatprep.mubr.bf16.mxu1 %v4271_v15 }
  0xb5   : > { %1656 = vmatmul.mubr.bf16.gmra.mxu0 %v4272_v16  ;;  %4029 = vmatmul.mubr.bf16.gmra.mxu1 %v4273_v17 }
  0xb6   : > { %1663 = vmatprep.mubr.bf16.mxu0 %v4274_v18  ;;  %4032 = vmatprep.mubr.bf16.mxu1 %v4276_v19  ;;  %v4337_v18 = vld [vmem:[%s4470_s30 + $0x270] ss:$12 sps:$4 sm:$0xff]  }
  0xb7   : > { %v4338_v19 = vld [vmem:[%s4470_s30 + $0x2f0] ss:$12 sps:$4 sm:$0xff]  }
  0xbd   : > { %1664 = vmatmul.mubr.bf16.gmra.mxu0 %v4277_v20  ;;  %4033 = vmatmul.mubr.bf16.gmra.mxu1 %v4278_v21  ;;  %v4339_v20 = vld [vmem:[%s4470_s30 + $0x28c] ss:$12 sps:$4 sm:$0xff]   ;;  %v4341_v21 = vld [vmem:[%s4470_s30 + $0x308] ss:$12 sps:$4 sm:$0xff]  }
  0xbe   : > { %1671 = vmatprep.mubr.bf16.mxu0 %v4279_v22  ;;  %4036 = vmatprep.mubr.bf16.mxu1 %v4281_v23 }
  0xc5   : > { %1672 = vmatmul.mubr.bf16.gmra.mxu0 %v4282_v24  ;;  %4037 = vmatmul.mubr.bf16.gmra.mxu1 %v4283_v25 }
  0xc6   : > { %1679 = vmatprep.mubr.bf16.mxu0 %v4284_v26  ;;  %4040 = vmatprep.mubr.bf16.mxu1 %v4286_v27 }
  0xcd   : > { %1680 = vmatmul.mubr.bf16.gmra.mxu0 %v4287_v28  ;;  %4041 = vmatmul.mubr.bf16.gmra.mxu1 %v4288_v29 }
  0xce   : > { %1687 = vmatprep.mubr.bf16.mxu0 %v4289_v30  ;;  %4044 = vmatprep.mubr.bf16.mxu1 %v4291_v31  ;;  %v4342_v30 = vld [vmem:[%s4470_s30 + $0x288] ss:$12 sps:$4 sm:$0xff]   ;;  %v4343_v31 = vld [vmem:[%s4470_s30 + $0x320] ss:$12 sps:$4 sm:$0xff]  }
  0xd5   : > { %1688 = vmatmul.mubr.bf16.gmra.mxu0 %v4292_v32  ;;  %4045 = vmatmul.mubr.bf16.gmra.mxu1 %v4293_v33  ;;  %v4346_v32 = vld [vmem:[%s4470_s30 + $0x2a4] ss:$12 sps:$4 sm:$0xff]  }
  0xd6   : > { %1695 = vmatprep.mubr.bf16.mxu0 %v4294_v34  ;;  %4048 = vmatprep.mubr.bf16.mxu1 %v4296_v35  ;;  %v4347_v33 = vld [vmem:[%s4470_s30 + $0x338] ss:$12 sps:$4 sm:$0xff]  }
  0xdd   : > { %1696 = vmatmul.mubr.bf16.gmra.mxu0 %v4297_v36  ;;  %4049 = vmatmul.mubr.bf16.gmra.mxu1 %v4298_v37 }
  0xde   : > { %1703 = vmatprep.mubr.bf16.mxu0 %v4299_v38  ;;  %4052 = vmatprep.mubr.bf16.mxu1 %v4301_v39 }
  0xe5   : > { %1704 = vmatmul.mubr.bf16.gmra.mxu0 %v4302_v40  ;;  %4053 = vmatmul.mubr.bf16.gmra.mxu1 %v4303_v41 }
  0xe6   : > { %1711 = vmatprep.mubr.bf16.mxu0 %v4304_v42  ;;  %4056 = vmatprep.mubr.bf16.mxu1 %v4306_v43  ;;  %v4344_v42 = vld [vmem:[%s4470_s30 + $0x2a0] ss:$12 sps:$4 sm:$0xff]   ;;  %v4348_v43 = vld [vmem:[%s4470_s30 + $0x350] ss:$12 sps:$4 sm:$0xff]  }
  0xed   : > { %1712 = vmatmul.mubr.bf16.gmra.mxu0 %v4307_v44  ;;  %4057 = vmatmul.mubr.bf16.gmra.mxu1 %v4308_v45  ;;  %v4351_v44 = vld [vmem:[%s4470_s30 + $0x2bc] ss:$12 sps:$4 sm:$0xff]  }
  0xee   : > { %1719 = vmatprep.mubr.bf16.mxu0 %v4309_v46  ;;  %4060 = vmatprep.mubr.bf16.mxu1 %v4311_v47  ;;  %v4352_v45 = vld [vmem:[%s4470_s30 + $0x368] ss:$12 sps:$4 sm:$0xff]  }
  0xf5   : > { %1720 = vmatmul.mubr.bf16.gmra.mxu0 %v4312_v48  ;;  %4061 = vmatmul.mubr.bf16.gmra.mxu1 %v4313_v49 }
  0xf6   : > { %1727 = vmatprep.mubr.bf16.mxu0 %v4314_v50  ;;  %4064 = vmatprep.mubr.bf16.mxu1 %v4316_v51 }
  0xfd   : > { %1728 = vmatmul.mubr.bf16.gmra.mxu0 %v4317_v52  ;;  %4065 = vmatmul.mubr.bf16.gmra.mxu1 %v4318_v53 }
  0xfe   : > { %1735 = vmatprep.mubr.bf16.mxu0 %v4319_v54  ;;  %4068 = vmatprep.mubr.bf16.mxu1 %v4321_v55  ;;  %v4349_v54 = vld [vmem:[%s4470_s30 + $0x2b8] ss:$12 sps:$4 sm:$0xff]   ;;  %v4353_v55 = vld [vmem:[%s4470_s30 + $0x380] ss:$12 sps:$4 sm:$0xff]  }
 0x105   : > { %1736 = vmatmul.mubr.bf16.gmra.mxu0 %v4322_v56  ;;  %4069 = vmatmul.mubr.bf16.gmra.mxu1 %v4323_v57  ;;  %v4356_v56 = vld [vmem:[%s4470_s30 + $0x2d4] ss:$12 sps:$4 sm:$0xff]   ;;  %v4357_v57 = vld [vmem:[%s4470_s30 + $0x398] ss:$12 sps:$4 sm:$0xff]  }
 0x106   : > { %1743 = vmatprep.mubr.bf16.mxu0 %v4324_v58  ;;  %4072 = vmatprep.mubr.bf16.mxu1 %v4326_v59 }
 0x10d   : > { %v4654_v0 = vpop.f32.mrf.mxu0  ;;  %1744 = vmatmul.mubr.bf16.gmra.mxu0 %v4327_v60  ;;  %v4656_v1 = vpop.f32.mrf.mxu1  ;;  %4073 = vmatmul.mubr.bf16.gmra.mxu1 %v4328_v61 }
 0x10e   : > { %1751 = vmatprep.mubr.bf16.mxu0 %v4329_v62  ;;  %4076 = vmatprep.mubr.bf16.mxu1 %v4331_v63 }
 0x10f   : > { %v1555_v2 = vpop.f32.mrf.mxu0  ;;  %v1835_v3 = vpop.f32.mrf.mxu1 }
 0x111   : > { %v4658_v4 = vpop.f32.mrf.mxu0  ;;  %v4660_v5 = vpop.f32.mrf.mxu1 }
 0x113   : > { %v1558_v10 = vpop.f32.mrf.mxu0  ;;  %v1838_v11 = vpop.f32.mrf.mxu1 }
 0x115   : > { %v4666_v12 = vpop.f32.mrf.mxu0  ;;  %1752 = vmatmul.mubr.bf16.gmra.mxu0 %v4332_v6  ;;  %v4668_v13 = vpop.f32.mrf.mxu1  ;;  %4077 = vmatmul.mubr.bf16.gmra.mxu1 %v4333_v7  ;;  %v4354_v6 = vld [vmem:[%s4470_s30 + $0x2d0] ss:$12 sps:$4 sm:$0xff]  }
 0x116   : > { %1759 = vmatprep.mubr.bf16.mxu0 %v4334_v8  ;;  %4080 = vmatprep.mubr.bf16.mxu1 %v4336_v9  ;;  %v4358_v7 = vld [vmem:[%s4470_s30 + $0x3b0] ss:$12 sps:$4 sm:$0xff]   ;;  %v4361_v8 = vld [vmem:[%s4470_s30 + $0x2ec] ss:$12 sps:$4 sm:$0xff]   ;;  %v4362_v9 = vld [vmem:[%s4470_s30 + $0x3c8] ss:$12 sps:$4 sm:$0xff]  }
 0x117   : > { %v1563_v14 = vpop.f32.mrf.mxu0  ;;  %v1843_v15 = vpop.f32.mrf.mxu1 }
 0x119   : > { %v4670_v16 = vpop.f32.mrf.mxu0  ;;  %v4672_v17 = vpop.f32.mrf.mxu1 }
 0x11b   : > { %v1566_v22 = vpop.f32.mrf.mxu0  ;;  %v1846_v23 = vpop.f32.mrf.mxu1 }
 0x11c   : > { %v4359_v22 = vld [vmem:[%s4470_s30 + $0x2e8] ss:$12 sps:$4 sm:$0xff]   ;;  %v4363_v23 = vld [vmem:[%s4470_s30 + $0x3e0] ss:$12 sps:$4 sm:$0xff]  }
 0x11d   : > { %v4678_v24 = vpop.f32.mrf.mxu0  ;;  %1760 = vmatmul.mubr.bf16.gmra.mxu0 %v4337_v18  ;;  %v4680_v25 = vpop.f32.mrf.mxu1  ;;  %4081 = vmatmul.mubr.bf16.gmra.mxu1 %v4338_v19 }
 0x11e   : > { %1767 = vmatprep.mubr.bf16.mxu0 %v4339_v20  ;;  %4084 = vmatprep.mubr.bf16.mxu1 %v4341_v21 }
 0x11f   : > { %v1571_v26 = vpop.f32.mrf.mxu0  ;;  %v1851_v27 = vpop.f32.mrf.mxu1 }
 0x120   : > { %v4366_v26 = vld [vmem:[%s4470_s30 + $0x304] ss:$12 sps:$4 sm:$0xff]  }
 0x121   : > { %v4682_v28 = vpop.f32.mrf.mxu0  ;;  %v4684_v29 = vpop.f32.mrf.mxu1  ;;  %v4367_v27 = vld [vmem:[%s4470_s30 + $0x3f8] ss:$12 sps:$4 sm:$0xff]  }
 0x123   : > { %v1574_v34 = vpop.f32.mrf.mxu0  ;;  %v1854_v35 = vpop.f32.mrf.mxu1 }
 0x125   : > { %v4690_v36 = vpop.f32.mrf.mxu0  ;;  %1768 = vmatmul.mubr.bf16.gmra.mxu0 %v4342_v30  ;;  %v4692_v37 = vpop.f32.mrf.mxu1  ;;  %4085 = vmatmul.mubr.bf16.gmra.mxu1 %v4343_v31 }
 0x126   : > { %1775 = vmatprep.mubr.bf16.mxu0 %v4346_v32  ;;  %4088 = vmatprep.mubr.bf16.mxu1 %v4347_v33 }
 0x127   : > { %v1579_v38 = vpop.f32.mrf.mxu0  ;;  %v1859_v39 = vpop.f32.mrf.mxu1 }
 0x129   : > { %v4694_v40 = vpop.f32.mrf.mxu0  ;;  %v4696_v41 = vpop.f32.mrf.mxu1 }
 0x12b   : > { %v1582_v46 = vpop.f32.mrf.mxu0  ;;  %v1862_v47 = vpop.f32.mrf.mxu1 }
 0x12d   : > { %v4702_v48 = vpop.f32.mrf.mxu0  ;;  %1776 = vmatmul.mubr.bf16.gmra.mxu0 %v4344_v42  ;;  %v4704_v49 = vpop.f32.mrf.mxu1  ;;  %4089 = vmatmul.mubr.bf16.gmra.mxu1 %v4348_v43  ;;  %v4364_v42 = vld [vmem:[%s4470_s30 + $0x300] ss:$12 sps:$4 sm:$0xff]   ;;  %v4368_v43 = vld [vmem:[%s4470_s30 + $0x410] ss:$12 sps:$4 sm:$0xff]  }
 0x12e   : > { %1783 = vmatprep.mubr.bf16.mxu0 %v4351_v44  ;;  %4092 = vmatprep.mubr.bf16.mxu1 %v4352_v45  ;;  %v4371_v44 = vld [vmem:[%s4470_s30 + $0x31c] ss:$12 sps:$4 sm:$0xff]  }
 0x12f   : > { %v1587_v50 = vpop.f32.mrf.mxu0  ;;  %v1867_v51 = vpop.f32.mrf.mxu1  ;;  %v4372_v45 = vld [vmem:[%s4470_s30 + $0x428] ss:$12 sps:$4 sm:$0xff]  }
 0x131   : > { %v4706_v52 = vpop.f32.mrf.mxu0  ;;  %v4708_v53 = vpop.f32.mrf.mxu1 }
 0x133   : > { %v1590_v58 = vpop.f32.mrf.mxu0  ;;  %v1870_v59 = vpop.f32.mrf.mxu1 }
 0x134   : > { %v4369_v58 = vld [vmem:[%s4470_s30 + $0x318] ss:$12 sps:$4 sm:$0xff]   ;;  %v4373_v59 = vld [vmem:[%s4470_s30 + $0x440] ss:$0 sps:$4 sm:$0xff]  }
 0x135   : > { %v4714_v60 = vpop.f32.mrf.mxu0  ;;  %1784 = vmatmul.mubr.bf16.gmra.mxu0 %v4349_v54  ;;  %v4716_v61 = vpop.f32.mrf.mxu1  ;;  %4093 = vmatmul.mubr.bf16.gmra.mxu1 %v4353_v55 }
 0x136   : > { %1791 = vmatprep.mubr.bf16.mxu0 %v4356_v56  ;;  %4096 = vmatprep.mubr.bf16.mxu1 %v4357_v57 }
 0x137   : > { %v1595_v62 = vpop.f32.mrf.mxu0  ;;  %v1875_v63 = vpop.f32.mrf.mxu1 }
 0x138   : > { %v4376_v62 = vld [vmem:[%s4470_s30 + $0x334] ss:$12 sps:$4 sm:$0xff]  }
 0x139   : > { %v4718_v2 = vpop.f32.mrf.mxu0  ;;  %v4720_v3 = vpop.f32.mrf.mxu1 }
 0x13b   : > { %v1598_v10 = vpop.f32.mrf.mxu0  ;;  %v1878_v11 = vpop.f32.mrf.mxu1 }
 0x13d   : > { %v4726_v14 = vpop.f32.mrf.mxu0  ;;  %1792 = vmatmul.mubr.bf16.gmra.mxu0 %v4354_v6  ;;  %v4728_v15 = vpop.f32.mrf.mxu1  ;;  %4097 = vmatmul.mubr.bf16.gmra.mxu1 %v4358_v7 }
 0x13e   : > { %1799 = vmatprep.mubr.bf16.mxu0 %v4361_v8  ;;  %4100 = vmatprep.mubr.bf16.mxu1 %v4362_v9 }
 0x13f   : > { %v1603_v18 = vpop.f32.mrf.mxu0  ;;  %v1883_v19 = vpop.f32.mrf.mxu1 }
 0x140   : > { %v4374_v19 = vld [vmem:[%s4470_s30 + $0x330] ss:$12 sps:$4 sm:$0xff]  }
 0x141   : > { %v4730_v20 = vpop.f32.mrf.mxu0  ;;  %v4732_v21 = vpop.f32.mrf.mxu1 }
 0x143   : > { %v1606_v30 = vpop.f32.mrf.mxu0  ;;  %v1886_v31 = vpop.f32.mrf.mxu1 }
 0x145   : > { %v4738_v32 = vpop.f32.mrf.mxu0  ;;  %1800 = vmatmul.mubr.bf16.gmra.mxu0 %v4359_v22  ;;  %v4740_v33 = vpop.f32.mrf.mxu1  ;;  %4101 = vmatmul.mubr.bf16.gmra.mxu1 %v4363_v23 }
 0x146   : > { %1807 = vmatprep.mubr.bf16.mxu0 %v4366_v26  ;;  %4104 = vmatprep.mubr.bf16.mxu1 %v4367_v27 }
 0x147   : > { %v1611_v34 = vpop.f32.mrf.mxu0  ;;  %v1891_v35 = vpop.f32.mrf.mxu1 }
 0x149   : > { %v4742_v38 = vpop.f32.mrf.mxu0  ;;  %v4744_v39 = vpop.f32.mrf.mxu1 }
 0x14b   : > { %v1614_v46 = vpop.f32.mrf.mxu0  ;;  %v1894_v47 = vpop.f32.mrf.mxu1 }
 0x14c   : > { %v4782_v47 = vld [vmem:[%s5046_s2] ss:$0 sm:$0xff] }
 0x14d   : > { %v4750_v50 = vpop.f32.mrf.mxu0  ;;  %1808 = vmatmul.mubr.bf16.gmra.mxu0 %v4364_v42  ;;  %v4752_v51 = vpop.f32.mrf.mxu1  ;;  %4105 = vmatmul.mubr.bf16.gmra.mxu1 %v4368_v43 }
 0x14e   : > { %1815 = vmatprep.mubr.bf16.mxu0 %v4371_v44  ;;  %4108 = vmatprep.mubr.bf16.mxu1 %v4372_v45 }
 0x14f   : > { %v1619_v54 = vpop.f32.mrf.mxu0  ;;  %v1899_v55 = vpop.f32.mrf.mxu1 }
 0x151   : > { %v4754_v56 = vpop.f32.mrf.mxu0  ;;  %v4756_v57 = vpop.f32.mrf.mxu1 }
 0x153   : > { %v1622_v63 = vpop.f32.mrf.mxu0  ;;  %v1902_v6 = vpop.f32.mrf.mxu1 }
 0x155   : > { %v4761_v7 = vpop.f32.mrf.mxu0  ;;  %1816 = vmatmul.mubr.bf16.gmra.mxu0 %v4369_v58  ;;  %v4763_v8 = vpop.f32.mrf.mxu1  ;;  %4109 = vmatmul.mubr.bf16.gmra.mxu1 %v4373_v59 }
 0x156   : > { %1823 = vmatprep.mubr.bf16.mxu0 %v4376_v62 }
 0x157   : > { %v1627_v9 = vpop.f32.mrf.mxu0  ;;  %v1907_v10 = vpop.f32.mrf.mxu1 }
 0x159   : > { %v4765_v11 = vpop.f32.mrf.mxu0  ;;  %v4767_v18 = vpop.f32.mrf.mxu1 }
 0x15b   : > { %v1630_v22 = vpop.f32.mrf.mxu0  ;;  %v1910_v23 = vpop.f32.mrf.mxu1 }
 0x15d   : > { %v4770_v26 = vpop.f32.mrf.mxu0  ;;  %1824 = vmatmul.mubr.bf16.gmra.mxu0 %v4374_v19  ;;  %v4772_v27 = vpop.f32.mrf.mxu1 }
 0x15f   : > { %v1635_v30 = vpop.f32.mrf.mxu0  ;;  %v1915_v31 = vpop.f32.mrf.mxu1 }
 0x161   : > { %v4774_v34 = vpop.f32.mrf.mxu0  ;;  %v1916_v35 = vpop.f32.mrf.mxu1 }
 0x163   : > { %v1638_v42 = vpop.f32.mrf.mxu0  ;;  %v1917_v43 = vpop.f32.mrf.mxu1 }
 0x165   : > { %v4776_v44 = vpop.f32.mrf.mxu0  ;;  %v4022_v45 = vpop.f32.mrf.mxu1 }
 0x166   : > { %v1962_v46 = vadd.f32 %v4022_v45, %v4666_v12 }
 0x167   : > { %v1643_v54 = vpop.f32.mrf.mxu0  ;;  %v1953_v55 = vpop.f32.mrf.mxu1 }
 0x168   : > { %v1954_v58 = vadd.f32 %v1953_v55, %v4654_v0  ;;  %v2604_v63 = vadd.f32 %v4782_v47, %v1962_v46 }
 0x169   : > { %v4785_v59 = vpop.f32.mrf.mxu0  ;;  %v4023_v62 = vpop.f32.mrf.mxu1 }
 0x16a   : > { %v1965_v6 = vadd.f32 %v4023_v62, %v4670_v16  ;;  %v2602_v12 = vadd.f32 %v4782_v47, %v1954_v58  ;;  %v2695_v0 = vmax.f32 %v2604_v63, 0.0 }
 0x16b   : > { %v1646_v9 = vpop.f32.mrf.mxu0  ;;  %v1956_v10 = vpop.f32.mrf.mxu1 }
 0x16c   : > { %v2605_v19 = vadd.f32 %v4782_v47, %v1965_v6  ;;  %v1957_v22 = vadd.f32 %v1956_v10, %v4658_v4  ;;  %v2693_v45 = vmax.f32 %v2602_v12, 0.0 }
 0x16d   : > { %v4793_v23 = vpop.f32.mrf.mxu0  ;;  %v4026_v30 = vpop.f32.mrf.mxu1 }
 0x16e   : > { %v2696_v31 = vmax.f32 %v2605_v19, 0.0  ;;  %v2603_v35 = vadd.f32 %v4782_v47, %v1957_v22  ;;  %v1978_v42 = vadd.f32 %v4026_v30, %v4690_v36 }
 0x16f   : > { %v1651_v16 = vpop.f32.mrf.mxu0  ;;  %v1969_v43 = vpop.f32.mrf.mxu1 }
 0x170   : > { %v3689_v4 = vpack.c.bf16 %v2696_v31, %v2695_v0  ;;  %v2694_v46 = vmax.f32 %v2603_v35, 0.0  ;;  %v1970_v54 = vadd.f32 %v1969_v43, %v4678_v24  ;;  %v2608_v36 = vadd.f32 %v4782_v47, %v1978_v42 }
 0x171   : > { %v4803_v55 = vpop.f32.mrf.mxu0  ;;  %v4027_v58 = vpop.f32.mrf.mxu1 }
 0x172   : > { %3906 = vst [vmem:[%s4800_s28 + $0x8] sm:$0xff] %v3689_v4   ;;  %v3684_v62 = vpack.c.bf16 %v2694_v46, %v2693_v45  ;;  %v1981_v63 = vadd.f32 %v4027_v58, %v4694_v40  ;;  %v2606_v10 = vadd.f32 %v4782_v47, %v1970_v54  ;;  %v2699_v30 = vmax.f32 %v2608_v36, 0.0 }
 0x173   : > { %v1654_v6 = vpop.f32.mrf.mxu0  ;;  %v1972_v9 = vpop.f32.mrf.mxu1 }
 0x174   : > { %3685 = vst [vmem:[%s4800_s28] sm:$0xff] %v3684_v62   ;;  %v2609_v12 = vadd.f32 %v4782_v47, %v1981_v63  ;;  %v1973_v19 = vadd.f32 %v1972_v9, %v4682_v28  ;;  %v2697_v16 = vmax.f32 %v2606_v10, 0.0 }
 0x175   : > { %v4812_v24 = vpop.f32.mrf.mxu0  ;;  %v4030_v22 = vpop.f32.mrf.mxu1 }
 0x176   : > { %v2700_v0 = vmax.f32 %v2609_v12, 0.0  ;;  %v2607_v31 = vadd.f32 %v4782_v47, %v1973_v19  ;;  %v1994_v40 = vadd.f32 %v4030_v22, %v4714_v60 }
 0x177   : > { %v1659_v35 = vpop.f32.mrf.mxu0  ;;  %v1985_v42 = vpop.f32.mrf.mxu1 }
 0x178   : > { %v3699_v43 = vpack.c.bf16 %v2700_v0, %v2699_v30  ;;  %v2698_v45 = vmax.f32 %v2607_v31, 0.0  ;;  %v1986_v4 = vadd.f32 %v1985_v42, %v4702_v48  ;;  %v2612_v58 = vadd.f32 %v4782_v47, %v1994_v40 }
 0x179   : > { %v4817_v46 = vpop.f32.mrf.mxu0  ;;  %v4031_v28 = vpop.f32.mrf.mxu1 }
 0x17a   : > { %3908 = vst [vmem:[%s4800_s28 + $0x18] sm:$0xff] %v3699_v43   ;;  %v3694_v54 = vpack.c.bf16 %v2698_v45, %v2697_v16  ;;  %v1997_v62 = vadd.f32 %v4031_v28, %v4718_v2  ;;  %v2610_v60 = vadd.f32 %v4782_v47, %v1986_v4  ;;  %v2703_v12 = vmax.f32 %v2612_v58, 0.0 }
 0x17b   : > { %v1662_v36 = vpop.f32.mrf.mxu0  ;;  %v1988_v63 = vpop.f32.mrf.mxu1 }
 0x17c   : > { %3907 = vst [vmem:[%s4800_s28 + $0x10] sm:$0xff] %v3694_v54   ;;  %v2613_v6 = vadd.f32 %v4782_v47, %v1997_v62  ;;  %v1989_v9 = vadd.f32 %v1988_v63, %v4706_v52  ;;  %v2701_v31 = vmax.f32 %v2610_v60, 0.0 }
 0x17d   : > { %v4826_v48 = vpop.f32.mrf.mxu0  ;;  %v4034_v10 = vpop.f32.mrf.mxu1 }
 0x17e   : > { %v2704_v19 = vmax.f32 %v2613_v6, 0.0  ;;  %v2611_v22 = vadd.f32 %v4782_v47, %v1989_v9  ;;  %v2010_v2 = vadd.f32 %v4034_v10, %v4738_v32 }
 0x17f   : > { %v1667_v30 = vpop.f32.mrf.mxu0  ;;  %v2001_v0 = vpop.f32.mrf.mxu1 }
 0x180   : > { %v3709_v40 = vpack.c.bf16 %v2704_v19, %v2703_v12  ;;  %v2702_v35 = vmax.f32 %v2611_v22, 0.0  ;;  %v2002_v42 = vadd.f32 %v2001_v0, %v4726_v14  ;;  %v2616_v45 = vadd.f32 %v4782_v47, %v2010_v2 }
 0x181   : > { %v4831_v16 = vpop.f32.mrf.mxu0  ;;  %v4035_v52 = vpop.f32.mrf.mxu1 }
 0x182   : > { %3910 = vst [vmem:[%s4800_s28 + $0x28] sm:$0xff] %v3709_v40   ;;  %v3704_v43 = vpack.c.bf16 %v2702_v35, %v2701_v31  ;;  %v2013_v4 = vadd.f32 %v4035_v52, %v4742_v38  ;;  %v2614_v32 = vadd.f32 %v4782_v47, %v2002_v42  ;;  %v2707_v63 = vmax.f32 %v2616_v45, 0.0 }
 0x183   : > { %v1670_v28 = vpop.f32.mrf.mxu0  ;;  %v2004_v54 = vpop.f32.mrf.mxu1 }
 0x184   : > { %3909 = vst [vmem:[%s4800_s28 + $0x20] sm:$0xff] %v3704_v43   ;;  %v2617_v58 = vadd.f32 %v4782_v47, %v2013_v4  ;;  %v2005_v62 = vadd.f32 %v2004_v54, %v4730_v20  ;;  %v2705_v12 = vmax.f32 %v2614_v32, 0.0 }
 0x185   : > { %v4840_v14 = vpop.f32.mrf.mxu0  ;;  %v4038_v36 = vpop.f32.mrf.mxu1 }
 0x186   : > { %v2708_v60 = vmax.f32 %v2617_v58, 0.0  ;;  %v2615_v6 = vadd.f32 %v4782_v47, %v2005_v62  ;;  %v2026_v38 = vadd.f32 %v4038_v36, %v4761_v7 }
 0x187   : > { %v1675_v9 = vpop.f32.mrf.mxu0  ;;  %v2017_v10 = vpop.f32.mrf.mxu1 }
 0x188   : > { %v3719_v19 = vpack.c.bf16 %v2708_v60, %v2707_v63  ;;  %v2706_v22 = vmax.f32 %v2615_v6, 0.0  ;;  %v2018_v2 = vadd.f32 %v2017_v10, %v4750_v50  ;;  %v2620_v31 = vadd.f32 %v4782_v47, %v2026_v38 }
 0x189   : > { %v4845_v30 = vpop.f32.mrf.mxu0  ;;  %v4039_v20 = vpop.f32.mrf.mxu1 }
 0x18a   : > { %3912 = vst [vmem:[%s4800_s28 + $0x38] sm:$0xff] %v3719_v19   ;;  %v3714_v0 = vpack.c.bf16 %v2706_v22, %v2705_v12  ;;  %v2029_v40 = vadd.f32 %v4039_v20, %v4765_v11  ;;  %v2618_v7 = vadd.f32 %v4782_v47, %v2018_v2  ;;  %v2711_v4 = vmax.f32 %v2620_v31, 0.0 }
 0x18b   : > { %v1678_v35 = vpop.f32.mrf.mxu0  ;;  %v2020_v42 = vpop.f32.mrf.mxu1 }
 0x18c   : > { %3911 = vst [vmem:[%s4800_s28 + $0x30] sm:$0xff] %v3714_v0   ;;  %v2621_v52 = vadd.f32 %v4782_v47, %v2029_v40  ;;  %v2021_v43 = vadd.f32 %v2020_v42, %v4754_v56  ;;  %v2709_v62 = vmax.f32 %v2618_v7, 0.0 }
 0x18d   : > { %v4854_v50 = vpop.f32.mrf.mxu0  ;;  %v4042_v45 = vpop.f32.mrf.mxu1 }
 0x18e   : > { %v2712_v28 = vmax.f32 %v2621_v52, 0.0  ;;  %v2619_v54 = vadd.f32 %v4782_v47, %v2021_v43  ;;  %v2042_v11 = vadd.f32 %v4042_v45, %v4776_v44 }
 0x18f   : > { %v1683_v32 = vpop.f32.mrf.mxu0  ;;  %v2033_v58 = vpop.f32.mrf.mxu1 }
 0x190   : > { %v3729_v36 = vpack.c.bf16 %v2712_v28, %v2711_v4  ;;  %v2710_v63 = vmax.f32 %v2619_v54, 0.0  ;;  %v2034_v60 = vadd.f32 %v2033_v58, %v4770_v26  ;;  %v2624_v9 = vadd.f32 %v4782_v47, %v2042_v11 }
 0x191   : > { %v4859_v6 = vpop.f32.mrf.mxu0  ;;  %v4043_v56 = vpop.f32.mrf.mxu1 }
 0x192   : > { %3914 = vst [vmem:[%s4800_s28 + $0x48] sm:$0xff] %v3729_v36   ;;  %v3724_v38 = vpack.c.bf16 %v2710_v63, %v2709_v62  ;;  %v2045_v10 = vadd.f32 %v4043_v56, %v4785_v59  ;;  %v2622_v44 = vadd.f32 %v4782_v47, %v2034_v60  ;;  %v2715_v0 = vmax.f32 %v2624_v9, 0.0 }
 0x193   : > { %v1686_v12 = vpop.f32.mrf.mxu0  ;;  %v2036_v19 = vpop.f32.mrf.mxu1 }
 0x194   : > { %3913 = vst [vmem:[%s4800_s28 + $0x40] sm:$0xff] %v3724_v38   ;;  %v2625_v22 = vadd.f32 %v4782_v47, %v2045_v10  ;;  %v2037_v2 = vadd.f32 %v2036_v19, %v4774_v34  ;;  %v2713_v7 = vmax.f32 %v2622_v44, 0.0 }
 0x195   : > { %v1689_v26 = vpop.f32.mrf.mxu0  ;;  %v4046_v20 = vpop.f32.mrf.mxu1 }
 0x196   : > { %v2716_v31 = vmax.f32 %v2625_v22, 0.0  ;;  %v2623_v40 = vadd.f32 %v4782_v47, %v2037_v2  ;;  %v2058_v35 = vadd.f32 %v4046_v20, %v4812_v24 }
 0x197   : > { %v1691_v59 = vpop.f32.mrf.mxu0  ;;  %v2049_v42 = vpop.f32.mrf.mxu1 }
 0x198   : > { %v3739_v52 = vpack.c.bf16 %v2716_v31, %v2715_v0  ;;  %v2714_v43 = vmax.f32 %v2623_v40, 0.0  ;;  %v2050_v45 = vadd.f32 %v2049_v42, %v4793_v23  ;;  %v2628_v54 = vadd.f32 %v4782_v47, %v2058_v35 }
 0x199   : > { %v1692_v4 = vpop.f32.mrf.mxu0  ;;  %v4047_v28 = vpop.f32.mrf.mxu1 }
 0x19a   : > { %3916 = vst [vmem:[%s4800_s28 + $0x58] sm:$0xff] %v3739_v52   ;;  %v3734_v34 = vpack.c.bf16 %v2714_v43, %v2713_v7  ;;  %v2061_v11 = vadd.f32 %v4047_v28, %v4817_v46  ;;  %v2626_v24 = vadd.f32 %v4782_v47, %v2050_v45  ;;  %v2719_v60 = vmax.f32 %v2628_v54, 0.0 }
 0x19b   : > { %v1694_v32 = vpop.f32.mrf.mxu0  ;;  %v2052_v58 = vpop.f32.mrf.mxu1 }
 0x19c   : > { %3915 = vst [vmem:[%s4800_s28 + $0x50] sm:$0xff] %v3734_v34   ;;  %v2629_v62 = vadd.f32 %v4782_v47, %v2061_v11  ;;  %v2053_v36 = vadd.f32 %v2052_v58, %v4803_v55  ;;  %v2717_v12 = vmax.f32 %v2626_v24, 0.0 }
 0x19d   : > { %v1697_v63 = vpop.f32.mrf.mxu0  ;;  %v4050_v23 = vpop.f32.mrf.mxu1 }
 0x19e   : > { %v2720_v56 = vmax.f32 %v2629_v62, 0.0  ;;  %v2627_v38 = vadd.f32 %v4782_v47, %v2053_v36  ;;  %v2074_v9 = vadd.f32 %v4050_v23, %v4840_v14 }
 0x19f   : > { %v1699_v46 = vpop.f32.mrf.mxu0  ;;  %v2065_v10 = vpop.f32.mrf.mxu1 }
 0x1a0   : > { %v3749_v19 = vpack.c.bf16 %v2720_v56, %v2719_v60  ;;  %v2718_v44 = vmax.f32 %v2627_v38, 0.0  ;;  %v2066_v22 = vadd.f32 %v2065_v10, %v4826_v48  ;;  %v2632_v0 = vadd.f32 %v4782_v47, %v2074_v9 }
 0x1a1   : > { %v1700_v2 = vpop.f32.mrf.mxu0  ;;  %v4051_v20 = vpop.f32.mrf.mxu1 }
 0x1a2   : > { %3918 = vst [vmem:[%s4800_s28 + $0x68] sm:$0xff] %v3749_v19   ;;  %v3744_v55 = vpack.c.bf16 %v2718_v44, %v2717_v12  ;;  %v2077_v31 = vadd.f32 %v4051_v20, %v4845_v30  ;;  %v2630_v14 = vadd.f32 %v4782_v47, %v2066_v22  ;;  %v2723_v52 = vmax.f32 %v2632_v0, 0.0 }
 0x1a3   : > { %v1702_v40 = vpop.f32.mrf.mxu0  ;;  %v2068_v35 = vpop.f32.mrf.mxu1 }
 0x1a4   : > { %3917 = vst [vmem:[%s4800_s28 + $0x60] sm:$0xff] %v3744_v55   ;;  %v2633_v59 = vadd.f32 %v4782_v47, %v2077_v31  ;;  %v2069_v42 = vadd.f32 %v2068_v35, %v4831_v16  ;;  %v2721_v54 = vmax.f32 %v2630_v14, 0.0 }
 0x1a5   : > { %v1705_v7 = vpop.f32.mrf.mxu0  ;;  %v4054_v48 = vpop.f32.mrf.mxu1 }
 0x1a6   : > { %v2724_v43 = vmax.f32 %v2633_v59, 0.0  ;;  %v2631_v45 = vadd.f32 %v4782_v47, %v2069_v42  ;;  %v2090_v28 = vadd.f32 %v4054_v48, %v1689_v26 }
 0x1a7   : > { %v1707_v34 = vpop.f32.mrf.mxu0  ;;  %v2081_v30 = vpop.f32.mrf.mxu1 }
 0x1a8   : > { %v3759_v11 = vpack.c.bf16 %v2724_v43, %v2723_v52  ;;  %v2722_v32 = vmax.f32 %v2631_v45, 0.0  ;;  %v2082_v58 = vadd.f32 %v2081_v30, %v4854_v50  ;;  %v2636_v16 = vadd.f32 %v4782_v47, %v2090_v28 }
 0x1a9   : > { %v1708_v24 = vpop.f32.mrf.mxu0  ;;  %v4055_v62 = vpop.f32.mrf.mxu1 }
 0x1aa   : > { %3920 = vst [vmem:[%s4800_s28 + $0x78] sm:$0xff] %v3759_v11   ;;  %v3754_v36 = vpack.c.bf16 %v2722_v32, %v2721_v54  ;;  %v2093_v23 = vadd.f32 %v4055_v62, %v1692_v4  ;;  %v2634_v38 = vadd.f32 %v4782_v47, %v2082_v58  ;;  %v2727_v50 = vmax.f32 %v2636_v16, 0.0 }
 0x1ab   : > { %v1710_v60 = vpop.f32.mrf.mxu0  ;;  %v2084_v56 = vpop.f32.mrf.mxu1 }
 0x1ac   : > { %3919 = vst [vmem:[%s4800_s28 + $0x70] sm:$0xff] %v3754_v36   ;;  %v2637_v26 = vadd.f32 %v4782_v47, %v2093_v23  ;;  %v2085_v9 = vadd.f32 %v2084_v56, %v4859_v6  ;;  %v2725_v20 = vmax.f32 %v2634_v38, 0.0 }
 0x1ad   : > { %v1713_v46 = vpop.f32.mrf.mxu0  ;;  %v4058_v10 = vpop.f32.mrf.mxu1 }
 0x1ae   : > { %v2728_v12 = vmax.f32 %v2637_v26, 0.0  ;;  %v2635_v19 = vadd.f32 %v4782_v47, %v2085_v9  ;;  %v2106_v44 = vadd.f32 %v4058_v10, %v1705_v7 }
 0x1af   : > { %v1715_v22 = vpop.f32.mrf.mxu0  ;;  %v2097_v4 = vpop.f32.mrf.mxu1 }
 0x1b0   : > { %v3769_v55 = vpack.c.bf16 %v2728_v12, %v2727_v50  ;;  %v2726_v0 = vmax.f32 %v2635_v19, 0.0  ;;  %v2098_v31 = vadd.f32 %v2097_v4, %v1697_v63  ;;  %v2640_v6 = vadd.f32 %v4782_v47, %v2106_v44 }
 0x1b1   : > { %v1716_v40 = vpop.f32.mrf.mxu0  ;;  %v4059_v35 = vpop.f32.mrf.mxu1 }
 0x1b2   : > { %3922 = vst [vmem:[%s4800_s28 + $0x88] sm:$0xff] %v3769_v55   ;;  %v3764_v14 = vpack.c.bf16 %v2726_v0, %v2725_v20  ;;  %v2109_v59 = vadd.f32 %v4059_v35, %v1708_v24  ;;  %v2638_v52 = vadd.f32 %v4782_v47, %v2098_v31  ;;  %v2731_v34 = vmax.f32 %v2640_v6, 0.0 }
 0x1b3   : > { %v1718_v42 = vpop.f32.mrf.mxu0  ;;  %v2100_v48 = vpop.f32.mrf.mxu1 }
 0x1b4   : > { %3921 = vst [vmem:[%s4800_s28 + $0x80] sm:$0xff] %v3764_v14   ;;  %v2641_v7 = vadd.f32 %v4782_v47, %v2109_v59  ;;  %v2101_v43 = vadd.f32 %v2100_v48, %v1700_v2  ;;  %v2729_v58 = vmax.f32 %v2638_v52, 0.0 }
 0x1b5   : > { %v1721_v45 = vpop.f32.mrf.mxu0  ;;  %v4062_v28 = vpop.f32.mrf.mxu1 }
 0x1b6   : > { %v2732_v63 = vmax.f32 %v2641_v7, 0.0  ;;  %v2639_v30 = vadd.f32 %v4782_v47, %v2101_v43  ;;  %v2122_v54 = vadd.f32 %v4062_v28, %v1721_v45 }
 0x1b7   : > { %v1723_v11 = vpop.f32.mrf.mxu0  ;;  %v2113_v32 = vpop.f32.mrf.mxu1 }
 0x1b8   : > { %v3779_v24 = vpack.c.bf16 %v2732_v63, %v2731_v34  ;;  %v2730_v62 = vmax.f32 %v2639_v30, 0.0  ;;  %v2114_v36 = vadd.f32 %v2113_v32, %v1713_v46  ;;  %v2644_v2 = vadd.f32 %v4782_v47, %v2122_v54 }
 0x1b9   : > { %v1724_v16 = vpop.f32.mrf.mxu0  ;;  %v4063_v23 = vpop.f32.mrf.mxu1 }
 0x1ba   : > { %3924 = vst [vmem:[%s4800_s28 + $0x98] sm:$0xff] %v3779_v24   ;;  %v3774_v60 = vpack.c.bf16 %v2730_v62, %v2729_v58  ;;  %v2125_v56 = vadd.f32 %v4063_v23, %v1724_v16  ;;  %v2642_v9 = vadd.f32 %v4782_v47, %v2114_v36  ;;  %v2735_v46 = vmax.f32 %v2644_v2, 0.0 }
 0x1bb   : > { %v1726_v38 = vpop.f32.mrf.mxu0  ;;  %v2116_v26 = vpop.f32.mrf.mxu1 }
 0x1bc   : > { %3923 = vst [vmem:[%s4800_s28 + $0x90] sm:$0xff] %v3774_v60   ;;  %v2645_v10 = vadd.f32 %v4782_v47, %v2125_v56  ;;  %v2117_v50 = vadd.f32 %v2116_v26, %v1716_v40  ;;  %v2733_v55 = vmax.f32 %v2642_v9, 0.0 }
 0x1bd   : > { %v1729_v12 = vpop.f32.mrf.mxu0  ;;  %v4066_v19 = vpop.f32.mrf.mxu1 }
 0x1be   : > { %v2736_v44 = vmax.f32 %v2645_v10, 0.0  ;;  %v2643_v22 = vadd.f32 %v4782_v47, %v2117_v50 }
 0x1bf   : > { %v1731_v4 = vpop.f32.mrf.mxu0  ;;  %v2129_v20 = vpop.f32.mrf.mxu1 }
 0x1c0   : > { %v3789_v0 = vpack.c.bf16 %v2736_v44, %v2735_v46  ;;  %v2734_v31 = vmax.f32 %v2643_v22, 0.0  ;;  %v2130_v35 = vadd.f32 %v2129_v20, %v1729_v12 }
 0x1c1   : > { %v1732_v14 = vpop.f32.mrf.mxu0  ;;  %v4067_v6 = vpop.f32.mrf.mxu1 }
 0x1c2   : > { %3926 = vst [vmem:[%s4800_s28 + $0xa8] sm:$0xff] %v3789_v0   ;;  %v3784_v59 = vpack.c.bf16 %v2734_v31, %v2733_v55  ;;  %v2646_v40 = vadd.f32 %v4782_v47, %v2130_v35 }
 0x1c3   : > { %v1734_v42 = vpop.f32.mrf.mxu0  ;;  %v2132_v48 = vpop.f32.mrf.mxu1 }
 0x1c4   : > { %3925 = vst [vmem:[%s4800_s28 + $0xa0] sm:$0xff] %v3784_v59   ;;  %v2133_v52 = vadd.f32 %v2132_v48, %v1732_v14  ;;  %v2737_v30 = vmax.f32 %v2646_v40, 0.0 }
 0x1c5   : > { %v1737_v7 = vpop.f32.mrf.mxu0  ;;  %v4070_v43 = vpop.f32.mrf.mxu1 }
 0x1c6   : > { %v2647_v45 = vadd.f32 %v4782_v47, %v2133_v52  ;;  %v2138_v28 = vadd.f32 %v4066_v19, %v1737_v7 }
 0x1c7   : > { %v1739_v34 = vpop.f32.mrf.mxu0  ;;  %v2145_v63 = vpop.f32.mrf.mxu1 }
 0x1c8   : > { %v2738_v54 = vmax.f32 %v2647_v45, 0.0  ;;  %v2648_v24 = vadd.f32 %v4782_v47, %v2138_v28 }
 0x1c9   : > { %v1740_v11 = vpop.f32.mrf.mxu0  ;;  %v4071_v32 = vpop.f32.mrf.mxu1 }
 0x1ca   : > { %v3794_v58 = vpack.c.bf16 %v2738_v54, %v2737_v30  ;;  %v2141_v62 = vadd.f32 %v4067_v6, %v1740_v11  ;;  %v2739_v56 = vmax.f32 %v2648_v24, 0.0 }
 0x1cb   : > { %v1742_v36 = vpop.f32.mrf.mxu0  ;;  %v2148_v16 = vpop.f32.mrf.mxu1 }
 0x1cc   : > { %3927 = vst [vmem:[%s4800_s28 + $0xb0] sm:$0xff] %v3794_v58   ;;  %v2649_v23 = vadd.f32 %v4782_v47, %v2141_v62 }
 0x1cd   : > { %v1745_v60 = vpop.f32.mrf.mxu0  ;;  %v4074_v2 = vpop.f32.mrf.mxu1 }
 0x1ce   : > { %v2740_v38 = vmax.f32 %v2649_v23, 0.0  ;;  %v2146_v26 = vadd.f32 %v2145_v63, %v1745_v60 }
 0x1cf   : > { %v1747_v9 = vpop.f32.mrf.mxu0  ;;  %v2161_v10 = vpop.f32.mrf.mxu1 }
 0x1d0   : > { %v3799_v50 = vpack.c.bf16 %v2740_v38, %v2739_v56  ;;  %v2650_v46 = vadd.f32 %v4782_v47, %v2146_v26 }
 0x1d1   : > { %v1748_v12 = vpop.f32.mrf.mxu0  ;;  %v4075_v19 = vpop.f32.mrf.mxu1 }
 0x1d2   : > { %3928 = vst [vmem:[%s4800_s28 + $0xb8] sm:$0xff] %v3799_v50   ;;  %v2149_v44 = vadd.f32 %v2148_v16, %v1748_v12  ;;  %v2741_v31 = vmax.f32 %v2650_v46, 0.0 }
 0x1d3   : > { %v1750_v22 = vpop.f32.mrf.mxu0  ;;  %v2164_v4 = vpop.f32.mrf.mxu1 }
 0x1d4   : > { %v2651_v20 = vadd.f32 %v4782_v47, %v2149_v44 }
 0x1d5   : > { %v1753_v55 = vpop.f32.mrf.mxu0  ;;  %v4919_v0 = vpop.f32.mrf.mxu1 }
 0x1d6   : > { %v2742_v35 = vmax.f32 %v2651_v20, 0.0  ;;  %v2154_v14 = vadd.f32 %v4070_v43, %v1753_v55 }
 0x1d7   : > { %v1755_v6 = vpop.f32.mrf.mxu0  ;;  %v2177_v59 = vpop.f32.mrf.mxu1 }
 0x1d8   : > { %v3804_v42 = vpack.c.bf16 %v2742_v35, %v2741_v31  ;;  %v2652_v52 = vadd.f32 %v4782_v47, %v2154_v14 }
 0x1d9   : > { %v1756_v48 = vpop.f32.mrf.mxu0  ;;  %v4921_v40 = vpop.f32.mrf.mxu1 }
 0x1da   : > { %3929 = vst [vmem:[%s4800_s28 + $0xc0] sm:$0xff] %v3804_v42   ;;  %v2157_v7 = vadd.f32 %v4071_v32, %v1756_v48  ;;  %v2743_v54 = vmax.f32 %v2652_v52, 0.0 }
 0x1db   : > { %v1758_v45 = vpop.f32.mrf.mxu0  ;;  %v2180_v28 = vpop.f32.mrf.mxu1 }
 0x1dc   : > { %v2653_v34 = vadd.f32 %v4782_v47, %v2157_v7 }
 0x1dd   : > { %v1761_v63 = vpop.f32.mrf.mxu0  ;;  %v4926_v30 = vpop.f32.mrf.mxu1 }
 0x1de   : > { %v2744_v43 = vmax.f32 %v2653_v34, 0.0  ;;  %v2162_v11 = vadd.f32 %v2161_v10, %v1761_v63 }
 0x1df   : > { %v1763_v58 = vpop.f32.mrf.mxu0  ;;  %v4928_v24 = vpop.f32.mrf.mxu1 }
 0x1e0   : > { %v3809_v62 = vpack.c.bf16 %v2744_v43, %v2743_v54  ;;  %v2654_v32 = vadd.f32 %v4782_v47, %v2162_v11 }
 0x1e1   : > { %v1764_v36 = vpop.f32.mrf.mxu0  ;;  %v4930_v16 = vpop.f32.mrf.mxu1 }
 0x1e2   : > { %3930 = vst [vmem:[%s4800_s28 + $0xc8] sm:$0xff] %v3809_v62   ;;  %v2165_v23 = vadd.f32 %v2164_v4, %v1764_v36  ;;  %v2745_v10 = vmax.f32 %v2654_v32, 0.0 }
 0x1e3   : > { %v1766_v60 = vpop.f32.mrf.mxu0  ;;  %v4934_v56 = vpop.f32.mrf.mxu1 }
 0x1e4   : > { %v2655_v38 = vadd.f32 %v4782_v47, %v2165_v23 }
 0x1e5   : > { %v1769_v26 = vpop.f32.mrf.mxu0  ;;  %v4937_v9 = vpop.f32.mrf.mxu1 }
 0x1e6   : > { %v2746_v50 = vmax.f32 %v2655_v38, 0.0  ;;  %v2170_v12 = vadd.f32 %v4074_v2, %v1769_v26 }
 0x1e7   : > { %v1771_v46 = vpop.f32.mrf.mxu0  ;;  %v4939_v44 = vpop.f32.mrf.mxu1 }
 0x1e8   : > { %v3814_v22 = vpack.c.bf16 %v2746_v50, %v2745_v10  ;;  %v2656_v4 = vadd.f32 %v4782_v47, %v2170_v12 }
 0x1e9   : > { %v1772_v20 = vpop.f32.mrf.mxu0  ;;  %v4941_v55 = vpop.f32.mrf.mxu1 }
 0x1ea   : > { %3931 = vst [vmem:[%s4800_s28 + $0xd0] sm:$0xff] %v3814_v22   ;;  %v2173_v31 = vadd.f32 %v4075_v19, %v1772_v20  ;;  %v2747_v2 = vmax.f32 %v2656_v4, 0.0 }
 0x1eb   : > { %v1774_v35 = vpop.f32.mrf.mxu0  ;;  %v4945_v14 = vpop.f32.mrf.mxu1 }
 0x1ec   : > { %v2657_v6 = vadd.f32 %v4782_v47, %v2173_v31 }
 0x1ed   : > { %v1777_v42 = vpop.f32.mrf.mxu0  ;;  %v4090_v48 = vpop.f32.mrf.mxu1 }
 0x1ee   : > { %v2748_v52 = vmax.f32 %v2657_v6, 0.0  ;;  %v2178_v7 = vadd.f32 %v2177_v59, %v1777_v42  ;;  %v2234_v45 = vadd.f32 %v4090_v48, %v4656_v1 }
 0x1ef   : > { %v1779_v34 = vpop.f32.mrf.mxu0  ;;  %v4949_v63 = vpop.f32.mrf.mxu1 }
 0x1f0   : > { %v3819_v54 = vpack.c.bf16 %v2748_v52, %v2747_v2  ;;  %v2658_v43 = vadd.f32 %v4782_v47, %v2178_v7  ;;  %v2672_v19 = vadd.f32 %v4782_v47, %v2234_v45 }
 0x1f1   : > { %v1780_v11 = vpop.f32.mrf.mxu0  ;;  %v4091_v58 = vpop.f32.mrf.mxu1 }
 0x1f2   : > { %3932 = vst [vmem:[%s4800_s28 + $0xd8] sm:$0xff] %v3819_v54   ;;  %v2181_v62 = vadd.f32 %v2180_v28, %v1780_v11  ;;  %v2237_v36 = vadd.f32 %v4091_v58, %v4660_v5  ;;  %v2749_v60 = vmax.f32 %v2658_v43, 0.0  ;;  %v2763_v38 = vmax.f32 %v2672_v19, 0.0 }
 0x1f3   : > { %v1782_v32 = vpop.f32.mrf.mxu0  ;;  %v4955_v23 = vpop.f32.mrf.mxu1 }
 0x1f4   : > { %v2659_v59 = vadd.f32 %v4782_v47, %v2181_v62  ;;  %v2673_v1 = vadd.f32 %v4782_v47, %v2237_v36 }
 0x1f5   : > { %v1785_v26 = vpop.f32.mrf.mxu0  ;;  %v4094_v10 = vpop.f32.mrf.mxu1 }
 0x1f6   : > { %v2750_v50 = vmax.f32 %v2659_v59, 0.0  ;;  %v2764_v12 = vmax.f32 %v2673_v1, 0.0  ;;  %v2186_v46 = vadd.f32 %v4919_v0, %v1785_v26  ;;  %v2250_v28 = vadd.f32 %v4094_v10, %v4680_v25 }
 0x1f7   : > { %v1787_v5 = vpop.f32.mrf.mxu0  ;;  %v2241_v22 = vpop.f32.mrf.mxu1 }
 0x1f8   : > { %v3824_v20 = vpack.c.bf16 %v2750_v50, %v2749_v60  ;;  %v3859_v4 = vpack.c.bf16 %v2764_v12, %v2763_v38  ;;  %v2660_v31 = vadd.f32 %v4782_v47, %v2186_v46  ;;  %v2676_v35 = vadd.f32 %v4782_v47, %v2250_v28 }
 0x1f9   : > { %v2242_v6 = vadd.f32 %v2241_v22, %v4668_v13  ;;  %v1788_v42 = vpop.f32.mrf.mxu0  ;;  %v4095_v48 = vpop.f32.mrf.mxu1 }
 0x1fa   : > { %3933 = vst [vmem:[%s4800_s28 + $0xe0] sm:$0xff] %v3824_v20   ;;  %3940 = vst [vmem:[%s4800_s28 + $0x118] sm:$0xff] %v3859_v4   ;;  %v2189_v2 = vadd.f32 %v4921_v40, %v1788_v42  ;;  %v2253_v0 = vadd.f32 %v4095_v48, %v4684_v29  ;;  %v2751_v43 = vmax.f32 %v2660_v31, 0.0  ;;  %v2767_v13 = vmax.f32 %v2676_v35, 0.0 }
 0x1fb   : > { %v1790_v52 = vpop.f32.mrf.mxu0  ;;  %v2244_v25 = vpop.f32.mrf.mxu1  ;;  %v2674_v7 = vadd.f32 %v4782_v47, %v2242_v6 }
 0x1fc   : > { %v2661_v45 = vadd.f32 %v4782_v47, %v2189_v2  ;;  %v2677_v34 = vadd.f32 %v4782_v47, %v2253_v0  ;;  %v2245_v54 = vadd.f32 %v2244_v25, %v4672_v17 }
 0x1fd   : > { %v1793_v19 = vpop.f32.mrf.mxu0  ;;  %v4098_v11 = vpop.f32.mrf.mxu1  ;;  %v2765_v1 = vmax.f32 %v2674_v7, 0.0 }
 0x1fe   : > { %v2752_v58 = vmax.f32 %v2661_v45, 0.0  ;;  %v2768_v62 = vmax.f32 %v2677_v34, 0.0  ;;  %v2675_v29 = vadd.f32 %v4782_v47, %v2245_v54  ;;  %v2194_v40 = vadd.f32 %v4928_v24, %v1793_v19 }
 0x1ff   : > { %v2266_v36 = vadd.f32 %v4098_v11, %v4704_v49  ;;  %v1795_v32 = vpop.f32.mrf.mxu0  ;;  %v2257_v59 = vpop.f32.mrf.mxu1 }
 0x200   : > { %v3829_v60 = vpack.c.bf16 %v2752_v58, %v2751_v43  ;;  %v3869_v17 = vpack.c.bf16 %v2768_v62, %v2767_v13  ;;  %v2766_v38 = vmax.f32 %v2675_v29, 0.0  ;;  %v2662_v26 = vadd.f32 %v4782_v47, %v2194_v40 }
 0x201   : > { %v2680_v10 = vadd.f32 %v4782_v47, %v2266_v36  ;;  %v2258_v50 = vadd.f32 %v2257_v59, %v4692_v37  ;;  %v1796_v12 = vpop.f32.mrf.mxu0  ;;  %v4099_v46 = vpop.f32.mrf.mxu1 }
 0x202   : > { %3934 = vst [vmem:[%s4800_s28 + $0xe8] sm:$0xff] %v3829_v60   ;;  %3942 = vst [vmem:[%s4800_s28 + $0x128] sm:$0xff] %v3869_v17   ;;  %v3864_v24 = vpack.c.bf16 %v2766_v38, %v2765_v1  ;;  %v2197_v49 = vadd.f32 %v4934_v56, %v1796_v12  ;;  %v2269_v28 = vadd.f32 %v4099_v46, %v4708_v53  ;;  %v2753_v35 = vmax.f32 %v2662_v26, 0.0 }
 0x203   : > { %v1798_v5 = vpop.f32.mrf.mxu0  ;;  %v2260_v22 = vpop.f32.mrf.mxu1  ;;  %v2678_v20 = vadd.f32 %v4782_v47, %v2258_v50  ;;  %v2771_v6 = vmax.f32 %v2680_v10, 0.0 }
 0x204   : > { %3941 = vst [vmem:[%s4800_s28 + $0x120] sm:$0xff] %v3864_v24   ;;  %v2663_v4 = vadd.f32 %v4782_v47, %v2197_v49  ;;  %v2681_v31 = vadd.f32 %v4782_v47, %v2269_v28  ;;  %v2261_v37 = vadd.f32 %v2260_v22, %v4696_v41 }
 0x205   : > { %v1801_v42 = vpop.f32.mrf.mxu0  ;;  %v4102_v48 = vpop.f32.mrf.mxu1  ;;  %v2769_v45 = vmax.f32 %v2678_v20, 0.0 }
 0x206   : > { %v2754_v2 = vmax.f32 %v2663_v4, 0.0  ;;  %v2772_v56 = vmax.f32 %v2681_v31, 0.0  ;;  %v2679_v53 = vadd.f32 %v4782_v47, %v2261_v37  ;;  %v2202_v0 = vadd.f32 %v4926_v30, %v1801_v42 }
 0x207   : > { %v2282_v52 = vadd.f32 %v4102_v48, %v4728_v15  ;;  %v1803_v25 = vpop.f32.mrf.mxu0  ;;  %v2273_v7 = vpop.f32.mrf.mxu1 }
 0x208   : > { %v3834_v34 = vpack.c.bf16 %v2754_v2, %v2753_v35  ;;  %v3879_v41 = vpack.c.bf16 %v2772_v56, %v2771_v6  ;;  %v2770_v54 = vmax.f32 %v2679_v53, 0.0  ;;  %v2664_v43 = vadd.f32 %v4782_v47, %v2202_v0 }
 0x209   : > { %v2684_v13 = vadd.f32 %v4782_v47, %v2282_v52  ;;  %v2274_v19 = vadd.f32 %v2273_v7, %v4716_v61  ;;  %v1804_v11 = vpop.f32.mrf.mxu0  ;;  %v4103_v58 = vpop.f32.mrf.mxu1 }
 0x20a   : > { %3935 = vst [vmem:[%s4800_s28 + $0xf0] sm:$0xff] %v3834_v34   ;;  %3944 = vst [vmem:[%s4800_s28 + $0x138] sm:$0xff] %v3879_v41   ;;  %v3874_v30 = vpack.c.bf16 %v2770_v54, %v2769_v45  ;;  %v2205_v15 = vadd.f32 %v4930_v16, %v1804_v11  ;;  %v2285_v62 = vadd.f32 %v4103_v58, %v4732_v21  ;;  %v2755_v1 = vmax.f32 %v2664_v43, 0.0 }
 0x20b   : > { %v1806_v29 = vpop.f32.mrf.mxu0  ;;  %v2276_v40 = vpop.f32.mrf.mxu1  ;;  %v2682_v36 = vadd.f32 %v4782_v47, %v2274_v19  ;;  %v2775_v60 = vmax.f32 %v2684_v13, 0.0  ;;  %v4377_v19 = vld [vmem:[%s5046_s2] ss:$0 sm:$0xff] }
 0x20c   : > { %3943 = vst [vmem:[%s4800_s28 + $0x130] sm:$0xff] %v3874_v30   ;;  %v2665_v32 = vadd.f32 %v4782_v47, %v2205_v15  ;;  %v2685_v59 = vadd.f32 %v4782_v47, %v2285_v62  ;;  %v2277_v61 = vadd.f32 %v2276_v40, %v4720_v3 }
 0x20d   : > { %v1809_v17 = vpop.f32.mrf.mxu0  ;;  %v4106_v38 = vpop.f32.mrf.mxu1  ;;  %v2773_v24 = vmax.f32 %v2682_v36, 0.0 }
 0x20e   : > { %v2756_v26 = vmax.f32 %v2665_v32, 0.0  ;;  %v2776_v16 = vmax.f32 %v2685_v59, 0.0  ;;  %v2683_v21 = vadd.f32 %v4782_v47, %v2277_v61  ;;  %v2210_v10 = vadd.f32 %v4939_v44, %v1809_v17 }
 0x20f   : > { %v2298_v50 = vadd.f32 %v4106_v38, %v4752_v51  ;;  %v1811_v12 = vpop.f32.mrf.mxu0  ;;  %v2289_v46 = vpop.f32.mrf.mxu1 }
 0x210   : > { %v3839_v49 = vpack.c.bf16 %v2756_v26, %v2755_v1  ;;  %v3889_v3 = vpack.c.bf16 %v2776_v16, %v2775_v60  ;;  %v2774_v28 = vmax.f32 %v2683_v21, 0.0  ;;  %v2666_v5 = vadd.f32 %v4782_v47, %v2210_v10 }
 0x211   : > { %v2688_v22 = vadd.f32 %v4782_v47, %v2298_v50  ;;  %v2290_v20 = vadd.f32 %v2289_v46, %v4740_v33  ;;  %v1812_v4 = vpop.f32.mrf.mxu0  ;;  %v4107_v31 = vpop.f32.mrf.mxu1 }
 0x212   : > { %3936 = vst [vmem:[%s4800_s28 + $0xf8] sm:$0xff] %v3839_v49   ;;  %3946 = vst [vmem:[%s4800_s28 + $0x148] sm:$0xff] %v3889_v3   ;;  %v3884_v44 = vpack.c.bf16 %v2774_v28, %v2773_v24  ;;  %v2213_v51 = vadd.f32 %v4945_v14, %v1812_v4  ;;  %v2301_v37 = vadd.f32 %v4107_v31, %v4756_v57  ;;  %v2757_v56 = vmax.f32 %v2666_v5, 0.0 }
 0x213   : > { %v1814_v35 = vpop.f32.mrf.mxu0  ;;  %v2292_v6 = vpop.f32.mrf.mxu1  ;;  %v2686_v42 = vadd.f32 %v4782_v47, %v2290_v20  ;;  %v2779_v53 = vmax.f32 %v2688_v22, 0.0 }
 0x214   : > { %3945 = vst [vmem:[%s4800_s28 + $0x140] sm:$0xff] %v3884_v44   ;;  %v2667_v48 = vadd.f32 %v4782_v47, %v2213_v51  ;;  %v2689_v2 = vadd.f32 %v4782_v47, %v2301_v37  ;;  %v2293_v33 = vadd.f32 %v2292_v6, %v4744_v39 }
 0x215   : > { %v1817_v0 = vpop.f32.mrf.mxu0  ;;  %v4110_v52 = vpop.f32.mrf.mxu1  ;;  %v2777_v54 = vmax.f32 %v2686_v42, 0.0 }
 0x216   : > { %v2758_v25 = vmax.f32 %v2667_v48, 0.0  ;;  %v2780_v14 = vmax.f32 %v2689_v2, 0.0  ;;  %v2687_v57 = vadd.f32 %v4782_v47, %v2293_v33  ;;  %v2218_v7 = vadd.f32 %v4937_v9, %v1817_v0 }
 0x217   : > { %v2314_v45 = vadd.f32 %v4110_v52, %v4772_v27  ;;  %v1819_v34 = vpop.f32.mrf.mxu0  ;;  %v2305_v41 = vpop.f32.mrf.mxu1 }
 0x218   : > { %v3844_v43 = vpack.c.bf16 %v2758_v25, %v2757_v56  ;;  %v3899_v39 = vpack.c.bf16 %v2780_v14, %v2779_v53  ;;  %v2778_v13 = vmax.f32 %v2687_v57, 0.0  ;;  %v2306_v58 = vadd.f32 %v2305_v41, %v4763_v8 }
 0x219   : > { %v2692_v11 = vadd.f32 %v4377_v19, %v2314_v45  ;;  %v1820_v30 = vpop.f32.mrf.mxu0  ;;  %v4111_v47 = vpop.f32.mrf.mxu1  ;;  %v2668_v27 = vadd.f32 %v4377_v19, %v2218_v7 }
 0x21a   : > { %3937 = vst [vmem:[%s4800_s28 + $0x100] sm:$0xff] %v3844_v43   ;;  %3948 = vst [vmem:[%s4800_s28 + $0x158] sm:$0xff] %v3899_v39   ;;  %v3894_v9 = vpack.c.bf16 %v2778_v13, %v2777_v54  ;;  %v2221_v15 = vadd.f32 %v4941_v55, %v1820_v30  ;;  %v2690_v36 = vadd.f32 %v4377_v19, %v2306_v58 }
 0x21b   : > { %v2783_v62 = vmax.f32 %v2692_v11, 0.0  ;;  %v1822_v29 = vpop.f32.mrf.mxu0  ;;  %v2308_v40 = vpop.f32.mrf.mxu1  ;;  %v2759_v1 = vmax.f32 %v2668_v27, 0.0 }
 0x21c   : > { %3947 = vst [vmem:[%s4800_s28 + $0x150] sm:$0xff] %v3894_v9   ;;  %v2669_v32 = vadd.f32 %v4377_v19, %v2221_v15  ;;  %v2309_v59 = vadd.f32 %v2308_v40, %v4767_v18  ;;  %v2781_v26 = vmax.f32 %v2690_v36, 0.0 }
 0x21d   : > { %v3680_v61 = vpack.c.bf16 %v2783_v62, %v2783_v62  ;;  %v1825_v8 = vpop.f32.mrf.mxu0 }
 0x21e   : > { %v2760_v60 = vmax.f32 %v2669_v32, 0.0  ;;  %v2691_v17 = vadd.f32 %v4377_v19, %v2309_v59  ;;  %v2226_v38 = vadd.f32 %v4949_v63, %v1825_v8 }
 0x21f   : > { %3239 = vst [vmem:[%s4800_s28 + $0x168] sm:$0xf] %v3680_v61  ;;  %v1827_v55 = vpop.f32.mrf.mxu0 }
 0x220   : > { %v3849_v16 = vpack.c.bf16 %v2760_v60, %v2759_v1  ;;  %v2782_v21 = vmax.f32 %v2691_v17, 0.0  ;;  %v2670_v12 = vadd.f32 %v4377_v19, %v2226_v38 }
 0x221   : > { %v1828_v10 = vpop.f32.mrf.mxu0 }
 0x222   : > { %3938 = vst [vmem:[%s4800_s28 + $0x108] sm:$0xff] %v3849_v16   ;;  %v3904_v50 = vpack.c.bf16 %v2782_v21, %v2781_v26  ;;  %v2229_v18 = vadd.f32 %v4955_v23, %v1828_v10  ;;  %v2761_v49 = vmax.f32 %v2670_v12, 0.0 }
 0x223   : > { %v1830_v46 = vpop.f32.mrf.mxu0 }
 0x224   : > { %3949 = vst [vmem:[%s4800_s28 + $0x160] sm:$0xff] %v3904_v50   ;;  %v2671_v24 = vadd.f32 %v4377_v19, %v2229_v18 }
 0x226   : > { %v2762_v3 = vmax.f32 %v2671_v24, 0.0 }
 0x228   : > { %v3854_v28 = vpack.c.bf16 %v2762_v3, %v2761_v49 }
 0x22a   : > { %3939 = vst [vmem:[%s4800_s28 + $0x110] sm:$0xff] %v3854_v28  }
 0x22b PF: > { %s13_s14 = sadd.s32 1, %s4400_s14   ;;  %s5048_s12 = smov %s4396_s13 }
 0x22c   : > { %p10_p5 = scmp.ge.s32.totalorder %s13_s14, 6   ;;  %s5049_s13 = smov %s5051_s15 }
 0x22e   :  { %12 = sbr.rel (!%p10_p5) target bundleno = 2 (0x2), region = 73 }

// kernel: morphics_forward.5
= control target key start
LH: loop header
LB: loop body
LE: loop exit
PB: predicated region body
PF: predicated region fallthrough
CT: control target
= control target key end

     0   :  { %s5545_s12 = smov 0   ;;  %s5547_s13 = smov 0   ;;  %s6551_s0 = inlined_call_operand.vmem [shape: bf16[208,5376], index: 0, kind: input, shape index: {}]   ;;  %s6552_s1 = inlined_call_operand.vmem [shape: bf16[5376,128], index: 1, kind: input, shape index: {}]   ;;  %s6553_s2 = inlined_call_operand.vmem [shape: f32[1,128], index: 2, kind: input, shape index: {}]   ;;  %s6554_s3 = inlined_call_operand.vmem [shape: bf16[208,128], index: 3, kind: output, shape index: {}]  }
   0x1   :  { %s5549_s14 = smov 0   ;;  %s5551_s15 = smov 0  }
   0x2   :  { %s5553_s16 = smov 0   ;;  %s5555_s17 = smov 0  }
   0x3   :  { %s5557_s18 = smov 0  }
   0x4 LB: > { %s22_s19 = sadd.s32 1, %s5512_s16  ;;  %s25_s20 = sadd.s32 1, %s5516_s17  ;;  %s5520_s18 = sphi %s5557_s18, %s13_s18   ;;  %s5516_s17 = sphi %s5555_s17, %s6596_s17   ;;  %s5512_s16 = sphi %s5553_s16, %s6595_s16   ;;  %s5508_s15 = sphi %s5551_s15, %s6594_s15   ;;  %s5504_s14 = sphi %s5549_s14, %s6593_s14   ;;  %s5500_s13 = sphi %s5547_s13, %s6592_s13   ;;  %s5496_s12 = sphi %s5545_s12, %s6591_s12  }
   0x5   : > { %p23_p0 = scmp.ge.s32.totalorder %s22_s19, 2  ;;  %p41_p1 = scmp.ne.s32.totalorder %s5500_s13, %s5496_s12 }
   0x6   : > { %p42_p2 = scmp.eq.s32.totalorder %s5520_s18, 0  ;;  %s34_s24 = sadd.s32 1, %s5500_s13 }
   0x7   : > { %s6598_s19 = smov (%p23_p0, %s22_s19), 0  ;;  %s6600_s20 = smov (!%p23_p0, %s25_s20), %s5516_s17 }
   0x8   : > { %p43_p3 = por %p42_p2, %p41_p1  ;;  %p27_p4 = scmp.ge.s32.totalorder %s6600_s20, 2 }
   0x9   : > { %s30_s21 = ssub.s32 %s5512_s16, %s6598_s19  ;;  %p3961_p6 = scmp.ge.s32.totalorder %s5520_s18, 4 }
   0xa   : > { %s6602_s20 = smov (%p27_p4, %s6600_s20), 0 }
   0xb   : > { %s29_s22 = ssub.s32 %s5516_s17, %s6602_s20  ;;  %143 = sbr.rel (%p3961_p6) target bundleno = 98 (0x62), region = 20 }
   0xc   : > { %s31_s23 = sor.u32 %s30_s21, %s29_s22 }
   0xd   : > { %p32_p5 = scmp.eq.s32.totalorder %s31_s23, 0 }
   0xf   : > { %s5596_s25 = scalar_select %p32_p5, %s5500_s13, %s34_s24  }
  0x10   : > { %146 = sbr.rel (!%p43_p3) target bundleno = 98 (0x62), region = 24  ;;  %s148_s26 = sand.u32 (%p43_p3), 1, %s5500_s13  }
  0x11   : > { %s5028_s27 = smul.u32 (%p43_p3), 1092, %s148_s26 }
  0x12   : > { %s152_s28 = smul.u32 (%p43_p3), 21, %s5512_s16 }
  0x13   : > { %s5031_s29 = smul.u32 (%p43_p3), 546, %s5516_s17  ;;  %s5610_s8 = scalar_lea.vmem (%p43_p3), [#allocation3], %s5028_s27 }
  0x15   : > { %s154_s30 = sadd.s32 %s5031_s29, %s152_s28 }
  0x16   : > { %s3962_s4 = sshll.u32 %s154_s30, 2 }
  0x17   : > { %s5605_s7 = scalar_lea.vmem %s6551_s0, %s3962_s4 }
  0x18   : > { %v171_v0 = vld [vmem:[%s5605_s7] sm:$0xff]  ;;  %v173_v1 = vld [vmem:[%s5605_s7 + $0x8] sm:$0xff]  ;;  %v175_v2 = vld [vmem:[%s5605_s7 + $0x10] sm:$0xff] }
  0x19   : > { %172 = vst [vmem:[%s5610_s8] sm:$0xff] %v171_v0  ;;  %174 = vst [vmem:[%s5610_s8 + $0x8] sm:$0xff] %v173_v1  ;;  %v177_v3 = vld [vmem:[%s5605_s7 + $0x18] sm:$0xff]  ;;  %v179_v4 = vld [vmem:[%s5605_s7 + $0x20] sm:$0xff] }
  0x1a   : > { %176 = vst [vmem:[%s5610_s8 + $0x10] sm:$0xff] %v175_v2  ;;  %v181_v5 = vld [vmem:[%s5605_s7 + $0x28] sm:$0xff]  ;;  %178 = vst [vmem:[%s5610_s8 + $0x18] sm:$0xff] %v177_v3  ;;  %v183_v6 = vld [vmem:[%s5605_s7 + $0x30] sm:$0xff] }
  0x1b   : > { %180 = vst [vmem:[%s5610_s8 + $0x20] sm:$0xff] %v179_v4  ;;  %182 = vst [vmem:[%s5610_s8 + $0x28] sm:$0xff] %v181_v5  ;;  %v185_v7 = vld [vmem:[%s5605_s7 + $0x38] sm:$0xff]  ;;  %v187_v8 = vld [vmem:[%s5605_s7 + $0x40] sm:$0xff] }
  0x1c   : > { %184 = vst [vmem:[%s5610_s8 + $0x30] sm:$0xff] %v183_v6  ;;  %186 = vst [vmem:[%s5610_s8 + $0x38] sm:$0xff] %v185_v7  ;;  %v189_v9 = vld [vmem:[%s5605_s7 + $0x48] sm:$0xff]  ;;  %v193_v11 = vld [vmem:[%s5605_s7 + $0xb0] sm:$0xff] }
  0x1d   : > { %188 = vst [vmem:[%s5610_s8 + $0x40] sm:$0xff] %v187_v8  ;;  %v191_v10 = vld [vmem:[%s5605_s7 + $0xa8] sm:$0xff]  ;;  %190 = vst [vmem:[%s5610_s8 + $0x48] sm:$0xff] %v189_v9  ;;  %v195_v12 = vld [vmem:[%s5605_s7 + $0xb8] sm:$0xff] }
  0x1e   : > { %192 = vst [vmem:[%s5610_s8 + $0x54] sm:$0xff] %v191_v10  ;;  %194 = vst [vmem:[%s5610_s8 + $0x5c] sm:$0xff] %v193_v11  ;;  %v197_v13 = vld [vmem:[%s5605_s7 + $0xc0] sm:$0xff]  ;;  %v199_v14 = vld [vmem:[%s5605_s7 + $0xc8] sm:$0xff] }
  0x1f   : > { %196 = vst [vmem:[%s5610_s8 + $0x64] sm:$0xff] %v195_v12  ;;  %198 = vst [vmem:[%s5610_s8 + $0x6c] sm:$0xff] %v197_v13  ;;  %v201_v15 = vld [vmem:[%s5605_s7 + $0xd0] sm:$0xff]  ;;  %v203_v16 = vld [vmem:[%s5605_s7 + $0xd8] sm:$0xff] }
  0x20   : > { %200 = vst [vmem:[%s5610_s8 + $0x74] sm:$0xff] %v199_v14  ;;  %v205_v17 = vld [vmem:[%s5605_s7 + $0xe0] sm:$0xff]  ;;  %202 = vst [vmem:[%s5610_s8 + $0x7c] sm:$0xff] %v201_v15  ;;  %v207_v18 = vld [vmem:[%s5605_s7 + $0xe8] sm:$0xff] }
  0x21   : > { %204 = vst [vmem:[%s5610_s8 + $0x84] sm:$0xff] %v203_v16  ;;  %206 = vst [vmem:[%s5610_s8 + $0x8c] sm:$0xff] %v205_v17  ;;  %v209_v19 = vld [vmem:[%s5605_s7 + $0xf0] sm:$0xff]  ;;  %v213_v21 = vld [vmem:[%s5605_s7 + $0x158] sm:$0xff] }
  0x22   : > { %v211_v20 = vld [vmem:[%s5605_s7 + $0x150] sm:$0xff]  ;;  %208 = vst [vmem:[%s5610_s8 + $0x94] sm:$0xff] %v207_v18  ;;  %210 = vst [vmem:[%s5610_s8 + $0x9c] sm:$0xff] %v209_v19  ;;  %v215_v22 = vld [vmem:[%s5605_s7 + $0x160] sm:$0xff] }
  0x23   : > { %212 = vst [vmem:[%s5610_s8 + $0xa8] sm:$0xff] %v211_v20  ;;  %v217_v23 = vld [vmem:[%s5605_s7 + $0x168] sm:$0xff]  ;;  %214 = vst [vmem:[%s5610_s8 + $0xb0] sm:$0xff] %v213_v21  ;;  %v219_v24 = vld [vmem:[%s5605_s7 + $0x170] sm:$0xff] }
  0x24   : > { %216 = vst [vmem:[%s5610_s8 + $0xb8] sm:$0xff] %v215_v22  ;;  %218 = vst [vmem:[%s5610_s8 + $0xc0] sm:$0xff] %v217_v23  ;;  %v221_v25 = vld [vmem:[%s5605_s7 + $0x178] sm:$0xff]  ;;  %v223_v26 = vld [vmem:[%s5605_s7 + $0x180] sm:$0xff] }
  0x25   : > { %220 = vst [vmem:[%s5610_s8 + $0xc8] sm:$0xff] %v219_v24  ;;  %222 = vst [vmem:[%s5610_s8 + $0xd0] sm:$0xff] %v221_v25  ;;  %v225_v27 = vld [vmem:[%s5605_s7 + $0x188] sm:$0xff]  ;;  %v227_v28 = vld [vmem:[%s5605_s7 + $0x190] sm:$0xff] }
  0x26   : > { %224 = vst [vmem:[%s5610_s8 + $0xd8] sm:$0xff] %v223_v26  ;;  %v229_v29 = vld [vmem:[%s5605_s7 + $0x198] sm:$0xff]  ;;  %226 = vst [vmem:[%s5610_s8 + $0xe0] sm:$0xff] %v225_v27  ;;  %v233_v31 = vld [vmem:[%s5605_s7 + $0x200] sm:$0xff] }
  0x27   : > { %228 = vst [vmem:[%s5610_s8 + $0xe8] sm:$0xff] %v227_v28  ;;  %230 = vst [vmem:[%s5610_s8 + $0xf0] sm:$0xff] %v229_v29  ;;  %v231_v30 = vld [vmem:[%s5605_s7 + $0x1f8] sm:$0xff]  ;;  %v235_v32 = vld [vmem:[%s5605_s7 + $0x208] sm:$0xff] }
  0x28   : > { %232 = vst [vmem:[%s5610_s8 + $0xfc] sm:$0xff] %v231_v30  ;;  %234 = vst [vmem:[%s5610_s8 + $0x104] sm:$0xff] %v233_v31  ;;  %v237_v33 = vld [vmem:[%s5605_s7 + $0x210] sm:$0xff]  ;;  %v239_v34 = vld [vmem:[%s5605_s7 + $0x218] sm:$0xff] }
  0x29   : > { %236 = vst [vmem:[%s5610_s8 + $0x10c] sm:$0xff] %v235_v32  ;;  %v241_v35 = vld [vmem:[%s5605_s7 + $0x220] sm:$0xff]  ;;  %238 = vst [vmem:[%s5610_s8 + $0x114] sm:$0xff] %v237_v33  ;;  %v243_v36 = vld [vmem:[%s5605_s7 + $0x228] sm:$0xff] }
  0x2a   : > { %240 = vst [vmem:[%s5610_s8 + $0x11c] sm:$0xff] %v239_v34  ;;  %242 = vst [vmem:[%s5610_s8 + $0x124] sm:$0xff] %v241_v35  ;;  %v245_v37 = vld [vmem:[%s5605_s7 + $0x230] sm:$0xff]  ;;  %v247_v38 = vld [vmem:[%s5605_s7 + $0x238] sm:$0xff] }
  0x2b   : > { %244 = vst [vmem:[%s5610_s8 + $0x12c] sm:$0xff] %v243_v36  ;;  %246 = vst [vmem:[%s5610_s8 + $0x134] sm:$0xff] %v245_v37  ;;  %v249_v39 = vld [vmem:[%s5605_s7 + $0x240] sm:$0xff]  ;;  %v253_v41 = vld [vmem:[%s5605_s7 + $0x2a8] sm:$0xff] }
  0x2c   : > { %248 = vst [vmem:[%s5610_s8 + $0x13c] sm:$0xff] %v247_v38  ;;  %v251_v40 = vld [vmem:[%s5605_s7 + $0x2a0] sm:$0xff]  ;;  %250 = vst [vmem:[%s5610_s8 + $0x144] sm:$0xff] %v249_v39  ;;  %v255_v42 = vld [vmem:[%s5605_s7 + $0x2b0] sm:$0xff] }
  0x2d   : > { %252 = vst [vmem:[%s5610_s8 + $0x150] sm:$0xff] %v251_v40  ;;  %254 = vst [vmem:[%s5610_s8 + $0x158] sm:$0xff] %v253_v41  ;;  %v257_v43 = vld [vmem:[%s5605_s7 + $0x2b8] sm:$0xff]  ;;  %v259_v44 = vld [vmem:[%s5605_s7 + $0x2c0] sm:$0xff] }
  0x2e   : > { %256 = vst [vmem:[%s5610_s8 + $0x160] sm:$0xff] %v255_v42  ;;  %258 = vst [vmem:[%s5610_s8 + $0x168] sm:$0xff] %v257_v43  ;;  %v261_v45 = vld [vmem:[%s5605_s7 + $0x2c8] sm:$0xff]  ;;  %v263_v46 = vld [vmem:[%s5605_s7 + $0x2d0] sm:$0xff] }
  0x2f   : > { %260 = vst [vmem:[%s5610_s8 + $0x170] sm:$0xff] %v259_v44  ;;  %v265_v47 = vld [vmem:[%s5605_s7 + $0x2d8] sm:$0xff]  ;;  %262 = vst [vmem:[%s5610_s8 + $0x178] sm:$0xff] %v261_v45  ;;  %v267_v48 = vld [vmem:[%s5605_s7 + $0x2e0] sm:$0xff] }
  0x30   : > { %264 = vst [vmem:[%s5610_s8 + $0x180] sm:$0xff] %v263_v46  ;;  %266 = vst [vmem:[%s5610_s8 + $0x188] sm:$0xff] %v265_v47  ;;  %v269_v49 = vld [vmem:[%s5605_s7 + $0x2e8] sm:$0xff]  ;;  %v273_v51 = vld [vmem:[%s5605_s7 + $0x350] sm:$0xff] }
  0x31   : > { %v271_v50 = vld [vmem:[%s5605_s7 + $0x348] sm:$0xff]  ;;  %268 = vst [vmem:[%s5610_s8 + $0x190] sm:$0xff] %v267_v48  ;;  %270 = vst [vmem:[%s5610_s8 + $0x198] sm:$0xff] %v269_v49  ;;  %v275_v52 = vld [vmem:[%s5605_s7 + $0x358] sm:$0xff] }
  0x32   : > { %272 = vst [vmem:[%s5610_s8 + $0x1a4] sm:$0xff] %v271_v50  ;;  %v277_v53 = vld [vmem:[%s5605_s7 + $0x360] sm:$0xff]  ;;  %274 = vst [vmem:[%s5610_s8 + $0x1ac] sm:$0xff] %v273_v51  ;;  %v279_v54 = vld [vmem:[%s5605_s7 + $0x368] sm:$0xff] }
  0x33   : > { %276 = vst [vmem:[%s5610_s8 + $0x1b4] sm:$0xff] %v275_v52  ;;  %278 = vst [vmem:[%s5610_s8 + $0x1bc] sm:$0xff] %v277_v53  ;;  %v281_v55 = vld [vmem:[%s5605_s7 + $0x370] sm:$0xff]  ;;  %v283_v56 = vld [vmem:[%s5605_s7 + $0x378] sm:$0xff] }
  0x34   : > { %280 = vst [vmem:[%s5610_s8 + $0x1c4] sm:$0xff] %v279_v54  ;;  %282 = vst [vmem:[%s5610_s8 + $0x1cc] sm:$0xff] %v281_v55  ;;  %v285_v57 = vld [vmem:[%s5605_s7 + $0x380] sm:$0xff]  ;;  %v287_v58 = vld [vmem:[%s5605_s7 + $0x388] sm:$0xff] }
  0x35   : > { %284 = vst [vmem:[%s5610_s8 + $0x1d4] sm:$0xff] %v283_v56  ;;  %v289_v59 = vld [vmem:[%s5605_s7 + $0x390] sm:$0xff]  ;;  %286 = vst [vmem:[%s5610_s8 + $0x1dc] sm:$0xff] %v285_v57  ;;  %v293_v61 = vld [vmem:[%s5605_s7 + $0x3f8] sm:$0xff] }
  0x36   : > { %288 = vst [vmem:[%s5610_s8 + $0x1e4] sm:$0xff] %v287_v58  ;;  %290 = vst [vmem:[%s5610_s8 + $0x1ec] sm:$0xff] %v289_v59  ;;  %v291_v60 = vld [vmem:[%s5605_s7 + $0x3f0] sm:$0xff]  ;;  %v295_v62 = vld [vmem:[%s5605_s7 + $0x400] sm:$0xff] }
  0x37   : > { %292 = vst [vmem:[%s5610_s8 + $0x1f8] sm:$0xff] %v291_v60  ;;  %294 = vst [vmem:[%s5610_s8 + $0x200] sm:$0xff] %v293_v61  ;;  %v297_v63 = vld [vmem:[%s5605_s7 + $0x408] sm:$0xff]  ;;  %v299_v0 = vld [vmem:[%s5605_s7 + $0x410] sm:$0xff] }
  0x38   : > { %296 = vst [vmem:[%s5610_s8 + $0x208] sm:$0xff] %v295_v62  ;;  %v301_v1 = vld [vmem:[%s5605_s7 + $0x418] sm:$0xff]  ;;  %298 = vst [vmem:[%s5610_s8 + $0x210] sm:$0xff] %v297_v63  ;;  %v303_v2 = vld [vmem:[%s5605_s7 + $0x420] sm:$0xff] }
  0x39   : > { %300 = vst [vmem:[%s5610_s8 + $0x218] sm:$0xff] %v299_v0  ;;  %302 = vst [vmem:[%s5610_s8 + $0x220] sm:$0xff] %v301_v1  ;;  %v305_v3 = vld [vmem:[%s5605_s7 + $0x428] sm:$0xff]  ;;  %v307_v4 = vld [vmem:[%s5605_s7 + $0x430] sm:$0xff] }
  0x3a   : > { %304 = vst [vmem:[%s5610_s8 + $0x228] sm:$0xff] %v303_v2  ;;  %306 = vst [vmem:[%s5610_s8 + $0x230] sm:$0xff] %v305_v3  ;;  %v309_v5 = vld [vmem:[%s5605_s7 + $0x438] sm:$0xff]  ;;  %v313_v7 = vld [vmem:[%s5605_s7 + $0x4a0] sm:$0xff] }
  0x3b   : > { %308 = vst [vmem:[%s5610_s8 + $0x238] sm:$0xff] %v307_v4  ;;  %v311_v6 = vld [vmem:[%s5605_s7 + $0x498] sm:$0xff]  ;;  %310 = vst [vmem:[%s5610_s8 + $0x240] sm:$0xff] %v309_v5  ;;  %v315_v8 = vld [vmem:[%s5605_s7 + $0x4a8] sm:$0xff] }
  0x3c   : > { %312 = vst [vmem:[%s5610_s8 + $0x24c] sm:$0xff] %v311_v6  ;;  %314 = vst [vmem:[%s5610_s8 + $0x254] sm:$0xff] %v313_v7  ;;  %v317_v9 = vld [vmem:[%s5605_s7 + $0x4b0] sm:$0xff]  ;;  %v319_v10 = vld [vmem:[%s5605_s7 + $0x4b8] sm:$0xff] }
  0x3d   : > { %316 = vst [vmem:[%s5610_s8 + $0x25c] sm:$0xff] %v315_v8  ;;  %318 = vst [vmem:[%s5610_s8 + $0x264] sm:$0xff] %v317_v9  ;;  %v321_v11 = vld [vmem:[%s5605_s7 + $0x4c0] sm:$0xff]  ;;  %v323_v12 = vld [vmem:[%s5605_s7 + $0x4c8] sm:$0xff] }
  0x3e   : > { %320 = vst [vmem:[%s5610_s8 + $0x26c] sm:$0xff] %v319_v10  ;;  %v325_v13 = vld [vmem:[%s5605_s7 + $0x4d0] sm:$0xff]  ;;  %322 = vst [vmem:[%s5610_s8 + $0x274] sm:$0xff] %v321_v11  ;;  %v327_v14 = vld [vmem:[%s5605_s7 + $0x4d8] sm:$0xff] }
  0x3f   : > { %324 = vst [vmem:[%s5610_s8 + $0x27c] sm:$0xff] %v323_v12  ;;  %326 = vst [vmem:[%s5610_s8 + $0x284] sm:$0xff] %v325_v13  ;;  %v329_v15 = vld [vmem:[%s5605_s7 + $0x4e0] sm:$0xff]  ;;  %v333_v17 = vld [vmem:[%s5605_s7 + $0x548] sm:$0xff] }
  0x40   : > { %v331_v16 = vld [vmem:[%s5605_s7 + $0x540] sm:$0xff]  ;;  %328 = vst [vmem:[%s5610_s8 + $0x28c] sm:$0xff] %v327_v14  ;;  %330 = vst [vmem:[%s5610_s8 + $0x294] sm:$0xff] %v329_v15  ;;  %v335_v18 = vld [vmem:[%s5605_s7 + $0x550] sm:$0xff] }
  0x41   : > { %332 = vst [vmem:[%s5610_s8 + $0x2a0] sm:$0xff] %v331_v16  ;;  %v337_v19 = vld [vmem:[%s5605_s7 + $0x558] sm:$0xff]  ;;  %334 = vst [vmem:[%s5610_s8 + $0x2a8] sm:$0xff] %v333_v17  ;;  %v339_v20 = vld [vmem:[%s5605_s7 + $0x560] sm:$0xff] }
  0x42   : > { %336 = vst [vmem:[%s5610_s8 + $0x2b0] sm:$0xff] %v335_v18  ;;  %338 = vst [vmem:[%s5610_s8 + $0x2b8] sm:$0xff] %v337_v19  ;;  %v341_v21 = vld [vmem:[%s5605_s7 + $0x568] sm:$0xff]  ;;  %v343_v22 = vld [vmem:[%s5605_s7 + $0x570] sm:$0xff] }
  0x43   : > { %340 = vst [vmem:[%s5610_s8 + $0x2c0] sm:$0xff] %v339_v20  ;;  %342 = vst [vmem:[%s5610_s8 + $0x2c8] sm:$0xff] %v341_v21  ;;  %v345_v23 = vld [vmem:[%s5605_s7 + $0x578] sm:$0xff]  ;;  %v347_v24 = vld [vmem:[%s5605_s7 + $0x580] sm:$0xff] }
  0x44   : > { %344 = vst [vmem:[%s5610_s8 + $0x2d0] sm:$0xff] %v343_v22  ;;  %v349_v25 = vld [vmem:[%s5605_s7 + $0x588] sm:$0xff]  ;;  %346 = vst [vmem:[%s5610_s8 + $0x2d8] sm:$0xff] %v345_v23  ;;  %v353_v27 = vld [vmem:[%s5605_s7 + $0x5f0] sm:$0xff] }
  0x45   : > { %348 = vst [vmem:[%s5610_s8 + $0x2e0] sm:$0xff] %v347_v24  ;;  %350 = vst [vmem:[%s5610_s8 + $0x2e8] sm:$0xff] %v349_v25  ;;  %v351_v26 = vld [vmem:[%s5605_s7 + $0x5e8] sm:$0xff]  ;;  %v355_v28 = vld [vmem:[%s5605_s7 + $0x5f8] sm:$0xff] }
  0x46   : > { %352 = vst [vmem:[%s5610_s8 + $0x2f4] sm:$0xff] %v351_v26  ;;  %354 = vst [vmem:[%s5610_s8 + $0x2fc] sm:$0xff] %v353_v27  ;;  %v357_v29 = vld [vmem:[%s5605_s7 + $0x600] sm:$0xff]  ;;  %v359_v30 = vld [vmem:[%s5605_s7 + $0x608] sm:$0xff] }
  0x47   : > { %356 = vst [vmem:[%s5610_s8 + $0x304] sm:$0xff] %v355_v28  ;;  %v361_v31 = vld [vmem:[%s5605_s7 + $0x610] sm:$0xff]  ;;  %358 = vst [vmem:[%s5610_s8 + $0x30c] sm:$0xff] %v357_v29  ;;  %v363_v32 = vld [vmem:[%s5605_s7 + $0x618] sm:$0xff] }
  0x48   : > { %360 = vst [vmem:[%s5610_s8 + $0x314] sm:$0xff] %v359_v30  ;;  %362 = vst [vmem:[%s5610_s8 + $0x31c] sm:$0xff] %v361_v31  ;;  %v365_v33 = vld [vmem:[%s5605_s7 + $0x620] sm:$0xff]  ;;  %v367_v34 = vld [vmem:[%s5605_s7 + $0x628] sm:$0xff] }
  0x49   : > { %364 = vst [vmem:[%s5610_s8 + $0x324] sm:$0xff] %v363_v32  ;;  %366 = vst [vmem:[%s5610_s8 + $0x32c] sm:$0xff] %v365_v33  ;;  %v369_v35 = vld [vmem:[%s5605_s7 + $0x630] sm:$0xff]  ;;  %v373_v37 = vld [vmem:[%s5605_s7 + $0x698] sm:$0xff] }
  0x4a   : > { %368 = vst [vmem:[%s5610_s8 + $0x334] sm:$0xff] %v367_v34  ;;  %v371_v36 = vld [vmem:[%s5605_s7 + $0x690] sm:$0xff]  ;;  %370 = vst [vmem:[%s5610_s8 + $0x33c] sm:$0xff] %v369_v35  ;;  %v375_v38 = vld [vmem:[%s5605_s7 + $0x6a0] sm:$0xff] }
  0x4b   : > { %372 = vst [vmem:[%s5610_s8 + $0x348] sm:$0xff] %v371_v36  ;;  %374 = vst [vmem:[%s5610_s8 + $0x350] sm:$0xff] %v373_v37  ;;  %v377_v39 = vld [vmem:[%s5605_s7 + $0x6a8] sm:$0xff]  ;;  %v379_v40 = vld [vmem:[%s5605_s7 + $0x6b0] sm:$0xff] }
  0x4c   : > { %376 = vst [vmem:[%s5610_s8 + $0x358] sm:$0xff] %v375_v38  ;;  %378 = vst [vmem:[%s5610_s8 + $0x360] sm:$0xff] %v377_v39  ;;  %v381_v41 = vld [vmem:[%s5605_s7 + $0x6b8] sm:$0xff]  ;;  %v383_v42 = vld [vmem:[%s5605_s7 + $0x6c0] sm:$0xff] }
  0x4d   : > { %380 = vst [vmem:[%s5610_s8 + $0x368] sm:$0xff] %v379_v40  ;;  %v385_v43 = vld [vmem:[%s5605_s7 + $0x6c8] sm:$0xff]  ;;  %382 = vst [vmem:[%s5610_s8 + $0x370] sm:$0xff] %v381_v41  ;;  %v387_v44 = vld [vmem:[%s5605_s7 + $0x6d0] sm:$0xff] }
  0x4e   : > { %384 = vst [vmem:[%s5610_s8 + $0x378] sm:$0xff] %v383_v42  ;;  %386 = vst [vmem:[%s5610_s8 + $0x380] sm:$0xff] %v385_v43  ;;  %v389_v45 = vld [vmem:[%s5605_s7 + $0x6d8] sm:$0xff]  ;;  %v393_v47 = vld [vmem:[%s5605_s7 + $0x740] sm:$0xff] }
  0x4f   : > { %v391_v46 = vld [vmem:[%s5605_s7 + $0x738] sm:$0xff]  ;;  %388 = vst [vmem:[%s5610_s8 + $0x388] sm:$0xff] %v387_v44  ;;  %390 = vst [vmem:[%s5610_s8 + $0x390] sm:$0xff] %v389_v45  ;;  %v395_v48 = vld [vmem:[%s5605_s7 + $0x748] sm:$0xff] }
  0x50   : > { %392 = vst [vmem:[%s5610_s8 + $0x39c] sm:$0xff] %v391_v46  ;;  %v397_v49 = vld [vmem:[%s5605_s7 + $0x750] sm:$0xff]  ;;  %394 = vst [vmem:[%s5610_s8 + $0x3a4] sm:$0xff] %v393_v47  ;;  %v399_v50 = vld [vmem:[%s5605_s7 + $0x758] sm:$0xff] }
  0x51   : > { %396 = vst [vmem:[%s5610_s8 + $0x3ac] sm:$0xff] %v395_v48  ;;  %398 = vst [vmem:[%s5610_s8 + $0x3b4] sm:$0xff] %v397_v49  ;;  %v401_v51 = vld [vmem:[%s5605_s7 + $0x760] sm:$0xff]  ;;  %v403_v52 = vld [vmem:[%s5605_s7 + $0x768] sm:$0xff] }
  0x52   : > { %400 = vst [vmem:[%s5610_s8 + $0x3bc] sm:$0xff] %v399_v50  ;;  %402 = vst [vmem:[%s5610_s8 + $0x3c4] sm:$0xff] %v401_v51  ;;  %v405_v53 = vld [vmem:[%s5605_s7 + $0x770] sm:$0xff]  ;;  %v407_v54 = vld [vmem:[%s5605_s7 + $0x778] sm:$0xff] }
  0x53   : > { %404 = vst [vmem:[%s5610_s8 + $0x3cc] sm:$0xff] %v403_v52  ;;  %v409_v55 = vld [vmem:[%s5605_s7 + $0x780] sm:$0xff]  ;;  %406 = vst [vmem:[%s5610_s8 + $0x3d4] sm:$0xff] %v405_v53  ;;  %v413_v57 = vld [vmem:[%s5605_s7 + $0x7e8] sm:$0xff] }
  0x54   : > { %408 = vst [vmem:[%s5610_s8 + $0x3dc] sm:$0xff] %v407_v54  ;;  %410 = vst [vmem:[%s5610_s8 + $0x3e4] sm:$0xff] %v409_v55  ;;  %v411_v56 = vld [vmem:[%s5605_s7 + $0x7e0] sm:$0xff]  ;;  %v415_v58 = vld [vmem:[%s5605_s7 + $0x7f0] sm:$0xff] }
  0x55   : > { %412 = vst [vmem:[%s5610_s8 + $0x3f0] sm:$0xff] %v411_v56  ;;  %414 = vst [vmem:[%s5610_s8 + $0x3f8] sm:$0xff] %v413_v57  ;;  %v417_v59 = vld [vmem:[%s5605_s7 + $0x7f8] sm:$0xff]  ;;  %v419_v60 = vld [vmem:[%s5605_s7 + $0x800] sm:$0xff] }
  0x56   : > { %416 = vst [vmem:[%s5610_s8 + $0x400] sm:$0xff] %v415_v58  ;;  %v421_v61 = vld [vmem:[%s5605_s7 + $0x808] sm:$0xff]  ;;  %418 = vst [vmem:[%s5610_s8 + $0x408] sm:$0xff] %v417_v59  ;;  %v423_v62 = vld [vmem:[%s5605_s7 + $0x810] sm:$0xff] }
  0x57   : > { %420 = vst [vmem:[%s5610_s8 + $0x410] sm:$0xff] %v419_v60  ;;  %422 = vst [vmem:[%s5610_s8 + $0x418] sm:$0xff] %v421_v61  ;;  %v425_v63 = vld [vmem:[%s5605_s7 + $0x818] sm:$0xff]  ;;  %v427_v0 = vld [vmem:[%s5605_s7 + $0x820] sm:$0xff] }
  0x58   : > { %424 = vst [vmem:[%s5610_s8 + $0x420] sm:$0xff] %v423_v62  ;;  %426 = vst [vmem:[%s5610_s8 + $0x428] sm:$0xff] %v425_v63  ;;  %v429_v1 = vld [vmem:[%s5605_s7 + $0x828] sm:$0xff]  ;;  %v3963_v2 = vld [vmem:[%s5605_s7 + $0x50] sm:$0xf] }
  0x59   : > { %428 = vst [vmem:[%s5610_s8 + $0x430] sm:$0xff] %v427_v0  ;;  %v3965_v3 = vld [vmem:[%s5605_s7 + $0xf8] sm:$0xf]  ;;  %430 = vst [vmem:[%s5610_s8 + $0x438] sm:$0xff] %v429_v1  ;;  %v3967_v4 = vld [vmem:[%s5605_s7 + $0x1a0] sm:$0xf] }
  0x5a   : > { %3964 = vst [vmem:[%s5610_s8 + $0x50] sm:$0xf] %v3963_v2  ;;  %3966 = vst [vmem:[%s5610_s8 + $0xa4] sm:$0xf] %v3965_v3  ;;  %v3969_v5 = vld [vmem:[%s5605_s7 + $0x248] sm:$0xf] }
  0x5b   : > { %v3971_v6 = vld [vmem:[%s5605_s7 + $0x2f0] sm:$0xf]  ;;  %3968 = vst [vmem:[%s5610_s8 + $0xf8] sm:$0xf] %v3967_v4  ;;  %3970 = vst [vmem:[%s5610_s8 + $0x14c] sm:$0xf] %v3969_v5 }
  0x5c   : > { %3972 = vst [vmem:[%s5610_s8 + $0x1a0] sm:$0xf] %v3971_v6  ;;  %v3973_v7 = vld [vmem:[%s5605_s7 + $0x398] sm:$0xf]  ;;  %v3975_v8 = vld [vmem:[%s5605_s7 + $0x440] sm:$0xf] }
  0x5d   : > { %v3977_v9 = vld [vmem:[%s5605_s7 + $0x4e8] sm:$0xf]  ;;  %3974 = vst [vmem:[%s5610_s8 + $0x1f4] sm:$0xf] %v3973_v7  ;;  %3976 = vst [vmem:[%s5610_s8 + $0x248] sm:$0xf] %v3975_v8 }
  0x5e   : > { %3978 = vst [vmem:[%s5610_s8 + $0x29c] sm:$0xf] %v3977_v9  ;;  %v3979_v10 = vld [vmem:[%s5605_s7 + $0x590] sm:$0xf]  ;;  %v3981_v11 = vld [vmem:[%s5605_s7 + $0x638] sm:$0xf] }
  0x5f   : > { %v3983_v12 = vld [vmem:[%s5605_s7 + $0x6e0] sm:$0xf]  ;;  %3980 = vst [vmem:[%s5610_s8 + $0x2f0] sm:$0xf] %v3979_v10  ;;  %3982 = vst [vmem:[%s5610_s8 + $0x344] sm:$0xf] %v3981_v11 }
  0x60   : > { %3984 = vst [vmem:[%s5610_s8 + $0x398] sm:$0xf] %v3983_v12  ;;  %v3985_v13 = vld [vmem:[%s5605_s7 + $0x788] sm:$0xf]  ;;  %v3987_v14 = vld [vmem:[%s5605_s7 + $0x830] sm:$0xf] }
  0x61   : > { %3986 = vst [vmem:[%s5610_s8 + $0x3ec] sm:$0xf] %v3985_v13  ;;  %3988 = vst [vmem:[%s5610_s8 + $0x440] sm:$0xf] %v3987_v14 }
  0x62 PF: > { %p3989_p7 = scmp.ge.s32.totalorder %s5520_s18, 1  ;;  %p478_p8 = scmp.lt.s32.totalorder %s5520_s18, 5 }
  0x64   : > { %p479_p9 = pnand %p3989_p7, %p478_p8 }
  0x66   : > { %482 = sbr.rel (%p479_p9) target bundleno = 681 (0x2a9), region = 54 }
  0x6b   : > { %s485_s9 = sand.u32 1, %s5496_s12   ;;  %s515_s10 = smul.u32 336, %s5504_s14 }
  0x6c   : > { %s5030_s11 = smul.u32 1092, %s485_s9  ;;  %p3992_p12 = scmp.ne.s32.totalorder %s5504_s14, 0 }
  0x6d   : > { %p516_p10 = scmp.lt.s32.totalorder %s515_s10, 671  ;;  %s521_s21 = smul.u32 13, %s5508_s15 }
  0x6e   : > { %s5910_s12 = scalar_lea.vmem [#allocation3], %s5030_s11 }
  0x6f   : > { %s6604_s10 = smov (!%p516_p10, %s515_s10), 671  ;;  %p522_p11 = scmp.lt.s32.totalorder %s521_s21, 25 }
  0x70   : > { %s3990_s22 = sshll.u32 %s6604_s10, 2  ;;  %531 = sbr.rel (%p3992_p12) target bundleno = 125 (0x7d), region = 62 }
  0x71   : > { %s5903_s26 = scalar_lea.vmem %s6552_s1, %s3990_s22  ;;  %s6606_s21 = smov (!%p522_p11, %s521_s21), 25 }
  0x72   : > { %s3991_s27 = sshll.u32 %s6606_s21, 2 }
  0x73   : > { %s5908_s30 = scalar_lea.vmem %s6554_s3, %s3991_s27 }
  0x75   : > { %v5522_v15 = vmov 0.0  }
  0x76   : > { %532 = vst [vmem:[#allocation2 + $0x30] sm:$0xff] %v5522_v15  ;;  %533 = vst [vmem:[#allocation2] sm:$0xff] %v5522_v15 }
  0x77   : > { %534 = vst [vmem:[#allocation2 + $0x58] sm:$0xff] %v5522_v15  ;;  %535 = vst [vmem:[#allocation2 + $0x18] sm:$0xff] %v5522_v15 }
  0x78   : > { %536 = vst [vmem:[#allocation2 + $0x50] sm:$0xff] %v5522_v15  ;;  %537 = vst [vmem:[#allocation2 + $0x20] sm:$0xff] %v5522_v15 }
  0x79   : > { %538 = vst [vmem:[#allocation2 + $0x8] sm:$0xff] %v5522_v15  ;;  %539 = vst [vmem:[#allocation2 + $0x38] sm:$0xff] %v5522_v15 }
  0x7a   : > { %540 = vst [vmem:[#allocation2 + $0x28] sm:$0xff] %v5522_v15  ;;  %541 = vst [vmem:[#allocation2 + $0x48] sm:$0xff] %v5522_v15 }
  0x7b   : > { %542 = vst [vmem:[#allocation2 + $0x10] sm:$0xff] %v5522_v15  ;;  %543 = vst [vmem:[#allocation2 + $0x60] sm:$0xff] %v5522_v15 }
  0x7c   : > { %544 = vst [vmem:[#allocation2 + $0x40] sm:$0xff] %v5522_v15 }
  0x7d PF: > { %v5091_v16 = vld [vmem:[%s5903_s26 + $0x78] sm:$0xff]   ;;  %v5093_v18 = vld [vmem:[%s5903_s26 + $0x70] sm:$0xff]   ;;  %v5095_v20 = vld [vmem:[%s5903_s26 + $0x68] sm:$0xff]   ;;  %vm5524_vm0 = vmmov 0   ;;  %p4308_p13 = scmp.ne.s32.totalorder %s5504_s14, 1 }
  0x7e   : > { %v5092_v17 = vld [vmem:[%s5903_s26 + $0x38] sm:$0xff]   ;;  %4373 = vmatprep.subr.bf16.mxu0 %v5091_v16  ;;  %5012 = vmatprep.subr.bf16.mxu1 %v5091_v16  ;;  %v5094_v19 = vld [vmem:[%s5903_s26 + $0x30] sm:$0xff]   ;;  %v5096_v21 = vld [vmem:[%s5903_s26 + $0x28] sm:$0xff]  }
  0x7f   : > { %4374 = vmatpush3.bf16.msra.mxu0 %v5092_v17  ;;  %5020 = vmatpush3.bf16.msra.mxu1 %v5092_v17  ;;  %v5097_v22 = vld [vmem:[%s5903_s26 + $0x60] sm:$0xff]   ;;  %v5099_v24 = vld [vmem:[%s5903_s26 + $0x58] sm:$0xff]   ;;  %v5101_v26 = vld [vmem:[%s5903_s26 + $0x50] sm:$0xff]  }
  0x80   : > { %4375 = vmatprep.subr.bf16.mxu0 %v5093_v18  ;;  %5013 = vmatprep.subr.bf16.mxu1 %v5093_v18  ;;  %v5098_v23 = vld [vmem:[%s5903_s26 + $0x20] sm:$0xff]   ;;  %v5100_v25 = vld [vmem:[%s5903_s26 + $0x18] sm:$0xff]   ;;  %v5102_v29 = vld [vmem:[%s5903_s26 + $0x10] sm:$0xff]  }
  0x81   : > { %v5109_v27 = vld [vmem:[%s5910_s12 + $0x4] ss:$84 sps:$4 sm:$0xff]   ;;  %v5113_v34 = vld [vmem:[%s5903_s26 + $0xf8] sm:$0xff]   ;;  %v5123_v47 = vld [vmem:[%s5910_s12 + $0xa8] ss:$84 sps:$4 sm:$0xff]  }
  0x82   : > { %v5112_v28 = vld [vmem:[%s5910_s12 + $0x2a4] ss:$84 sps:$4 sm:$0xff]   ;;  %2787 = vmatprep.mubr.bf16.mxu0 %v5109_v27  ;;  %v5107_v35 = vld [vmem:[%s5910_s12] ss:$84 sps:$4 sm:$0xff]   ;;  %v5130_v51 = vld [vmem:[%s5910_s12 + $0x348] ss:$84 sps:$4 sm:$0xff]  }
  0x83   : > { %4376 = vmatpush3.bf16.msra.mxu0 %v5094_v19  ;;  %5021 = vmatpush3.bf16.msra.mxu1 %v5094_v19  ;;  %v5103_v30 = vld [vmem:[%s5903_s26 + $0x48] sm:$0xff]   ;;  %v5105_v32 = vld [vmem:[%s5903_s26 + $0x40] sm:$0xff]   ;;  %v5114_v37 = vld [vmem:[%s5903_s26 + $0x178] sm:$0xff]  }
  0x84   : > { %4377 = vmatprep.subr.bf16.mxu0 %v5095_v20  ;;  %5014 = vmatprep.subr.bf16.mxu1 %v5095_v20  ;;  %v5104_v31 = vld [vmem:[%s5903_s26 + $0x8] sm:$0xff]   ;;  %v5106_v33 = vld [vmem:[%s5903_s26] sm:$0xff]   ;;  %v5115_v38 = vld [vmem:[%s5903_s26 + $0xb8] sm:$0xff]  }
  0x85   : > { %2819 = vmatprep.mubr.bf16.mxu1 %v5112_v28  ;;  %v5110_v36 = vld [vmem:[%s5910_s12 + $0x2a0] ss:$84 sps:$4 sm:$0xff]   ;;  %v5117_v40 = vld [vmem:[%s5903_s26 + $0xf0] sm:$0xff]   ;;  %v5148_v4 = vld [vmem:[%s5910_s12 + $0x1fc] ss:$84 sps:$4 sm:$0xff]  }
  0x86   : > { %v5116_v39 = vld [vmem:[%s5903_s26 + $0x138] sm:$0xff]   ;;  %v5118_v41 = vld [vmem:[%s5903_s26 + $0x170] sm:$0xff]   ;;  %v5124_v46 = vld [vmem:[%s5903_s26 + $0xe8] sm:$0xff]  }
  0x87   : > { %4378 = vmatpush3.bf16.msra.mxu0 %v5096_v21  ;;  %5022 = vmatpush3.bf16.msra.mxu1 %v5096_v21  ;;  %v5121_v42 = vld [vmem:[%s5910_s12 + $0xac] ss:$84 sps:$4 sm:$0xff]   ;;  %v5131_v52 = vld [vmem:[%s5903_s26 + $0xe0] sm:$0xff]   ;;  %v5137_v60 = vld [vmem:[%s5910_s12 + $0x150] ss:$84 sps:$4 sm:$0xff]  }
  0x88   : > { %4379 = vmatprep.subr.bf16.mxu0 %v5097_v22  ;;  %5015 = vmatprep.subr.bf16.mxu1 %v5097_v22  ;;  %v5119_v43 = vld [vmem:[%s5903_s26 + $0xb0] sm:$0xff]   ;;  %v5125_v48 = vld [vmem:[%s5903_s26 + $0x168] sm:$0xff]   ;;  %v5132_v53 = vld [vmem:[%s5903_s26 + $0x160] sm:$0xff]  }
  0x89   : > { %v5128_v44 = vld [vmem:[%s5910_s12 + $0x34c] ss:$84 sps:$4 sm:$0xff]   ;;  %v5133_v54 = vld [vmem:[%s5903_s26 + $0xa0] sm:$0xff]   ;;  %v5162_v18 = vld [vmem:[%s5910_s12 + $0x10] ss:$84 sps:$4 sm:$0xff]  }
  0x8a   : > { %v5120_v45 = vld [vmem:[%s5903_s26 + $0x130] sm:$0xff]   ;;  %v5126_v49 = vld [vmem:[%s5903_s26 + $0xa8] sm:$0xff]   ;;  %v5134_v56 = vld [vmem:[%s5903_s26 + $0x120] sm:$0xff]  }
  0x8b   : > { %4380 = vmatpush3.bf16.msra.mxu0 %v5098_v23  ;;  %5023 = vmatpush3.bf16.msra.mxu1 %v5098_v23  ;;  %v5127_v50 = vld [vmem:[%s5903_s26 + $0x128] sm:$0xff]   ;;  %v5135_v55 = vld [vmem:[%s5910_s12 + $0x154] ss:$84 sps:$4 sm:$0xff]   ;;  %v5150_v7 = vld [vmem:[%s5910_s12 + $0x1f8] ss:$84 sps:$4 sm:$0xff]  }
  0x8c   : > { %4381 = vmatprep.subr.bf16.mxu0 %v5099_v24  ;;  %5016 = vmatprep.subr.bf16.mxu1 %v5099_v24  ;;  %v690_v57 = vld [vmem:[%s5910_s12 + $0x3f0] sm:$0xff]  ;;  %v5144_v1 = vld [vmem:[%s5903_s26 + $0xd0] sm:$0xff]   ;;  %v5151_v6 = vld [vmem:[%s5903_s26 + $0xc8] sm:$0xff]  }
  0x8d   : > { %v5138_v58 = vld [vmem:[%s5903_s26 + $0xd8] sm:$0xff]   ;;  %v4120_v59 = vcombine.high %v690_v57, %v690_v57  ;;  %v4119_v0 = vcombine.low %v690_v57, %v690_v57  ;;  %v5145_v2 = vld [vmem:[%s5903_s26 + $0x150] sm:$0xff]   ;;  %v5152_v8 = vld [vmem:[%s5903_s26 + $0x148] sm:$0xff]  }
  0x8e   : > { %v5139_v61 = vld [vmem:[%s5903_s26 + $0x158] sm:$0xff]   ;;  %v5146_v3 = vld [vmem:[%s5903_s26 + $0x90] sm:$0xff]   ;;  %v5153_v9 = vld [vmem:[%s5903_s26 + $0x88] sm:$0xff]  }
  0x8f   : > { %4382 = vmatpush3.bf16.msra.mxu0 %v5100_v25  ;;  %5024 = vmatpush3.bf16.msra.mxu1 %v5100_v25  ;;  %v5140_v62 = vld [vmem:[%s5903_s26 + $0x98] sm:$0xff]   ;;  %v5147_v5 = vld [vmem:[%s5903_s26 + $0x110] sm:$0xff]   ;;  %v5154_v10 = vld [vmem:[%s5903_s26 + $0x108] sm:$0xff]  }
  0x90   : > { %4383 = vmatprep.subr.bf16.mxu0 %v5101_v26  ;;  %5017 = vmatprep.subr.bf16.mxu1 %v5101_v26  ;;  %v5141_v63 = vld [vmem:[%s5903_s26 + $0x118] sm:$0xff]   ;;  %v5155_v11 = vld [vmem:[%s5903_s26 + $0xc0] sm:$0xff]   ;;  %v5173_v25 = vld [vmem:[%s5903_s26 + $0x1f0] sm:$0xff]  }
  0x91   : > { %v5156_v12 = vld [vmem:[%s5903_s26 + $0x140] sm:$0xff]   ;;  %v5161_v13 = vld [vmem:[%s5910_s12 + $0xc] ss:$84 sps:$4 sm:$0xff]   ;;  %v5174_v27 = vld [vmem:[%s5910_s12 + $0xb0] ss:$84 sps:$4 sm:$0xff]  }
  0x92   : > { %v5157_v14 = vld [vmem:[%s5903_s26 + $0x80] sm:$0xff]   ;;  %v5165_v19 = vld [vmem:[%s5903_s26 + $0x1f8] sm:$0xff]   ;;  %v5176_v26 = vld [vmem:[%s5903_s26 + $0x1b0] sm:$0xff]  }
  0x93   : > { %4384 = vmatpush3.bf16.msra.mxu0 %v5102_v29  ;;  %5025 = vmatpush3.bf16.msra.mxu1 %v5102_v29  ;;  %v5164_v15 = vld [vmem:[%s5910_s12 + $0x14] ss:$84 sps:$4 sm:$0xff]   ;;  %v5171_v24 = vld [vmem:[%s5910_s12 + $0xbc] ss:$84 sps:$4 sm:$0xff]   ;;  %v5175_v28 = vld [vmem:[%s5910_s12 + $0xb8] ss:$84 sps:$4 sm:$0xff]  }
  0x94   : > { %4385 = vmatprep.subr.bf16.mxu0 %v5103_v30  ;;  %5018 = vmatprep.subr.bf16.mxu1 %v5103_v30  ;;  %v5158_v16 = vld [vmem:[%s5903_s26 + $0x100] sm:$0xff]   ;;  %v5166_v20 = vld [vmem:[%s5903_s26 + $0x1b8] sm:$0xff]   ;;  %v5177_v29 = vld [vmem:[%s5903_s26 + $0x270] sm:$0xff]  }
  0x95   : > { %v5159_v17 = vld [vmem:[%s5910_s12 + $0x8] ss:$84 sps:$4 sm:$0xff]   ;;  %v5167_v21 = vld [vmem:[%s5903_s26 + $0x278] sm:$0xff]  }
  0x96   : > { %v5168_v22 = vld [vmem:[%s5903_s26 + $0x238] sm:$0xff]   ;;  %v5178_v30 = vld [vmem:[%s5903_s26 + $0x230] sm:$0xff]  }
  0x97   : > { %4386 = vmatpush3.bf16.msra.mxu0 %v5104_v31  ;;  %5026 = vmatpush3.bf16.msra.mxu1 %v5104_v31  ;;  %v5169_v23 = vld [vmem:[%s5910_s12 + $0xb4] ss:$84 sps:$4 sm:$0xff]   ;;  %v5179_v31 = vld [vmem:[%s5903_s26 + $0x1e8] sm:$0xff]  }
  0x98   : > { %4387 = vmatprep.subr.bf16.mxu0 %v5105_v32  ;;  %5019 = vmatprep.subr.bf16.mxu1 %v5105_v32  ;;  %v5180_v32 = vld [vmem:[%s5910_s12 + $0x15c] ss:$84 sps:$4 sm:$0xff]   ;;  %v5211_v57 = vld [vmem:[%s5910_s12 + $0x354] ss:$84 sps:$4 sm:$0xff]  }
  0x9b   : > { %4388 = vmatpush3.bf16.msra.mxu0 %v5106_v33  ;;  %5027 = vmatpush3.bf16.msra.mxu1 %v5106_v33  ;;  %v5182_v33 = vld [vmem:[%s5910_s12 + $0x164] ss:$84 sps:$4 sm:$0xff]  }
  0x9c   : > { %4431 = vmatprep.subr.bf16.mxu1 %v5113_v34  ;;  %4489 = vmatprep.subr.bf16.mxu0 %v5114_v37  ;;  %v5184_v34 = vld [vmem:[%s5903_s26 + $0x1a8] sm:$0xff]  }
  0x9d   : > { %v5186_v37 = vld [vmem:[%s5910_s12 + $0x160] ss:$84 sps:$4 sm:$0xff]  }
  0x9e   : > { %2788 = vmatmul.mubr.bf16.vlgmr.msra.gmra.mxu0 %v5107_v35  ;;  %2820 = vmatmul.mubr.bf16.vlgmr.msra.gmra.mxu1 %v5110_v36  ;;  %v5187_v35 = vld [vmem:[%s5903_s26 + $0x268] sm:$0xff]   ;;  %v5185_v36 = vld [vmem:[%s5910_s12 + $0x158] ss:$84 sps:$4 sm:$0xff]  }
  0x9f   : > { %4432 = vmatpush3.bf16.msra.mxu1 %v5115_v38  ;;  %4490 = vmatpush3.bf16.msra.mxu0 %v5116_v39  ;;  %v5188_v38 = vld [vmem:[%s5903_s26 + $0x228] sm:$0xff]   ;;  %v5189_v39 = vld [vmem:[%s5903_s26 + $0x1e0] sm:$0xff]  }
  0xa0   : > { %4433 = vmatprep.subr.bf16.mxu1 %v5117_v40  ;;  %4491 = vmatprep.subr.bf16.mxu0 %v5118_v41  ;;  %v5190_v40 = vld [vmem:[%s5903_s26 + $0x1a0] sm:$0xff]  }
  0xa1   : > { %2795 = vmatprep.mubr.bf16.mxu0 %v5121_v42  ;;  %2827 = vmatprep.mubr.bf16.mxu1 %v5128_v44  ;;  %v5191_v41 = vld [vmem:[%s5910_s12 + $0x204] ss:$84 sps:$4 sm:$0xff]   ;;  %v5193_v42 = vld [vmem:[%s5910_s12 + $0x20c] ss:$84 sps:$4 sm:$0xff]  }
  0xa2   : > { %v5198_v44 = vld [vmem:[%s5903_s26 + $0x220] sm:$0xff]  }
  0xa3   : > { %4434 = vmatpush3.bf16.msra.mxu1 %v5119_v43  ;;  %4492 = vmatpush3.bf16.msra.mxu0 %v5120_v45  ;;  %v5197_v43 = vld [vmem:[%s5903_s26 + $0x260] sm:$0xff]   ;;  %v5199_v45 = vld [vmem:[%s5903_s26 + $0x1d8] sm:$0xff]  }
  0xa4   : > { %4435 = vmatprep.subr.bf16.mxu1 %v5124_v46  ;;  %4493 = vmatprep.subr.bf16.mxu0 %v5125_v48  ;;  %v5200_v46 = vld [vmem:[%s5903_s26 + $0x198] sm:$0xff]   ;;  %v5196_v48 = vld [vmem:[%s5910_s12 + $0x208] ss:$84 sps:$4 sm:$0xff]  }
  0xa6   : > { %2796 = vmatmul.mubr.bf16.gmra.mxu0 %v5123_v47  ;;  %2828 = vmatmul.mubr.bf16.gmra.mxu1 %v5130_v51  ;;  %v5195_v47 = vld [vmem:[%s5910_s12 + $0x200] ss:$84 sps:$4 sm:$0xff]  }
  0xa7   : > { %4436 = vmatpush3.bf16.msra.mxu1 %v5126_v49  ;;  %4494 = vmatpush3.bf16.msra.mxu0 %v5127_v50  ;;  %v5201_v49 = vld [vmem:[%s5910_s12 + $0x2ac] ss:$84 sps:$4 sm:$0xff]   ;;  %v5203_v50 = vld [vmem:[%s5910_s12 + $0x2b4] ss:$84 sps:$4 sm:$0xff]  }
  0xa8   : > { %4437 = vmatprep.subr.bf16.mxu1 %v5131_v52  ;;  %4495 = vmatprep.subr.bf16.mxu0 %v5132_v53  ;;  %v5207_v51 = vld [vmem:[%s5903_s26 + $0x258] sm:$0xff]   ;;  %v5209_v53 = vld [vmem:[%s5903_s26 + $0x1d0] sm:$0xff]  }
  0xa9   : > { %2803 = vmatprep.mubr.bf16.mxu0 %v5135_v55  ;;  %2835 = vmatprep.mubr.bf16.mxu1 %v4120_v59  ;;  %v5208_v52 = vld [vmem:[%s5903_s26 + $0x218] sm:$0xff]   ;;  %v5205_v55 = vld [vmem:[%s5910_s12 + $0x2a8] ss:$84 sps:$4 sm:$0xff]  }
  0xaa   : > { %v5217_v59 = vld [vmem:[%s5903_s26 + $0x250] sm:$0xff]  }
  0xab   : > { %4438 = vmatpush3.bf16.msra.mxu1 %v5133_v54  ;;  %4496 = vmatpush3.bf16.msra.mxu0 %v5134_v56  ;;  %v5210_v54 = vld [vmem:[%s5903_s26 + $0x190] sm:$0xff]  }
  0xac   : > { %4439 = vmatprep.subr.bf16.mxu1 %v5138_v58  ;;  %4497 = vmatprep.subr.bf16.mxu0 %v5139_v61  ;;  %v5206_v56 = vld [vmem:[%s5910_s12 + $0x2b0] ss:$84 sps:$4 sm:$0xff]  }
  0xad   : > { %v5213_v58 = vld [vmem:[%s5910_s12 + $0x35c] ss:$84 sps:$4 sm:$0xff]  }
  0xae   : > { %2804 = vmatmul.mubr.bf16.gmra.mxu0 %v5137_v60  ;;  %2836 = vmatmul.mubr.bf16.gmra.mxu1 %v4119_v0  ;;  %v5218_v60 = vld [vmem:[%s5903_s26 + $0x210] sm:$0xff]   ;;  %v5219_v61 = vld [vmem:[%s5903_s26 + $0x1c8] sm:$0xff]  }
  0xaf   : > { %4440 = vmatpush3.bf16.msra.mxu1 %v5140_v62  ;;  %4498 = vmatpush3.bf16.msra.mxu0 %v5141_v63  ;;  %v5220_v62 = vld [vmem:[%s5903_s26 + $0x188] sm:$0xff]  }
  0xb0   : > { %4441 = vmatprep.subr.bf16.mxu1 %v5144_v1  ;;  %4499 = vmatprep.subr.bf16.mxu0 %v5145_v2  ;;  %v691_v63 = vld [vmem:[%s5910_s12 + $0x3f8] sm:$0xff]  ;;  %v692_v0 = vld [vmem:[%s5910_s12 + $0x400] sm:$0xff] }
  0xb1   : > { %2811 = vmatprep.mubr.bf16.mxu0 %v5148_v4  ;;  %2875 = vmatprep.mubr.bf16.mxu1 %v5161_v13  ;;  %v5223_v1 = vld [vmem:[%s5903_s26 + $0x248] sm:$0xff]   ;;  %v4121_v13 = vcombine.low %v691_v63, %v691_v63 }
  0xb2   : > { %v5215_v2 = vld [vmem:[%s5910_s12 + $0x350] ss:$84 sps:$4 sm:$0xff]  }
  0xb3   : > { %4442 = vmatpush3.bf16.msra.mxu1 %v5146_v3  ;;  %4500 = vmatpush3.bf16.msra.mxu0 %v5147_v5  ;;  %v5216_v3 = vld [vmem:[%s5910_s12 + $0x358] ss:$84 sps:$4 sm:$0xff]   ;;  %v5226_v4 = vld [vmem:[%s5903_s26 + $0x208] sm:$0xff]  }
  0xb4   : > { %4443 = vmatprep.subr.bf16.mxu1 %v5151_v6  ;;  %4501 = vmatprep.subr.bf16.mxu0 %v5152_v8  ;;  %v5227_v5 = vld [vmem:[%s5903_s26 + $0x1c0] sm:$0xff]   ;;  %v4124_v8 = vcombine.high %v692_v0, %v692_v0 }
  0xb5   : > { %v5228_v6 = vld [vmem:[%s5903_s26 + $0x180] sm:$0xff]  }
  0xb6   : > { %2812 = vmatmul.mubr.bf16.gmra.mxu0 %v5150_v7  ;;  %v4122_v7 = vcombine.high %v691_v63, %v691_v63  ;;  %v5299_v63 = vld [vmem:[%s5903_s26 + $0x2c0] sm:$0xff]  }
  0xb7   : > { %4444 = vmatpush3.bf16.msra.mxu1 %v5153_v9  ;;  %4502 = vmatpush3.bf16.msra.mxu0 %v5154_v10  ;;  %v5229_v9 = vld [vmem:[%s5903_s26 + $0x240] sm:$0xff]  }
  0xb8   : > { %4445 = vmatprep.subr.bf16.mxu1 %v5155_v11  ;;  %4503 = vmatprep.subr.bf16.mxu0 %v5156_v12  ;;  %v5230_v10 = vld [vmem:[%s5903_s26 + $0x200] sm:$0xff]   ;;  %v5237_v11 = vld [vmem:[%s5903_s26 + $0x2f8] sm:$0xff]  }
  0xb9   : > { %2963 = vmatprep.mubr.bf16.mxu0 %v5164_v15  ;;  %v5233_v12 = vld [vmem:[%s5910_s12 + $0x1c] ss:$84 sps:$4 sm:$0xff]  }
  0xba   : > { %v5239_v15 = vld [vmem:[%s5903_s26 + $0x378] sm:$0xff]  }
  0xbb   : > { %4446 = vmatpush3.bf16.msra.mxu1 %v5157_v14  ;;  %4504 = vmatpush3.bf16.msra.mxu0 %v5158_v16  ;;  %v4123_v14 = vcombine.low %v692_v0, %v692_v0  ;;  %v5236_v16 = vld [vmem:[%s5910_s12 + $0x24] ss:$84 sps:$4 sm:$0xff]  }
  0xbc   : > { %4547 = vmatprep.subr.bf16.mxu1 %v5165_v19  ;;  %4605 = vmatprep.subr.bf16.mxu0 %v5167_v21  ;;  %v5238_v19 = vld [vmem:[%s5903_s26 + $0x2b8] sm:$0xff]   ;;  %v5241_v21 = vld [vmem:[%s5910_s12 + $0xc4] ss:$84 sps:$4 sm:$0xff]  }
  0xbd   : > { %v5300_v0 = vld [vmem:[%s5903_s26 + $0x280] sm:$0xff]  }
  0xbe   : > { %2876 = vmatmul.mubr.bf16.vlgmr.msra.gmra.mxu1 %v5159_v17  ;;  %2964 = vmatmul.mubr.bf16.vlgmr.msra.gmra.mxu0 %v5162_v18  ;;  %v5231_v17 = vld [vmem:[%s5910_s12 + $0x18] ss:$84 sps:$4 sm:$0xff]   ;;  %v5234_v18 = vld [vmem:[%s5910_s12 + $0x20] ss:$84 sps:$4 sm:$0xff]  }
  0xbf   : > { %4548 = vmatpush3.bf16.msra.mxu1 %v5166_v20  ;;  %4606 = vmatpush3.bf16.msra.mxu0 %v5168_v22  ;;  %v5240_v20 = vld [vmem:[%s5903_s26 + $0x338] sm:$0xff]  }
  0xc0   : > { %2883 = vmatprep.mubr.bf16.mxu1 %v5169_v23  ;;  %2971 = vmatprep.mubr.bf16.mxu0 %v5171_v24  ;;  %v5243_v22 = vld [vmem:[%s5910_s12 + $0xcc] ss:$84 sps:$4 sm:$0xff]  }
  0xc1   : > { %4549 = vmatprep.subr.bf16.mxu1 %v5173_v25  ;;  %4607 = vmatprep.subr.bf16.mxu0 %v5177_v29  ;;  %v5245_v23 = vld [vmem:[%s5903_s26 + $0x2f0] sm:$0xff]  }
  0xc2   : > { %v5249_v24 = vld [vmem:[%s5903_s26 + $0x370] sm:$0xff]  }
  0xc3   : > { %4550 = vmatpush3.bf16.msra.mxu1 %v5176_v26  ;;  %4608 = vmatpush3.bf16.msra.mxu0 %v5178_v30  ;;  %v5248_v25 = vld [vmem:[%s5903_s26 + $0x2b0] sm:$0xff]   ;;  %v5259_v30 = vld [vmem:[%s5903_s26 + $0x368] sm:$0xff]  }
  0xc4   : > { %4551 = vmatprep.subr.bf16.mxu1 %v5179_v31  ;;  %4609 = vmatprep.subr.bf16.mxu0 %v5187_v35  ;;  %v5250_v26 = vld [vmem:[%s5903_s26 + $0x330] sm:$0xff]   ;;  %v5261_v35 = vld [vmem:[%s5903_s26 + $0x2e0] sm:$0xff]  }
  0xc5   : > { %v5247_v29 = vld [vmem:[%s5910_s12 + $0xc8] ss:$84 sps:$4 sm:$0xff]   ;;  %v5252_v31 = vld [vmem:[%s5910_s12 + $0x16c] ss:$84 sps:$4 sm:$0xff]  }
  0xc6   : > { %2884 = vmatmul.mubr.bf16.gmra.mxu1 %v5174_v27  ;;  %2972 = vmatmul.mubr.bf16.gmra.mxu0 %v5175_v28  ;;  %v5251_v27 = vld [vmem:[%s5903_s26 + $0x2e8] sm:$0xff]  }
  0xc7   : > { %2891 = vmatprep.mubr.bf16.mxu1 %v5180_v32  ;;  %2979 = vmatprep.mubr.bf16.mxu0 %v5182_v33  ;;  %v5246_v28 = vld [vmem:[%s5910_s12 + $0xc0] ss:$84 sps:$4 sm:$0xff]  }
  0xc8   : > { %4552 = vmatpush3.bf16.msra.mxu1 %v5184_v34  ;;  %4610 = vmatpush3.bf16.msra.mxu0 %v5188_v38  ;;  %v5254_v32 = vld [vmem:[%s5910_s12 + $0x174] ss:$84 sps:$4 sm:$0xff]   ;;  %v5256_v33 = vld [vmem:[%s5903_s26 + $0x2a8] sm:$0xff]  }
  0xc9   : > { %4553 = vmatprep.subr.bf16.mxu1 %v5189_v39  ;;  %4611 = vmatprep.subr.bf16.mxu0 %v5197_v43  ;;  %v5260_v34 = vld [vmem:[%s5903_s26 + $0x328] sm:$0xff]   ;;  %v5270_v39 = vld [vmem:[%s5903_s26 + $0x320] sm:$0xff]  }
  0xca   : > { %v5257_v38 = vld [vmem:[%s5910_s12 + $0x168] ss:$84 sps:$4 sm:$0xff]  }
  0xcb   : > { %v5265_v43 = vld [vmem:[%s5910_s12 + $0x21c] ss:$84 sps:$4 sm:$0xff]  }
  0xcc   : > { %4554 = vmatpush3.bf16.msra.mxu1 %v5190_v40  ;;  %4612 = vmatpush3.bf16.msra.mxu0 %v5198_v44  ;;  %v5271_v40 = vld [vmem:[%s5903_s26 + $0x2d8] sm:$0xff]  }
  0xcd   : > { %4555 = vmatprep.subr.bf16.mxu1 %v5199_v45  ;;  %4613 = vmatprep.subr.bf16.mxu0 %v5207_v51  ;;  %v5272_v44 = vld [vmem:[%s5903_s26 + $0x298] sm:$0xff]  }
  0xce   : > { %2892 = vmatmul.mubr.bf16.gmra.mxu1 %v5185_v36  ;;  %2980 = vmatmul.mubr.bf16.gmra.mxu0 %v5186_v37  ;;  %v5269_v36 = vld [vmem:[%s5903_s26 + $0x360] sm:$0xff]   ;;  %v5279_v45 = vld [vmem:[%s5903_s26 + $0x358] sm:$0xff]  }
  0xcf   : > { %2899 = vmatprep.mubr.bf16.mxu1 %v5191_v41  ;;  %2987 = vmatprep.mubr.bf16.mxu0 %v5193_v42  ;;  %v5262_v37 = vld [vmem:[%s5903_s26 + $0x2a0] sm:$0xff]   ;;  %v5258_v41 = vld [vmem:[%s5910_s12 + $0x170] ss:$84 sps:$4 sm:$0xff]  }
  0xd0   : > { %4556 = vmatpush3.bf16.msra.mxu1 %v5200_v46  ;;  %4614 = vmatpush3.bf16.msra.mxu0 %v5208_v52  ;;  %v5263_v42 = vld [vmem:[%s5910_s12 + $0x214] ss:$84 sps:$4 sm:$0xff]   ;;  %v5273_v51 = vld [vmem:[%s5910_s12 + $0x2bc] ss:$84 sps:$4 sm:$0xff]   ;;  %v5275_v52 = vld [vmem:[%s5910_s12 + $0x2c4] ss:$84 sps:$4 sm:$0xff]  }
  0xd1   : > { %4557 = vmatprep.subr.bf16.mxu1 %v5209_v53  ;;  %4615 = vmatprep.subr.bf16.mxu0 %v5217_v59  ;;  %v5280_v46 = vld [vmem:[%s5903_s26 + $0x318] sm:$0xff]   ;;  %v5289_v53 = vld [vmem:[%s5903_s26 + $0x350] sm:$0xff]   ;;  %v5295_v59 = vld [vmem:[%s5903_s26 + $0x348] sm:$0xff]  }
  0xd4   : > { %4558 = vmatpush3.bf16.msra.mxu1 %v5210_v54  ;;  %4616 = vmatpush3.bf16.msra.mxu0 %v5218_v60  ;;  %v5290_v54 = vld [vmem:[%s5903_s26 + $0x310] sm:$0xff]  }
  0xd5   : > { %4559 = vmatprep.subr.bf16.mxu1 %v5219_v61  ;;  %4617 = vmatprep.subr.bf16.mxu0 %v5223_v1  ;;  %v5283_v60 = vld [vmem:[%s5910_s12 + $0x364] ss:$84 sps:$4 sm:$0xff]   ;;  %v5285_v61 = vld [vmem:[%s5910_s12 + $0x36c] ss:$84 sps:$4 sm:$0xff]  }
  0xd6   : > { %2900 = vmatmul.mubr.bf16.gmra.mxu1 %v5195_v47  ;;  %2988 = vmatmul.mubr.bf16.gmra.mxu0 %v5196_v48  ;;  %v5281_v47 = vld [vmem:[%s5903_s26 + $0x2d0] sm:$0xff]   ;;  %v5301_v1 = vld [vmem:[%s5903_s26 + $0x340] sm:$0xff]  }
  0xd7   : > { %2907 = vmatprep.mubr.bf16.mxu1 %v5201_v49  ;;  %2995 = vmatprep.mubr.bf16.mxu0 %v5203_v50  ;;  %v5282_v48 = vld [vmem:[%s5903_s26 + $0x290] sm:$0xff]  }
  0xd8   : > { %4560 = vmatpush3.bf16.msra.mxu1 %v5220_v62  ;;  %4618 = vmatpush3.bf16.msra.mxu0 %v5226_v4  ;;  %v5267_v49 = vld [vmem:[%s5910_s12 + $0x210] ss:$84 sps:$4 sm:$0xff]   ;;  %v5268_v50 = vld [vmem:[%s5910_s12 + $0x218] ss:$84 sps:$4 sm:$0xff]   ;;  %v5287_v4 = vld [vmem:[%s5910_s12 + $0x360] ss:$84 sps:$4 sm:$0xff]  }
  0xd9   : > { %4561 = vmatprep.subr.bf16.mxu1 %v5227_v5  ;;  %4619 = vmatprep.subr.bf16.mxu0 %v5229_v9  ;;  %v5298_v62 = vld [vmem:[%s5903_s26 + $0x308] sm:$0xff]   ;;  %v694_v5 = vld [vmem:[%s5910_s12 + $0x410] sm:$0xff] }
  0xda   : > { %v4128_v9 = vcombine.high %v694_v5, %v694_v5 }
  0xdc   : > { %4562 = vmatpush3.bf16.msra.mxu1 %v5228_v6  ;;  %4620 = vmatpush3.bf16.msra.mxu0 %v5230_v10  ;;  %v5309_v6 = vld [vmem:[%s5903_s26 + $0x3f8] sm:$0xff]  }
  0xdd   : > { %4663 = vmatprep.subr.bf16.mxu1 %v5237_v11  ;;  %4721 = vmatprep.subr.bf16.mxu0 %v5239_v15  ;;  %v5311_v10 = vld [vmem:[%s5903_s26 + $0x478] sm:$0xff]   ;;  %v5303_v15 = vld [vmem:[%s5910_s12 + $0x28] ss:$84 sps:$4 sm:$0xff]  }
  0xde   : > { %2908 = vmatmul.mubr.bf16.gmra.mxu1 %v5205_v55  ;;  %2996 = vmatmul.mubr.bf16.gmra.mxu0 %v5206_v56  ;;  %v5291_v55 = vld [vmem:[%s5903_s26 + $0x2c8] sm:$0xff]  }
  0xdf   : > { %2915 = vmatprep.mubr.bf16.mxu1 %v5211_v57  ;;  %3003 = vmatprep.mubr.bf16.mxu0 %v5213_v58  ;;  %v5292_v56 = vld [vmem:[%s5903_s26 + $0x288] sm:$0xff]   ;;  %v5277_v57 = vld [vmem:[%s5910_s12 + $0x2b8] ss:$84 sps:$4 sm:$0xff]  }
  0xe0   : > { %v5278_v58 = vld [vmem:[%s5910_s12 + $0x2c0] ss:$84 sps:$4 sm:$0xff]  }
  0xe6   : > { %2916 = vmatmul.mubr.bf16.gmra.mxu1 %v5215_v2  ;;  %3004 = vmatmul.mubr.bf16.gmra.mxu0 %v5216_v3  ;;  %v5302_v2 = vld [vmem:[%s5903_s26 + $0x300] sm:$0xff]   ;;  %v693_v3 = vld [vmem:[%s5910_s12 + $0x408] sm:$0xff] }
  0xe7   : > { %2923 = vmatprep.mubr.bf16.mxu1 %v4122_v7  ;;  %3011 = vmatprep.mubr.bf16.mxu0 %v4124_v8  ;;  %v5288_v7 = vld [vmem:[%s5910_s12 + $0x368] ss:$84 sps:$4 sm:$0xff]   ;;  %v4126_v8 = vcombine.high %v693_v3, %v693_v3  ;;  %v4125_v11 = vcombine.low %v693_v3, %v693_v3 }
  0xe8   : > { %v695_v3 = vld [vmem:[%s5910_s12 + $0x418] sm:$0xff] }
  0xee   : > { %2924 = vmatmul.mubr.bf16.gmra.mxu1 %v4121_v13  ;;  %3012 = vmatmul.mubr.bf16.gmra.mxu0 %v4123_v14  ;;  %v5305_v13 = vld [vmem:[%s5910_s12 + $0x2c] ss:$84 sps:$4 sm:$0xff]   ;;  %v5308_v14 = vld [vmem:[%s5910_s12 + $0x34] ss:$84 sps:$4 sm:$0xff]  }
  0xef   : > { %3051 = vmatprep.mubr.bf16.mxu1 %v5233_v12  ;;  %3139 = vmatprep.mubr.bf16.mxu0 %v5236_v16  ;;  %v4127_v12 = vcombine.low %v694_v5, %v694_v5  ;;  %v5306_v16 = vld [vmem:[%s5910_s12 + $0x30] ss:$84 sps:$4 sm:$0xff]  }
  0xf0   : > { %v5359_v5 = vld [vmem:[%s5910_s12 + $0x370] ss:$84 sps:$4 sm:$0xff]  }
  0xf6   : > { %3052 = vmatmul.mubr.bf16.vlgmr.msra.gmra.mxu1 %v5231_v17  ;;  %3140 = vmatmul.mubr.bf16.vlgmr.msra.gmra.mxu0 %v5234_v18  ;;  %v5310_v17 = vld [vmem:[%s5903_s26 + $0x3b8] sm:$0xff]  }
  0xf7   : > { %4664 = vmatpush3.bf16.msra.mxu1 %v5238_v19  ;;  %4722 = vmatpush3.bf16.msra.mxu0 %v5240_v20  ;;  %v5312_v18 = vld [vmem:[%s5903_s26 + $0x438] sm:$0xff]  }
  0xf8   : > { %3059 = vmatprep.mubr.bf16.mxu1 %v5241_v21  ;;  %3147 = vmatprep.mubr.bf16.mxu0 %v5243_v22  ;;  %v5313_v19 = vld [vmem:[%s5910_s12 + $0xd4] ss:$84 sps:$4 sm:$0xff]   ;;  %v5315_v20 = vld [vmem:[%s5910_s12 + $0xdc] ss:$84 sps:$4 sm:$0xff]  }
  0xf9   : > { %4665 = vmatprep.subr.bf16.mxu1 %v5245_v23  ;;  %4723 = vmatprep.subr.bf16.mxu0 %v5249_v24  ;;  %v5317_v21 = vld [vmem:[%s5903_s26 + $0x3f0] sm:$0xff]  }
  0xfa   : > { %v5320_v22 = vld [vmem:[%s5903_s26 + $0x3b0] sm:$0xff]  }
  0xfb   : > { %4666 = vmatpush3.bf16.msra.mxu1 %v5248_v25  ;;  %4724 = vmatpush3.bf16.msra.mxu0 %v5250_v26  ;;  %v5321_v23 = vld [vmem:[%s5903_s26 + $0x470] sm:$0xff]   ;;  %v5323_v25 = vld [vmem:[%s5903_s26 + $0x3e8] sm:$0xff]  }
  0xfc   : > { %4667 = vmatprep.subr.bf16.mxu1 %v5251_v27  ;;  %4725 = vmatprep.subr.bf16.mxu0 %v5259_v30  ;;  %v5322_v24 = vld [vmem:[%s5903_s26 + $0x430] sm:$0xff]   ;;  %v5331_v27 = vld [vmem:[%s5903_s26 + $0x468] sm:$0xff]  }
  0xfd   : > { %v5318_v26 = vld [vmem:[%s5910_s12 + $0xd0] ss:$84 sps:$4 sm:$0xff]  }
  0xfe   : > { %3060 = vmatmul.mubr.bf16.gmra.mxu1 %v5246_v28  ;;  %3148 = vmatmul.mubr.bf16.gmra.mxu0 %v5247_v29  ;;  %v5319_v28 = vld [vmem:[%s5910_s12 + $0xd8] ss:$84 sps:$4 sm:$0xff]   ;;  %v5324_v29 = vld [vmem:[%s5910_s12 + $0x17c] ss:$84 sps:$4 sm:$0xff]  }
  0xff   : > { %3067 = vmatprep.mubr.bf16.mxu1 %v5252_v31  ;;  %3155 = vmatprep.mubr.bf16.mxu0 %v5254_v32  ;;  %v5326_v30 = vld [vmem:[%s5910_s12 + $0x184] ss:$84 sps:$4 sm:$0xff]  }
 0x100   : > { %4668 = vmatpush3.bf16.msra.mxu1 %v5256_v33  ;;  %4726 = vmatpush3.bf16.msra.mxu0 %v5260_v34  ;;  %v5328_v31 = vld [vmem:[%s5903_s26 + $0x3a8] sm:$0xff]   ;;  %v5333_v33 = vld [vmem:[%s5903_s26 + $0x3e0] sm:$0xff]  }
 0x101   : > { %4669 = vmatprep.subr.bf16.mxu1 %v5261_v35  ;;  %4727 = vmatprep.subr.bf16.mxu0 %v5269_v36  ;;  %v5332_v32 = vld [vmem:[%s5903_s26 + $0x428] sm:$0xff]   ;;  %v5341_v34 = vld [vmem:[%s5903_s26 + $0x460] sm:$0xff]  }
 0x102   : > { %v5334_v35 = vld [vmem:[%s5903_s26 + $0x3a0] sm:$0xff]  }
 0x103   : > { %v5342_v36 = vld [vmem:[%s5903_s26 + $0x420] sm:$0xff]  }
 0x104   : > { %4670 = vmatpush3.bf16.msra.mxu1 %v5262_v37  ;;  %4728 = vmatpush3.bf16.msra.mxu0 %v5270_v39  ;;  %v5329_v37 = vld [vmem:[%s5910_s12 + $0x178] ss:$84 sps:$4 sm:$0xff]  }
 0x105   : > { %4671 = vmatprep.subr.bf16.mxu1 %v5271_v40  ;;  %4729 = vmatprep.subr.bf16.mxu0 %v5279_v45  ;;  %v5343_v39 = vld [vmem:[%s5903_s26 + $0x3d8] sm:$0xff]   ;;  %v5335_v40 = vld [vmem:[%s5910_s12 + $0x224] ss:$84 sps:$4 sm:$0xff]  }
 0x106   : > { %3068 = vmatmul.mubr.bf16.gmra.mxu1 %v5257_v38  ;;  %3156 = vmatmul.mubr.bf16.gmra.mxu0 %v5258_v41  ;;  %v5330_v38 = vld [vmem:[%s5910_s12 + $0x180] ss:$84 sps:$4 sm:$0xff]   ;;  %v5353_v45 = vld [vmem:[%s5903_s26 + $0x3d0] sm:$0xff]  }
 0x107   : > { %3075 = vmatprep.mubr.bf16.mxu1 %v5263_v42  ;;  %3163 = vmatprep.mubr.bf16.mxu0 %v5265_v43  ;;  %v5351_v41 = vld [vmem:[%s5903_s26 + $0x458] sm:$0xff]  }
 0x108   : > { %4672 = vmatpush3.bf16.msra.mxu1 %v5272_v44  ;;  %4730 = vmatpush3.bf16.msra.mxu0 %v5280_v46  ;;  %v5337_v42 = vld [vmem:[%s5910_s12 + $0x22c] ss:$84 sps:$4 sm:$0xff]  }
 0x109   : > { %4673 = vmatprep.subr.bf16.mxu1 %v5281_v47  ;;  %4731 = vmatprep.subr.bf16.mxu0 %v5289_v53  ;;  %v5344_v43 = vld [vmem:[%s5903_s26 + $0x398] sm:$0xff]   ;;  %v5361_v46 = vld [vmem:[%s5903_s26 + $0x450] sm:$0xff]  }
 0x10a   : > { %v5352_v44 = vld [vmem:[%s5903_s26 + $0x418] sm:$0xff]   ;;  %v5354_v47 = vld [vmem:[%s5903_s26 + $0x390] sm:$0xff]  }
 0x10b   : > { %v5347_v53 = vld [vmem:[%s5910_s12 + $0x2d4] ss:$84 sps:$4 sm:$0xff]  }
 0x10c   : > { %4674 = vmatpush3.bf16.msra.mxu1 %v5282_v48  ;;  %4732 = vmatpush3.bf16.msra.mxu0 %v5290_v54  ;;  %v5362_v48 = vld [vmem:[%s5903_s26 + $0x410] sm:$0xff]   ;;  %v5367_v54 = vld [vmem:[%s5903_s26 + $0x448] sm:$0xff]  }
 0x10d   : > { %4675 = vmatprep.subr.bf16.mxu1 %v5291_v55  ;;  %4733 = vmatprep.subr.bf16.mxu0 %v5295_v59  ;;  %v5364_v55 = vld [vmem:[%s5903_s26 + $0x388] sm:$0xff]  }
 0x10e   : > { %3076 = vmatmul.mubr.bf16.gmra.mxu1 %v5267_v49  ;;  %3164 = vmatmul.mubr.bf16.gmra.mxu0 %v5268_v50  ;;  %v5339_v49 = vld [vmem:[%s5910_s12 + $0x220] ss:$84 sps:$4 sm:$0xff]   ;;  %v5340_v50 = vld [vmem:[%s5910_s12 + $0x228] ss:$84 sps:$4 sm:$0xff]  }
 0x10f   : > { %3083 = vmatprep.mubr.bf16.mxu1 %v5273_v51  ;;  %3171 = vmatprep.mubr.bf16.mxu0 %v5275_v52  ;;  %v5363_v51 = vld [vmem:[%s5903_s26 + $0x3c8] sm:$0xff]  }
 0x110   : > { %4676 = vmatpush3.bf16.msra.mxu1 %v5292_v56  ;;  %4734 = vmatpush3.bf16.msra.mxu0 %v5298_v62  ;;  %v5345_v52 = vld [vmem:[%s5910_s12 + $0x2cc] ss:$84 sps:$4 sm:$0xff]   ;;  %v5349_v59 = vld [vmem:[%s5910_s12 + $0x2c8] ss:$84 sps:$4 sm:$0xff]  }
 0x111   : > { %4677 = vmatprep.subr.bf16.mxu1 %v5299_v63  ;;  %4735 = vmatprep.subr.bf16.mxu0 %v5301_v1  ;;  %v5370_v56 = vld [vmem:[%s5903_s26 + $0x408] sm:$0xff]   ;;  %v5374_v62 = vld [vmem:[%s5903_s26 + $0x400] sm:$0xff]   ;;  %v5381_v63 = vld [vmem:[%s5903_s26 + $0x4f8] sm:$0xff]  }
 0x112   : > { %v5357_v1 = vld [vmem:[%s5910_s12 + $0x37c] ss:$84 sps:$4 sm:$0xff]  }
 0x114   : > { %4678 = vmatpush3.bf16.msra.mxu1 %v5300_v0  ;;  %4736 = vmatpush3.bf16.msra.mxu0 %v5302_v2  ;;  %v5355_v0 = vld [vmem:[%s5910_s12 + $0x374] ss:$84 sps:$4 sm:$0xff]   ;;  %v5523_v2 = vmov 0.0  }
 0x115   : > { %4779 = vmatprep.subr.bf16.mxu1 %v5309_v6  ;;  %4837 = vmatprep.subr.bf16.mxu0 %v5311_v10  ;;  %v5360_v6 = vld [vmem:[%s5910_s12 + $0x378] ss:$84 sps:$4 sm:$0xff]  }
 0x116   : > { %3084 = vmatmul.mubr.bf16.gmra.mxu1 %v5277_v57  ;;  %3172 = vmatmul.mubr.bf16.gmra.mxu0 %v5278_v58  ;;  %v5371_v57 = vld [vmem:[%s5903_s26 + $0x3c0] sm:$0xff]  }
 0x117   : > { %3091 = vmatprep.mubr.bf16.mxu1 %v5283_v60  ;;  %3179 = vmatprep.mubr.bf16.mxu0 %v5285_v61  ;;  %v5373_v58 = vld [vmem:[%s5903_s26 + $0x440] sm:$0xff]   ;;  %v5350_v60 = vld [vmem:[%s5910_s12 + $0x2d0] ss:$84 sps:$4 sm:$0xff]  }
 0x118   : > { %v5372_v61 = vld [vmem:[%s5903_s26 + $0x380] sm:$0xff]  }
 0x11e   : > { %3092 = vmatmul.mubr.bf16.gmra.mxu1 %v5287_v4  ;;  %3180 = vmatmul.mubr.bf16.gmra.mxu0 %v5288_v7  ;;  %v696_v4 = vld [vmem:[%s5910_s12 + $0x420] sm:$0xff]  ;;  %v4130_v7 = vcombine.high %v695_v3, %v695_v3 }
 0x11f   : > { %3099 = vmatprep.mubr.bf16.mxu1 %v4126_v8  ;;  %3187 = vmatprep.mubr.bf16.mxu0 %v4128_v9  ;;  %v4132_v8 = vcombine.high %v696_v4, %v696_v4  ;;  %v4129_v9 = vcombine.low %v695_v3, %v695_v3  ;;  %v4131_v10 = vcombine.low %v696_v4, %v696_v4  ;;  %v5400_v3 = vld [vmem:[%s5910_s12 + $0x190] ss:$84 sps:$4 sm:$0xff]   ;;  %v5404_v4 = vld [vmem:[%s5910_s12 + $0x234] ss:$84 sps:$4 sm:$0xff]  }
 0x126   : > { %3100 = vmatmul.mubr.bf16.gmra.mxu1 %v4125_v11  ;;  %3188 = vmatmul.mubr.bf16.gmra.mxu0 %v4127_v12  ;;  %v5377_v11 = vld [vmem:[%s5910_s12 + $0x3c] ss:$84 sps:$4 sm:$0xff]   ;;  %v5380_v12 = vld [vmem:[%s5910_s12 + $0x44] ss:$84 sps:$4 sm:$0xff]  }
 0x127   : > { %3227 = vmatprep.mubr.bf16.mxu1 %v5305_v13  ;;  %3315 = vmatprep.mubr.bf16.mxu0 %v5308_v14 }
 0x12e   : > { %3228 = vmatmul.mubr.bf16.vlgmr.msra.gmra.mxu1 %v5303_v15  ;;  %3316 = vmatmul.mubr.bf16.vlgmr.msra.gmra.mxu0 %v5306_v16 }
 0x12f   : > { %4780 = vmatpush3.bf16.msra.mxu1 %v5310_v17  ;;  %4838 = vmatpush3.bf16.msra.mxu0 %v5312_v18  ;;  %v5375_v17 = vld [vmem:[%s5910_s12 + $0x38] ss:$84 sps:$4 sm:$0xff]  }
 0x130   : > { %3235 = vmatprep.mubr.bf16.mxu1 %v5313_v19  ;;  %3323 = vmatprep.mubr.bf16.mxu0 %v5315_v20  ;;  %v5378_v20 = vld [vmem:[%s5910_s12 + $0x40] ss:$84 sps:$4 sm:$0xff]  }
 0x131   : > { %4781 = vmatprep.subr.bf16.mxu1 %v5317_v21  ;;  %4839 = vmatprep.subr.bf16.mxu0 %v5321_v23  ;;  %v5382_v21 = vld [vmem:[%s5903_s26 + $0x4b8] sm:$0xff]  }
 0x133   : > { %4782 = vmatpush3.bf16.msra.mxu1 %v5320_v22  ;;  %4840 = vmatpush3.bf16.msra.mxu0 %v5322_v24  ;;  %v5383_v24 = vld [vmem:[%s5903_s26 + $0x538] sm:$0xff]  }
 0x134   : > { %4783 = vmatprep.subr.bf16.mxu1 %v5323_v25  ;;  %4841 = vmatprep.subr.bf16.mxu0 %v5331_v27  ;;  %v5384_v25 = vld [vmem:[%s5910_s12 + $0xe4] ss:$84 sps:$4 sm:$0xff]  }
 0x136   : > { %3236 = vmatmul.mubr.bf16.gmra.mxu1 %v5318_v26  ;;  %3324 = vmatmul.mubr.bf16.gmra.mxu0 %v5319_v28  ;;  %v5386_v28 = vld [vmem:[%s5910_s12 + $0xec] ss:$84 sps:$4 sm:$0xff]  }
 0x137   : > { %3243 = vmatprep.mubr.bf16.mxu1 %v5324_v29  ;;  %3331 = vmatprep.mubr.bf16.mxu0 %v5326_v30 }
 0x138   : > { %4784 = vmatpush3.bf16.msra.mxu1 %v5328_v31  ;;  %4842 = vmatpush3.bf16.msra.mxu0 %v5332_v32  ;;  %v5388_v31 = vld [vmem:[%s5903_s26 + $0x4f0] sm:$0xff]  }
 0x139   : > { %4785 = vmatprep.subr.bf16.mxu1 %v5333_v33  ;;  %4843 = vmatprep.subr.bf16.mxu0 %v5341_v34  ;;  %v5391_v34 = vld [vmem:[%s5903_s26 + $0x4b0] sm:$0xff]  }
 0x13c   : > { %4786 = vmatpush3.bf16.msra.mxu1 %v5334_v35  ;;  %4844 = vmatpush3.bf16.msra.mxu0 %v5342_v36  ;;  %v5392_v35 = vld [vmem:[%s5903_s26 + $0x530] sm:$0xff]  }
 0x13d   : > { %4787 = vmatprep.subr.bf16.mxu1 %v5343_v39  ;;  %4845 = vmatprep.subr.bf16.mxu0 %v5351_v41  ;;  %v5389_v41 = vld [vmem:[%s5910_s12 + $0xe0] ss:$84 sps:$4 sm:$0xff]  }
 0x13e   : > { %3244 = vmatmul.mubr.bf16.gmra.mxu1 %v5329_v37  ;;  %3332 = vmatmul.mubr.bf16.gmra.mxu0 %v5330_v38  ;;  %v5393_v38 = vld [vmem:[%s5903_s26 + $0x4e8] sm:$0xff]  }
 0x13f   : > { %3251 = vmatprep.mubr.bf16.mxu1 %v5335_v40  ;;  %3339 = vmatprep.mubr.bf16.mxu0 %v5337_v42 }
 0x140   : > { %4788 = vmatpush3.bf16.msra.mxu1 %v5344_v43  ;;  %4846 = vmatpush3.bf16.msra.mxu0 %v5352_v44  ;;  %v5390_v44 = vld [vmem:[%s5910_s12 + $0xe8] ss:$84 sps:$4 sm:$0xff]  }
 0x141   : > { %4789 = vmatprep.subr.bf16.mxu1 %v5353_v45  ;;  %4847 = vmatprep.subr.bf16.mxu0 %v5361_v46  ;;  %v5394_v45 = vld [vmem:[%s5910_s12 + $0x18c] ss:$84 sps:$4 sm:$0xff]   ;;  %v5396_v46 = vld [vmem:[%s5910_s12 + $0x194] ss:$84 sps:$4 sm:$0xff]  }
 0x144   : > { %4790 = vmatpush3.bf16.msra.mxu1 %v5354_v47  ;;  %4848 = vmatpush3.bf16.msra.mxu0 %v5362_v48  ;;  %v5398_v47 = vld [vmem:[%s5903_s26 + $0x4a8] sm:$0xff]  }
 0x145   : > { %4791 = vmatprep.subr.bf16.mxu1 %v5363_v51  ;;  %4849 = vmatprep.subr.bf16.mxu0 %v5367_v54 }
 0x146   : > { %3252 = vmatmul.mubr.bf16.gmra.mxu1 %v5339_v49  ;;  %3340 = vmatmul.mubr.bf16.gmra.mxu0 %v5340_v50  ;;  %v5401_v50 = vld [vmem:[%s5903_s26 + $0x528] sm:$0xff]  }
 0x147   : > { %3259 = vmatprep.mubr.bf16.mxu1 %v5345_v52  ;;  %3347 = vmatprep.mubr.bf16.mxu0 %v5347_v53  ;;  %v5402_v53 = vld [vmem:[%s5903_s26 + $0x4e0] sm:$0xff]  }
 0x148   : > { %4792 = vmatpush3.bf16.msra.mxu1 %v5364_v55  ;;  %4850 = vmatpush3.bf16.msra.mxu0 %v5370_v56  ;;  %v5403_v56 = vld [vmem:[%s5903_s26 + $0x4a0] sm:$0xff]  }
 0x149   : > { %4793 = vmatprep.subr.bf16.mxu1 %v5371_v57  ;;  %4851 = vmatprep.subr.bf16.mxu0 %v5373_v58 }
 0x14c   : > { %4794 = vmatpush3.bf16.msra.mxu1 %v5372_v61  ;;  %4852 = vmatpush3.bf16.msra.mxu0 %v5374_v62 }
 0x14d   : > { %4895 = vmatprep.subr.bf16.mxu1 %v5381_v63  ;;  %4968 = vmatprep.subr.bf16.mxu0 %v5523_v2  ;;  %v5411_v63 = vld [vmem:[%s5903_s26 + $0x4d8] sm:$0xff]  }
 0x14e   : > { %3260 = vmatmul.mubr.bf16.gmra.mxu1 %v5349_v59  ;;  %3348 = vmatmul.mubr.bf16.gmra.mxu0 %v5350_v60  ;;  %v5399_v59 = vld [vmem:[%s5910_s12 + $0x188] ss:$84 sps:$4 sm:$0xff]  }
 0x14f   : > { %3267 = vmatprep.mubr.bf16.mxu1 %v5355_v0  ;;  %3355 = vmatprep.mubr.bf16.mxu0 %v5357_v1  ;;  %v5410_v60 = vld [vmem:[%s5903_s26 + $0x520] sm:$0xff]  }
 0x156   : > { %3268 = vmatmul.mubr.bf16.gmra.mxu1 %v5359_v5  ;;  %3356 = vmatmul.mubr.bf16.gmra.mxu0 %v5360_v6  ;;  %v5408_v5 = vld [vmem:[%s5910_s12 + $0x23c] ss:$84 sps:$4 sm:$0xff]  }
 0x157   : > { %3275 = vmatprep.mubr.bf16.mxu1 %v4130_v7  ;;  %3363 = vmatprep.mubr.bf16.mxu0 %v4132_v8  ;;  %v5412_v8 = vld [vmem:[%s5903_s26 + $0x498] sm:$0xff]  }
 0x15e   : > { %v4389_v13 = vpop.f32.mrf.mxu0  ;;  %v4413_v14 = vpop.f32.mrf.mxu1  ;;  %3276 = vmatmul.mubr.bf16.gmra.mxu1 %v4129_v9  ;;  %3364 = vmatmul.mubr.bf16.gmra.mxu0 %v4131_v10  ;;  %v5419_v9 = vld [vmem:[%s5903_s26 + $0x518] sm:$0xff]  }
 0x15f   : > { %3403 = vmatprep.mubr.bf16.mxu1 %v5377_v11  ;;  %3491 = vmatprep.mubr.bf16.mxu0 %v5380_v12  ;;  %v5420_v11 = vld [vmem:[%s5903_s26 + $0x4d0] sm:$0xff]  }
 0x160   : > { %v4390_v15 = vpop.f32.mrf.mxu0  ;;  %v4414_v16 = vpop.f32.mrf.mxu1 }
 0x161   : > { %v6153_v18 = vadd.f32 %v4390_v15, %v4389_v13  ;;  %v6155_v19 = vadd.f32 %v4414_v16, %v4413_v14  ;;  %v5421_v13 = vld [vmem:[%s5903_s26 + $0x490] sm:$0xff]  }
 0x162   : > { %v4392_v22 = vpop.f32.mrf.mxu0  ;;  %v4416_v23 = vpop.f32.mrf.mxu1  ;;  %v5406_v15 = vld [vmem:[%s5910_s12 + $0x238] ss:$84 sps:$4 sm:$0xff]  }
 0x163   : > { %v5428_v16 = vld [vmem:[%s5903_s26 + $0x510] sm:$0xff]  }
 0x164   : > { %v4393_v26 = vpop.f32.mrf.mxu0  ;;  %v4417_v27 = vpop.f32.mrf.mxu1 }
 0x165   : > { %v6162_v29 = vadd.f32 %v4393_v26, %v4392_v22  ;;  %v6164_v30 = vadd.f32 %v4417_v27, %v4416_v23  ;;  %v5415_v23 = vld [vmem:[%s5910_s12 + $0x2dc] ss:$84 sps:$4 sm:$0xff]  }
 0x166   : > { %v4395_v32 = vpop.f32.mrf.mxu0  ;;  %3404 = vmatmul.mubr.bf16.vlgmr.msra.gmra.mxu1 %v5375_v17  ;;  %3492 = vmatmul.mubr.bf16.vlgmr.msra.gmra.mxu0 %v5378_v20  ;;  %v4419_v33 = vpop.f32.mrf.mxu1  ;;  %v5409_v20 = vld [vmem:[%s5910_s12 + $0x230] ss:$84 sps:$4 sm:$0xff]  }
 0x167   : > { %4896 = vmatpush3.bf16.msra.mxu1 %v5382_v21  ;;  %4969 = vmatpush3.bf16.msra.mxu0 %v5383_v24  ;;  %v5429_v21 = vld [vmem:[%s5903_s26 + $0x4c8] sm:$0xff]  }
 0x168   : > { %v4396_v36 = vpop.f32.mrf.mxu0  ;;  %v4420_v37 = vpop.f32.mrf.mxu1  ;;  %3411 = vmatprep.mubr.bf16.mxu1 %v5384_v25  ;;  %3499 = vmatprep.mubr.bf16.mxu0 %v5386_v28  ;;  %v5418_v24 = vld [vmem:[%s5910_s12 + $0x2e4] ss:$84 sps:$4 sm:$0xff]  }
 0x169   : > { %v6170_v39 = vadd.f32 %v4396_v36, %v4395_v32  ;;  %v6172_v40 = vadd.f32 %v4420_v37, %v4419_v33  ;;  %4897 = vmatprep.subr.bf16.mxu1 %v5388_v31  ;;  %4970 = vmatprep.subr.bf16.mxu0 %v5523_v2  ;;  %v5430_v25 = vld [vmem:[%s5903_s26 + $0x488] sm:$0xff]   ;;  %v5436_v31 = vld [vmem:[%s5903_s26 + $0x4c0] sm:$0xff]  }
 0x16a   : > { %v4398_v42 = vpop.f32.mrf.mxu0  ;;  %v4422_v43 = vpop.f32.mrf.mxu1  ;;  %v5435_v27 = vld [vmem:[%s5903_s26 + $0x508] sm:$0xff]   ;;  %v5437_v36 = vld [vmem:[%s5903_s26 + $0x480] sm:$0xff]  }
 0x16b   : > { %4898 = vmatpush3.bf16.msra.mxu1 %v5391_v34  ;;  %4971 = vmatpush3.bf16.msra.mxu0 %v5392_v35  ;;  %v5438_v37 = vld [vmem:[%s5903_s26 + $0x500] sm:$0xff]  }
 0x16c   : > { %v4399_v48 = vpop.f32.mrf.mxu0  ;;  %v4423_v49 = vpop.f32.mrf.mxu1  ;;  %4899 = vmatprep.subr.bf16.mxu1 %v5393_v38  ;;  %4972 = vmatprep.subr.bf16.mxu0 %v5523_v2 }
 0x16d   : > { %v6182_v51 = vadd.f32 %v4399_v48, %v4398_v42  ;;  %v6184_v52 = vadd.f32 %v4423_v49, %v4422_v43  ;;  %v5427_v48 = vld [vmem:[%s5910_s12 + $0x38c] ss:$84 sps:$4 sm:$0xff]  }
 0x16e   : > { %v4401_v54 = vpop.f32.mrf.mxu0  ;;  %3412 = vmatmul.mubr.bf16.gmra.mxu1 %v5389_v41  ;;  %3500 = vmatmul.mubr.bf16.gmra.mxu0 %v5390_v44  ;;  %v4425_v55 = vpop.f32.mrf.mxu1  ;;  %v5413_v44 = vld [vmem:[%s5910_s12 + $0x2d8] ss:$84 sps:$4 sm:$0xff]  }
 0x16f   : > { %3419 = vmatprep.mubr.bf16.mxu1 %v5394_v45  ;;  %3507 = vmatprep.mubr.bf16.mxu0 %v5396_v46  ;;  %v5416_v45 = vld [vmem:[%s5910_s12 + $0x2e0] ss:$84 sps:$4 sm:$0xff]  }
 0x170   : > { %v4402_v57 = vpop.f32.mrf.mxu0  ;;  %v4426_v58 = vpop.f32.mrf.mxu1  ;;  %4900 = vmatpush3.bf16.msra.mxu1 %v5398_v47  ;;  %4973 = vmatpush3.bf16.msra.mxu0 %v5401_v50  ;;  %v5424_v47 = vld [vmem:[%s5910_s12 + $0x384] ss:$84 sps:$4 sm:$0xff]  }
 0x171   : > { %v6190_v61 = vadd.f32 %v4402_v57, %v4401_v54  ;;  %v6192_v62 = vadd.f32 %v4426_v58, %v4425_v55  ;;  %4901 = vmatprep.subr.bf16.mxu1 %v5402_v53  ;;  %4974 = vmatprep.subr.bf16.mxu0 %v5523_v2 }
 0x172   : > { %v4404_v0 = vpop.f32.mrf.mxu0  ;;  %v4428_v1 = vpop.f32.mrf.mxu1 }
 0x174   : > { %v4405_v6 = vpop.f32.mrf.mxu0  ;;  %v4429_v7 = vpop.f32.mrf.mxu1  ;;  %4902 = vmatpush3.bf16.msra.mxu1 %v5403_v56  ;;  %4975 = vmatpush3.bf16.msra.mxu0 %v5410_v60  ;;  %v697_v60 = vld [vmem:[%s5910_s12 + $0x428] sm:$0xff] }
 0x175   : > { %v6201_v10 = vadd.f32 %v4405_v6, %v4404_v0  ;;  %4903 = vmatprep.subr.bf16.mxu1 %v5411_v63  ;;  %4976 = vmatprep.subr.bf16.mxu0 %v5523_v2  ;;  %v698_v63 = vld [vmem:[%s5910_s12 + $0x430] sm:$0xff]  ;;  %v5425_v7 = vld [vmem:[%s5910_s12 + $0x388] ss:$84 sps:$4 sm:$0xff]  }
 0x176   : > { %v4407_v12 = vpop.f32.mrf.mxu0  ;;  %3420 = vmatmul.mubr.bf16.gmra.mxu1 %v5399_v59  ;;  %3508 = vmatmul.mubr.bf16.gmra.mxu0 %v5400_v3  ;;  %v5422_v6 = vld [vmem:[%s5910_s12 + $0x380] ss:$84 sps:$4 sm:$0xff]  }
 0x177   : > { %3427 = vmatprep.mubr.bf16.mxu1 %v5404_v4  ;;  %3515 = vmatprep.mubr.bf16.mxu0 %v5408_v5 }
 0x178   : > { %v4408_v14 = vpop.f32.mrf.mxu0  ;;  %4904 = vmatpush3.bf16.msra.mxu1 %v5412_v8  ;;  %4977 = vmatpush3.bf16.msra.mxu0 %v5419_v9  ;;  %v4134_v9 = vcombine.high %v697_v60, %v697_v60 }
 0x179   : > { %v6208_v17 = vadd.f32 %v4408_v14, %v4407_v12  ;;  %4905 = vmatprep.subr.bf16.mxu1 %v5420_v11  ;;  %4978 = vmatprep.subr.bf16.mxu0 %v5523_v2  ;;  %v4136_v11 = vcombine.high %v698_v63, %v698_v63 }
 0x17a   : > { %v4410_v22 = vpop.f32.mrf.mxu0 }
 0x17c   : > { %v4411_v26 = vpop.f32.mrf.mxu0  ;;  %4906 = vmatpush3.bf16.msra.mxu1 %v5421_v13  ;;  %4979 = vmatpush3.bf16.msra.mxu0 %v5428_v16 }
 0x17d   : > { %v6217_v28 = vadd.f32 %v4411_v26, %v4410_v22  ;;  %4907 = vmatprep.subr.bf16.mxu1 %v5429_v21  ;;  %4980 = vmatprep.subr.bf16.mxu0 %v5523_v2 }
 0x17e   : > { %v4447_v32 = vpop.f32.mrf.mxu1  ;;  %v4505_v33 = vpop.f32.mrf.mxu0  ;;  %3428 = vmatmul.mubr.bf16.gmra.mxu1 %v5409_v20  ;;  %3516 = vmatmul.mubr.bf16.gmra.mxu0 %v5406_v15 }
 0x17f   : > { %3435 = vmatprep.mubr.bf16.mxu1 %v5415_v23  ;;  %3523 = vmatprep.mubr.bf16.mxu0 %v5418_v24 }
 0x180   : > { %v4448_v34 = vpop.f32.mrf.mxu1  ;;  %v4506_v35 = vpop.f32.mrf.mxu0  ;;  %4908 = vmatpush3.bf16.msra.mxu1 %v5430_v25  ;;  %4981 = vmatpush3.bf16.msra.mxu0 %v5435_v27 }
 0x181   : > { %v4449_v38 = vadd.f32 %v4448_v34, %v4447_v32  ;;  %v4507_v41 = vadd.f32 %v4506_v35, %v4505_v33  ;;  %4909 = vmatprep.subr.bf16.mxu1 %v5436_v31  ;;  %4982 = vmatprep.subr.bf16.mxu0 %v5523_v2  ;;  %v4133_v31 = vcombine.low %v697_v60, %v697_v60  ;;  %v5441_v34 = vld [vmem:[%s5910_s12 + $0x4c] ss:$84 sps:$4 sm:$0xff]  }
 0x182   : > { %v4450_v42 = vpop.f32.mrf.mxu1  ;;  %v4508_v43 = vpop.f32.mrf.mxu0  ;;  %v4135_v32 = vcombine.low %v698_v63, %v698_v63 }
 0x183   : > { %v2878_v46 = vadd.f32 %v4449_v38, %v6153_v18 }
 0x184   : > { %v4451_v49 = vpop.f32.mrf.mxu1  ;;  %v4509_v50 = vpop.f32.mrf.mxu0  ;;  %4910 = vmatpush3.bf16.msra.mxu1 %v5437_v36  ;;  %4983 = vmatpush3.bf16.msra.mxu0 %v5438_v37 }
 0x185   : > { %v6229_v53 = vadd.f32 %v4507_v41, %v2878_v46  ;;  %v4452_v54 = vadd.f32 %v4451_v49, %v4450_v42  ;;  %v4510_v55 = vadd.f32 %v4509_v50, %v4508_v43  ;;  %v5439_v50 = vld [vmem:[%s5910_s12 + $0x48] ss:$84 sps:$4 sm:$0xff]  }
 0x186   : > { %v4453_v56 = vpop.f32.mrf.mxu1  ;;  %v4511_v57 = vpop.f32.mrf.mxu0  ;;  %3436 = vmatmul.mubr.bf16.gmra.mxu1 %v5413_v44  ;;  %3524 = vmatmul.mubr.bf16.gmra.mxu0 %v5416_v45 }
 0x187   : > { %v2881_v18 = vadd.f32 %v4452_v54, %v6162_v29  ;;  %3443 = vmatprep.mubr.bf16.mxu1 %v5424_v47  ;;  %3531 = vmatprep.mubr.bf16.mxu0 %v5427_v48  ;;  %v5442_v54 = vld [vmem:[%s5910_s12 + $0x50] ss:$84 sps:$4 sm:$0xff]  }
 0x188   : > { %v4454_v58 = vpop.f32.mrf.mxu1  ;;  %v4512_v59 = vpop.f32.mrf.mxu0 }
 0x189   : > { %v6234_v0 = vadd.f32 %v4510_v55, %v2881_v18  ;;  %v4455_v1 = vadd.f32 %v4454_v58, %v4453_v56  ;;  %v4513_v3 = vadd.f32 %v4512_v59, %v4511_v57  ;;  %v5445_v56 = vld [vmem:[%s5910_s12 + $0xf4] ss:$84 sps:$4 sm:$0xff]  }
 0x18a   : > { %v4456_v4 = vpop.f32.mrf.mxu1  ;;  %v4514_v5 = vpop.f32.mrf.mxu0 }
 0x18b   : > { %v2886_v8 = vadd.f32 %v4455_v1, %v6170_v39 }
 0x18c   : > { %v4457_v12 = vpop.f32.mrf.mxu1  ;;  %v4515_v29 = vpop.f32.mrf.mxu0 }
 0x18d   : > { %v6239_v13 = vadd.f32 %v4513_v3, %v2886_v8  ;;  %v4458_v14 = vadd.f32 %v4457_v12, %v4456_v4  ;;  %v4516_v15 = vadd.f32 %v4515_v29, %v4514_v5  ;;  %v5449_v29 = vld [vmem:[%s5910_s12 + $0x19c] ss:$84 sps:$4 sm:$0xff]  }
 0x18e   : > { %v4459_v16 = vpop.f32.mrf.mxu1  ;;  %v4517_v20 = vpop.f32.mrf.mxu0  ;;  %3444 = vmatmul.mubr.bf16.gmra.mxu1 %v5422_v6  ;;  %3532 = vmatmul.mubr.bf16.gmra.mxu0 %v5425_v7 }
 0x18f   : > { %v2889_v21 = vadd.f32 %v4458_v14, %v6182_v51  ;;  %3451 = vmatprep.mubr.bf16.mxu1 %v4134_v9  ;;  %3539 = vmatprep.mubr.bf16.mxu0 %v4136_v11  ;;  %v5443_v9 = vld [vmem:[%s5910_s12 + $0xf0] ss:$84 sps:$4 sm:$0xff]   ;;  %v5446_v11 = vld [vmem:[%s5910_s12 + $0xf8] ss:$84 sps:$4 sm:$0xff]  }
 0x190   : > { %v4460_v22 = vpop.f32.mrf.mxu1  ;;  %v4518_v23 = vpop.f32.mrf.mxu0 }
 0x191   : > { %v6242_v39 = vadd.f32 %v4516_v15, %v2889_v21  ;;  %v4461_v24 = vadd.f32 %v4460_v22, %v4459_v16  ;;  %v4519_v25 = vadd.f32 %v4518_v23, %v4517_v20 }
 0x192   : > { %v4462_v26 = vpop.f32.mrf.mxu1  ;;  %v4520_v27 = vpop.f32.mrf.mxu0 }
 0x193   : > { %v2894_v33 = vadd.f32 %v4461_v24, %v6190_v61 }
 0x194   : > { %v4463_v35 = vpop.f32.mrf.mxu1  ;;  %v4521_v36 = vpop.f32.mrf.mxu0 }
 0x195   : > { %v6246_v37 = vadd.f32 %v4519_v25, %v2894_v33  ;;  %v4464_v51 = vadd.f32 %v4463_v35, %v4462_v26  ;;  %v4522_v38 = vadd.f32 %v4521_v36, %v4520_v27  ;;  %v5447_v33 = vld [vmem:[%s5910_s12 + $0x198] ss:$84 sps:$4 sm:$0xff]  }
 0x196   : > { %v4465_v41 = vpop.f32.mrf.mxu1  ;;  %v4523_v42 = vpop.f32.mrf.mxu0  ;;  %3452 = vmatmul.mubr.bf16.gmra.mxu1 %v4133_v31  ;;  %3540 = vmatmul.mubr.bf16.gmra.mxu0 %v4135_v32  ;;  %v5453_v36 = vld [vmem:[%s5910_s12 + $0x244] ss:$84 sps:$4 sm:$0xff]  }
 0x197   : > { %v2897_v43 = vadd.f32 %v4464_v51, %v6201_v10  ;;  %3579 = vmatprep.mubr.bf16.mxu1 %v5441_v34  ;;  %4984 = vmatprep.mubr.msk.bf16.mxu0 %vm5524_vm0, %v5523_v2  ;;  %v5450_v34 = vld [vmem:[%s5910_s12 + $0x1a0] ss:$84 sps:$4 sm:$0xff]  }
 0x198   : > { %v4466_v61 = vpop.f32.mrf.mxu1  ;;  %v4524_v44 = vpop.f32.mrf.mxu0 }
 0x199   : > { %v6251_v45 = vadd.f32 %v4522_v38, %v2897_v43  ;;  %v4467_v46 = vadd.f32 %v4466_v61, %v4465_v41  ;;  %v4525_v47 = vadd.f32 %v4524_v44, %v4523_v42 }
 0x19a   : > { %v4468_v48 = vpop.f32.mrf.mxu1  ;;  %v4526_v49 = vpop.f32.mrf.mxu0 }
 0x19b   : > { %v2902_v55 = vadd.f32 %v4467_v46, %v6208_v17 }
 0x19c   : > { %v4469_v57 = vpop.f32.mrf.mxu1  ;;  %v4527_v10 = vpop.f32.mrf.mxu0 }
 0x19d   : > { %v6257_v18 = vadd.f32 %v4525_v47, %v2902_v55  ;;  %v4470_v58 = vadd.f32 %v4469_v57, %v4468_v48  ;;  %v4528_v59 = vadd.f32 %v4527_v10, %v4526_v49  ;;  %v5451_v55 = vld [vmem:[%s5910_s12 + $0x240] ss:$84 sps:$4 sm:$0xff]  }
 0x19e   : > { %v4471_v60 = vpop.f32.mrf.mxu1  ;;  %v4529_v63 = vpop.f32.mrf.mxu0  ;;  %3580 = vmatmul.mubr.bf16.vlgmr.msra.gmra.mxu1 %v5439_v50  ;;  %4985 = vmatmul.mubr.bf16.vlgmr.msra.gmra.mxu0 %v5442_v54  ;;  %v5457_v10 = vld [vmem:[%s5910_s12 + $0x2ec] ss:$84 sps:$4 sm:$0xff]  }
 0x19f   : > { %v2905_v1 = vadd.f32 %v4470_v58, %v6217_v28  ;;  %3587 = vmatprep.mubr.bf16.mxu1 %v5445_v56  ;;  %4988 = vmatprep.mubr.msk.bf16.mxu0 %vm5524_vm0, %v5523_v2  ;;  %v5454_v56 = vld [vmem:[%s5910_s12 + $0x248] ss:$84 sps:$4 sm:$0xff]  }
 0x1a0   : > { %v4472_v17 = vpop.f32.mrf.mxu1  ;;  %v4530_v3 = vpop.f32.mrf.mxu0 }
 0x1a1   : > { %v6262_v4 = vadd.f32 %v4528_v59, %v2905_v1  ;;  %v4473_v5 = vadd.f32 %v4472_v17, %v4471_v60  ;;  %v4531_v6 = vadd.f32 %v4530_v3, %v4529_v63 }
 0x1a2   : > { %v4474_v7 = vpop.f32.mrf.mxu1  ;;  %v4532_v8 = vpop.f32.mrf.mxu0 }
 0x1a3   : > { %v2910_v12 = vadd.f32 %v4473_v5, %v6155_v19 }
 0x1a4   : > { %v4475_v14 = vpop.f32.mrf.mxu1  ;;  %v4533_v15 = vpop.f32.mrf.mxu0 }
 0x1a5   : > { %v6268_v28 = vadd.f32 %v4531_v6, %v2910_v12  ;;  %v4476_v16 = vadd.f32 %v4475_v14, %v4474_v7  ;;  %v4534_v20 = vadd.f32 %v4533_v15, %v4532_v8  ;;  %v5455_v7 = vld [vmem:[%s5910_s12 + $0x2e8] ss:$84 sps:$4 sm:$0xff]   ;;  %v5458_v8 = vld [vmem:[%s5910_s12 + $0x2f0] ss:$84 sps:$4 sm:$0xff]  }
 0x1a6   : > { %v4477_v21 = vpop.f32.mrf.mxu1  ;;  %v4535_v22 = vpop.f32.mrf.mxu0  ;;  %3588 = vmatmul.mubr.bf16.gmra.mxu1 %v5443_v9  ;;  %4989 = vmatmul.mubr.bf16.gmra.mxu0 %v5446_v11  ;;  %v5461_v11 = vld [vmem:[%s5910_s12 + $0x394] ss:$84 sps:$4 sm:$0xff]  }
 0x1a7   : > { %v2913_v23 = vadd.f32 %v4476_v16, %v6164_v30  ;;  %3595 = vmatprep.mubr.bf16.mxu1 %v5449_v29  ;;  %4992 = vmatprep.mubr.msk.bf16.mxu0 %vm5524_vm0, %v5523_v2 }
 0x1a8   : > { %v4478_v19 = vpop.f32.mrf.mxu1  ;;  %v4536_v24 = vpop.f32.mrf.mxu0 }
 0x1a9   : > { %v6273_v25 = vadd.f32 %v4534_v20, %v2913_v23  ;;  %v4479_v26 = vadd.f32 %v4478_v19, %v4477_v21  ;;  %v4537_v27 = vadd.f32 %v4536_v24, %v4535_v22  ;;  %v699_v19 = vld [vmem:[%s5910_s12 + $0x438] sm:$0xff] }
 0x1aa   : > { %v4480_v31 = vpop.f32.mrf.mxu1  ;;  %v4538_v32 = vpop.f32.mrf.mxu0 }
 0x1ab   : > { %v2918_v35 = vadd.f32 %v4479_v26, %v6172_v40 }
 0x1ac   : > { %v4481_v51 = vpop.f32.mrf.mxu1  ;;  %v4539_v38 = vpop.f32.mrf.mxu0 }
 0x1ad   : > { %v6279_v30 = vadd.f32 %v4537_v27, %v2918_v35  ;;  %v4482_v41 = vadd.f32 %v4481_v51, %v4480_v31  ;;  %v4540_v42 = vadd.f32 %v4539_v38, %v4538_v32 }
 0x1ae   : > { %v4483_v43 = vpop.f32.mrf.mxu1  ;;  %v4541_v61 = vpop.f32.mrf.mxu0  ;;  %3596 = vmatmul.mubr.bf16.gmra.mxu1 %v5447_v33  ;;  %4993 = vmatmul.mubr.bf16.gmra.mxu0 %v5450_v34  ;;  %v5459_v33 = vld [vmem:[%s5910_s12 + $0x390] ss:$84 sps:$4 sm:$0xff]   ;;  %v5462_v34 = vld [vmem:[%s5910_s12 + $0x398] ss:$84 sps:$4 sm:$0xff]  }
 0x1af   : > { %v2921_v44 = vadd.f32 %v4482_v41, %v6184_v52  ;;  %3603 = vmatprep.mubr.bf16.mxu1 %v5453_v36  ;;  %4996 = vmatprep.mubr.msk.bf16.mxu0 %vm5524_vm0, %v5523_v2  ;;  %v4138_v36 = vcombine.high %v699_v19, %v699_v19 }
 0x1b0   : > { %v4484_v40 = vpop.f32.mrf.mxu1  ;;  %v4542_v46 = vpop.f32.mrf.mxu0 }
 0x1b1   : > { %v6284_v47 = vadd.f32 %v4540_v42, %v2921_v44  ;;  %v4485_v48 = vadd.f32 %v4484_v40, %v4483_v43  ;;  %v4543_v49 = vadd.f32 %v4542_v46, %v4541_v61 }
 0x1b2   : > { %v4486_v50 = vpop.f32.mrf.mxu1  ;;  %v4544_v54 = vpop.f32.mrf.mxu0 }
 0x1b3   : > { %v2926_v57 = vadd.f32 %v4485_v48, %v6192_v62 }
 0x1b4   : > { %v4487_v58 = vpop.f32.mrf.mxu1  ;;  %v4545_v52 = vpop.f32.mrf.mxu0 }
 0x1b5   : > { %v6290_v59 = vadd.f32 %v4543_v49, %v2926_v57 }
 0x1b6   : > { %v4563_v60 = vpop.f32.mrf.mxu1  ;;  %v4621_v63 = vpop.f32.mrf.mxu0  ;;  %3604 = vmatmul.mubr.bf16.gmra.mxu1 %v5451_v55  ;;  %4997 = vmatmul.mubr.bf16.gmra.mxu0 %v5454_v56  ;;  %v4137_v55 = vcombine.low %v699_v19, %v699_v19  ;;  %v5465_v56 = vld [vmem:[%s5910_s12 + $0x440] ss:$0 sps:$4 sm:$0xff]  }
 0x1b7   : > { %3611 = vmatprep.mubr.bf16.mxu1 %v5457_v10  ;;  %5000 = vmatprep.mubr.msk.bf16.mxu0 %vm5524_vm0, %v5523_v2 }
 0x1b8   : > { %v4564_v1 = vpop.f32.mrf.mxu1  ;;  %v4622_v17 = vpop.f32.mrf.mxu0 }
 0x1b9   : > { %v4565_v3 = vadd.f32 %v4564_v1, %v4563_v60  ;;  %v4623_v62 = vadd.f32 %v4622_v17, %v4621_v63 }
 0x1ba   : > { %v4566_v5 = vpop.f32.mrf.mxu1  ;;  %v4624_v6 = vpop.f32.mrf.mxu0 }
 0x1bb   : > { %v3054_v9 = vadd.f32 %v4565_v3, %v6229_v53 }
 0x1bc   : > { %v4567_v12 = vpop.f32.mrf.mxu1  ;;  %v4625_v29 = vpop.f32.mrf.mxu0 }
 0x1bd   : > { %v6298_v14 = vadd.f32 %v4623_v62, %v3054_v9  ;;  %v4568_v15 = vadd.f32 %v4567_v12, %v4566_v5  ;;  %v4626_v16 = vadd.f32 %v4625_v29, %v4624_v6 }
 0x1be   : > { %v4569_v20 = vpop.f32.mrf.mxu1  ;;  %v4627_v21 = vpop.f32.mrf.mxu0  ;;  %3612 = vmatmul.mubr.bf16.gmra.mxu1 %v5455_v7  ;;  %5001 = vmatmul.mubr.bf16.gmra.mxu0 %v5458_v8 }
 0x1bf   : > { %v3057_v22 = vadd.f32 %v4568_v15, %v6234_v0  ;;  %3619 = vmatprep.mubr.bf16.mxu1 %v5461_v11  ;;  %5004 = vmatprep.mubr.msk.bf16.mxu0 %vm5524_vm0, %v5523_v2 }
 0x1c0   : > { %v4570_v53 = vpop.f32.mrf.mxu1  ;;  %v4628_v23 = vpop.f32.mrf.mxu0 }
 0x1c1   : > { %v6304_v24 = vadd.f32 %v4626_v16, %v3057_v22  ;;  %v4571_v26 = vadd.f32 %v4570_v53, %v4569_v20  ;;  %v4629_v27 = vadd.f32 %v4628_v23, %v4627_v21 }
 0x1c2   : > { %v4572_v31 = vpop.f32.mrf.mxu1  ;;  %v4630_v32 = vpop.f32.mrf.mxu0 }
 0x1c3   : > { %v3062_v35 = vadd.f32 %v4571_v26, %v6239_v13 }
 0x1c4   : > { %v4573_v51 = vpop.f32.mrf.mxu1  ;;  %v4631_v0 = vpop.f32.mrf.mxu0 }
 0x1c5   : > { %v6309_v38 = vadd.f32 %v4629_v27, %v3062_v35  ;;  %v4574_v41 = vadd.f32 %v4573_v51, %v4572_v31  ;;  %v4632_v42 = vadd.f32 %v4631_v0, %v4630_v32 }
 0x1c6   : > { %v4575_v43 = vpop.f32.mrf.mxu1  ;;  %v4633_v61 = vpop.f32.mrf.mxu0  ;;  %3620 = vmatmul.mubr.bf16.gmra.mxu1 %v5459_v33  ;;  %5005 = vmatmul.mubr.bf16.gmra.mxu0 %v5462_v34 }
 0x1c7   : > { %v3065_v44 = vadd.f32 %v4574_v41, %v6242_v39  ;;  %3627 = vmatprep.mubr.bf16.mxu1 %v4138_v36  ;;  %5008 = vmatprep.mubr.msk.bf16.mxu0 %vm5524_vm0, %v5523_v2 }
 0x1c8   : > { %v4576_v40 = vpop.f32.mrf.mxu1  ;;  %v4634_v13 = vpop.f32.mrf.mxu0 }
 0x1c9   : > { %v6314_v46 = vadd.f32 %v4632_v42, %v3065_v44  ;;  %v4577_v48 = vadd.f32 %v4576_v40, %v4575_v43  ;;  %v4635_v49 = vadd.f32 %v4634_v13, %v4633_v61 }
 0x1ca   : > { %v4578_v50 = vpop.f32.mrf.mxu1  ;;  %v4636_v54 = vpop.f32.mrf.mxu0 }
 0x1cb   : > { %v3070_v57 = vadd.f32 %v4577_v48, %v6246_v37 }
 0x1cc   : > { %v4579_v10 = vpop.f32.mrf.mxu1  ;;  %v4637_v58 = vpop.f32.mrf.mxu0 }
 0x1cd   : > { %v6318_v52 = vadd.f32 %v4635_v49, %v3070_v57  ;;  %v4580_v39 = vadd.f32 %v4579_v10, %v4578_v50  ;;  %v4638_v60 = vadd.f32 %v4637_v58, %v4636_v54 }
 0x1ce   : > { %v4581_v63 = vpop.f32.mrf.mxu1  ;;  %v4639_v2 = vpop.f32.mrf.mxu0  ;;  %3628 = vmatmul.mubr.bf16.gmra.mxu1 %v4137_v55  ;;  %5009 = vmatmul.mubr.bf16.gmra.mxu0 %v5465_v56 }
 0x1cf   : > { %v3073_v1 = vadd.f32 %v4580_v39, %v6251_v45 }
 0x1d0   : > { %v4582_v17 = vpop.f32.mrf.mxu1  ;;  %v4640_v3 = vpop.f32.mrf.mxu0 }
 0x1d1   : > { %v6321_v62 = vadd.f32 %v4638_v60, %v3073_v1  ;;  %v4583_v5 = vadd.f32 %v4582_v17, %v4581_v63  ;;  %v4641_v6 = vadd.f32 %v4640_v3, %v4639_v2 }
 0x1d2   : > { %v4584_v7 = vpop.f32.mrf.mxu1  ;;  %v4642_v37 = vpop.f32.mrf.mxu0 }
 0x1d3   : > { %v3078_v8 = vadd.f32 %v4583_v5, %v6257_v18 }
 0x1d4   : > { %v4585_v9 = vpop.f32.mrf.mxu1  ;;  %v4643_v11 = vpop.f32.mrf.mxu0 }
 0x1d5   : > { %v6324_v12 = vadd.f32 %v4641_v6, %v3078_v8  ;;  %v4586_v29 = vadd.f32 %v4585_v9, %v4584_v7  ;;  %v4644_v15 = vadd.f32 %v4643_v11, %v4642_v37 }
 0x1d6   : > { %v4587_v16 = vpop.f32.mrf.mxu1  ;;  %v4645_v20 = vpop.f32.mrf.mxu0 }
 0x1d7   : > { %v3081_v45 = vadd.f32 %v4586_v29, %v6262_v4 }
 0x1d8   : > { %v4588_v21 = vpop.f32.mrf.mxu1  ;;  %v4646_v22 = vpop.f32.mrf.mxu0 }
 0x1d9   : > { %v6327_v53 = vadd.f32 %v4644_v15, %v3081_v45  ;;  %v4589_v23 = vadd.f32 %v4588_v21, %v4587_v16  ;;  %v4647_v19 = vadd.f32 %v4646_v22, %v4645_v20 }
 0x1da   : > { %v4590_v26 = vpop.f32.mrf.mxu1  ;;  %v4648_v27 = vpop.f32.mrf.mxu0 }
 0x1db   : > { %v3086_v18 = vadd.f32 %v4589_v23, %v6268_v28 }
 0x1dc   : > { %v4591_v31 = vpop.f32.mrf.mxu1  ;;  %v4649_v32 = vpop.f32.mrf.mxu0 }
 0x1dd   : > { %v6330_v33 = vadd.f32 %v4647_v19, %v3086_v18  ;;  %v4592_v34 = vadd.f32 %v4591_v31, %v4590_v26  ;;  %v4650_v35 = vadd.f32 %v4649_v32, %v4648_v27 }
 0x1de   : > { %v4593_v36 = vpop.f32.mrf.mxu1  ;;  %v4651_v51 = vpop.f32.mrf.mxu0 }
 0x1df   : > { %v3089_v4 = vadd.f32 %v4592_v34, %v6273_v25 }
 0x1e0   : > { %v4594_v0 = vpop.f32.mrf.mxu1  ;;  %v4652_v41 = vpop.f32.mrf.mxu0 }
 0x1e1   : > { %v6333_v42 = vadd.f32 %v4650_v35, %v3089_v4  ;;  %v4595_v43 = vadd.f32 %v4594_v0, %v4593_v36  ;;  %v4653_v61 = vadd.f32 %v4652_v41, %v4651_v51 }
 0x1e2   : > { %v4596_v44 = vpop.f32.mrf.mxu1  ;;  %v4654_v40 = vpop.f32.mrf.mxu0 }
 0x1e3   : > { %v3094_v28 = vadd.f32 %v4595_v43, %v6279_v30 }
 0x1e4   : > { %v4597_v13 = vpop.f32.mrf.mxu1  ;;  %v4655_v48 = vpop.f32.mrf.mxu0 }
 0x1e5   : > { %v6336_v49 = vadd.f32 %v4653_v61, %v3094_v28  ;;  %v4598_v50 = vadd.f32 %v4597_v13, %v4596_v44  ;;  %v4656_v54 = vadd.f32 %v4655_v48, %v4654_v40 }
 0x1e6   : > { %v4599_v55 = vpop.f32.mrf.mxu1  ;;  %v4657_v56 = vpop.f32.mrf.mxu0 }
 0x1e7   : > { %v3097_v25 = vadd.f32 %v4598_v50, %v6284_v47 }
 0x1e8   : > { %v4600_v57 = vpop.f32.mrf.mxu1  ;;  %v4658_v10 = vpop.f32.mrf.mxu0 }
 0x1e9   : > { %v6339_v58 = vadd.f32 %v4656_v54, %v3097_v25  ;;  %v4601_v39 = vadd.f32 %v4600_v57, %v4599_v55  ;;  %v4659_v60 = vadd.f32 %v4658_v10, %v4657_v56 }
 0x1ea   : > { %v4602_v63 = vpop.f32.mrf.mxu1  ;;  %v4660_v2 = vpop.f32.mrf.mxu0 }
 0x1eb   : > { %v3102_v30 = vadd.f32 %v4601_v39, %v6290_v59 }
 0x1ec   : > { %v4603_v1 = vpop.f32.mrf.mxu1  ;;  %v4661_v17 = vpop.f32.mrf.mxu0 }
 0x1ed   : > { %v6342_v3 = vadd.f32 %v4659_v60, %v3102_v30 }
 0x1ee   : > { %v4679_v5 = vpop.f32.mrf.mxu1  ;;  %v4737_v6 = vpop.f32.mrf.mxu0 }
 0x1f0   : > { %v4680_v7 = vpop.f32.mrf.mxu1  ;;  %v4738_v37 = vpop.f32.mrf.mxu0 }
 0x1f1   : > { %v4681_v8 = vadd.f32 %v4680_v7, %v4679_v5  ;;  %v4739_v47 = vadd.f32 %v4738_v37, %v4737_v6 }
 0x1f2   : > { %v4682_v9 = vpop.f32.mrf.mxu1  ;;  %v4740_v11 = vpop.f32.mrf.mxu0 }
 0x1f3   : > { %v3230_v29 = vadd.f32 %v4681_v8, %v6298_v14 }
 0x1f4   : > { %v4683_v15 = vpop.f32.mrf.mxu1  ;;  %v4741_v16 = vpop.f32.mrf.mxu0 }
 0x1f5   : > { %v6345_v20 = vadd.f32 %v4739_v47, %v3230_v29  ;;  %v4684_v45 = vadd.f32 %v4683_v15, %v4682_v9  ;;  %v4742_v59 = vadd.f32 %v4741_v16, %v4740_v11 }
 0x1f6   : > { %v4685_v21 = vpop.f32.mrf.mxu1  ;;  %v4743_v22 = vpop.f32.mrf.mxu0 }
 0x1f7   : > { %v3233_v23 = vadd.f32 %v4684_v45, %v6304_v24 }
 0x1f8   : > { %v4686_v19 = vpop.f32.mrf.mxu1  ;;  %v4744_v26 = vpop.f32.mrf.mxu0 }
 0x1f9   : > { %v6348_v27 = vadd.f32 %v4742_v59, %v3233_v23  ;;  %v4687_v18 = vadd.f32 %v4686_v19, %v4685_v21  ;;  %v4745_v31 = vadd.f32 %v4744_v26, %v4743_v22 }
 0x1fa   : > { %v4688_v32 = vpop.f32.mrf.mxu1  ;;  %v4746_v34 = vpop.f32.mrf.mxu0 }
 0x1fb   : > { %v3238_v14 = vadd.f32 %v4687_v18, %v6309_v38 }
 0x1fc   : > { %v4689_v35 = vpop.f32.mrf.mxu1  ;;  %v4747_v36 = vpop.f32.mrf.mxu0 }
 0x1fd   : > { %v6351_v51 = vadd.f32 %v4745_v31, %v3238_v14  ;;  %v4690_v4 = vadd.f32 %v4689_v35, %v4688_v32  ;;  %v4748_v0 = vadd.f32 %v4747_v36, %v4746_v34 }
 0x1fe   : > { %v4691_v41 = vpop.f32.mrf.mxu1  ;;  %v4749_v43 = vpop.f32.mrf.mxu0 }
 0x1ff   : > { %v3241_v24 = vadd.f32 %v4690_v4, %v6314_v46 }
 0x200   : > { %v4692_v61 = vpop.f32.mrf.mxu1  ;;  %v4750_v44 = vpop.f32.mrf.mxu0 }
 0x201   : > { %v6354_v40 = vadd.f32 %v4748_v0, %v3241_v24  ;;  %v4693_v28 = vadd.f32 %v4692_v61, %v4691_v41  ;;  %v4751_v13 = vadd.f32 %v4750_v44, %v4749_v43 }
 0x202   : > { %v4694_v48 = vpop.f32.mrf.mxu1  ;;  %v4752_v50 = vpop.f32.mrf.mxu0 }
 0x203   : > { %v3246_v38 = vadd.f32 %v4693_v28, %v6318_v52 }
 0x204   : > { %v4695_v54 = vpop.f32.mrf.mxu1  ;;  %v4753_v55 = vpop.f32.mrf.mxu0 }
 0x205   : > { %v6357_v56 = vadd.f32 %v4751_v13, %v3246_v38  ;;  %v4696_v25 = vadd.f32 %v4695_v54, %v4694_v48  ;;  %v4754_v57 = vadd.f32 %v4753_v55, %v4752_v50 }
 0x206   : > { %v4697_v10 = vpop.f32.mrf.mxu1  ;;  %v4755_v39 = vpop.f32.mrf.mxu0 }
 0x207   : > { %v3249_v46 = vadd.f32 %v4696_v25, %v6321_v62 }
 0x208   : > { %v4698_v60 = vpop.f32.mrf.mxu1  ;;  %v4756_v63 = vpop.f32.mrf.mxu0 }
 0x209   : > { %v6360_v2 = vadd.f32 %v4754_v57, %v3249_v46  ;;  %v4699_v30 = vadd.f32 %v4698_v60, %v4697_v10  ;;  %v4757_v1 = vadd.f32 %v4756_v63, %v4755_v39 }
 0x20a   : > { %v4700_v17 = vpop.f32.mrf.mxu1  ;;  %v4758_v5 = vpop.f32.mrf.mxu0 }
 0x20b   : > { %v3254_v52 = vadd.f32 %v4699_v30, %v6324_v12 }
 0x20c   : > { %v4701_v6 = vpop.f32.mrf.mxu1  ;;  %v4759_v7 = vpop.f32.mrf.mxu0 }
 0x20d   : > { %v6363_v37 = vadd.f32 %v4757_v1, %v3254_v52  ;;  %v4702_v8 = vadd.f32 %v4701_v6, %v4700_v17  ;;  %v4760_v47 = vadd.f32 %v4759_v7, %v4758_v5 }
 0x20e   : > { %v4703_v9 = vpop.f32.mrf.mxu1  ;;  %v4761_v11 = vpop.f32.mrf.mxu0 }
 0x20f   : > { %v3257_v62 = vadd.f32 %v4702_v8, %v6327_v53 }
 0x210   : > { %v4704_v29 = vpop.f32.mrf.mxu1  ;;  %v4762_v15 = vpop.f32.mrf.mxu0 }
 0x211   : > { %v6366_v16 = vadd.f32 %v4760_v47, %v3257_v62  ;;  %v4705_v45 = vadd.f32 %v4704_v29, %v4703_v9  ;;  %v4763_v59 = vadd.f32 %v4762_v15, %v4761_v11 }
 0x212   : > { %v4706_v21 = vpop.f32.mrf.mxu1  ;;  %v4764_v22 = vpop.f32.mrf.mxu0 }
 0x213   : > { %v3262_v12 = vadd.f32 %v4705_v45, %v6330_v33 }
 0x214   : > { %v4707_v23 = vpop.f32.mrf.mxu1  ;;  %v4765_v19 = vpop.f32.mrf.mxu0 }
 0x215   : > { %v6369_v26 = vadd.f32 %v4763_v59, %v3262_v12  ;;  %v4708_v18 = vadd.f32 %v4707_v23, %v4706_v21  ;;  %v4766_v31 = vadd.f32 %v4765_v19, %v4764_v22 }
 0x216   : > { %v4709_v32 = vpop.f32.mrf.mxu1  ;;  %v4767_v34 = vpop.f32.mrf.mxu0 }
 0x217   : > { %v3265_v53 = vadd.f32 %v4708_v18, %v6333_v42 }
 0x218   : > { %v4710_v14 = vpop.f32.mrf.mxu1  ;;  %v4768_v35 = vpop.f32.mrf.mxu0 }
 0x219   : > { %v6372_v36 = vadd.f32 %v4766_v31, %v3265_v53  ;;  %v4711_v4 = vadd.f32 %v4710_v14, %v4709_v32  ;;  %v4769_v0 = vadd.f32 %v4768_v35, %v4767_v34 }
 0x21a   : > { %v4712_v41 = vpop.f32.mrf.mxu1  ;;  %v4770_v43 = vpop.f32.mrf.mxu0 }
 0x21b   : > { %6555 = vst [vmem:[#allocation4_spill] sm:$0xff] %v6372_v36  ;;  %v3270_v33 = vadd.f32 %v4711_v4, %v6336_v49 }
 0x21c   : > { %v4713_v24 = vpop.f32.mrf.mxu1  ;;  %v4771_v61 = vpop.f32.mrf.mxu0 }
 0x21d   : > { %v6375_v44 = vadd.f32 %v4769_v0, %v3270_v33  ;;  %v4714_v28 = vadd.f32 %v4713_v24, %v4712_v41  ;;  %v4772_v13 = vadd.f32 %v4771_v61, %v4770_v43 }
 0x21e   : > { %v4715_v48 = vpop.f32.mrf.mxu1  ;;  %v4773_v50 = vpop.f32.mrf.mxu0 }
 0x21f   : > { %6556 = vst [vmem:[#allocation5_spill] sm:$0xff] %v6375_v44  ;;  %v3273_v42 = vadd.f32 %v4714_v28, %v6339_v58 }
 0x220   : > { %v4716_v38 = vpop.f32.mrf.mxu1  ;;  %v4774_v54 = vpop.f32.mrf.mxu0 }
 0x221   : > { %v6378_v55 = vadd.f32 %v4772_v13, %v3273_v42  ;;  %v4717_v25 = vadd.f32 %v4716_v38, %v4715_v48  ;;  %v4775_v57 = vadd.f32 %v4774_v54, %v4773_v50 }
 0x222   : > { %v4718_v10 = vpop.f32.mrf.mxu1  ;;  %v4776_v39 = vpop.f32.mrf.mxu0 }
 0x223   : > { %6557 = vst [vmem:[#allocation6_spill] sm:$0xff] %v6378_v55  ;;  %v3278_v49 = vadd.f32 %v4717_v25, %v6342_v3 }
 0x224   : > { %v4719_v46 = vpop.f32.mrf.mxu1  ;;  %v4777_v60 = vpop.f32.mrf.mxu0 }
 0x225   : > { %v6381_v63 = vadd.f32 %v4775_v57, %v3278_v49 }
 0x226   : > { %v4795_v30 = vpop.f32.mrf.mxu1  ;;  %v4853_v1 = vpop.f32.mrf.mxu0 }
 0x227   : > { %6558 = vst [vmem:[#allocation7_spill] sm:$0xff] %v6381_v63 }
 0x228   : > { %v4796_v17 = vpop.f32.mrf.mxu1  ;;  %v4854_v5 = vpop.f32.mrf.mxu0 }
 0x229   : > { %v4797_v55 = vadd.f32 %v4796_v17, %v4795_v30 }
 0x22a   : > { %v4798_v52 = vpop.f32.mrf.mxu1  ;;  %v6383_v58 = vpop.f32.mrf.mxu0 }
 0x22c   : > { %v4799_v6 = vpop.f32.mrf.mxu1  ;;  %v4857_v7 = vpop.f32.mrf.mxu0 }
 0x22e   : > { %v4801_v8 = vpop.f32.mrf.mxu1  ;;  %v6385_v47 = vpop.f32.mrf.mxu0 }
 0x230   : > { %v4802_v9 = vpop.f32.mrf.mxu1  ;;  %v6387_v11 = vpop.f32.mrf.mxu0 }
 0x231   : > { %v4803_v36 = vadd.f32 %v4802_v9, %v4801_v8 }
 0x232   : > { %v4804_v3 = vpop.f32.mrf.mxu1  ;;  %v6389_v62 = vpop.f32.mrf.mxu0 }
 0x234   : > { %v4805_v29 = vpop.f32.mrf.mxu1  ;;  %v6391_v15 = vpop.f32.mrf.mxu0 }
 0x236   : > { %v6393_v45 = vpop.f32.mrf.mxu1  ;;  %v6395_v59 = vpop.f32.mrf.mxu0 }
 0x238   : > { %v6397_v21 = vpop.f32.mrf.mxu1  ;;  %v6399_v22 = vpop.f32.mrf.mxu0 }
 0x23a   : > { %v6401_v12 = vpop.f32.mrf.mxu1  ;;  %v6403_v23 = vpop.f32.mrf.mxu0 }
 0x23c   : > { %v6405_v19 = vpop.f32.mrf.mxu1  ;;  %v6407_v18 = vpop.f32.mrf.mxu0 }
 0x23e   : > { %v6409_v31 = vpop.f32.mrf.mxu1  ;;  %v6411_v32 = vpop.f32.mrf.mxu0 }
 0x240   : > { %v6413_v34 = vpop.f32.mrf.mxu1  ;;  %v6415_v53 = vpop.f32.mrf.mxu0 }
 0x242   : > { %v6417_v14 = vpop.f32.mrf.mxu1  ;;  %v6419_v35 = vpop.f32.mrf.mxu0 }
 0x244   : > { %v6421_v4 = vpop.f32.mrf.mxu1  ;;  %v6423_v0 = vpop.f32.mrf.mxu0 }
 0x246   : > { %v6425_v41 = vpop.f32.mrf.mxu1  ;;  %v6427_v43 = vpop.f32.mrf.mxu0 }
 0x248   : > { %v6429_v33 = vpop.f32.mrf.mxu1  ;;  %v6431_v24 = vpop.f32.mrf.mxu0 }
 0x24a   : > { %v6433_v61 = vpop.f32.mrf.mxu1  ;;  %v6435_v28 = vpop.f32.mrf.mxu0 }
 0x24b   : > { %6559 = vst [vmem:[#allocation8_spill] sm:$0xff] %v6435_v28  ;;  %v4855_v28 = vadd.f32 %v4854_v5, %v4853_v1 }
 0x24c   : > { %v6437_v13 = vpop.f32.mrf.mxu1  ;;  %v6439_v48 = vpop.f32.mrf.mxu0 }
 0x24d   : > { %6560 = vst [vmem:[#allocation9_spill] sm:$0xff] %v6439_v48 }
 0x24e   : > { %v6441_v50 = vpop.f32.mrf.mxu1  ;;  %v6443_v42 = vpop.f32.mrf.mxu0 }
 0x24f   : > { %6561 = vst [vmem:[#allocation10_spill] sm:$0xff] %v6441_v50  ;;  %6562 = vst [vmem:[#allocation11_spill] sm:$0xff] %v6443_v42 }
 0x250   : > { %v6445_v38 = vpop.f32.mrf.mxu1  ;;  %v6447_v54 = vpop.f32.mrf.mxu0 }
 0x251   : > { %6563 = vst [vmem:[#allocation12_spill] sm:$0xff] %v6445_v38  ;;  %6564 = vst [vmem:[#allocation13_spill] sm:$0xff] %v6447_v54  ;;  %v4800_v54 = vadd.f32 %v4799_v6, %v4798_v52  ;;  %v4806_v6 = vadd.f32 %v4805_v29, %v4804_v3  ;;  %v4809_v29 = vadd.f32 %v6397_v21, %v6393_v45 }
 0x252   : > { %v6449_v25 = vpop.f32.mrf.mxu1  ;;  %v6451_v57 = vpop.f32.mrf.mxu0  ;;  %v4867_v45 = vadd.f32 %v6399_v22, %v6395_v59  ;;  %v4870_v59 = vadd.f32 %v6407_v18, %v6403_v23 }
 0x253   : > { %6565 = vst [vmem:[#allocation14_spill] sm:$0xff] %v6449_v25  ;;  %6566 = vst [vmem:[#allocation15_spill] sm:$0xff] %v6451_v57  ;;  %v3406_v57 = vadd.f32 %v4797_v55, %v6345_v20  ;;  %v3414_v55 = vadd.f32 %v4803_v36, %v6351_v51 }
 0x254   : > { %v6453_v10 = vpop.f32.mrf.mxu1  ;;  %v6455_v39 = vpop.f32.mrf.mxu0 }
 0x255   : > { %6567 = vst [vmem:[#allocation16_spill] sm:$0xff] %v6453_v10  ;;  %6568 = vst [vmem:[#allocation17_spill] sm:$0xff] %v6455_v39  ;;  %v3409_v39 = vadd.f32 %v4800_v54, %v6348_v27  ;;  %v4861_v27 = vadd.f32 %v6387_v11, %v6385_v47  ;;  %v4864_v47 = vadd.f32 %v6391_v15, %v6389_v62 }
 0x256   : > { %v6457_v49 = vpop.f32.mrf.mxu1  ;;  %v6459_v46 = vpop.f32.mrf.mxu0 }
 0x257   : > { %6569 = vst [vmem:[#allocation18_spill] sm:$0xff] %v6457_v49  ;;  %6570 = vst [vmem:[#allocation19_spill] sm:$0xff] %v6459_v46  ;;  %v3494_v46 = vadd.f32 %v4855_v28, %v3406_v57  ;;  %v3502_v3 = vadd.f32 %v4861_v27, %v3414_v55 }
 0x258   : > { %v6461_v60 = vpop.f32.mrf.mxu1  ;;  %v6463_v63 = vpop.f32.mrf.mxu0 }
 0x259   : > { %6571 = vst [vmem:[#allocation20_spill] sm:$0xff] %v6461_v60  ;;  %6572 = vst [vmem:[#allocation21_spill] sm:$0xff] %v6463_v63  ;;  %v4858_v63 = vadd.f32 %v4857_v7, %v6383_v58  ;;  %v3417_v58 = vadd.f32 %v4806_v6, %v6354_v40  ;;  %v546_v7 = vld [vmem:[#allocation2] sm:$0xff]  ;;  %v4812_v40 = vadd.f32 %v6405_v19, %v6401_v12  ;;  %v548_v6 = vld [vmem:[#allocation2 + $0x18] sm:$0xff] }
 0x25a   : > { %v4834_v42 = vpop.f32.mrf.mxu1  ;;  %v4892_v44 = vpop.f32.mrf.mxu0 }
 0x25b   : > { %v3497_v52 = vadd.f32 %v4858_v63, %v3409_v39  ;;  %v547_v39 = vld [vmem:[#allocation2 + $0x58] sm:$0xff] }
 0x25c   : > { %v4835_v48 = vpop.f32.mrf.mxu1  ;;  %v4893_v25 = vpop.f32.mrf.mxu0 }
 0x25d   : > { %v545_v48 = vld [vmem:[#allocation2 + $0x30] sm:$0xff] }
 0x25e   : > { %v4911_v10 = vpop.f32.mrf.mxu1  ;;  %v3669_v38 = vpop.f32.mrf.mxu0 }
 0x260   : > { %v4912_v49 = vpop.f32.mrf.mxu1  ;;  %v4986_v50 = vpop.f32.mrf.mxu0 }
 0x261   : > { %v4913_v60 = vadd.f32 %v4912_v49, %v4911_v10  ;;  %v3505_v10 = vadd.f32 %v4864_v47, %v3417_v58 }
 0x262   : > { %v4914_v30 = vpop.f32.mrf.mxu1  ;;  %v3672_v17 = vpop.f32.mrf.mxu0 }
 0x263   : > { %v3582_v44 = vadd.f32 %v4913_v60, %v3494_v46  ;;  %v3422_v60 = vadd.f32 %v4809_v29, %v6357_v56 }
 0x264   : > { %v4915_v42 = vpop.f32.mrf.mxu1  ;;  %v4987_v20 = vpop.f32.mrf.mxu0 }
 0x265   : > { %v3670_v1 = vadd.f32 %v3669_v38, %v3582_v44  ;;  %v4916_v5 = vadd.f32 %v4915_v42, %v4914_v30  ;;  %v3510_v19 = vadd.f32 %v4867_v45, %v3422_v60  ;;  %v4815_v42 = vadd.f32 %v6413_v34, %v6409_v31  ;;  %v6573_v45 = vld [vmem:[#allocation4_spill] sm:$0xff] }
 0x266   : > { %v4917_v28 = vpop.f32.mrf.mxu1  ;;  %v3677_v8 = vpop.f32.mrf.mxu0  ;;  %v4873_v31 = vadd.f32 %v6415_v53, %v6411_v32  ;;  %v4876_v32 = vadd.f32 %v6423_v0, %v6419_v35 }
 0x267   : > { %v3723_v9 = vadd.f32 %v3670_v1, %v545_v48  ;;  %v3585_v50 = vadd.f32 %v4916_v5, %v3497_v52  ;;  %v3425_v52 = vadd.f32 %v4812_v40, %v6360_v2  ;;  %v4818_v2 = vadd.f32 %v6421_v4, %v6417_v14 }
 0x268   : > { %v4918_v54 = vpop.f32.mrf.mxu1  ;;  %v4990_v63 = vpop.f32.mrf.mxu0 }
 0x269   : > { %3736 = vst [vmem:[#allocation2 + $0x30] sm:$0xff] %v3723_v9  ;;  %v3673_v51 = vadd.f32 %v3672_v17, %v3585_v50  ;;  %v4919_v36 = vadd.f32 %v4918_v54, %v4917_v28  ;;  %v3513_v5 = vadd.f32 %v4870_v59, %v3425_v52  ;;  %v549_v28 = vld [vmem:[#allocation2 + $0x50] sm:$0xff]  ;;  %v3430_v50 = vadd.f32 %v4815_v42, %v6363_v37 }
 0x26a   : > { %v4920_v11 = vpop.f32.mrf.mxu1  ;;  %v3680_v38 = vpop.f32.mrf.mxu0  ;;  %v3433_v63 = vadd.f32 %v4818_v2, %v6366_v16  ;;  %v4824_v16 = vadd.f32 %v6437_v13, %v6433_v61  ;;  %v6579_v59 = vld [vmem:[#allocation16_spill] sm:$0xff] }
 0x26b   : > { %v3724_v25 = vadd.f32 %v3673_v51, %v546_v7  ;;  %v3590_v57 = vadd.f32 %v4919_v36, %v3502_v3  ;;  %v550_v3 = vld [vmem:[#allocation2 + $0x20] sm:$0xff]  ;;  %v3518_v4 = vadd.f32 %v4873_v31, %v3430_v50  ;;  %v4821_v51 = vadd.f32 %v6429_v33, %v6425_v41 }
 0x26c   : > { %v4921_v49 = vpop.f32.mrf.mxu1  ;;  %v4991_v46 = vpop.f32.mrf.mxu0  ;;  %v4879_v41 = vadd.f32 %v6431_v24, %v6427_v43  ;;  %v6576_v43 = vld [vmem:[#allocation8_spill] sm:$0xff]  ;;  %v6577_v24 = vld [vmem:[#allocation9_spill] sm:$0xff] }
 0x26d   : > { %3737 = vst [vmem:[#allocation2] sm:$0xff] %v3724_v25  ;;  %v3678_v21 = vadd.f32 %v3677_v8, %v3590_v57  ;;  %v4922_v30 = vadd.f32 %v4921_v49, %v4920_v11  ;;  %v3521_v25 = vadd.f32 %v4876_v32, %v3433_v63  ;;  %v551_v57 = vld [vmem:[#allocation2 + $0x8] sm:$0xff] }
 0x26e   : > { %v4923_v62 = vpop.f32.mrf.mxu1  ;;  %v3685_v15 = vpop.f32.mrf.mxu0  ;;  %v554_v63 = vld [vmem:[#allocation2 + $0x48] sm:$0xff] }
 0x26f   : > { %v3725_v17 = vadd.f32 %v3678_v21, %v547_v39  ;;  %v3593_v44 = vadd.f32 %v4922_v30, %v3505_v10  ;;  %v3438_v39 = vadd.f32 %v4821_v51, %v6369_v26  ;;  %v3441_v21 = vadd.f32 %v4824_v16, %v6573_v45  ;;  %v552_v30 = vld [vmem:[#allocation2 + $0x38] sm:$0xff]  ;;  %v6585_v51 = vld [vmem:[#allocation20_spill] sm:$0xff] }
 0x270   : > { %v4924_v48 = vpop.f32.mrf.mxu1  ;;  %v4994_v12 = vpop.f32.mrf.mxu0 }
 0x271   : > { %3738 = vst [vmem:[#allocation2 + $0x58] sm:$0xff] %v3725_v17  ;;  %v3681_v56 = vadd.f32 %v3680_v38, %v3593_v44  ;;  %v4925_v20 = vadd.f32 %v4924_v48, %v4923_v62  ;;  %v3526_v13 = vadd.f32 %v4879_v41, %v3438_v39  ;;  %v6575_v17 = vld [vmem:[#allocation12_spill] sm:$0xff] }
 0x272   : > { %v4926_v22 = vpop.f32.mrf.mxu1  ;;  %v3688_v55 = vpop.f32.mrf.mxu0 }
 0x273   : > { %v3726_v27 = vadd.f32 %v3681_v56, %v548_v6  ;;  %v3598_v1 = vadd.f32 %v4925_v20, %v3510_v19  ;;  %v4882_v6 = vadd.f32 %v6577_v24, %v6576_v43  ;;  %v6578_v20 = vld [vmem:[#allocation14_spill] sm:$0xff] }
 0x274   : > { %v4927_v8 = vpop.f32.mrf.mxu1  ;;  %v4995_v9 = vpop.f32.mrf.mxu0 }
 0x275   : > { %3739 = vst [vmem:[#allocation2 + $0x18] sm:$0xff] %v3726_v27  ;;  %v3686_v34 = vadd.f32 %v3685_v15, %v3598_v1  ;;  %v4928_v58 = vadd.f32 %v4927_v8, %v4926_v22  ;;  %v6574_v15 = vld [vmem:[#allocation10_spill] sm:$0xff]  ;;  %v3529_v56 = vadd.f32 %v4882_v6, %v3441_v21  ;;  %v4830_v22 = vadd.f32 %v6579_v59, %v6578_v20  ;;  %v6582_v8 = vld [vmem:[#allocation13_spill] sm:$0xff] }
 0x276   : > { %v4929_v23 = vpop.f32.mrf.mxu1  ;;  %v3693_v18 = vpop.f32.mrf.mxu0  ;;  %v4827_v44 = vadd.f32 %v6575_v17, %v6574_v15 }
 0x277   : > { %v3727_v7 = vadd.f32 %v3686_v34, %v549_v28  ;;  %v3601_v54 = vadd.f32 %v4928_v58, %v3513_v5  ;;  %v6580_v5 = vld [vmem:[#allocation5_spill] sm:$0xff]  ;;  %v6581_v28 = vld [vmem:[#allocation11_spill] sm:$0xff] }
 0x278   : > { %v4930_v29 = vpop.f32.mrf.mxu1  ;;  %v4998_v14 = vpop.f32.mrf.mxu0  ;;  %v3446_v2 = vadd.f32 %v4827_v44, %v6580_v5  ;;  %v4885_v9 = vadd.f32 %v6582_v8, %v6581_v28 }
 0x279   : > { %3740 = vst [vmem:[#allocation2 + $0x50] sm:$0xff] %v3727_v7  ;;  %v3689_v37 = vadd.f32 %v3688_v55, %v3601_v54  ;;  %v4931_v36 = vadd.f32 %v4930_v29, %v4929_v23  ;;  %v553_v55 = vld [vmem:[#allocation2 + $0x28] sm:$0xff]  ;;  %v6583_v7 = vld [vmem:[#allocation6_spill] sm:$0xff] }
 0x27a   : > { %v4932_v53 = vpop.f32.mrf.mxu1  ;;  %v3696_v47 = vpop.f32.mrf.mxu0  ;;  %v3449_v54 = vadd.f32 %v4830_v22, %v6583_v7  ;;  %v3534_v14 = vadd.f32 %v4885_v9, %v3446_v2 }
 0x27b   : > { %v3728_v11 = vadd.f32 %v3689_v37, %v550_v3  ;;  %v3606_v38 = vadd.f32 %v4931_v36, %v3518_v4  ;;  %v6584_v4 = vld [vmem:[#allocation18_spill] sm:$0xff] }
 0x27c   : > { %v4933_v10 = vpop.f32.mrf.mxu1  ;;  %v4999_v40 = vpop.f32.mrf.mxu0  ;;  %v4833_v37 = vadd.f32 %v6585_v51, %v6584_v4 }
 0x27d   : > { %3741 = vst [vmem:[#allocation2 + $0x20] sm:$0xff] %v3728_v11  ;;  %v3694_v33 = vadd.f32 %v3693_v18, %v3606_v38  ;;  %v4934_v49 = vadd.f32 %v4933_v10, %v4932_v53  ;;  %v6586_v53 = vld [vmem:[#allocation15_spill] sm:$0xff]  ;;  %v555_v40 = vld [vmem:[#allocation2 + $0x10] sm:$0xff] }
 0x27e   : > { %v4935_v35 = vpop.f32.mrf.mxu1  ;;  %v3701_v0 = vpop.f32.mrf.mxu0 }
 0x27f   : > { %v3729_v46 = vadd.f32 %v3694_v33, %v551_v57  ;;  %v3609_v60 = vadd.f32 %v4934_v49, %v3521_v25  ;;  %v6588_v33 = vld [vmem:[#allocation7_spill] sm:$0xff] }
 0x280   : > { %v4936_v62 = vpop.f32.mrf.mxu1  ;;  %v5002_v61 = vpop.f32.mrf.mxu0  ;;  %v3454_v49 = vadd.f32 %v4833_v37, %v6588_v33 }
 0x281   : > { %3742 = vst [vmem:[#allocation2 + $0x8] sm:$0xff] %v3729_v46  ;;  %v3697_v26 = vadd.f32 %v3696_v47, %v3609_v60  ;;  %v4937_v52 = vadd.f32 %v4936_v62, %v4935_v35  ;;  %v6587_v47 = vld [vmem:[#allocation17_spill] sm:$0xff]  ;;  %v6589_v35 = vld [vmem:[#allocation19_spill] sm:$0xff] }
 0x282   : > { %v4938_v48 = vpop.f32.mrf.mxu1  ;;  %v3704_v12 = vpop.f32.mrf.mxu0  ;;  %v4888_v11 = vadd.f32 %v6587_v47, %v6586_v53 }
 0x283   : > { %v3730_v19 = vadd.f32 %v3697_v26, %v552_v30  ;;  %v3614_v42 = vadd.f32 %v4937_v52, %v3526_v13  ;;  %v556_v13 = vld [vmem:[#allocation2 + $0x60] sm:$0xff] }
 0x284   : > { %v4939_v27 = vpop.f32.mrf.mxu1  ;;  %v5003_v1 = vpop.f32.mrf.mxu0  ;;  %v3537_v10 = vadd.f32 %v4888_v11, %v3449_v54 }
 0x285   : > { %3743 = vst [vmem:[#allocation2 + $0x38] sm:$0xff] %v3730_v19  ;;  %v3702_v50 = vadd.f32 %v3701_v0, %v3614_v42  ;;  %v4940_v31 = vadd.f32 %v4939_v27, %v4938_v48  ;;  %v6590_v0 = vld [vmem:[#allocation21_spill] sm:$0xff] }
 0x286   : > { %v4941_v34 = vpop.f32.mrf.mxu1  ;;  %v3709_v58 = vpop.f32.mrf.mxu0  ;;  %v4891_v46 = vadd.f32 %v6590_v0, %v6589_v35 }
 0x287   : > { %v3731_v23 = vadd.f32 %v3702_v50, %v553_v55  ;;  %v3617_v18 = vadd.f32 %v4940_v31, %v3529_v56 }
 0x288   : > { %v4942_v3 = vpop.f32.mrf.mxu1  ;;  %v5006_v29 = vpop.f32.mrf.mxu0  ;;  %v3542_v44 = vadd.f32 %v4891_v46, %v3454_v49 }
 0x289   : > { %3744 = vst [vmem:[#allocation2 + $0x28] sm:$0xff] %v3731_v23  ;;  %v3705_v36 = vadd.f32 %v3704_v12, %v3617_v18  ;;  %v4943_v32 = vadd.f32 %v4942_v3, %v4941_v34  ;;  %v557_v12 = vld [vmem:[#allocation2 + $0x40] sm:$0xff] }
 0x28a   : > { %v4944_v38 = vpop.f32.mrf.mxu1  ;;  %v3712_v25 = vpop.f32.mrf.mxu0 }
 0x28b   : > { %v3732_v16 = vadd.f32 %v3705_v36, %v554_v63  ;;  %v3622_v57 = vadd.f32 %v4943_v32, %v3534_v14 }
 0x28c   : > { %v4945_v39 = vpop.f32.mrf.mxu1  ;;  %v5007_v41 = vpop.f32.mrf.mxu0 }
 0x28d   : > { %3745 = vst [vmem:[#allocation2 + $0x48] sm:$0xff] %v3732_v16  ;;  %v3710_v60 = vadd.f32 %v3709_v58, %v3622_v57  ;;  %v4946_v45 = vadd.f32 %v4945_v39, %v4944_v38 }
 0x28e   : > { %v4947_v21 = vpop.f32.mrf.mxu1  ;;  %v3717_v30 = vpop.f32.mrf.mxu0 }
 0x28f   : > { %v3733_v62 = vadd.f32 %v3710_v60, %v555_v40  ;;  %v3625_v61 = vadd.f32 %v4946_v45, %v3537_v10 }
 0x290   : > { %v4948_v15 = vpop.f32.mrf.mxu1  ;;  %v5010_v17 = vpop.f32.mrf.mxu0 }
 0x291   : > { %3746 = vst [vmem:[#allocation2 + $0x10] sm:$0xff] %v3733_v62  ;;  %v3713_v26 = vadd.f32 %v3712_v25, %v3625_v61  ;;  %v4949_v52 = vadd.f32 %v4948_v15, %v4947_v21 }
 0x292   : > { %v4950_v43 = vpop.f32.mrf.mxu1  ;;  %v3720_v24 = vpop.f32.mrf.mxu0 }
 0x293   : > { %v3734_v6 = vadd.f32 %v3713_v26, %v556_v13  ;;  %v3630_v48 = vadd.f32 %v4949_v52, %v3542_v44 }
 0x294   : > { %v4951_v19 = vpop.f32.mrf.mxu1  ;;  %v5011_v42 = vpop.f32.mrf.mxu0 }
 0x295   : > { %3747 = vst [vmem:[#allocation2 + $0x60] sm:$0xff] %v3734_v6  ;;  %v3718_v56 = vadd.f32 %v3717_v30, %v3630_v48  ;;  %3752 = sbr.rel (%p4308_p13) target bundleno = 681 (0x2a9), region = 66 }
 0x297   : > { %v3735_v20 = vadd.f32 %v3718_v56, %v557_v12 }
 0x299   : > { %3748 = vst [vmem:[#allocation2 + $0x40] sm:$0xff] %v3735_v20 }
 0x29a   : > { %v3753_v59 = vld [vmem:[#allocation2 + $0x30] sm:$0xff]  ;;  %v3754_v22 = vld [vmem:[#allocation2] sm:$0xff]  ;;  %v3755_v5 = vld [vmem:[#allocation2 + $0x58] sm:$0xff] }
 0x29b   : > { %v4309_v55 = vld [vmem:[%s6553_s2] ss:$0 sm:$0xff]  ;;  %v3756_v2 = vld [vmem:[#allocation2 + $0x18] sm:$0xff]  ;;  %v3757_v28 = vld [vmem:[#allocation2 + $0x50] sm:$0xff] }
 0x29c   : > { %v3773_v27 = vadd.f32 %v4309_v55, %v3753_v59  ;;  %v3774_v1 = vadd.f32 %v4309_v55, %v3754_v22  ;;  %v3775_v8 = vadd.f32 %v4309_v55, %v3755_v5  ;;  %v3776_v9 = vadd.f32 %v4309_v55, %v3756_v2  ;;  %v3758_v50 = vld [vmem:[#allocation2 + $0x20] sm:$0xff]  ;;  %v3759_v34 = vld [vmem:[#allocation2 + $0x8] sm:$0xff]  ;;  %v3760_v58 = vld [vmem:[#allocation2 + $0x38] sm:$0xff] }
 0x29d   : > { %v3777_v31 = vadd.f32 %v4309_v55, %v3757_v28  ;;  %v3778_v7 = vadd.f32 %v4309_v55, %v3758_v50  ;;  %v3779_v54 = vadd.f32 %v4309_v55, %v3759_v34  ;;  %v3761_v63 = vld [vmem:[#allocation2 + $0x28] sm:$0xff]  ;;  %v3763_v29 = vld [vmem:[#allocation2 + $0x10] sm:$0xff]  ;;  %v3780_v37 = vadd.f32 %v4309_v55, %v3760_v58  ;;  %v3764_v36 = vld [vmem:[#allocation2 + $0x60] sm:$0xff] }
 0x29e   : > { %v3786_v23 = vmax.f32 %v3773_v27, 0.0  ;;  %v3787_v18 = vmax.f32 %v3774_v1, 0.0  ;;  %v3762_v3 = vld [vmem:[#allocation2 + $0x48] sm:$0xff]  ;;  %v3788_v14 = vmax.f32 %v3775_v8, 0.0  ;;  %v3789_v4 = vmax.f32 %v3776_v9, 0.0 }
 0x29f   : > { %v3790_v51 = vmax.f32 %v3777_v31, 0.0  ;;  %v3791_v47 = vmax.f32 %v3778_v7, 0.0  ;;  %v3792_v11 = vmax.f32 %v3779_v54, 0.0  ;;  %v3781_v38 = vadd.f32 %v4309_v55, %v3761_v63 }
 0x2a0   : > { %v3765_v32 = vld [vmem:[#allocation2 + $0x40] sm:$0xff]  ;;  %v4341_v53 = vpack.c.bf16 %v3787_v18, %v3786_v23  ;;  %v4346_v25 = vpack.c.bf16 %v3789_v4, %v3788_v14  ;;  %v3793_v16 = vmax.f32 %v3780_v37, 0.0  ;;  %v3782_v57 = vadd.f32 %v4309_v55, %v3762_v3 }
 0x2a1   : > { %v3783_v10 = vadd.f32 %v4309_v55, %v3763_v29  ;;  %v4351_v40 = vpack.c.bf16 %v3791_v47, %v3790_v51  ;;  %v3794_v39 = vmax.f32 %v3781_v38, 0.0  ;;  %v3784_v41 = vadd.f32 %v4309_v55, %v3764_v36 }
 0x2a2   : > { %4342 = vst [vmem:[%s5908_s30] sm:$0xff] %v4341_v53   ;;  %v3785_v33 = vadd.f32 %v4309_v55, %v3765_v32  ;;  %4368 = vst [vmem:[%s5908_s30 + $0x8] sm:$0xff] %v4346_v25   ;;  %v4356_v49 = vpack.c.bf16 %v3793_v16, %v3792_v11  ;;  %v3795_v35 = vmax.f32 %v3782_v57, 0.0 }
 0x2a3   : > { %v3796_v0 = vmax.f32 %v3783_v10, 0.0  ;;  %4369 = vst [vmem:[%s5908_s30 + $0x10] sm:$0xff] %v4351_v40   ;;  %v3797_v46 = vmax.f32 %v3784_v41, 0.0 }
 0x2a4   : > { %v3798_v60 = vmax.f32 %v3785_v33, 0.0  ;;  %4370 = vst [vmem:[%s5908_s30 + $0x18] sm:$0xff] %v4356_v49   ;;  %v4361_v45 = vpack.c.bf16 %v3795_v35, %v3794_v39 }
 0x2a5   : > { %v4366_v21 = vpack.c.bf16 %v3797_v46, %v3796_v0 }
 0x2a6   : > { %v4337_v30 = vpack.c.bf16 %v3798_v60, %v3798_v60  ;;  %4371 = vst [vmem:[%s5908_s30 + $0x20] sm:$0xff] %v4361_v45  }
 0x2a7   : > { %4372 = vst [vmem:[%s5908_s30 + $0x28] sm:$0xff] %v4366_v21  }
 0x2a8   : > { %3864 = vst [vmem:[%s5908_s30 + $0x30] sm:$0xf] %v4337_v30 }
 0x2a9 PF: > { %s13_s18 = sadd.s32 1, %s5520_s18   ;;  %s6591_s12 = smov %s5500_s13 }
 0x2aa   : > { %p10_p0 = scmp.ge.s32.totalorder %s13_s18, 6   ;;  %s6592_s13 = smov %s5596_s25 }
 0x2ab   : > { %s6593_s14 = smov %s5512_s16  ;;  %s6594_s15 = smov %s5516_s17 }
 0x2ac   : > { %s6595_s16 = smov %s6598_s19  ;;  %s6596_s17 = smov %s6602_s20 }
 0x2ad   :  { %12 = sbr.rel (!%p10_p0) target bundleno = 4 (0x4), region = 110 }

// kernel: morphics_forward.6
= control target key start
LH: loop header
LB: loop body
LE: loop exit
PB: predicated region body
PF: predicated region fallthrough
CT: control target
= control target key end

     0   :  { %vm1588_vm0 = vmmov 0   ;;  %s1982_s1 = inlined_call_operand.vmem [shape: bf16[1536,128], index: 1, kind: input, shape index: {}]   ;;  %s1983_s0 = inlined_call_operand.vmem [shape: bf16[8,1536], index: 0, kind: input, shape index: {}]   ;;  %s1984_s3 = inlined_call_operand.vmem [shape: f32[128,128], index: 3, kind: input, shape index: {}]   ;;  %s1985_s2 = inlined_call_operand.vmem [shape: f32[1,128], index: 2, kind: input, shape index: {}]   ;;  %s1986_s4 = inlined_call_operand.vmem [shape: f32[1,128], index: 4, kind: input, shape index: {}]   ;;  %s1987_s5 = inlined_call_operand.vmem [shape: f32[8,128], index: 5, kind: output, shape index: {}]  }
   0x1   :  { %v1479_v0 = vld [vmem:[%s1982_s1 + $0x78] sm:$0xff]   ;;  %v1483_v4 = vld [vmem:[%s1982_s1 + $0x70] sm:$0xff]   ;;  %v1487_v8 = vld [vmem:[%s1982_s1 + $0x68] sm:$0xff]  }
   0x2   :  { %v1480_v1 = vld [vmem:[%s1982_s1 + $0xf8] sm:$0xff]   ;;  %1293 = vmatprep.subr.bf16.mxu0 %v1479_v0  ;;  %v1484_v5 = vld [vmem:[%s1982_s1 + $0xf0] sm:$0xff]   ;;  %v1488_v9 = vld [vmem:[%s1982_s1 + $0xe8] sm:$0xff]  }
   0x3   :  { %v1481_v2 = vld [vmem:[%s1982_s1 + $0x38] sm:$0xff]   ;;  %1315 = vmatprep.subr.bf16.mxu1 %v1480_v1  ;;  %v1485_v6 = vld [vmem:[%s1982_s1 + $0x30] sm:$0xff]   ;;  %v1489_v10 = vld [vmem:[%s1982_s1 + $0x28] sm:$0xff]  }
   0x4   :  { %v1482_v3 = vld [vmem:[%s1982_s1 + $0xb8] sm:$0xff]   ;;  %1294 = vmatpush3.bf16.msra.mxu0 %v1481_v2  ;;  %v1486_v7 = vld [vmem:[%s1982_s1 + $0xb0] sm:$0xff]   ;;  %v1490_v11 = vld [vmem:[%s1982_s1 + $0xa8] sm:$0xff]  }
   0x5   :  { %1316 = vmatpush3.bf16.msra.mxu1 %v1482_v3  ;;  %1295 = vmatprep.subr.bf16.mxu0 %v1483_v4  ;;  %v1491_v12 = vld [vmem:[%s1982_s1 + $0x60] sm:$0xff]   ;;  %v1495_v16 = vld [vmem:[%s1982_s1 + $0x58] sm:$0xff]   ;;  %v1499_v20 = vld [vmem:[%s1982_s1 + $0x50] sm:$0xff]  }
   0x6   :  { %1317 = vmatprep.subr.bf16.mxu1 %v1484_v5  ;;  %v1492_v13 = vld [vmem:[%s1982_s1 + $0xe0] sm:$0xff]   ;;  %v1496_v17 = vld [vmem:[%s1982_s1 + $0xd8] sm:$0xff]   ;;  %v1500_v21 = vld [vmem:[%s1982_s1 + $0xd0] sm:$0xff]  }
   0x7   :  { %v1493_v14 = vld [vmem:[%s1982_s1 + $0x20] sm:$0xff]   ;;  %v1497_v18 = vld [vmem:[%s1982_s1 + $0x18] sm:$0xff]   ;;  %v1501_v22 = vld [vmem:[%s1982_s1 + $0x10] sm:$0xff]  }
   0x8   :  { %1296 = vmatpush3.bf16.msra.mxu0 %v1485_v6  ;;  %v1494_v15 = vld [vmem:[%s1982_s1 + $0xa0] sm:$0xff]   ;;  %v1498_v19 = vld [vmem:[%s1982_s1 + $0x98] sm:$0xff]   ;;  %v1502_v23 = vld [vmem:[%s1982_s1 + $0x90] sm:$0xff]  }
   0x9   :  { %1318 = vmatpush3.bf16.msra.mxu1 %v1486_v7  ;;  %1297 = vmatprep.subr.bf16.mxu0 %v1487_v8  ;;  %v1503_v24 = vld [vmem:[%s1982_s1 + $0x48] sm:$0xff]   ;;  %v1507_v28 = vld [vmem:[%s1982_s1 + $0x40] sm:$0xff]   ;;  %v1515_v38 = vld [vmem:[%s1982_s1 + $0x178] sm:$0xff]  }
   0xa   :  { %1319 = vmatprep.subr.bf16.mxu1 %v1488_v9  ;;  %v1504_v25 = vld [vmem:[%s1982_s1 + $0xc8] sm:$0xff]   ;;  %v1508_v29 = vld [vmem:[%s1982_s1 + $0xc0] sm:$0xff]   ;;  %v1516_v39 = vld [vmem:[%s1982_s1 + $0x1f8] sm:$0xff]  }
   0xb   :  { %v1505_v26 = vld [vmem:[%s1982_s1 + $0x8] sm:$0xff]   ;;  %v1509_v30 = vld [vmem:[%s1982_s1] sm:$0xff]   ;;  %v1517_v40 = vld [vmem:[%s1982_s1 + $0x138] sm:$0xff]  }
   0xc   :  { %1298 = vmatpush3.bf16.msra.mxu0 %v1489_v10  ;;  %v1506_v27 = vld [vmem:[%s1982_s1 + $0x88] sm:$0xff]   ;;  %v1510_v31 = vld [vmem:[%s1982_s1 + $0x80] sm:$0xff]   ;;  %v1518_v41 = vld [vmem:[%s1982_s1 + $0x1b8] sm:$0xff]  }
   0xd   :  { %1320 = vmatpush3.bf16.msra.mxu1 %v1490_v11  ;;  %1299 = vmatprep.subr.bf16.mxu0 %v1491_v12  ;;  %v21_v32 = vld [vmem:[%s1983_s0] sm:$0xff]  ;;  %v22_v33 = vld [vmem:[%s1983_s0 + $0x8] sm:$0xff]  ;;  %v1519_v42 = vld [vmem:[%s1982_s1 + $0x170] sm:$0xff]  }
   0xe   :  { %1321 = vmatprep.subr.bf16.mxu1 %v1492_v13  ;;  %v1184_v34 = vcombine.low %v21_v32, %v21_v32  ;;  %v1185_v35 = vcombine.high %v21_v32, %v21_v32  ;;  %v1186_v36 = vcombine.low %v22_v33, %v22_v33  ;;  %v1187_v37 = vcombine.high %v22_v33, %v22_v33  ;;  %v1520_v43 = vld [vmem:[%s1982_s1 + $0x1f0] sm:$0xff]   ;;  %v1523_v46 = vld [vmem:[%s1982_s1 + $0x168] sm:$0xff]   ;;  %v1527_v50 = vld [vmem:[%s1982_s1 + $0x160] sm:$0xff]  }
   0xf   :  { %v1521_v44 = vld [vmem:[%s1982_s1 + $0x130] sm:$0xff]   ;;  %v1524_v47 = vld [vmem:[%s1982_s1 + $0x1e8] sm:$0xff]   ;;  %v1528_v51 = vld [vmem:[%s1982_s1 + $0x1e0] sm:$0xff]  }
  0x10   :  { %1300 = vmatpush3.bf16.msra.mxu0 %v1493_v14  ;;  %876 = vmatprep.mubr.bf16.mxu0 %v1185_v35  ;;  %v1522_v45 = vld [vmem:[%s1982_s1 + $0x1b0] sm:$0xff]   ;;  %v1525_v48 = vld [vmem:[%s1982_s1 + $0x128] sm:$0xff]   ;;  %v1529_v52 = vld [vmem:[%s1982_s1 + $0x120] sm:$0xff]  }
  0x11   :  { %1322 = vmatpush3.bf16.msra.mxu1 %v1494_v15  ;;  %1301 = vmatprep.subr.bf16.mxu0 %v1495_v16  ;;  %v1526_v49 = vld [vmem:[%s1982_s1 + $0x1a8] sm:$0xff]   ;;  %v1530_v53 = vld [vmem:[%s1982_s1 + $0x1a0] sm:$0xff]   ;;  %v1531_v54 = vld [vmem:[%s1982_s1 + $0x158] sm:$0xff]  }
  0x12   :  { %1323 = vmatprep.subr.bf16.mxu1 %v1496_v17  ;;  %916 = vmatprep.mubr.bf16.mxu1 %v1187_v37  ;;  %v1532_v55 = vld [vmem:[%s1982_s1 + $0x1d8] sm:$0xff]   ;;  %v1535_v58 = vld [vmem:[%s1982_s1 + $0x150] sm:$0xff]   ;;  %v1539_v62 = vld [vmem:[%s1982_s1 + $0x148] sm:$0xff]  }
  0x13   :  { %v1533_v56 = vld [vmem:[%s1982_s1 + $0x118] sm:$0xff]   ;;  %v1536_v59 = vld [vmem:[%s1982_s1 + $0x1d0] sm:$0xff]   ;;  %v1540_v63 = vld [vmem:[%s1982_s1 + $0x1c8] sm:$0xff]  }
  0x14   :  { %1302 = vmatpush3.bf16.msra.mxu0 %v1497_v18  ;;  %v1534_v57 = vld [vmem:[%s1982_s1 + $0x198] sm:$0xff]   ;;  %v1537_v60 = vld [vmem:[%s1982_s1 + $0x110] sm:$0xff]   ;;  %v1541_v0 = vld [vmem:[%s1982_s1 + $0x108] sm:$0xff]  }
  0x15   :  { %1324 = vmatpush3.bf16.msra.mxu1 %v1498_v19  ;;  %1303 = vmatprep.subr.bf16.mxu0 %v1499_v20  ;;  %v1538_v61 = vld [vmem:[%s1982_s1 + $0x190] sm:$0xff]   ;;  %v1542_v1 = vld [vmem:[%s1982_s1 + $0x188] sm:$0xff]   ;;  %v1543_v2 = vld [vmem:[%s1982_s1 + $0x140] sm:$0xff]  }
  0x16   :  { %1325 = vmatprep.subr.bf16.mxu1 %v1500_v21  ;;  %v1544_v3 = vld [vmem:[%s1982_s1 + $0x1c0] sm:$0xff]   ;;  %v23_v6 = vld [vmem:[%s1983_s0 + $0x10] sm:$0xff]  ;;  %v24_v9 = vld [vmem:[%s1983_s0 + $0x18] sm:$0xff] }
  0x17   :  { %v1545_v4 = vld [vmem:[%s1982_s1 + $0x100] sm:$0xff]   ;;  %v1188_v7 = vcombine.low %v23_v6, %v23_v6  ;;  %v1189_v8 = vcombine.high %v23_v6, %v23_v6  ;;  %v1190_v10 = vcombine.low %v24_v9, %v24_v9  ;;  %v1191_v11 = vcombine.high %v24_v9, %v24_v9  ;;  %v1551_v12 = vld [vmem:[%s1982_s1 + $0x278] sm:$0xff]   ;;  %v1555_v16 = vld [vmem:[%s1982_s1 + $0x270] sm:$0xff]  }
  0x18   :  { %1304 = vmatpush3.bf16.msra.mxu0 %v1501_v22  ;;  %v1546_v5 = vld [vmem:[%s1982_s1 + $0x180] sm:$0xff]   ;;  %v1552_v13 = vld [vmem:[%s1982_s1 + $0x2f8] sm:$0xff]   ;;  %v1556_v17 = vld [vmem:[%s1982_s1 + $0x2f0] sm:$0xff]  }
  0x19   :  { %1326 = vmatpush3.bf16.msra.mxu1 %v1502_v23  ;;  %1305 = vmatprep.subr.bf16.mxu0 %v1503_v24  ;;  %v1553_v14 = vld [vmem:[%s1982_s1 + $0x238] sm:$0xff]   ;;  %v1557_v18 = vld [vmem:[%s1982_s1 + $0x230] sm:$0xff]   ;;  %v1559_v20 = vld [vmem:[%s1982_s1 + $0x268] sm:$0xff]  }
  0x1a   :  { %1327 = vmatprep.subr.bf16.mxu1 %v1504_v25  ;;  %v1554_v15 = vld [vmem:[%s1982_s1 + $0x2b8] sm:$0xff]   ;;  %v1558_v19 = vld [vmem:[%s1982_s1 + $0x2b0] sm:$0xff]   ;;  %v1560_v21 = vld [vmem:[%s1982_s1 + $0x2e8] sm:$0xff]  }
  0x1b   :  { %v1561_v22 = vld [vmem:[%s1982_s1 + $0x228] sm:$0xff]   ;;  %v1563_v24 = vld [vmem:[%s1982_s1 + $0x260] sm:$0xff]   ;;  %v1571_v32 = vld [vmem:[%s1982_s1 + $0x250] sm:$0xff]  }
  0x1c   :  { %1306 = vmatpush3.bf16.msra.mxu0 %v1505_v26  ;;  %v1562_v23 = vld [vmem:[%s1982_s1 + $0x2a8] sm:$0xff]   ;;  %v1564_v25 = vld [vmem:[%s1982_s1 + $0x2e0] sm:$0xff]   ;;  %v1572_v33 = vld [vmem:[%s1982_s1 + $0x2d0] sm:$0xff]  }
  0x1d   :  { %1328 = vmatpush3.bf16.msra.mxu1 %v1506_v27  ;;  %1307 = vmatprep.subr.bf16.mxu0 %v1507_v28  ;;  %v1565_v26 = vld [vmem:[%s1982_s1 + $0x220] sm:$0xff]   ;;  %v1567_v28 = vld [vmem:[%s1982_s1 + $0x258] sm:$0xff]   ;;  %v1574_v35 = vld [vmem:[%s1982_s1 + $0x290] sm:$0xff]  }
  0x1e   :  { %1329 = vmatprep.subr.bf16.mxu1 %v1508_v29  ;;  %v1566_v27 = vld [vmem:[%s1982_s1 + $0x2a0] sm:$0xff]   ;;  %v1568_v29 = vld [vmem:[%s1982_s1 + $0x2d8] sm:$0xff]   ;;  %v1576_v37 = vld [vmem:[%s1982_s1 + $0x2c8] sm:$0xff]  }
  0x20   :  { %1308 = vmatpush3.bf16.msra.mxu0 %v1509_v30  ;;  %v1569_v30 = vld [vmem:[%s1982_s1 + $0x218] sm:$0xff]  }
  0x21   :  { %1330 = vmatpush3.bf16.msra.mxu1 %v1510_v31  ;;  %1337 = vmatprep.subr.bf16.mxu0 %v1515_v38  ;;  %v1570_v31 = vld [vmem:[%s1982_s1 + $0x298] sm:$0xff]   ;;  %v1577_v38 = vld [vmem:[%s1982_s1 + $0x208] sm:$0xff]  }
  0x22   :  { %1359 = vmatprep.subr.bf16.mxu1 %v1516_v39  ;;  %v1578_v39 = vld [vmem:[%s1982_s1 + $0x288] sm:$0xff]  }
  0x23   :  { %877 = vmatmul.mubr.bf16.vlgmr.msra.gmra.mxu0 %v1184_v34  ;;  %v1573_v34 = vld [vmem:[%s1982_s1 + $0x210] sm:$0xff]  }
  0x24   :  { %917 = vmatmul.mubr.bf16.vlgmr.msra.gmra.mxu1 %v1186_v36  ;;  %1338 = vmatpush3.bf16.msra.mxu0 %v1517_v40  ;;  %v1575_v36 = vld [vmem:[%s1982_s1 + $0x248] sm:$0xff]   ;;  %v1579_v40 = vld [vmem:[%s1982_s1 + $0x240] sm:$0xff]  }
  0x25   :  { %1360 = vmatpush3.bf16.msra.mxu1 %v1518_v41  ;;  %1339 = vmatprep.subr.bf16.mxu0 %v1519_v42  ;;  %v1580_v41 = vld [vmem:[%s1982_s1 + $0x2c0] sm:$0xff]  }
  0x26   :  { %1361 = vmatprep.subr.bf16.mxu1 %v1520_v43  ;;  %956 = vmatprep.mubr.bf16.mxu0 %v1189_v8  ;;  %v1581_v42 = vld [vmem:[%s1982_s1 + $0x200] sm:$0xff]  }
  0x27   :  { %996 = vmatprep.mubr.bf16.mxu1 %v1191_v11  ;;  %v1582_v43 = vld [vmem:[%s1982_s1 + $0x280] sm:$0xff]  }
  0x28   :  { %1340 = vmatpush3.bf16.msra.mxu0 %v1521_v44  ;;  %v25_v44 = vld [vmem:[%s1983_s0 + $0x20] sm:$0xff] }
  0x29   :  { %1362 = vmatpush3.bf16.msra.mxu1 %v1522_v45  ;;  %1341 = vmatprep.subr.bf16.mxu0 %v1523_v46  ;;  %v26_v45 = vld [vmem:[%s1983_s0 + $0x28] sm:$0xff]  ;;  %v1192_v46 = vcombine.low %v25_v44, %v25_v44 }
  0x2a   :  { %1363 = vmatprep.subr.bf16.mxu1 %v1524_v47  ;;  %v1193_v47 = vcombine.high %v25_v44, %v25_v44 }
  0x2c   :  { %1342 = vmatpush3.bf16.msra.mxu0 %v1525_v48  ;;  %v1194_v48 = vcombine.low %v26_v45, %v26_v45 }
  0x2d   :  { %1364 = vmatpush3.bf16.msra.mxu1 %v1526_v49  ;;  %1343 = vmatprep.subr.bf16.mxu0 %v1527_v50  ;;  %v1195_v49 = vcombine.high %v26_v45, %v26_v45  ;;  %v1587_v50 = vmov 0.0  }
  0x2e   :  { %1365 = vmatprep.subr.bf16.mxu1 %v1528_v51  ;;  %v1100_v51 = vld [vmem:[%s1984_s3 + $0x78] sm:$0xff] }
  0x30   :  { %1344 = vmatpush3.bf16.msra.mxu0 %v1529_v52  ;;  %v1099_v52 = vld [vmem:[%s1984_s3 + $0x70] sm:$0xff] }
  0x31   :  { %1366 = vmatpush3.bf16.msra.mxu1 %v1530_v53  ;;  %1345 = vmatprep.subr.bf16.mxu0 %v1531_v54  ;;  %v1098_v53 = vld [vmem:[%s1984_s3 + $0x68] sm:$0xff]  ;;  %v1097_v54 = vld [vmem:[%s1984_s3 + $0x60] sm:$0xff] }
  0x32   :  { %1367 = vmatprep.subr.bf16.mxu1 %v1532_v55  ;;  %v1096_v55 = vld [vmem:[%s1984_s3 + $0x58] sm:$0xff] }
  0x34   :  { %1346 = vmatpush3.bf16.msra.mxu0 %v1533_v56  ;;  %v1095_v56 = vld [vmem:[%s1984_s3 + $0x50] sm:$0xff] }
  0x35   :  { %1368 = vmatpush3.bf16.msra.mxu1 %v1534_v57  ;;  %1347 = vmatprep.subr.bf16.mxu0 %v1535_v58  ;;  %v1094_v57 = vld [vmem:[%s1984_s3 + $0x48] sm:$0xff]  ;;  %v1093_v58 = vld [vmem:[%s1984_s3 + $0x40] sm:$0xff] }
  0x36   :  { %1369 = vmatprep.subr.bf16.mxu1 %v1536_v59  ;;  %v1092_v59 = vld [vmem:[%s1984_s3 + $0x38] sm:$0xff] }
  0x38   :  { %1348 = vmatpush3.bf16.msra.mxu0 %v1537_v60  ;;  %v1091_v60 = vld [vmem:[%s1984_s3 + $0x30] sm:$0xff] }
  0x39   :  { %1370 = vmatpush3.bf16.msra.mxu1 %v1538_v61  ;;  %1349 = vmatprep.subr.bf16.mxu0 %v1539_v62  ;;  %v1090_v61 = vld [vmem:[%s1984_s3 + $0x28] sm:$0xff]  ;;  %v1089_v62 = vld [vmem:[%s1984_s3 + $0x20] sm:$0xff] }
  0x3a   :  { %1371 = vmatprep.subr.bf16.mxu1 %v1540_v63  ;;  %v1088_v63 = vld [vmem:[%s1984_s3 + $0x18] sm:$0xff] }
  0x3c   :  { %1350 = vmatpush3.bf16.msra.mxu0 %v1541_v0  ;;  %v1087_v0 = vld [vmem:[%s1984_s3 + $0x10] sm:$0xff] }
  0x3d   :  { %1372 = vmatpush3.bf16.msra.mxu1 %v1542_v1  ;;  %1351 = vmatprep.subr.bf16.mxu0 %v1543_v2  ;;  %v1086_v1 = vld [vmem:[%s1984_s3 + $0x8] sm:$0xff]  ;;  %v1085_v2 = vld [vmem:[%s1984_s3] sm:$0xff] }
  0x3e   :  { %1373 = vmatprep.subr.bf16.mxu1 %v1544_v3 }
  0x40   :  { %1352 = vmatpush3.bf16.msra.mxu0 %v1545_v4 }
  0x41   :  { %1374 = vmatpush3.bf16.msra.mxu1 %v1546_v5  ;;  %1381 = vmatprep.subr.bf16.mxu0 %v1551_v12 }
  0x42   :  { %1403 = vmatprep.subr.bf16.mxu1 %v1552_v13 }
  0x43   :  { %957 = vmatmul.mubr.bf16.vlgmr.msra.gmra.mxu0 %v1188_v7 }
  0x44   :  { %997 = vmatmul.mubr.bf16.vlgmr.msra.gmra.mxu1 %v1190_v10  ;;  %1382 = vmatpush3.bf16.msra.mxu0 %v1553_v14 }
  0x45   :  { %1404 = vmatpush3.bf16.msra.mxu1 %v1554_v15  ;;  %1383 = vmatprep.subr.bf16.mxu0 %v1555_v16 }
  0x46   :  { %1405 = vmatprep.subr.bf16.mxu1 %v1556_v17  ;;  %1036 = vmatprep.mubr.bf16.mxu0 %v1193_v47 }
  0x47   :  { %1076 = vmatprep.mubr.bf16.mxu1 %v1195_v49 }
  0x48   :  { %1384 = vmatpush3.bf16.msra.mxu0 %v1557_v18 }
  0x49   :  { %1406 = vmatpush3.bf16.msra.mxu1 %v1558_v19  ;;  %1385 = vmatprep.subr.bf16.mxu0 %v1559_v20  ;;  %v1183_v20 = vld [vmem:[%s1985_s2] ss:$0 sm:$0xff] }
  0x4a   :  { %1407 = vmatprep.subr.bf16.mxu1 %v1560_v21 }
  0x4c   :  { %1386 = vmatpush3.bf16.msra.mxu0 %v1561_v22 }
  0x4d   :  { %1408 = vmatpush3.bf16.msra.mxu1 %v1562_v23  ;;  %1387 = vmatprep.subr.bf16.mxu0 %v1563_v24 }
  0x4e   :  { %1409 = vmatprep.subr.bf16.mxu1 %v1564_v25 }
  0x50   :  { %1388 = vmatpush3.bf16.msra.mxu0 %v1565_v26 }
  0x51   :  { %1410 = vmatpush3.bf16.msra.mxu1 %v1566_v27  ;;  %1389 = vmatprep.subr.bf16.mxu0 %v1567_v28 }
  0x52   :  { %1411 = vmatprep.subr.bf16.mxu1 %v1568_v29 }
  0x54   :  { %1390 = vmatpush3.bf16.msra.mxu0 %v1569_v30 }
  0x55   :  { %1412 = vmatpush3.bf16.msra.mxu1 %v1570_v31  ;;  %1391 = vmatprep.subr.bf16.mxu0 %v1571_v32 }
  0x56   :  { %1413 = vmatprep.subr.bf16.mxu1 %v1572_v33 }
  0x58   :  { %1392 = vmatpush3.bf16.msra.mxu0 %v1573_v34 }
  0x59   :  { %1414 = vmatpush3.bf16.msra.mxu1 %v1574_v35  ;;  %1393 = vmatprep.subr.bf16.mxu0 %v1575_v36 }
  0x5a   :  { %1415 = vmatprep.subr.bf16.mxu1 %v1576_v37 }
  0x5c   :  { %1394 = vmatpush3.bf16.msra.mxu0 %v1577_v38 }
  0x5d   :  { %1416 = vmatpush3.bf16.msra.mxu1 %v1578_v39  ;;  %1395 = vmatprep.subr.bf16.mxu0 %v1579_v40 }
  0x5e   :  { %1417 = vmatprep.subr.bf16.mxu1 %v1580_v41  ;;  %v1292_v41 = vld [vmem:[%s1986_s4] ss:$0 sm:$0xff] }
  0x60   :  { %1396 = vmatpush3.bf16.msra.mxu0 %v1581_v42 }
  0x61   :  { %1418 = vmatpush3.bf16.msra.mxu1 %v1582_v43  ;;  %1442 = vmatprep.subr.mxu0 %v1587_v50 }
  0x63   :  { %1037 = vmatmul.mubr.bf16.vlgmr.msra.gmra.mxu0 %v1192_v46 }
  0x64   :  { %1077 = vmatmul.mubr.bf16.vlgmr.msra.gmra.mxu1 %v1194_v48  ;;  %1443 = vmatpush3.msra.mxu0 %v1100_v51 }
  0x65   :  { %1444 = vmatprep.subr.mxu0 %v1587_v50  ;;  %1474 = vmatprep.mubr.msk.f32.mxu0 %vm1588_vm0, %v1587_v50 }
  0x66   :  { %1445 = vmatpush3.msra.mxu0 %v1099_v52 }
  0x67   :  { %1446 = vmatprep.subr.mxu0 %v1587_v50 }
  0x68   :  { %1447 = vmatpush3.msra.mxu0 %v1098_v53 }
  0x69   :  { %1448 = vmatprep.subr.mxu0 %v1587_v50 }
  0x6a   :  { %1449 = vmatpush3.msra.mxu0 %v1097_v54 }
  0x6b   :  { %1450 = vmatprep.subr.mxu0 %v1587_v50 }
  0x6c   :  { %1451 = vmatpush3.msra.mxu0 %v1096_v55 }
  0x6d   :  { %1452 = vmatprep.subr.mxu0 %v1587_v50 }
  0x6e   :  { %1453 = vmatpush3.msra.mxu0 %v1095_v56 }
  0x6f   :  { %1454 = vmatprep.subr.mxu0 %v1587_v50 }
  0x70   :  { %1455 = vmatpush3.msra.mxu0 %v1094_v57 }
  0x71   :  { %1456 = vmatprep.subr.mxu0 %v1587_v50 }
  0x72   :  { %1457 = vmatpush3.msra.mxu0 %v1093_v58 }
  0x73   :  { %1458 = vmatprep.subr.mxu0 %v1587_v50 }
  0x74   :  { %1459 = vmatpush3.msra.mxu0 %v1092_v59 }
  0x75   :  { %1460 = vmatprep.subr.mxu0 %v1587_v50 }
  0x76   :  { %1461 = vmatpush3.msra.mxu0 %v1091_v60 }
  0x77   :  { %1462 = vmatprep.subr.mxu0 %v1587_v50 }
  0x78   :  { %1463 = vmatpush3.msra.mxu0 %v1090_v61 }
  0x79   :  { %1464 = vmatprep.subr.mxu0 %v1587_v50 }
  0x7a   :  { %1465 = vmatpush3.msra.mxu0 %v1089_v62 }
  0x7b   :  { %1466 = vmatprep.subr.mxu0 %v1587_v50 }
  0x7c   :  { %1467 = vmatpush3.msra.mxu0 %v1088_v63 }
  0x7d   :  { %1468 = vmatprep.subr.mxu0 %v1587_v50 }
  0x7e   :  { %1469 = vmatpush3.msra.mxu0 %v1087_v0 }
  0x7f   :  { %1470 = vmatprep.subr.mxu0 %v1587_v50 }
  0x80   :  { %1471 = vmatpush3.msra.mxu0 %v1086_v1 }
  0x81   :  { %1472 = vmatprep.subr.mxu0 %v1587_v50 }
  0x82   :  { %1473 = vmatpush3.msra.mxu0 %v1085_v2 }
  0xe3   :  { %v1309_v3 = vpop.f32.mrf.mxu0 }
  0xe4   :  { %v1331_v4 = vpop.f32.mrf.mxu1 }
  0xe5   :  { %v1310_v5 = vpop.f32.mrf.mxu0 }
  0xe6   :  { %v1332_v6 = vpop.f32.mrf.mxu1  ;;  %v1311_v19 = vadd.f32 %v1310_v5, %v1309_v3 }
  0xe7   :  { %v1312_v7 = vpop.f32.mrf.mxu0  ;;  %v1333_v22 = vadd.f32 %v1332_v6, %v1331_v4 }
  0xe8   :  { %v1334_v8 = vpop.f32.mrf.mxu1  ;;  %v879_v21 = vadd.f32 %v1311_v19, %v1183_v20 }
  0xe9   :  { %v1313_v9 = vpop.f32.mrf.mxu0 }
  0xea   :  { %v1335_v10 = vpop.f32.mrf.mxu1  ;;  %v919_v24 = vadd.f32 %v1333_v22, %v879_v21 }
 0x103   :  { %v1353_v11 = vpop.f32.mrf.mxu0 }
 0x104   :  { %v1375_v12 = vpop.f32.mrf.mxu1 }
 0x105   :  { %v1354_v13 = vpop.f32.mrf.mxu0 }
 0x106   :  { %v1376_v14 = vpop.f32.mrf.mxu1  ;;  %v1355_v23 = vadd.f32 %v1354_v13, %v1353_v11 }
 0x107   :  { %v1356_v15 = vpop.f32.mrf.mxu0  ;;  %v1377_v26 = vadd.f32 %v1376_v14, %v1375_v12 }
 0x108   :  { %v1378_v16 = vpop.f32.mrf.mxu1  ;;  %v959_v25 = vadd.f32 %v1355_v23, %v919_v24 }
 0x109   :  { %v1357_v17 = vpop.f32.mrf.mxu0 }
 0x10a   :  { %v1379_v18 = vpop.f32.mrf.mxu1  ;;  %v999_v30 = vadd.f32 %v1377_v26, %v959_v25 }
 0x123   :  { %v1397_v27 = vpop.f32.mrf.mxu0 }
 0x124   :  { %v1419_v28 = vpop.f32.mrf.mxu1 }
 0x125   :  { %v1398_v29 = vpop.f32.mrf.mxu0 }
 0x126   :  { %v1399_v31 = vadd.f32 %v1398_v29, %v1397_v27  ;;  %v1420_v32 = vpop.f32.mrf.mxu1 }
 0x127   :  { %v1400_v33 = vpop.f32.mrf.mxu0  ;;  %v1421_v35 = vadd.f32 %v1420_v32, %v1419_v28 }
 0x128   :  { %v1039_v34 = vadd.f32 %v1399_v31, %v999_v30  ;;  %v1422_v36 = vpop.f32.mrf.mxu1 }
 0x129   :  { %v1401_v37 = vpop.f32.mrf.mxu0 }
 0x12a   :  { %v1079_v38 = vadd.f32 %v1421_v35, %v1039_v34  ;;  %v1423_v39 = vpop.f32.mrf.mxu1 }
 0x12c   :  { %v1084_v40 = vmax.f32 %v1079_v38, 0.0 }
 0x12e   :  { %1475 = vmatmul.mubr.f32.vlgmr.msra.gmra.mxu0 %v1084_v40 }
 0x1ee   :  { %v1174_v42 = vpop.f32.mrf.mxu0 }
 0x1ef   :  { %v1175_v43 = vadd.f32 %v1292_v41, %v1174_v42 }
 0x1f0   :  { %v1476_v44 = vpop.f32.mrf.mxu0 }
 0x1f1   :  { %1178 = vst [vmem:[%s1987_s5] sm:$0xff] %v1175_v43 }

// kernel: morphics_forward.7
= control target key start
LH: loop header
LB: loop body
LE: loop exit
PB: predicated region body
PF: predicated region fallthrough
CT: control target
= control target key end

     0   :  { %s3155_s12 = smov 0   ;;  %s3157_s13 = smov 0   ;;  %s3713_s0 = inlined_call_operand.vmem [shape: bf16[4256,128], index: 0, kind: input, shape index: {}]   ;;  %s3714_s1 = inlined_call_operand.vmem [shape: bf16[128,128], index: 1, kind: input, shape index: {}]   ;;  %s3715_s2 = inlined_call_operand.vmem [shape: f32[1,128], index: 2, kind: input, shape index: {}]   ;;  %s3716_s3 = inlined_call_operand.vmem [shape: f32[4256,128], index: 3, kind: output, shape index: {}]  }
   0x1   :  { %s3159_s14 = smov 0  }
   0x2 LB: > { %s25_s15 = sadd.s32 1, %s3127_s13  ;;  %p2551_p0 = scmp.ge.s32.totalorder %s3131_s14, 1  ;;  %s3131_s14 = sphi %s3159_s14, %s13_s14   ;;  %s3127_s13 = sphi %s3157_s13, %s3718_s13   ;;  %s3123_s12 = sphi %s3155_s12, %s3717_s12  }
   0x3   : > { %p27_p1 = scmp.ge.s32.totalorder %s25_s15, 4  ;;  %p166_p2 = scmp.lt.s32.totalorder %s3131_s14, 5 }
   0x5   : > { %s3720_s15 = smov (%p27_p1, %s25_s15), 0  ;;  %p167_p3 = pnand %p2551_p0, %p166_p2 }
   0x6   : > { %s198_s20 = smul.u32 (!%p167_p3), 133, %s3123_s12 }
   0x7   : > { %170 = sbr.rel (%p167_p3) target bundleno = 511 (0x1ff), region = 32 }
   0x8   : > { %p199_p4 = scmp.lt.s32.totalorder (!%p167_p3), %s198_s20, 531 }
   0xc   : > { %v3033_v0 = vld [vmem:[%s3714_s1 + $0x38] sm:$0xff]   ;;  %v3133_v1 = vmov 0.0   ;;  %v3034_v2 = vld [vmem:[%s3714_s1 + $0x30] sm:$0xff]   ;;  %vm3134_vm0 = vmmov 0   ;;  %v3035_v3 = vld [vmem:[%s3714_s1 + $0x28] sm:$0xff]   ;;  %s3722_s20 = smov (!%p199_p4, %s198_s20), 531 }
   0xd   : > { %2707 = vmatprep.subr.bf16.mxu0 %v3133_v1  ;;  %2991 = vmatprep.subr.bf16.mxu1 %v3133_v1  ;;  %s2552_s23 = sshll.u32 %s3722_s20, 2  ;;  %v3036_v4 = vld [vmem:[%s3714_s1 + $0x20] sm:$0xff]   ;;  %v3037_v5 = vld [vmem:[%s3714_s1 + $0x18] sm:$0xff]   ;;  %v3038_v6 = vld [vmem:[%s3714_s1 + $0x10] sm:$0xff]   ;;  %s2553_s12 = sshll.u32 %s3722_s20, 3 }
   0xe   : > { %2708 = vmatpush3.bf16.msra.mxu0 %v3033_v0  ;;  %2999 = vmatpush3.bf16.msra.mxu1 %v3033_v0  ;;  %s3198_s26 = scalar_lea.vmem %s3713_s0, %s2552_s23  ;;  %v3039_v7 = vld [vmem:[%s3714_s1 + $0x8] sm:$0xff]   ;;  %v3040_v8 = vld [vmem:[%s3714_s1] sm:$0xff]   ;;  %s3386_s18 = scalar_lea.vmem %s3716_s3, %s2553_s12 }
   0xf   : > { %2709 = vmatprep.subr.bf16.mxu0 %v3133_v1  ;;  %2992 = vmatprep.subr.bf16.mxu1 %v3133_v1  ;;  %v3041_v9 = vld [vmem:[%s3198_s26] sm:$0xff]   ;;  %v3042_v10 = vld [vmem:[%s3198_s26 + $0x110] sm:$0xff]   ;;  %v3043_v11 = vld [vmem:[%s3198_s26 + $0x8] sm:$0xff]  }
  0x10   : > { %2723 = vmatprep.mubr.msk.bf16.mxu0 %vm3134_vm0, %v3133_v1  ;;  %2859 = vmatprep.mubr.msk.bf16.mxu1 %vm3134_vm0, %v3133_v1  ;;  %v3044_v12 = vld [vmem:[%s3198_s26 + $0x118] sm:$0xff]   ;;  %v3045_v13 = vld [vmem:[%s3198_s26 + $0x10] sm:$0xff]   ;;  %v3046_v14 = vld [vmem:[%s3198_s26 + $0x120] sm:$0xff]  }
  0x11   : > { %v3047_v15 = vld [vmem:[%s3198_s26 + $0x18] sm:$0xff]   ;;  %v3048_v16 = vld [vmem:[%s3198_s26 + $0x128] sm:$0xff]   ;;  %v3049_v17 = vld [vmem:[%s3198_s26 + $0x20] sm:$0xff]  }
  0x12   : > { %2710 = vmatpush3.bf16.msra.mxu0 %v3034_v2  ;;  %3000 = vmatpush3.bf16.msra.mxu1 %v3034_v2  ;;  %v3050_v18 = vld [vmem:[%s3198_s26 + $0x130] sm:$0xff]   ;;  %v3051_v19 = vld [vmem:[%s3198_s26 + $0x28] sm:$0xff]   ;;  %v3052_v20 = vld [vmem:[%s3198_s26 + $0x138] sm:$0xff]  }
  0x13   : > { %2711 = vmatprep.subr.bf16.mxu0 %v3133_v1  ;;  %2993 = vmatprep.subr.bf16.mxu1 %v3133_v1  ;;  %v3053_v21 = vld [vmem:[%s3198_s26 + $0x30] sm:$0xff]   ;;  %v3054_v22 = vld [vmem:[%s3198_s26 + $0x140] sm:$0xff]   ;;  %v3055_v23 = vld [vmem:[%s3198_s26 + $0x38] sm:$0xff]  }
  0x14   : > { %v3056_v24 = vld [vmem:[%s3198_s26 + $0x148] sm:$0xff]   ;;  %v3057_v25 = vld [vmem:[%s3198_s26 + $0x40] sm:$0xff]   ;;  %v3058_v26 = vld [vmem:[%s3198_s26 + $0x150] sm:$0xff]  }
  0x15   : > { %v3059_v27 = vld [vmem:[%s3198_s26 + $0x48] sm:$0xff]   ;;  %v3060_v28 = vld [vmem:[%s3198_s26 + $0x158] sm:$0xff]   ;;  %v3061_v29 = vld [vmem:[%s3198_s26 + $0x50] sm:$0xff]  }
  0x16   : > { %2712 = vmatpush3.bf16.msra.mxu0 %v3035_v3  ;;  %3001 = vmatpush3.bf16.msra.mxu1 %v3035_v3  ;;  %v3062_v30 = vld [vmem:[%s3198_s26 + $0x160] sm:$0xff]   ;;  %v3063_v31 = vld [vmem:[%s3198_s26 + $0x58] sm:$0xff]   ;;  %v3064_v32 = vld [vmem:[%s3198_s26 + $0x168] sm:$0xff]  }
  0x17   : > { %2713 = vmatprep.subr.bf16.mxu0 %v3133_v1  ;;  %2994 = vmatprep.subr.bf16.mxu1 %v3133_v1  ;;  %v3065_v33 = vld [vmem:[%s3198_s26 + $0x60] sm:$0xff]   ;;  %v3066_v34 = vld [vmem:[%s3198_s26 + $0x170] sm:$0xff]   ;;  %v3067_v35 = vld [vmem:[%s3198_s26 + $0x68] sm:$0xff]  }
  0x18   : > { %v3068_v36 = vld [vmem:[%s3198_s26 + $0x178] sm:$0xff]   ;;  %v3069_v37 = vld [vmem:[%s3198_s26 + $0x70] sm:$0xff]   ;;  %v3070_v38 = vld [vmem:[%s3198_s26 + $0x180] sm:$0xff]  }
  0x19   : > { %v3071_v39 = vld [vmem:[%s3198_s26 + $0x78] sm:$0xff]   ;;  %v3072_v40 = vld [vmem:[%s3198_s26 + $0x188] sm:$0xff]   ;;  %v3073_v41 = vld [vmem:[%s3198_s26 + $0x80] sm:$0xff]  }
  0x1a   : > { %2714 = vmatpush3.bf16.msra.mxu0 %v3036_v4  ;;  %3002 = vmatpush3.bf16.msra.mxu1 %v3036_v4  ;;  %v3074_v42 = vld [vmem:[%s3198_s26 + $0x190] sm:$0xff]   ;;  %v3075_v43 = vld [vmem:[%s3198_s26 + $0x88] sm:$0xff]   ;;  %v3076_v44 = vld [vmem:[%s3198_s26 + $0x198] sm:$0xff]  }
  0x1b   : > { %2715 = vmatprep.subr.bf16.mxu0 %v3133_v1  ;;  %2995 = vmatprep.subr.bf16.mxu1 %v3133_v1  ;;  %v3077_v45 = vld [vmem:[%s3198_s26 + $0x90] sm:$0xff]   ;;  %v3078_v46 = vld [vmem:[%s3198_s26 + $0x1a0] sm:$0xff]   ;;  %v3079_v47 = vld [vmem:[%s3198_s26 + $0x98] sm:$0xff]  }
  0x1c   : > { %v3080_v48 = vld [vmem:[%s3198_s26 + $0x1a8] sm:$0xff]   ;;  %v3081_v49 = vld [vmem:[%s3198_s26 + $0xa0] sm:$0xff]   ;;  %v3082_v50 = vld [vmem:[%s3198_s26 + $0x1b0] sm:$0xff]  }
  0x1d   : > { %v3083_v51 = vld [vmem:[%s3198_s26 + $0xa8] sm:$0xff]   ;;  %v3084_v52 = vld [vmem:[%s3198_s26 + $0x1b8] sm:$0xff]   ;;  %v3085_v53 = vld [vmem:[%s3198_s26 + $0xb0] sm:$0xff]  }
  0x1e   : > { %2716 = vmatpush3.bf16.msra.mxu0 %v3037_v5  ;;  %3003 = vmatpush3.bf16.msra.mxu1 %v3037_v5  ;;  %v3086_v54 = vld [vmem:[%s3198_s26 + $0x1c0] sm:$0xff]   ;;  %v3087_v55 = vld [vmem:[%s3198_s26 + $0xb8] sm:$0xff]   ;;  %v3088_v56 = vld [vmem:[%s3198_s26 + $0x1c8] sm:$0xff]  }
  0x1f   : > { %2717 = vmatprep.subr.bf16.mxu0 %v3133_v1  ;;  %2996 = vmatprep.subr.bf16.mxu1 %v3133_v1  ;;  %v3089_v57 = vld [vmem:[%s3198_s26 + $0xc0] sm:$0xff]   ;;  %v3090_v58 = vld [vmem:[%s3198_s26 + $0x1d0] sm:$0xff]  }
  0x20   : > { %v3374_v59 = vld [vmem:[%s3715_s2] ss:$0 sm:$0xff] }
  0x22   : > { %2718 = vmatpush3.bf16.msra.mxu0 %v3038_v6  ;;  %3004 = vmatpush3.bf16.msra.mxu1 %v3038_v6  ;;  %v3091_v6 = vld [vmem:[%s3198_s26 + $0xc8] sm:$0xff]  }
  0x23   : > { %2719 = vmatprep.subr.bf16.mxu0 %v3133_v1  ;;  %2997 = vmatprep.subr.bf16.mxu1 %v3133_v1 }
  0x26   : > { %2720 = vmatpush3.bf16.msra.mxu0 %v3039_v7  ;;  %3005 = vmatpush3.bf16.msra.mxu1 %v3039_v7 }
  0x27   : > { %2721 = vmatprep.subr.bf16.mxu0 %v3133_v1  ;;  %2998 = vmatprep.subr.bf16.mxu1 %v3133_v1 }
  0x2a   : > { %2722 = vmatpush3.bf16.msra.mxu0 %v3040_v8  ;;  %3006 = vmatpush3.bf16.msra.mxu1 %v3040_v8  ;;  %v3092_v8 = vld [vmem:[%s3198_s26 + $0x1d8] sm:$0xff]  }
  0x2d   : > { %2724 = vmatmul.mubr.bf16.vlgmr.msra.gmra.mxu0 %v3041_v9  ;;  %2860 = vmatmul.mubr.bf16.vlgmr.msra.gmra.mxu1 %v3042_v10 }
  0x2e   : > { %2727 = vmatprep.mubr.msk.bf16.mxu0 %vm3134_vm0, %v3133_v1  ;;  %2863 = vmatprep.mubr.msk.bf16.mxu1 %vm3134_vm0, %v3133_v1 }
  0x35   : > { %2728 = vmatmul.mubr.bf16.gmra.mxu0 %v3043_v11  ;;  %2864 = vmatmul.mubr.bf16.gmra.mxu1 %v3044_v12 }
  0x36   : > { %2731 = vmatprep.mubr.msk.bf16.mxu0 %vm3134_vm0, %v3133_v1  ;;  %2867 = vmatprep.mubr.msk.bf16.mxu1 %vm3134_vm0, %v3133_v1 }
  0x3d   : > { %2732 = vmatmul.mubr.bf16.gmra.mxu0 %v3045_v13  ;;  %2868 = vmatmul.mubr.bf16.gmra.mxu1 %v3046_v14 }
  0x3e   : > { %2735 = vmatprep.mubr.msk.bf16.mxu0 %vm3134_vm0, %v3133_v1  ;;  %2871 = vmatprep.mubr.msk.bf16.mxu1 %vm3134_vm0, %v3133_v1 }
  0x45   : > { %2736 = vmatmul.mubr.bf16.gmra.mxu0 %v3047_v15  ;;  %2872 = vmatmul.mubr.bf16.gmra.mxu1 %v3048_v16 }
  0x46   : > { %2739 = vmatprep.mubr.msk.bf16.mxu0 %vm3134_vm0, %v3133_v1  ;;  %2875 = vmatprep.mubr.msk.bf16.mxu1 %vm3134_vm0, %v3133_v1 }
  0x4d   : > { %2740 = vmatmul.mubr.bf16.gmra.mxu0 %v3049_v17  ;;  %2876 = vmatmul.mubr.bf16.gmra.mxu1 %v3050_v18 }
  0x4e   : > { %2743 = vmatprep.mubr.msk.bf16.mxu0 %vm3134_vm0, %v3133_v1  ;;  %2879 = vmatprep.mubr.msk.bf16.mxu1 %vm3134_vm0, %v3133_v1 }
  0x55   : > { %2744 = vmatmul.mubr.bf16.gmra.mxu0 %v3051_v19  ;;  %2880 = vmatmul.mubr.bf16.gmra.mxu1 %v3052_v20 }
  0x56   : > { %2747 = vmatprep.mubr.msk.bf16.mxu0 %vm3134_vm0, %v3133_v1  ;;  %2883 = vmatprep.mubr.msk.bf16.mxu1 %vm3134_vm0, %v3133_v1 }
  0x5d   : > { %2748 = vmatmul.mubr.bf16.gmra.mxu0 %v3053_v21  ;;  %2884 = vmatmul.mubr.bf16.gmra.mxu1 %v3054_v22 }
  0x5e   : > { %2751 = vmatprep.mubr.msk.bf16.mxu0 %vm3134_vm0, %v3133_v1  ;;  %2887 = vmatprep.mubr.msk.bf16.mxu1 %vm3134_vm0, %v3133_v1 }
  0x65   : > { %2752 = vmatmul.mubr.bf16.gmra.mxu0 %v3055_v23  ;;  %2888 = vmatmul.mubr.bf16.gmra.mxu1 %v3056_v24  ;;  %v3093_v24 = vld [vmem:[%s3198_s26 + $0xd0] sm:$0xff]  }
  0x66   : > { %2755 = vmatprep.mubr.msk.bf16.mxu0 %vm3134_vm0, %v3133_v1  ;;  %2891 = vmatprep.mubr.msk.bf16.mxu1 %vm3134_vm0, %v3133_v1 }
  0x6d   : > { %2756 = vmatmul.mubr.bf16.gmra.mxu0 %v3057_v25  ;;  %2892 = vmatmul.mubr.bf16.gmra.mxu1 %v3058_v26  ;;  %v3094_v26 = vld [vmem:[%s3198_s26 + $0x1e0] sm:$0xff]  }
  0x6e   : > { %2759 = vmatprep.mubr.msk.bf16.mxu0 %vm3134_vm0, %v3133_v1  ;;  %2895 = vmatprep.mubr.msk.bf16.mxu1 %vm3134_vm0, %v3133_v1 }
  0x75   : > { %2760 = vmatmul.mubr.bf16.gmra.mxu0 %v3059_v27  ;;  %2896 = vmatmul.mubr.bf16.gmra.mxu1 %v3060_v28 }
  0x76   : > { %2763 = vmatprep.mubr.msk.bf16.mxu0 %vm3134_vm0, %v3133_v1  ;;  %2899 = vmatprep.mubr.msk.bf16.mxu1 %vm3134_vm0, %v3133_v1 }
  0x7d   : > { %2764 = vmatmul.mubr.bf16.gmra.mxu0 %v3061_v29  ;;  %2900 = vmatmul.mubr.bf16.gmra.mxu1 %v3062_v30 }
  0x7e   : > { %2767 = vmatprep.mubr.msk.bf16.mxu0 %vm3134_vm0, %v3133_v1  ;;  %2903 = vmatprep.mubr.msk.bf16.mxu1 %vm3134_vm0, %v3133_v1 }
  0x85   : > { %2768 = vmatmul.mubr.bf16.gmra.mxu0 %v3063_v31  ;;  %2904 = vmatmul.mubr.bf16.gmra.mxu1 %v3064_v32 }
  0x86   : > { %2771 = vmatprep.mubr.msk.bf16.mxu0 %vm3134_vm0, %v3133_v1  ;;  %2907 = vmatprep.mubr.msk.bf16.mxu1 %vm3134_vm0, %v3133_v1 }
  0x8d   : > { %2772 = vmatmul.mubr.bf16.gmra.mxu0 %v3065_v33  ;;  %2908 = vmatmul.mubr.bf16.gmra.mxu1 %v3066_v34 }
  0x8e   : > { %2775 = vmatprep.mubr.msk.bf16.mxu0 %vm3134_vm0, %v3133_v1  ;;  %2911 = vmatprep.mubr.msk.bf16.mxu1 %vm3134_vm0, %v3133_v1 }
  0x95   : > { %2776 = vmatmul.mubr.bf16.gmra.mxu0 %v3067_v35  ;;  %2912 = vmatmul.mubr.bf16.gmra.mxu1 %v3068_v36 }
  0x96   : > { %2779 = vmatprep.mubr.msk.bf16.mxu0 %vm3134_vm0, %v3133_v1  ;;  %2915 = vmatprep.mubr.msk.bf16.mxu1 %vm3134_vm0, %v3133_v1 }
  0x9d   : > { %2780 = vmatmul.mubr.bf16.gmra.mxu0 %v3069_v37  ;;  %2916 = vmatmul.mubr.bf16.gmra.mxu1 %v3070_v38 }
  0x9e   : > { %2783 = vmatprep.mubr.msk.bf16.mxu0 %vm3134_vm0, %v3133_v1  ;;  %2919 = vmatprep.mubr.msk.bf16.mxu1 %vm3134_vm0, %v3133_v1 }
  0xa5   : > { %2784 = vmatmul.mubr.bf16.gmra.mxu0 %v3071_v39  ;;  %2920 = vmatmul.mubr.bf16.gmra.mxu1 %v3072_v40 }
  0xa6   : > { %2787 = vmatprep.mubr.msk.bf16.mxu0 %vm3134_vm0, %v3133_v1  ;;  %2923 = vmatprep.mubr.msk.bf16.mxu1 %vm3134_vm0, %v3133_v1 }
  0xad   : > { %2788 = vmatmul.mubr.bf16.gmra.mxu0 %v3073_v41  ;;  %2924 = vmatmul.mubr.bf16.gmra.mxu1 %v3074_v42  ;;  %v3095_v42 = vld [vmem:[%s3198_s26 + $0xd8] sm:$0xff]  }
  0xae   : > { %2791 = vmatprep.mubr.msk.bf16.mxu0 %vm3134_vm0, %v3133_v1  ;;  %2927 = vmatprep.mubr.msk.bf16.mxu1 %vm3134_vm0, %v3133_v1 }
  0xb5   : > { %2792 = vmatmul.mubr.bf16.gmra.mxu0 %v3075_v43  ;;  %2928 = vmatmul.mubr.bf16.gmra.mxu1 %v3076_v44  ;;  %v3096_v44 = vld [vmem:[%s3198_s26 + $0x1e8] sm:$0xff]  }
  0xb6   : > { %2795 = vmatprep.mubr.msk.bf16.mxu0 %vm3134_vm0, %v3133_v1  ;;  %2931 = vmatprep.mubr.msk.bf16.mxu1 %vm3134_vm0, %v3133_v1 }
  0xbd   : > { %2796 = vmatmul.mubr.bf16.gmra.mxu0 %v3077_v45  ;;  %2932 = vmatmul.mubr.bf16.gmra.mxu1 %v3078_v46 }
  0xbe   : > { %2799 = vmatprep.mubr.msk.bf16.mxu0 %vm3134_vm0, %v3133_v1  ;;  %2935 = vmatprep.mubr.msk.bf16.mxu1 %vm3134_vm0, %v3133_v1 }
  0xc5   : > { %2800 = vmatmul.mubr.bf16.gmra.mxu0 %v3079_v47  ;;  %2936 = vmatmul.mubr.bf16.gmra.mxu1 %v3080_v48 }
  0xc6   : > { %2803 = vmatprep.mubr.msk.bf16.mxu0 %vm3134_vm0, %v3133_v1  ;;  %2939 = vmatprep.mubr.msk.bf16.mxu1 %vm3134_vm0, %v3133_v1 }
  0xcd   : > { %2804 = vmatmul.mubr.bf16.gmra.mxu0 %v3081_v49  ;;  %2940 = vmatmul.mubr.bf16.gmra.mxu1 %v3082_v50 }
  0xce   : > { %2807 = vmatprep.mubr.msk.bf16.mxu0 %vm3134_vm0, %v3133_v1  ;;  %2943 = vmatprep.mubr.msk.bf16.mxu1 %vm3134_vm0, %v3133_v1 }
  0xd5   : > { %2808 = vmatmul.mubr.bf16.gmra.mxu0 %v3083_v51  ;;  %2944 = vmatmul.mubr.bf16.gmra.mxu1 %v3084_v52 }
  0xd6   : > { %2811 = vmatprep.mubr.msk.bf16.mxu0 %vm3134_vm0, %v3133_v1  ;;  %2947 = vmatprep.mubr.msk.bf16.mxu1 %vm3134_vm0, %v3133_v1 }
  0xdd   : > { %2812 = vmatmul.mubr.bf16.gmra.mxu0 %v3085_v53  ;;  %2948 = vmatmul.mubr.bf16.gmra.mxu1 %v3086_v54 }
  0xde   : > { %2815 = vmatprep.mubr.msk.bf16.mxu0 %vm3134_vm0, %v3133_v1  ;;  %2951 = vmatprep.mubr.msk.bf16.mxu1 %vm3134_vm0, %v3133_v1 }
  0xe5   : > { %2816 = vmatmul.mubr.bf16.gmra.mxu0 %v3087_v55  ;;  %2952 = vmatmul.mubr.bf16.gmra.mxu1 %v3088_v56 }
  0xe6   : > { %2819 = vmatprep.mubr.msk.bf16.mxu0 %vm3134_vm0, %v3133_v1  ;;  %2955 = vmatprep.mubr.msk.bf16.mxu1 %vm3134_vm0, %v3133_v1 }
  0xed   : > { %v1121_v60 = vpop.f32.mrf.mxu0  ;;  %2820 = vmatmul.mubr.bf16.gmra.mxu0 %v3089_v57  ;;  %v1393_v61 = vpop.f32.mrf.mxu1  ;;  %2956 = vmatmul.mubr.bf16.gmra.mxu1 %v3090_v58 }
  0xee   : > { %v2064_v62 = vadd.f32 %v3374_v59, %v1121_v60  ;;  %v2132_v63 = vadd.f32 %v3374_v59, %v1393_v61  ;;  %2823 = vmatprep.mubr.msk.bf16.mxu0 %vm3134_vm0, %v3133_v1  ;;  %2959 = vmatprep.mubr.msk.bf16.mxu1 %vm3134_vm0, %v3133_v1  ;;  %v3097_v61 = vld [vmem:[%s3198_s26 + $0xe0] sm:$0xff]  }
  0xef   : > { %v2725_v0 = vpop.f32.mrf.mxu0  ;;  %v2861_v2 = vpop.f32.mrf.mxu1 }
  0xf0   : > { %v2197_v3 = vmax.f32 %v2064_v62, 0.0  ;;  %v2265_v4 = vmax.f32 %v2132_v63, 0.0  ;;  %v3098_v63 = vld [vmem:[%s3198_s26 + $0x1f0] sm:$0xff]  }
  0xf1   : > { %v1124_v5 = vpop.f32.mrf.mxu0  ;;  %v1396_v7 = vpop.f32.mrf.mxu1 }
  0xf2   : > { %2330 = vst [vmem:[%s3386_s18] sm:$0xff] %v2197_v3  ;;  %v2065_v9 = vadd.f32 %v3374_v59, %v1124_v5  ;;  %2398 = vst [vmem:[%s3386_s18 + $0x220] sm:$0xff] %v2265_v4  ;;  %v2133_v10 = vadd.f32 %v3374_v59, %v1396_v7 }
  0xf3   : > { %v2726_v11 = vpop.f32.mrf.mxu0  ;;  %v2862_v12 = vpop.f32.mrf.mxu1 }
  0xf4   : > { %v2198_v13 = vmax.f32 %v2065_v9, 0.0  ;;  %v2266_v14 = vmax.f32 %v2133_v10, 0.0 }
  0xf5   : > { %v1129_v15 = vpop.f32.mrf.mxu0  ;;  %2824 = vmatmul.mubr.bf16.gmra.mxu0 %v3091_v6  ;;  %v1401_v16 = vpop.f32.mrf.mxu1  ;;  %2960 = vmatmul.mubr.bf16.gmra.mxu1 %v3092_v8 }
  0xf6   : > { %2331 = vst [vmem:[%s3386_s18 + $0x8] sm:$0xff] %v2198_v13  ;;  %v2066_v17 = vadd.f32 %v3374_v59, %v1129_v15  ;;  %2399 = vst [vmem:[%s3386_s18 + $0x228] sm:$0xff] %v2266_v14  ;;  %v2134_v18 = vadd.f32 %v3374_v59, %v1401_v16  ;;  %2827 = vmatprep.mubr.msk.bf16.mxu0 %vm3134_vm0, %v3133_v1  ;;  %2963 = vmatprep.mubr.msk.bf16.mxu1 %vm3134_vm0, %v3133_v1  ;;  %v3099_v16 = vld [vmem:[%s3198_s26 + $0xe8] sm:$0xff]  }
  0xf7   : > { %v2729_v19 = vpop.f32.mrf.mxu0  ;;  %v2865_v20 = vpop.f32.mrf.mxu1 }
  0xf8   : > { %v2199_v21 = vmax.f32 %v2066_v17, 0.0  ;;  %v2267_v22 = vmax.f32 %v2134_v18, 0.0  ;;  %v3100_v18 = vld [vmem:[%s3198_s26 + $0x1f8] sm:$0xff]  }
  0xf9   : > { %v1132_v23 = vpop.f32.mrf.mxu0  ;;  %v1404_v25 = vpop.f32.mrf.mxu1 }
  0xfa   : > { %2332 = vst [vmem:[%s3386_s18 + $0x10] sm:$0xff] %v2199_v21  ;;  %v2067_v27 = vadd.f32 %v3374_v59, %v1132_v23  ;;  %2400 = vst [vmem:[%s3386_s18 + $0x230] sm:$0xff] %v2267_v22  ;;  %v2135_v28 = vadd.f32 %v3374_v59, %v1404_v25 }
  0xfb   : > { %v2730_v29 = vpop.f32.mrf.mxu0  ;;  %v2866_v30 = vpop.f32.mrf.mxu1 }
  0xfc   : > { %v2200_v31 = vmax.f32 %v2067_v27, 0.0  ;;  %v2268_v32 = vmax.f32 %v2135_v28, 0.0 }
  0xfd   : > { %v1137_v33 = vpop.f32.mrf.mxu0  ;;  %2828 = vmatmul.mubr.bf16.gmra.mxu0 %v3093_v24  ;;  %v1409_v34 = vpop.f32.mrf.mxu1  ;;  %2964 = vmatmul.mubr.bf16.gmra.mxu1 %v3094_v26 }
  0xfe   : > { %2333 = vst [vmem:[%s3386_s18 + $0x18] sm:$0xff] %v2200_v31  ;;  %v2068_v35 = vadd.f32 %v3374_v59, %v1137_v33  ;;  %2401 = vst [vmem:[%s3386_s18 + $0x238] sm:$0xff] %v2268_v32  ;;  %v2136_v36 = vadd.f32 %v3374_v59, %v1409_v34  ;;  %2831 = vmatprep.mubr.msk.bf16.mxu0 %vm3134_vm0, %v3133_v1  ;;  %2967 = vmatprep.mubr.msk.bf16.mxu1 %vm3134_vm0, %v3133_v1  ;;  %v3101_v34 = vld [vmem:[%s3198_s26 + $0xf0] sm:$0xff]  }
  0xff   : > { %v2733_v37 = vpop.f32.mrf.mxu0  ;;  %v2869_v38 = vpop.f32.mrf.mxu1 }
 0x100   : > { %v2201_v39 = vmax.f32 %v2068_v35, 0.0  ;;  %v2269_v40 = vmax.f32 %v2136_v36, 0.0  ;;  %v3102_v36 = vld [vmem:[%s3198_s26 + $0x200] sm:$0xff]  }
 0x101   : > { %v1140_v41 = vpop.f32.mrf.mxu0  ;;  %v1412_v43 = vpop.f32.mrf.mxu1 }
 0x102   : > { %2334 = vst [vmem:[%s3386_s18 + $0x20] sm:$0xff] %v2201_v39  ;;  %v2069_v45 = vadd.f32 %v3374_v59, %v1140_v41  ;;  %2402 = vst [vmem:[%s3386_s18 + $0x240] sm:$0xff] %v2269_v40  ;;  %v2137_v46 = vadd.f32 %v3374_v59, %v1412_v43 }
 0x103   : > { %v2734_v47 = vpop.f32.mrf.mxu0  ;;  %v2870_v48 = vpop.f32.mrf.mxu1 }
 0x104   : > { %v2202_v49 = vmax.f32 %v2069_v45, 0.0  ;;  %v2270_v50 = vmax.f32 %v2137_v46, 0.0 }
 0x105   : > { %v1145_v51 = vpop.f32.mrf.mxu0  ;;  %2832 = vmatmul.mubr.bf16.gmra.mxu0 %v3095_v42  ;;  %v1417_v52 = vpop.f32.mrf.mxu1  ;;  %2968 = vmatmul.mubr.bf16.gmra.mxu1 %v3096_v44 }
 0x106   : > { %2335 = vst [vmem:[%s3386_s18 + $0x28] sm:$0xff] %v2202_v49  ;;  %v2070_v53 = vadd.f32 %v3374_v59, %v1145_v51  ;;  %2403 = vst [vmem:[%s3386_s18 + $0x248] sm:$0xff] %v2270_v50  ;;  %v2138_v54 = vadd.f32 %v3374_v59, %v1417_v52  ;;  %2835 = vmatprep.mubr.msk.bf16.mxu0 %vm3134_vm0, %v3133_v1  ;;  %2971 = vmatprep.mubr.msk.bf16.mxu1 %vm3134_vm0, %v3133_v1  ;;  %v3103_v52 = vld [vmem:[%s3198_s26 + $0xf8] sm:$0xff]  }
 0x107   : > { %v2737_v55 = vpop.f32.mrf.mxu0  ;;  %v2873_v56 = vpop.f32.mrf.mxu1 }
 0x108   : > { %v2203_v57 = vmax.f32 %v2070_v53, 0.0  ;;  %v2271_v58 = vmax.f32 %v2138_v54, 0.0  ;;  %v3104_v54 = vld [vmem:[%s3198_s26 + $0x208] sm:$0xff]  }
 0x109   : > { %v1148_v60 = vpop.f32.mrf.mxu0  ;;  %v1420_v62 = vpop.f32.mrf.mxu1 }
 0x10a   : > { %2336 = vst [vmem:[%s3386_s18 + $0x30] sm:$0xff] %v2203_v57  ;;  %v2071_v0 = vadd.f32 %v3374_v59, %v1148_v60  ;;  %2404 = vst [vmem:[%s3386_s18 + $0x250] sm:$0xff] %v2271_v58  ;;  %v2139_v2 = vadd.f32 %v3374_v59, %v1420_v62 }
 0x10b   : > { %v2738_v3 = vpop.f32.mrf.mxu0  ;;  %v2874_v4 = vpop.f32.mrf.mxu1 }
 0x10c   : > { %v2204_v5 = vmax.f32 %v2071_v0, 0.0  ;;  %v2272_v6 = vmax.f32 %v2139_v2, 0.0 }
 0x10d   : > { %v1153_v7 = vpop.f32.mrf.mxu0  ;;  %2836 = vmatmul.mubr.bf16.gmra.mxu0 %v3097_v61  ;;  %v1425_v8 = vpop.f32.mrf.mxu1  ;;  %2972 = vmatmul.mubr.bf16.gmra.mxu1 %v3098_v63 }
 0x10e   : > { %2337 = vst [vmem:[%s3386_s18 + $0x38] sm:$0xff] %v2204_v5  ;;  %v2072_v9 = vadd.f32 %v3374_v59, %v1153_v7  ;;  %2405 = vst [vmem:[%s3386_s18 + $0x258] sm:$0xff] %v2272_v6  ;;  %v2140_v10 = vadd.f32 %v3374_v59, %v1425_v8  ;;  %2839 = vmatprep.mubr.msk.bf16.mxu0 %vm3134_vm0, %v3133_v1  ;;  %2975 = vmatprep.mubr.msk.bf16.mxu1 %vm3134_vm0, %v3133_v1  ;;  %v3105_v8 = vld [vmem:[%s3198_s26 + $0x100] sm:$0xff]  }
 0x10f   : > { %v2741_v11 = vpop.f32.mrf.mxu0  ;;  %v2877_v12 = vpop.f32.mrf.mxu1 }
 0x110   : > { %v2205_v13 = vmax.f32 %v2072_v9, 0.0  ;;  %v2273_v14 = vmax.f32 %v2140_v10, 0.0  ;;  %v3106_v10 = vld [vmem:[%s3198_s26 + $0x210] ss:$0 sps:$4 sm:$0xff]  }
 0x111   : > { %v1156_v15 = vpop.f32.mrf.mxu0  ;;  %v1428_v17 = vpop.f32.mrf.mxu1 }
 0x112   : > { %2338 = vst [vmem:[%s3386_s18 + $0x40] sm:$0xff] %v2205_v13  ;;  %v2073_v19 = vadd.f32 %v3374_v59, %v1156_v15  ;;  %2406 = vst [vmem:[%s3386_s18 + $0x260] sm:$0xff] %v2273_v14  ;;  %v2141_v20 = vadd.f32 %v3374_v59, %v1428_v17 }
 0x113   : > { %v2742_v21 = vpop.f32.mrf.mxu0  ;;  %v2878_v22 = vpop.f32.mrf.mxu1 }
 0x114   : > { %v2206_v23 = vmax.f32 %v2073_v19, 0.0  ;;  %v2274_v24 = vmax.f32 %v2141_v20, 0.0 }
 0x115   : > { %v1161_v25 = vpop.f32.mrf.mxu0  ;;  %2840 = vmatmul.mubr.bf16.gmra.mxu0 %v3099_v16  ;;  %v1433_v26 = vpop.f32.mrf.mxu1  ;;  %2976 = vmatmul.mubr.bf16.gmra.mxu1 %v3100_v18 }
 0x116   : > { %2339 = vst [vmem:[%s3386_s18 + $0x48] sm:$0xff] %v2206_v23  ;;  %v2074_v27 = vadd.f32 %v3374_v59, %v1161_v25  ;;  %2407 = vst [vmem:[%s3386_s18 + $0x268] sm:$0xff] %v2274_v24  ;;  %v2142_v28 = vadd.f32 %v3374_v59, %v1433_v26  ;;  %2843 = vmatprep.mubr.msk.bf16.mxu0 %vm3134_vm0, %v3133_v1  ;;  %2979 = vmatprep.mubr.msk.bf16.mxu1 %vm3134_vm0, %v3133_v1  ;;  %v3107_v26 = vld [vmem:[%s3198_s26 + $0x108] sm:$0xff]  }
 0x117   : > { %v2745_v29 = vpop.f32.mrf.mxu0  ;;  %v2881_v30 = vpop.f32.mrf.mxu1 }
 0x118   : > { %v2207_v31 = vmax.f32 %v2074_v27, 0.0  ;;  %v2275_v32 = vmax.f32 %v2142_v28, 0.0 }
 0x119   : > { %v1164_v33 = vpop.f32.mrf.mxu0  ;;  %v1436_v35 = vpop.f32.mrf.mxu1 }
 0x11a   : > { %2340 = vst [vmem:[%s3386_s18 + $0x50] sm:$0xff] %v2207_v31  ;;  %v2075_v37 = vadd.f32 %v3374_v59, %v1164_v33  ;;  %2408 = vst [vmem:[%s3386_s18 + $0x270] sm:$0xff] %v2275_v32  ;;  %v2143_v38 = vadd.f32 %v3374_v59, %v1436_v35 }
 0x11b   : > { %v2746_v39 = vpop.f32.mrf.mxu0  ;;  %v2882_v40 = vpop.f32.mrf.mxu1 }
 0x11c   : > { %v2208_v41 = vmax.f32 %v2075_v37, 0.0  ;;  %v2276_v42 = vmax.f32 %v2143_v38, 0.0 }
 0x11d   : > { %v1169_v43 = vpop.f32.mrf.mxu0  ;;  %2844 = vmatmul.mubr.bf16.gmra.mxu0 %v3101_v34  ;;  %v1441_v44 = vpop.f32.mrf.mxu1  ;;  %2980 = vmatmul.mubr.bf16.gmra.mxu1 %v3102_v36 }
 0x11e   : > { %2341 = vst [vmem:[%s3386_s18 + $0x58] sm:$0xff] %v2208_v41  ;;  %v2076_v45 = vadd.f32 %v3374_v59, %v1169_v43  ;;  %2409 = vst [vmem:[%s3386_s18 + $0x278] sm:$0xff] %v2276_v42  ;;  %v2144_v46 = vadd.f32 %v3374_v59, %v1441_v44  ;;  %2847 = vmatprep.mubr.msk.bf16.mxu0 %vm3134_vm0, %v3133_v1  ;;  %2983 = vmatprep.mubr.msk.bf16.mxu1 %vm3134_vm0, %v3133_v1 }
 0x11f   : > { %v2749_v47 = vpop.f32.mrf.mxu0  ;;  %v2885_v48 = vpop.f32.mrf.mxu1 }
 0x120   : > { %v2209_v49 = vmax.f32 %v2076_v45, 0.0  ;;  %v2277_v50 = vmax.f32 %v2144_v46, 0.0 }
 0x121   : > { %v1172_v51 = vpop.f32.mrf.mxu0  ;;  %v1444_v53 = vpop.f32.mrf.mxu1 }
 0x122   : > { %2342 = vst [vmem:[%s3386_s18 + $0x60] sm:$0xff] %v2209_v49  ;;  %v2077_v55 = vadd.f32 %v3374_v59, %v1172_v51  ;;  %2410 = vst [vmem:[%s3386_s18 + $0x280] sm:$0xff] %v2277_v50  ;;  %v2145_v56 = vadd.f32 %v3374_v59, %v1444_v53 }
 0x123   : > { %v2750_v57 = vpop.f32.mrf.mxu0  ;;  %v2886_v58 = vpop.f32.mrf.mxu1 }
 0x124   : > { %v2210_v60 = vmax.f32 %v2077_v55, 0.0  ;;  %v2278_v61 = vmax.f32 %v2145_v56, 0.0 }
 0x125   : > { %v1177_v62 = vpop.f32.mrf.mxu0  ;;  %2848 = vmatmul.mubr.bf16.gmra.mxu0 %v3103_v52  ;;  %v1449_v63 = vpop.f32.mrf.mxu1  ;;  %2984 = vmatmul.mubr.bf16.gmra.mxu1 %v3104_v54 }
 0x126   : > { %2343 = vst [vmem:[%s3386_s18 + $0x68] sm:$0xff] %v2210_v60  ;;  %v2078_v0 = vadd.f32 %v3374_v59, %v1177_v62  ;;  %2411 = vst [vmem:[%s3386_s18 + $0x288] sm:$0xff] %v2278_v61  ;;  %v2146_v2 = vadd.f32 %v3374_v59, %v1449_v63  ;;  %2851 = vmatprep.mubr.msk.bf16.mxu0 %vm3134_vm0, %v3133_v1  ;;  %2987 = vmatprep.mubr.msk.bf16.mxu1 %vm3134_vm0, %v3133_v1 }
 0x127   : > { %v2753_v3 = vpop.f32.mrf.mxu0  ;;  %v2889_v4 = vpop.f32.mrf.mxu1 }
 0x128   : > { %v2211_v5 = vmax.f32 %v2078_v0, 0.0  ;;  %v2279_v6 = vmax.f32 %v2146_v2, 0.0 }
 0x129   : > { %v1180_v7 = vpop.f32.mrf.mxu0  ;;  %v1452_v9 = vpop.f32.mrf.mxu1 }
 0x12a   : > { %2344 = vst [vmem:[%s3386_s18 + $0x70] sm:$0xff] %v2211_v5  ;;  %v2079_v11 = vadd.f32 %v3374_v59, %v1180_v7  ;;  %2412 = vst [vmem:[%s3386_s18 + $0x290] sm:$0xff] %v2279_v6  ;;  %v2147_v12 = vadd.f32 %v3374_v59, %v1452_v9 }
 0x12b   : > { %v2754_v13 = vpop.f32.mrf.mxu0  ;;  %v2890_v14 = vpop.f32.mrf.mxu1 }
 0x12c   : > { %v2212_v15 = vmax.f32 %v2079_v11, 0.0  ;;  %v2280_v16 = vmax.f32 %v2147_v12, 0.0 }
 0x12d   : > { %v1185_v17 = vpop.f32.mrf.mxu0  ;;  %2852 = vmatmul.mubr.bf16.gmra.mxu0 %v3105_v8  ;;  %v1457_v18 = vpop.f32.mrf.mxu1  ;;  %2988 = vmatmul.mubr.bf16.gmra.mxu1 %v3106_v10 }
 0x12e   : > { %2345 = vst [vmem:[%s3386_s18 + $0x78] sm:$0xff] %v2212_v15  ;;  %v2080_v19 = vadd.f32 %v3374_v59, %v1185_v17  ;;  %2413 = vst [vmem:[%s3386_s18 + $0x298] sm:$0xff] %v2280_v16  ;;  %v2148_v20 = vadd.f32 %v3374_v59, %v1457_v18  ;;  %2855 = vmatprep.mubr.msk.bf16.mxu0 %vm3134_vm0, %v3133_v1 }
 0x12f   : > { %v2757_v21 = vpop.f32.mrf.mxu0  ;;  %v2893_v22 = vpop.f32.mrf.mxu1 }
 0x130   : > { %v2213_v23 = vmax.f32 %v2080_v19, 0.0  ;;  %v2281_v24 = vmax.f32 %v2148_v20, 0.0 }
 0x131   : > { %v1188_v25 = vpop.f32.mrf.mxu0  ;;  %v1460_v27 = vpop.f32.mrf.mxu1 }
 0x132   : > { %2346 = vst [vmem:[%s3386_s18 + $0x80] sm:$0xff] %v2213_v23  ;;  %v2081_v28 = vadd.f32 %v3374_v59, %v1188_v25  ;;  %2414 = vst [vmem:[%s3386_s18 + $0x2a0] sm:$0xff] %v2281_v24  ;;  %v2149_v29 = vadd.f32 %v3374_v59, %v1460_v27 }
 0x133   : > { %v2758_v30 = vpop.f32.mrf.mxu0  ;;  %v2894_v31 = vpop.f32.mrf.mxu1 }
 0x134   : > { %v2214_v32 = vmax.f32 %v2081_v28, 0.0  ;;  %v2282_v1 = vmax.f32 %v2149_v29, 0.0 }
 0x135   : > { %v1193_v33 = vpop.f32.mrf.mxu0  ;;  %2856 = vmatmul.mubr.bf16.gmra.mxu0 %v3107_v26  ;;  %v1465_v34 = vpop.f32.mrf.mxu1 }
 0x136   : > { %2347 = vst [vmem:[%s3386_s18 + $0x88] sm:$0xff] %v2214_v32  ;;  %v2082_v35 = vadd.f32 %v3374_v59, %v1193_v33  ;;  %2415 = vst [vmem:[%s3386_s18 + $0x2a8] sm:$0xff] %v2282_v1  ;;  %v2150_v36 = vadd.f32 %v3374_v59, %v1465_v34 }
 0x137   : > { %v2761_v37 = vpop.f32.mrf.mxu0  ;;  %v2897_v38 = vpop.f32.mrf.mxu1 }
 0x138   : > { %v2215_v39 = vmax.f32 %v2082_v35, 0.0  ;;  %v2283_v40 = vmax.f32 %v2150_v36, 0.0 }
 0x139   : > { %v1196_v41 = vpop.f32.mrf.mxu0  ;;  %v1468_v42 = vpop.f32.mrf.mxu1 }
 0x13a   : > { %2348 = vst [vmem:[%s3386_s18 + $0x90] sm:$0xff] %v2215_v39  ;;  %v2083_v43 = vadd.f32 %v3374_v59, %v1196_v41  ;;  %2416 = vst [vmem:[%s3386_s18 + $0x2b0] sm:$0xff] %v2283_v40  ;;  %v2151_v44 = vadd.f32 %v3374_v59, %v1468_v42 }
 0x13b   : > { %v2762_v45 = vpop.f32.mrf.mxu0  ;;  %v2898_v46 = vpop.f32.mrf.mxu1 }
 0x13c   : > { %v2216_v47 = vmax.f32 %v2083_v43, 0.0  ;;  %v2284_v48 = vmax.f32 %v2151_v44, 0.0 }
 0x13d   : > { %v1201_v49 = vpop.f32.mrf.mxu0  ;;  %v1473_v50 = vpop.f32.mrf.mxu1 }
 0x13e   : > { %2349 = vst [vmem:[%s3386_s18 + $0x98] sm:$0xff] %v2216_v47  ;;  %v2084_v51 = vadd.f32 %v3374_v59, %v1201_v49  ;;  %2417 = vst [vmem:[%s3386_s18 + $0x2b8] sm:$0xff] %v2284_v48  ;;  %v2152_v52 = vadd.f32 %v3374_v59, %v1473_v50 }
 0x13f   : > { %v2765_v53 = vpop.f32.mrf.mxu0  ;;  %v2901_v54 = vpop.f32.mrf.mxu1 }
 0x140   : > { %v2217_v55 = vmax.f32 %v2084_v51, 0.0  ;;  %v2285_v56 = vmax.f32 %v2152_v52, 0.0 }
 0x141   : > { %v1204_v57 = vpop.f32.mrf.mxu0  ;;  %v1476_v58 = vpop.f32.mrf.mxu1 }
 0x142   : > { %2350 = vst [vmem:[%s3386_s18 + $0xa0] sm:$0xff] %v2217_v55  ;;  %v2085_v60 = vadd.f32 %v3374_v59, %v1204_v57  ;;  %2418 = vst [vmem:[%s3386_s18 + $0x2c0] sm:$0xff] %v2285_v56  ;;  %v2153_v61 = vadd.f32 %v3374_v59, %v1476_v58 }
 0x143   : > { %v2766_v62 = vpop.f32.mrf.mxu0  ;;  %v2902_v63 = vpop.f32.mrf.mxu1 }
 0x144   : > { %v2218_v0 = vmax.f32 %v2085_v60, 0.0  ;;  %v2286_v2 = vmax.f32 %v2153_v61, 0.0 }
 0x145   : > { %v1209_v3 = vpop.f32.mrf.mxu0  ;;  %v1481_v4 = vpop.f32.mrf.mxu1 }
 0x146   : > { %2351 = vst [vmem:[%s3386_s18 + $0xa8] sm:$0xff] %v2218_v0  ;;  %v2086_v5 = vadd.f32 %v3374_v59, %v1209_v3  ;;  %2419 = vst [vmem:[%s3386_s18 + $0x2c8] sm:$0xff] %v2286_v2  ;;  %v2154_v6 = vadd.f32 %v3374_v59, %v1481_v4 }
 0x147   : > { %v2769_v7 = vpop.f32.mrf.mxu0  ;;  %v2905_v8 = vpop.f32.mrf.mxu1 }
 0x148   : > { %v2219_v9 = vmax.f32 %v2086_v5, 0.0  ;;  %v2287_v10 = vmax.f32 %v2154_v6, 0.0 }
 0x149   : > { %v1212_v11 = vpop.f32.mrf.mxu0  ;;  %v1484_v12 = vpop.f32.mrf.mxu1 }
 0x14a   : > { %2352 = vst [vmem:[%s3386_s18 + $0xb0] sm:$0xff] %v2219_v9  ;;  %v2087_v13 = vadd.f32 %v3374_v59, %v1212_v11  ;;  %2420 = vst [vmem:[%s3386_s18 + $0x2d0] sm:$0xff] %v2287_v10  ;;  %v2155_v14 = vadd.f32 %v3374_v59, %v1484_v12 }
 0x14b   : > { %v2770_v15 = vpop.f32.mrf.mxu0  ;;  %v2906_v16 = vpop.f32.mrf.mxu1 }
 0x14c   : > { %v2220_v17 = vmax.f32 %v2087_v13, 0.0  ;;  %v2288_v18 = vmax.f32 %v2155_v14, 0.0 }
 0x14d   : > { %v1217_v19 = vpop.f32.mrf.mxu0  ;;  %v1489_v20 = vpop.f32.mrf.mxu1 }
 0x14e   : > { %2353 = vst [vmem:[%s3386_s18 + $0xb8] sm:$0xff] %v2220_v17  ;;  %v2088_v21 = vadd.f32 %v3374_v59, %v1217_v19  ;;  %2421 = vst [vmem:[%s3386_s18 + $0x2d8] sm:$0xff] %v2288_v18  ;;  %v2156_v22 = vadd.f32 %v3374_v59, %v1489_v20 }
 0x14f   : > { %v2773_v23 = vpop.f32.mrf.mxu0  ;;  %v2909_v24 = vpop.f32.mrf.mxu1 }
 0x150   : > { %v2221_v25 = vmax.f32 %v2088_v21, 0.0  ;;  %v2289_v26 = vmax.f32 %v2156_v22, 0.0 }
 0x151   : > { %v1220_v27 = vpop.f32.mrf.mxu0  ;;  %v1492_v28 = vpop.f32.mrf.mxu1 }
 0x152   : > { %2354 = vst [vmem:[%s3386_s18 + $0xc0] sm:$0xff] %v2221_v25  ;;  %v2089_v29 = vadd.f32 %v3374_v59, %v1220_v27  ;;  %2422 = vst [vmem:[%s3386_s18 + $0x2e0] sm:$0xff] %v2289_v26  ;;  %v2157_v30 = vadd.f32 %v3374_v59, %v1492_v28 }
 0x153   : > { %v2774_v31 = vpop.f32.mrf.mxu0  ;;  %v2910_v32 = vpop.f32.mrf.mxu1 }
 0x154   : > { %v2222_v1 = vmax.f32 %v2089_v29, 0.0  ;;  %v2290_v33 = vmax.f32 %v2157_v30, 0.0 }
 0x155   : > { %v1225_v34 = vpop.f32.mrf.mxu0  ;;  %v1497_v35 = vpop.f32.mrf.mxu1 }
 0x156   : > { %2355 = vst [vmem:[%s3386_s18 + $0xc8] sm:$0xff] %v2222_v1  ;;  %v2090_v36 = vadd.f32 %v3374_v59, %v1225_v34  ;;  %2423 = vst [vmem:[%s3386_s18 + $0x2e8] sm:$0xff] %v2290_v33  ;;  %v2158_v37 = vadd.f32 %v3374_v59, %v1497_v35 }
 0x157   : > { %v2777_v38 = vpop.f32.mrf.mxu0  ;;  %v2913_v39 = vpop.f32.mrf.mxu1 }
 0x158   : > { %v2223_v40 = vmax.f32 %v2090_v36, 0.0  ;;  %v2291_v41 = vmax.f32 %v2158_v37, 0.0 }
 0x159   : > { %v1228_v42 = vpop.f32.mrf.mxu0  ;;  %v1500_v43 = vpop.f32.mrf.mxu1 }
 0x15a   : > { %2356 = vst [vmem:[%s3386_s18 + $0xd0] sm:$0xff] %v2223_v40  ;;  %v2091_v44 = vadd.f32 %v3374_v59, %v1228_v42  ;;  %2424 = vst [vmem:[%s3386_s18 + $0x2f0] sm:$0xff] %v2291_v41  ;;  %v2159_v45 = vadd.f32 %v3374_v59, %v1500_v43 }
 0x15b   : > { %v2778_v46 = vpop.f32.mrf.mxu0  ;;  %v2914_v47 = vpop.f32.mrf.mxu1 }
 0x15c   : > { %v2224_v48 = vmax.f32 %v2091_v44, 0.0  ;;  %v2292_v49 = vmax.f32 %v2159_v45, 0.0 }
 0x15d   : > { %v1233_v50 = vpop.f32.mrf.mxu0  ;;  %v1505_v51 = vpop.f32.mrf.mxu1 }
 0x15e   : > { %2357 = vst [vmem:[%s3386_s18 + $0xd8] sm:$0xff] %v2224_v48  ;;  %v2092_v52 = vadd.f32 %v3374_v59, %v1233_v50  ;;  %2425 = vst [vmem:[%s3386_s18 + $0x2f8] sm:$0xff] %v2292_v49  ;;  %v2160_v53 = vadd.f32 %v3374_v59, %v1505_v51 }
 0x15f   : > { %v2781_v54 = vpop.f32.mrf.mxu0  ;;  %v2917_v55 = vpop.f32.mrf.mxu1 }
 0x160   : > { %v2225_v56 = vmax.f32 %v2092_v52, 0.0  ;;  %v2293_v57 = vmax.f32 %v2160_v53, 0.0 }
 0x161   : > { %v1236_v58 = vpop.f32.mrf.mxu0  ;;  %v1508_v60 = vpop.f32.mrf.mxu1 }
 0x162   : > { %2358 = vst [vmem:[%s3386_s18 + $0xe0] sm:$0xff] %v2225_v56  ;;  %v2093_v61 = vadd.f32 %v3374_v59, %v1236_v58  ;;  %2426 = vst [vmem:[%s3386_s18 + $0x300] sm:$0xff] %v2293_v57  ;;  %v2161_v62 = vadd.f32 %v3374_v59, %v1508_v60 }
 0x163   : > { %v2782_v63 = vpop.f32.mrf.mxu0  ;;  %v2918_v0 = vpop.f32.mrf.mxu1 }
 0x164   : > { %v2226_v2 = vmax.f32 %v2093_v61, 0.0  ;;  %v2294_v3 = vmax.f32 %v2161_v62, 0.0 }
 0x165   : > { %v1241_v4 = vpop.f32.mrf.mxu0  ;;  %v1513_v5 = vpop.f32.mrf.mxu1 }
 0x166   : > { %2359 = vst [vmem:[%s3386_s18 + $0xe8] sm:$0xff] %v2226_v2  ;;  %v2094_v6 = vadd.f32 %v3374_v59, %v1241_v4  ;;  %2427 = vst [vmem:[%s3386_s18 + $0x308] sm:$0xff] %v2294_v3  ;;  %v2162_v7 = vadd.f32 %v3374_v59, %v1513_v5 }
 0x167   : > { %v2785_v8 = vpop.f32.mrf.mxu0  ;;  %v2921_v9 = vpop.f32.mrf.mxu1 }
 0x168   : > { %v2227_v10 = vmax.f32 %v2094_v6, 0.0  ;;  %v2295_v11 = vmax.f32 %v2162_v7, 0.0 }
 0x169   : > { %v1244_v12 = vpop.f32.mrf.mxu0  ;;  %v1516_v13 = vpop.f32.mrf.mxu1 }
 0x16a   : > { %2360 = vst [vmem:[%s3386_s18 + $0xf0] sm:$0xff] %v2227_v10  ;;  %v2095_v14 = vadd.f32 %v3374_v59, %v1244_v12  ;;  %2428 = vst [vmem:[%s3386_s18 + $0x310] sm:$0xff] %v2295_v11  ;;  %v2163_v15 = vadd.f32 %v3374_v59, %v1516_v13 }
 0x16b   : > { %v2786_v16 = vpop.f32.mrf.mxu0  ;;  %v2922_v17 = vpop.f32.mrf.mxu1 }
 0x16c   : > { %v2228_v18 = vmax.f32 %v2095_v14, 0.0  ;;  %v2296_v19 = vmax.f32 %v2163_v15, 0.0 }
 0x16d   : > { %v1249_v20 = vpop.f32.mrf.mxu0  ;;  %v1521_v21 = vpop.f32.mrf.mxu1 }
 0x16e   : > { %2361 = vst [vmem:[%s3386_s18 + $0xf8] sm:$0xff] %v2228_v18  ;;  %v2096_v22 = vadd.f32 %v3374_v59, %v1249_v20  ;;  %2429 = vst [vmem:[%s3386_s18 + $0x318] sm:$0xff] %v2296_v19  ;;  %v2164_v23 = vadd.f32 %v3374_v59, %v1521_v21 }
 0x16f   : > { %v2789_v24 = vpop.f32.mrf.mxu0  ;;  %v2925_v25 = vpop.f32.mrf.mxu1 }
 0x170   : > { %v2229_v26 = vmax.f32 %v2096_v22, 0.0  ;;  %v2297_v27 = vmax.f32 %v2164_v23, 0.0 }
 0x171   : > { %v1252_v28 = vpop.f32.mrf.mxu0  ;;  %v1524_v29 = vpop.f32.mrf.mxu1 }
 0x172   : > { %2362 = vst [vmem:[%s3386_s18 + $0x100] sm:$0xff] %v2229_v26  ;;  %v2097_v30 = vadd.f32 %v3374_v59, %v1252_v28  ;;  %2430 = vst [vmem:[%s3386_s18 + $0x320] sm:$0xff] %v2297_v27  ;;  %v2165_v31 = vadd.f32 %v3374_v59, %v1524_v29 }
 0x173   : > { %v2790_v32 = vpop.f32.mrf.mxu0  ;;  %v2926_v1 = vpop.f32.mrf.mxu1 }
 0x174   : > { %v2230_v33 = vmax.f32 %v2097_v30, 0.0  ;;  %v2298_v34 = vmax.f32 %v2165_v31, 0.0 }
 0x175   : > { %v1257_v35 = vpop.f32.mrf.mxu0  ;;  %v1529_v36 = vpop.f32.mrf.mxu1 }
 0x176   : > { %2363 = vst [vmem:[%s3386_s18 + $0x108] sm:$0xff] %v2230_v33  ;;  %v2098_v37 = vadd.f32 %v3374_v59, %v1257_v35  ;;  %2431 = vst [vmem:[%s3386_s18 + $0x328] sm:$0xff] %v2298_v34  ;;  %v2166_v38 = vadd.f32 %v3374_v59, %v1529_v36 }
 0x177   : > { %v2793_v39 = vpop.f32.mrf.mxu0  ;;  %v2929_v40 = vpop.f32.mrf.mxu1 }
 0x178   : > { %v2231_v41 = vmax.f32 %v2098_v37, 0.0  ;;  %v2299_v42 = vmax.f32 %v2166_v38, 0.0 }
 0x179   : > { %v1260_v43 = vpop.f32.mrf.mxu0  ;;  %v1532_v44 = vpop.f32.mrf.mxu1 }
 0x17a   : > { %2364 = vst [vmem:[%s3386_s18 + $0x110] sm:$0xff] %v2231_v41  ;;  %v2099_v45 = vadd.f32 %v3374_v59, %v1260_v43  ;;  %2432 = vst [vmem:[%s3386_s18 + $0x330] sm:$0xff] %v2299_v42  ;;  %v2167_v46 = vadd.f32 %v3374_v59, %v1532_v44 }
 0x17b   : > { %v2794_v47 = vpop.f32.mrf.mxu0  ;;  %v2930_v48 = vpop.f32.mrf.mxu1 }
 0x17c   : > { %v2232_v49 = vmax.f32 %v2099_v45, 0.0  ;;  %v2300_v50 = vmax.f32 %v2167_v46, 0.0 }
 0x17d   : > { %v1265_v51 = vpop.f32.mrf.mxu0  ;;  %v1537_v52 = vpop.f32.mrf.mxu1 }
 0x17e   : > { %2365 = vst [vmem:[%s3386_s18 + $0x118] sm:$0xff] %v2232_v49  ;;  %v2100_v53 = vadd.f32 %v3374_v59, %v1265_v51  ;;  %2433 = vst [vmem:[%s3386_s18 + $0x338] sm:$0xff] %v2300_v50  ;;  %v2168_v54 = vadd.f32 %v3374_v59, %v1537_v52 }
 0x17f   : > { %v2797_v55 = vpop.f32.mrf.mxu0  ;;  %v2933_v56 = vpop.f32.mrf.mxu1 }
 0x180   : > { %v2233_v57 = vmax.f32 %v2100_v53, 0.0  ;;  %v2301_v58 = vmax.f32 %v2168_v54, 0.0 }
 0x181   : > { %v1268_v60 = vpop.f32.mrf.mxu0  ;;  %v1540_v61 = vpop.f32.mrf.mxu1 }
 0x182   : > { %2366 = vst [vmem:[%s3386_s18 + $0x120] sm:$0xff] %v2233_v57  ;;  %v2101_v62 = vadd.f32 %v3374_v59, %v1268_v60  ;;  %2434 = vst [vmem:[%s3386_s18 + $0x340] sm:$0xff] %v2301_v58  ;;  %v2169_v63 = vadd.f32 %v3374_v59, %v1540_v61 }
 0x183   : > { %v2798_v0 = vpop.f32.mrf.mxu0  ;;  %v2934_v2 = vpop.f32.mrf.mxu1 }
 0x184   : > { %v2234_v3 = vmax.f32 %v2101_v62, 0.0  ;;  %v2302_v4 = vmax.f32 %v2169_v63, 0.0 }
 0x185   : > { %v1273_v5 = vpop.f32.mrf.mxu0  ;;  %v1545_v6 = vpop.f32.mrf.mxu1 }
 0x186   : > { %2367 = vst [vmem:[%s3386_s18 + $0x128] sm:$0xff] %v2234_v3  ;;  %v2102_v7 = vadd.f32 %v3374_v59, %v1273_v5  ;;  %2435 = vst [vmem:[%s3386_s18 + $0x348] sm:$0xff] %v2302_v4  ;;  %v2170_v8 = vadd.f32 %v3374_v59, %v1545_v6 }
 0x187   : > { %v2801_v9 = vpop.f32.mrf.mxu0  ;;  %v2937_v10 = vpop.f32.mrf.mxu1 }
 0x188   : > { %v2235_v11 = vmax.f32 %v2102_v7, 0.0  ;;  %v2303_v12 = vmax.f32 %v2170_v8, 0.0  ;;  %v3619_v8 = vld [vmem:[%s3715_s2] ss:$0 sm:$0xff] }
 0x189   : > { %v1276_v13 = vpop.f32.mrf.mxu0  ;;  %v1548_v14 = vpop.f32.mrf.mxu1 }
 0x18a   : > { %2368 = vst [vmem:[%s3386_s18 + $0x130] sm:$0xff] %v2235_v11  ;;  %v2103_v15 = vadd.f32 %v3374_v59, %v1276_v13  ;;  %2436 = vst [vmem:[%s3386_s18 + $0x350] sm:$0xff] %v2303_v12  ;;  %v2171_v16 = vadd.f32 %v3374_v59, %v1548_v14 }
 0x18b   : > { %v2802_v17 = vpop.f32.mrf.mxu0  ;;  %v2938_v18 = vpop.f32.mrf.mxu1 }
 0x18c   : > { %v2236_v19 = vmax.f32 %v2103_v15, 0.0  ;;  %v2304_v20 = vmax.f32 %v2171_v16, 0.0 }
 0x18d   : > { %v1281_v21 = vpop.f32.mrf.mxu0  ;;  %v1553_v22 = vpop.f32.mrf.mxu1 }
 0x18e   : > { %2369 = vst [vmem:[%s3386_s18 + $0x138] sm:$0xff] %v2236_v19  ;;  %v2104_v23 = vadd.f32 %v3374_v59, %v1281_v21  ;;  %2437 = vst [vmem:[%s3386_s18 + $0x358] sm:$0xff] %v2304_v20  ;;  %v2172_v24 = vadd.f32 %v3374_v59, %v1553_v22 }
 0x18f   : > { %v2805_v25 = vpop.f32.mrf.mxu0  ;;  %v2941_v26 = vpop.f32.mrf.mxu1 }
 0x190   : > { %v2237_v27 = vmax.f32 %v2104_v23, 0.0  ;;  %v2305_v28 = vmax.f32 %v2172_v24, 0.0 }
 0x191   : > { %v1284_v29 = vpop.f32.mrf.mxu0  ;;  %v1556_v30 = vpop.f32.mrf.mxu1 }
 0x192   : > { %2370 = vst [vmem:[%s3386_s18 + $0x140] sm:$0xff] %v2237_v27  ;;  %v2105_v31 = vadd.f32 %v3374_v59, %v1284_v29  ;;  %2438 = vst [vmem:[%s3386_s18 + $0x360] sm:$0xff] %v2305_v28  ;;  %v2173_v32 = vadd.f32 %v3374_v59, %v1556_v30 }
 0x193   : > { %v2806_v1 = vpop.f32.mrf.mxu0  ;;  %v2942_v33 = vpop.f32.mrf.mxu1 }
 0x194   : > { %v2238_v34 = vmax.f32 %v2105_v31, 0.0  ;;  %v2306_v35 = vmax.f32 %v2173_v32, 0.0 }
 0x195   : > { %v1289_v36 = vpop.f32.mrf.mxu0  ;;  %v1561_v37 = vpop.f32.mrf.mxu1 }
 0x196   : > { %2371 = vst [vmem:[%s3386_s18 + $0x148] sm:$0xff] %v2238_v34  ;;  %v2106_v38 = vadd.f32 %v3374_v59, %v1289_v36  ;;  %2439 = vst [vmem:[%s3386_s18 + $0x368] sm:$0xff] %v2306_v35  ;;  %v2174_v39 = vadd.f32 %v3374_v59, %v1561_v37 }
 0x197   : > { %v2809_v40 = vpop.f32.mrf.mxu0  ;;  %v2945_v41 = vpop.f32.mrf.mxu1 }
 0x198   : > { %v2239_v42 = vmax.f32 %v2106_v38, 0.0  ;;  %v2307_v43 = vmax.f32 %v2174_v39, 0.0 }
 0x199   : > { %v1292_v44 = vpop.f32.mrf.mxu0  ;;  %v1564_v45 = vpop.f32.mrf.mxu1 }
 0x19a   : > { %2372 = vst [vmem:[%s3386_s18 + $0x150] sm:$0xff] %v2239_v42  ;;  %v2107_v46 = vadd.f32 %v3374_v59, %v1292_v44  ;;  %2440 = vst [vmem:[%s3386_s18 + $0x370] sm:$0xff] %v2307_v43  ;;  %v2175_v47 = vadd.f32 %v3374_v59, %v1564_v45 }
 0x19b   : > { %v2810_v48 = vpop.f32.mrf.mxu0  ;;  %v2946_v49 = vpop.f32.mrf.mxu1 }
 0x19c   : > { %v2240_v50 = vmax.f32 %v2107_v46, 0.0  ;;  %v2308_v51 = vmax.f32 %v2175_v47, 0.0 }
 0x19d   : > { %v1297_v52 = vpop.f32.mrf.mxu0  ;;  %v1569_v53 = vpop.f32.mrf.mxu1 }
 0x19e   : > { %2373 = vst [vmem:[%s3386_s18 + $0x158] sm:$0xff] %v2240_v50  ;;  %v2108_v54 = vadd.f32 %v3374_v59, %v1297_v52  ;;  %2441 = vst [vmem:[%s3386_s18 + $0x378] sm:$0xff] %v2308_v51  ;;  %v2176_v55 = vadd.f32 %v3374_v59, %v1569_v53 }
 0x19f   : > { %v2813_v56 = vpop.f32.mrf.mxu0  ;;  %v2949_v57 = vpop.f32.mrf.mxu1 }
 0x1a0   : > { %v2241_v58 = vmax.f32 %v2108_v54, 0.0  ;;  %v2309_v60 = vmax.f32 %v2176_v55, 0.0 }
 0x1a1   : > { %v1300_v61 = vpop.f32.mrf.mxu0  ;;  %v1572_v62 = vpop.f32.mrf.mxu1 }
 0x1a2   : > { %2374 = vst [vmem:[%s3386_s18 + $0x160] sm:$0xff] %v2241_v58  ;;  %v2109_v63 = vadd.f32 %v3374_v59, %v1300_v61  ;;  %2442 = vst [vmem:[%s3386_s18 + $0x380] sm:$0xff] %v2309_v60  ;;  %v2177_v0 = vadd.f32 %v3374_v59, %v1572_v62 }
 0x1a3   : > { %v2814_v2 = vpop.f32.mrf.mxu0  ;;  %v2950_v3 = vpop.f32.mrf.mxu1 }
 0x1a4   : > { %v2242_v4 = vmax.f32 %v2109_v63, 0.0  ;;  %v2310_v5 = vmax.f32 %v2177_v0, 0.0 }
 0x1a5   : > { %v1305_v6 = vpop.f32.mrf.mxu0  ;;  %v1577_v7 = vpop.f32.mrf.mxu1 }
 0x1a6   : > { %2375 = vst [vmem:[%s3386_s18 + $0x168] sm:$0xff] %v2242_v4  ;;  %v2110_v9 = vadd.f32 %v3619_v8, %v1305_v6  ;;  %2443 = vst [vmem:[%s3386_s18 + $0x388] sm:$0xff] %v2310_v5  ;;  %v2178_v10 = vadd.f32 %v3619_v8, %v1577_v7 }
 0x1a7   : > { %v2817_v59 = vpop.f32.mrf.mxu0  ;;  %v2953_v11 = vpop.f32.mrf.mxu1 }
 0x1a8   : > { %v2243_v12 = vmax.f32 %v2110_v9, 0.0  ;;  %v2311_v13 = vmax.f32 %v2178_v10, 0.0 }
 0x1a9   : > { %v1308_v14 = vpop.f32.mrf.mxu0  ;;  %v1580_v15 = vpop.f32.mrf.mxu1 }
 0x1aa   : > { %2376 = vst [vmem:[%s3386_s18 + $0x170] sm:$0xff] %v2243_v12  ;;  %v2111_v16 = vadd.f32 %v3619_v8, %v1308_v14  ;;  %2444 = vst [vmem:[%s3386_s18 + $0x390] sm:$0xff] %v2311_v13  ;;  %v2179_v17 = vadd.f32 %v3619_v8, %v1580_v15 }
 0x1ab   : > { %v2818_v18 = vpop.f32.mrf.mxu0  ;;  %v2954_v19 = vpop.f32.mrf.mxu1 }
 0x1ac   : > { %v2244_v20 = vmax.f32 %v2111_v16, 0.0  ;;  %v2312_v21 = vmax.f32 %v2179_v17, 0.0 }
 0x1ad   : > { %v1313_v22 = vpop.f32.mrf.mxu0  ;;  %v1585_v23 = vpop.f32.mrf.mxu1 }
 0x1ae   : > { %2377 = vst [vmem:[%s3386_s18 + $0x178] sm:$0xff] %v2244_v20  ;;  %v2112_v24 = vadd.f32 %v3619_v8, %v1313_v22  ;;  %2445 = vst [vmem:[%s3386_s18 + $0x398] sm:$0xff] %v2312_v21  ;;  %v2180_v25 = vadd.f32 %v3619_v8, %v1585_v23 }
 0x1af   : > { %v2821_v26 = vpop.f32.mrf.mxu0  ;;  %v2957_v27 = vpop.f32.mrf.mxu1 }
 0x1b0   : > { %v2245_v28 = vmax.f32 %v2112_v24, 0.0  ;;  %v2313_v29 = vmax.f32 %v2180_v25, 0.0 }
 0x1b1   : > { %v1316_v30 = vpop.f32.mrf.mxu0  ;;  %v1588_v31 = vpop.f32.mrf.mxu1 }
 0x1b2   : > { %2378 = vst [vmem:[%s3386_s18 + $0x180] sm:$0xff] %v2245_v28  ;;  %v2113_v32 = vadd.f32 %v3619_v8, %v1316_v30  ;;  %2446 = vst [vmem:[%s3386_s18 + $0x3a0] sm:$0xff] %v2313_v29  ;;  %v2181_v1 = vadd.f32 %v3619_v8, %v1588_v31 }
 0x1b3   : > { %v2822_v33 = vpop.f32.mrf.mxu0  ;;  %v2958_v34 = vpop.f32.mrf.mxu1 }
 0x1b4   : > { %v2246_v35 = vmax.f32 %v2113_v32, 0.0  ;;  %v2314_v36 = vmax.f32 %v2181_v1, 0.0 }
 0x1b5   : > { %v1321_v37 = vpop.f32.mrf.mxu0  ;;  %v1593_v38 = vpop.f32.mrf.mxu1 }
 0x1b6   : > { %2379 = vst [vmem:[%s3386_s18 + $0x188] sm:$0xff] %v2246_v35  ;;  %v2114_v39 = vadd.f32 %v3619_v8, %v1321_v37  ;;  %2447 = vst [vmem:[%s3386_s18 + $0x3a8] sm:$0xff] %v2314_v36  ;;  %v2182_v40 = vadd.f32 %v3619_v8, %v1593_v38 }
 0x1b7   : > { %v2825_v41 = vpop.f32.mrf.mxu0  ;;  %v2961_v42 = vpop.f32.mrf.mxu1 }
 0x1b8   : > { %v2247_v43 = vmax.f32 %v2114_v39, 0.0  ;;  %v2315_v44 = vmax.f32 %v2182_v40, 0.0 }
 0x1b9   : > { %v1324_v45 = vpop.f32.mrf.mxu0  ;;  %v1596_v46 = vpop.f32.mrf.mxu1 }
 0x1ba   : > { %2380 = vst [vmem:[%s3386_s18 + $0x190] sm:$0xff] %v2247_v43  ;;  %v2115_v47 = vadd.f32 %v3619_v8, %v1324_v45  ;;  %2448 = vst [vmem:[%s3386_s18 + $0x3b0] sm:$0xff] %v2315_v44  ;;  %v2183_v48 = vadd.f32 %v3619_v8, %v1596_v46 }
 0x1bb   : > { %v2826_v49 = vpop.f32.mrf.mxu0  ;;  %v2962_v50 = vpop.f32.mrf.mxu1 }
 0x1bc   : > { %v2248_v51 = vmax.f32 %v2115_v47, 0.0  ;;  %v2316_v52 = vmax.f32 %v2183_v48, 0.0 }
 0x1bd   : > { %v1329_v53 = vpop.f32.mrf.mxu0  ;;  %v1601_v54 = vpop.f32.mrf.mxu1 }
 0x1be   : > { %2381 = vst [vmem:[%s3386_s18 + $0x198] sm:$0xff] %v2248_v51  ;;  %v2116_v55 = vadd.f32 %v3619_v8, %v1329_v53  ;;  %2449 = vst [vmem:[%s3386_s18 + $0x3b8] sm:$0xff] %v2316_v52  ;;  %v2184_v56 = vadd.f32 %v3619_v8, %v1601_v54 }
 0x1bf   : > { %v2829_v57 = vpop.f32.mrf.mxu0  ;;  %v2965_v58 = vpop.f32.mrf.mxu1 }
 0x1c0   : > { %v2249_v60 = vmax.f32 %v2116_v55, 0.0  ;;  %v2317_v61 = vmax.f32 %v2184_v56, 0.0 }
 0x1c1   : > { %v1332_v62 = vpop.f32.mrf.mxu0  ;;  %v1604_v63 = vpop.f32.mrf.mxu1 }
 0x1c2   : > { %2382 = vst [vmem:[%s3386_s18 + $0x1a0] sm:$0xff] %v2249_v60  ;;  %v2117_v0 = vadd.f32 %v3619_v8, %v1332_v62  ;;  %2450 = vst [vmem:[%s3386_s18 + $0x3c0] sm:$0xff] %v2317_v61  ;;  %v2185_v2 = vadd.f32 %v3619_v8, %v1604_v63 }
 0x1c3   : > { %v2830_v3 = vpop.f32.mrf.mxu0  ;;  %v2966_v4 = vpop.f32.mrf.mxu1 }
 0x1c4   : > { %v2250_v5 = vmax.f32 %v2117_v0, 0.0  ;;  %v2318_v6 = vmax.f32 %v2185_v2, 0.0 }
 0x1c5   : > { %v1337_v7 = vpop.f32.mrf.mxu0  ;;  %v1609_v9 = vpop.f32.mrf.mxu1 }
 0x1c6   : > { %2383 = vst [vmem:[%s3386_s18 + $0x1a8] sm:$0xff] %v2250_v5  ;;  %v2118_v10 = vadd.f32 %v3619_v8, %v1337_v7  ;;  %2451 = vst [vmem:[%s3386_s18 + $0x3c8] sm:$0xff] %v2318_v6  ;;  %v2186_v59 = vadd.f32 %v3619_v8, %v1609_v9 }
 0x1c7   : > { %v2833_v11 = vpop.f32.mrf.mxu0  ;;  %v2969_v12 = vpop.f32.mrf.mxu1 }
 0x1c8   : > { %v2251_v13 = vmax.f32 %v2118_v10, 0.0  ;;  %v2319_v14 = vmax.f32 %v2186_v59, 0.0 }
 0x1c9   : > { %v1340_v15 = vpop.f32.mrf.mxu0  ;;  %v1612_v16 = vpop.f32.mrf.mxu1 }
 0x1ca   : > { %2384 = vst [vmem:[%s3386_s18 + $0x1b0] sm:$0xff] %v2251_v13  ;;  %v2119_v17 = vadd.f32 %v3619_v8, %v1340_v15  ;;  %2452 = vst [vmem:[%s3386_s18 + $0x3d0] sm:$0xff] %v2319_v14  ;;  %v2187_v18 = vadd.f32 %v3619_v8, %v1612_v16 }
 0x1cb   : > { %v2834_v19 = vpop.f32.mrf.mxu0  ;;  %v2970_v20 = vpop.f32.mrf.mxu1 }
 0x1cc   : > { %v2252_v21 = vmax.f32 %v2119_v17, 0.0  ;;  %v2320_v22 = vmax.f32 %v2187_v18, 0.0 }
 0x1cd   : > { %v1345_v23 = vpop.f32.mrf.mxu0  ;;  %v1617_v24 = vpop.f32.mrf.mxu1 }
 0x1ce   : > { %2385 = vst [vmem:[%s3386_s18 + $0x1b8] sm:$0xff] %v2252_v21  ;;  %v2120_v25 = vadd.f32 %v3619_v8, %v1345_v23  ;;  %2453 = vst [vmem:[%s3386_s18 + $0x3d8] sm:$0xff] %v2320_v22  ;;  %v2188_v26 = vadd.f32 %v3619_v8, %v1617_v24 }
 0x1cf   : > { %v2837_v27 = vpop.f32.mrf.mxu0  ;;  %v2973_v28 = vpop.f32.mrf.mxu1 }
 0x1d0   : > { %v2253_v29 = vmax.f32 %v2120_v25, 0.0  ;;  %v2321_v30 = vmax.f32 %v2188_v26, 0.0 }
 0x1d1   : > { %v1348_v31 = vpop.f32.mrf.mxu0  ;;  %v1620_v32 = vpop.f32.mrf.mxu1 }
 0x1d2   : > { %2386 = vst [vmem:[%s3386_s18 + $0x1c0] sm:$0xff] %v2253_v29  ;;  %v2121_v1 = vadd.f32 %v3619_v8, %v1348_v31  ;;  %2454 = vst [vmem:[%s3386_s18 + $0x3e0] sm:$0xff] %v2321_v30  ;;  %v2189_v33 = vadd.f32 %v3619_v8, %v1620_v32 }
 0x1d3   : > { %v2838_v34 = vpop.f32.mrf.mxu0  ;;  %v2974_v35 = vpop.f32.mrf.mxu1 }
 0x1d4   : > { %v2254_v36 = vmax.f32 %v2121_v1, 0.0  ;;  %v2322_v37 = vmax.f32 %v2189_v33, 0.0 }
 0x1d5   : > { %v1353_v38 = vpop.f32.mrf.mxu0  ;;  %v1625_v39 = vpop.f32.mrf.mxu1 }
 0x1d6   : > { %2387 = vst [vmem:[%s3386_s18 + $0x1c8] sm:$0xff] %v2254_v36  ;;  %v2122_v40 = vadd.f32 %v3619_v8, %v1353_v38  ;;  %2455 = vst [vmem:[%s3386_s18 + $0x3e8] sm:$0xff] %v2322_v37  ;;  %v2190_v41 = vadd.f32 %v3619_v8, %v1625_v39 }
 0x1d7   : > { %v2841_v42 = vpop.f32.mrf.mxu0  ;;  %v2977_v43 = vpop.f32.mrf.mxu1 }
 0x1d8   : > { %v2255_v44 = vmax.f32 %v2122_v40, 0.0  ;;  %v2323_v45 = vmax.f32 %v2190_v41, 0.0 }
 0x1d9   : > { %v1356_v46 = vpop.f32.mrf.mxu0  ;;  %v1628_v47 = vpop.f32.mrf.mxu1 }
 0x1da   : > { %2388 = vst [vmem:[%s3386_s18 + $0x1d0] sm:$0xff] %v2255_v44  ;;  %v2123_v48 = vadd.f32 %v3619_v8, %v1356_v46  ;;  %2456 = vst [vmem:[%s3386_s18 + $0x3f0] sm:$0xff] %v2323_v45  ;;  %v2191_v49 = vadd.f32 %v3619_v8, %v1628_v47 }
 0x1db   : > { %v2842_v50 = vpop.f32.mrf.mxu0  ;;  %v2978_v51 = vpop.f32.mrf.mxu1 }
 0x1dc   : > { %v2256_v52 = vmax.f32 %v2123_v48, 0.0  ;;  %v2324_v53 = vmax.f32 %v2191_v49, 0.0 }
 0x1dd   : > { %v1361_v54 = vpop.f32.mrf.mxu0  ;;  %v1633_v55 = vpop.f32.mrf.mxu1 }
 0x1de   : > { %2389 = vst [vmem:[%s3386_s18 + $0x1d8] sm:$0xff] %v2256_v52  ;;  %v2124_v56 = vadd.f32 %v3619_v8, %v1361_v54  ;;  %2457 = vst [vmem:[%s3386_s18 + $0x3f8] sm:$0xff] %v2324_v53  ;;  %v2192_v57 = vadd.f32 %v3619_v8, %v1633_v55 }
 0x1df   : > { %v2845_v58 = vpop.f32.mrf.mxu0  ;;  %v2981_v60 = vpop.f32.mrf.mxu1 }
 0x1e0   : > { %v2257_v61 = vmax.f32 %v2124_v56, 0.0  ;;  %v2325_v62 = vmax.f32 %v2192_v57, 0.0 }
 0x1e1   : > { %v1364_v63 = vpop.f32.mrf.mxu0  ;;  %v1636_v0 = vpop.f32.mrf.mxu1 }
 0x1e2   : > { %2390 = vst [vmem:[%s3386_s18 + $0x1e0] sm:$0xff] %v2257_v61  ;;  %v2125_v2 = vadd.f32 %v3619_v8, %v1364_v63  ;;  %2458 = vst [vmem:[%s3386_s18 + $0x400] sm:$0xff] %v2325_v62  ;;  %v2193_v3 = vadd.f32 %v3619_v8, %v1636_v0 }
 0x1e3   : > { %v2846_v4 = vpop.f32.mrf.mxu0  ;;  %v2982_v5 = vpop.f32.mrf.mxu1 }
 0x1e4   : > { %v2258_v6 = vmax.f32 %v2125_v2, 0.0  ;;  %v2326_v7 = vmax.f32 %v2193_v3, 0.0 }
 0x1e5   : > { %v1369_v9 = vpop.f32.mrf.mxu0  ;;  %v1641_v10 = vpop.f32.mrf.mxu1 }
 0x1e6   : > { %2391 = vst [vmem:[%s3386_s18 + $0x1e8] sm:$0xff] %v2258_v6  ;;  %v2126_v59 = vadd.f32 %v3619_v8, %v1369_v9  ;;  %2459 = vst [vmem:[%s3386_s18 + $0x408] sm:$0xff] %v2326_v7  ;;  %v2194_v11 = vadd.f32 %v3619_v8, %v1641_v10 }
 0x1e7   : > { %v2849_v12 = vpop.f32.mrf.mxu0  ;;  %v2985_v13 = vpop.f32.mrf.mxu1 }
 0x1e8   : > { %v2259_v14 = vmax.f32 %v2126_v59, 0.0  ;;  %v2327_v15 = vmax.f32 %v2194_v11, 0.0 }
 0x1e9   : > { %v1372_v16 = vpop.f32.mrf.mxu0  ;;  %v1644_v17 = vpop.f32.mrf.mxu1 }
 0x1ea   : > { %2392 = vst [vmem:[%s3386_s18 + $0x1f0] sm:$0xff] %v2259_v14  ;;  %v2127_v18 = vadd.f32 %v3619_v8, %v1372_v16  ;;  %2460 = vst [vmem:[%s3386_s18 + $0x410] sm:$0xff] %v2327_v15  ;;  %v2195_v19 = vadd.f32 %v3619_v8, %v1644_v17 }
 0x1eb   : > { %v2850_v20 = vpop.f32.mrf.mxu0  ;;  %v2986_v21 = vpop.f32.mrf.mxu1 }
 0x1ec   : > { %v2260_v22 = vmax.f32 %v2127_v18, 0.0  ;;  %v2328_v23 = vmax.f32 %v2195_v19, 0.0 }
 0x1ed   : > { %v1377_v24 = vpop.f32.mrf.mxu0  ;;  %v1649_v25 = vpop.f32.mrf.mxu1 }
 0x1ee   : > { %2393 = vst [vmem:[%s3386_s18 + $0x1f8] sm:$0xff] %v2260_v22  ;;  %v2128_v26 = vadd.f32 %v3619_v8, %v1377_v24  ;;  %2461 = vst [vmem:[%s3386_s18 + $0x418] sm:$0xff] %v2328_v23  ;;  %v2196_v27 = vadd.f32 %v3619_v8, %v1649_v25 }
 0x1ef   : > { %v2853_v28 = vpop.f32.mrf.mxu0  ;;  %v2989_v29 = vpop.f32.mrf.mxu1 }
 0x1f0   : > { %v2261_v30 = vmax.f32 %v2128_v26, 0.0  ;;  %v2329_v31 = vmax.f32 %v2196_v27, 0.0 }
 0x1f1   : > { %v1380_v32 = vpop.f32.mrf.mxu0  ;;  %v1652_v1 = vpop.f32.mrf.mxu1 }
 0x1f2   : > { %2394 = vst [vmem:[%s3386_s18 + $0x200] sm:$0xff] %v2261_v30  ;;  %v2129_v33 = vadd.f32 %v3619_v8, %v1380_v32  ;;  %2462 = vst [vmem:[%s3386_s18 + $0x420] sm:$0xff] %v2329_v31 }
 0x1f3   : > { %v2854_v34 = vpop.f32.mrf.mxu0  ;;  %v2990_v35 = vpop.f32.mrf.mxu1 }
 0x1f4   : > { %v2262_v36 = vmax.f32 %v2129_v33, 0.0 }
 0x1f5   : > { %v1385_v37 = vpop.f32.mrf.mxu0 }
 0x1f6   : > { %2395 = vst [vmem:[%s3386_s18 + $0x208] sm:$0xff] %v2262_v36  ;;  %v2130_v38 = vadd.f32 %v3619_v8, %v1385_v37 }
 0x1f7   : > { %v2857_v39 = vpop.f32.mrf.mxu0 }
 0x1f8   : > { %v2263_v40 = vmax.f32 %v2130_v38, 0.0 }
 0x1f9   : > { %v1388_v41 = vpop.f32.mrf.mxu0 }
 0x1fa   : > { %2396 = vst [vmem:[%s3386_s18 + $0x210] sm:$0xff] %v2263_v40  ;;  %v2131_v42 = vadd.f32 %v3619_v8, %v1388_v41 }
 0x1fb   : > { %v2858_v43 = vpop.f32.mrf.mxu0 }
 0x1fc   : > { %v2264_v44 = vmax.f32 %v2131_v42, 0.0 }
 0x1fe   : > { %2397 = vst [vmem:[%s3386_s18 + $0x218] sm:$0xff] %v2264_v44 }
 0x1ff PF: > { %s13_s14 = sadd.s32 1, %s3131_s14   ;;  %s3717_s12 = smov %s3127_s13 }
 0x200   : > { %p10_p5 = scmp.ge.s32.totalorder %s13_s14, 6   ;;  %s3718_s13 = smov %s3720_s15 }
 0x202   :  { %12 = sbr.rel (!%p10_p5) target bundleno = 2 (0x2), region = 73 }

</bundles_post_ra>
